<compile_context>
chip_gen: v7x
topology: tpu7x:2x2x1
jax: 0.10.0
libtpu: 0.0.40
codegen_flags: <defaults>
</compile_context>

<pallas_src>
import functools

import jax
import jax.numpy as jnp
from jax.experimental import pallas as pl
from jax.experimental.pallas import tpu as pltpu


# ---------------------------------------------------------------------------
# Kernel: everything fused, single invocation, whole problem resident in VMEM
# ---------------------------------------------------------------------------
def _fused_kernel(x1_ref, x2_ref, w_ref, gamma_ref, beta_ref, out_ref, *,
                  batch, ho, wo, stride, eps, mxu_dtype):
    wfull = x1_ref.shape[2]
    cout = w_ref.shape[1]
    w = w_ref[...]

    if stride != 1:
        # (wo, wfull) 0/1 selection matrix: picks every `stride`-th W column
        # on the MXU (sel @ row).  MXU is idle at this size -> effectively free.
        wi = jax.lax.broadcasted_iota(jnp.int32, (wo, wfull), 0)
        wj = jax.lax.broadcasted_iota(jnp.int32, (wo, wfull), 1)
        sel = jnp.where(wj == stride * wi, 1.0, 0.0).astype(mxu_dtype)

    # ---- pass 1: y = relu(x1+x2)[::s, ::s] @ W, stage into out_ref,
    #              accumulate per-channel sums -------------------------------
    acc = jnp.zeros((wo, cout), jnp.float32)
    for bi in range(batch):
        for a in range(ho):
            r = (x1_ref[bi, stride * a, :, :].astype(jnp.float32)
                 + x2_ref[bi, stride * a, :, :].astype(jnp.float32))
            z = jnp.maximum(r, 0.0)                                # (wfull, cin)
            if stride != 1:
                z = jnp.dot(sel, z.astype(mxu_dtype),
                            preferred_element_type=jnp.float32)    # (wo, cin)
            y = jnp.dot(z.astype(mxu_dtype), w,
                        preferred_element_type=jnp.float32)        # (wo, cout)
            out_ref[bi, a, :, :] = y          # stage un-normalized conv output
            acc = acc + y
    inv_m = 1.0 / float(batch * ho * wo)
    mean = jnp.sum(acc, axis=0, keepdims=True) * inv_m             # (1, cout)

    # ---- pass 2: centered (two-pass) variance over the staged y ------------
    sq = jnp.zeros((wo, cout), jnp.float32)
    for bi in range(batch):
        for a in range(ho):
            d = out_ref[bi, a, :, :] - mean
            sq = sq + d * d
    var = jnp.sum(sq, axis=0, keepdims=True) * inv_m               # biased var
    inv_std = jax.lax.rsqrt(var + eps)
    scale = gamma_ref[...] * inv_std                               # (1, cout)
    shift = beta_ref[...] - mean * scale

    # ---- pass 3: apply the folded BN affine in place ------------------------
    for bi in range(batch):
        for a in range(ho):
            out_ref[bi, a, :, :] = out_ref[bi, a, :, :] * scale + shift


# ---------------------------------------------------------------------------
# pallas_call wrapper (NHWC, single block)
# ---------------------------------------------------------------------------
def _fused_nhwc(x1_nhwc, x2_nhwc, w_mat, gamma2, beta2, *, stride, eps,
                mxu_dtype):
    n, h, w, cin = x1_nhwc.shape
    ho = (h - 1) // stride + 1
    wo = (w - 1) // stride + 1
    cout = w_mat.shape[1]

    kernel = functools.partial(_fused_kernel, batch=n, ho=ho, wo=wo,
                               stride=stride, eps=eps, mxu_dtype=mxu_dtype)
    full4 = lambda i: (0, 0, 0, 0)
    full2 = lambda i: (0, 0)

    return pl.pallas_call(
        kernel,
        out_shape=jax.ShapeDtypeStruct((n, ho, wo, cout), jnp.float32),
        grid=(1,),
        in_specs=[
            pl.BlockSpec((n, h, w, cin), full4),      # x1 (full block)
            pl.BlockSpec((n, h, w, cin), full4),      # x2 (full block)
            pl.BlockSpec((cin, cout), full2),         # conv weight
            pl.BlockSpec((1, cout), full2),           # gamma
            pl.BlockSpec((1, cout), full2),           # beta
        ],
        out_specs=pl.BlockSpec((n, ho, wo, cout), full4),
        compiler_params=pltpu.CompilerParams(
            dimension_semantics=("arbitrary",)),
    )(x1_nhwc, x2_nhwc, w_mat, gamma2, beta2)


def _prep_params(conv_w, bn_gamma, bn_beta, mxu_dtype):
    cout, cin = conv_w.shape[0], conv_w.shape[1]
    w_mat = jnp.transpose(conv_w.reshape(cout, cin), (1, 0)).astype(mxu_dtype)
    gamma2 = bn_gamma.reshape(1, cout).astype(jnp.float32)
    beta2 = bn_beta.reshape(1, cout).astype(jnp.float32)
    return w_mat, gamma2, beta2


# ---------------------------------------------------------------------------
# Public entry points
# ---------------------------------------------------------------------------
def fused_forward_nhwc(x15_nhwc, x23_nhwc, conv_w, bn_gamma, bn_beta, *,
                       stride=2, eps=1e-5, use_bf16_matmul=True):
    """NHWC entry point: (N,H,W,Cin) -> (N,Ho,Wo,Cout).  Zero XLA glue:
    add/relu, stride-2 subsample, conv and batch-stat BN all inside one
    pallas_call."""
    mxu_dtype = jnp.bfloat16 if use_bf16_matmul else jnp.float32
    w_mat, gamma2, beta2 = _prep_params(conv_w, bn_gamma, bn_beta, mxu_dtype)
    return _fused_nhwc(x15_nhwc, x23_nhwc, w_mat, gamma2, beta2,
                       stride=stride, eps=eps, mxu_dtype=mxu_dtype)


def fused_forward(x15_nchw, x23_nchw, conv_w, bn_gamma, bn_beta, *,
                  stride=2, eps=1e-5, use_bf16_matmul=True):
    """PyTorch-layout adapter: NCHW in / NCHW out (matches module M).

    NCHW needs a layout change somewhere; it is done on the 4x-smaller
    subsampled tensor (slice+transpose fuse into one XLA copy per input) and
    the kernel then runs with stride=1.  Prefer fused_forward_nhwc to avoid
    these copies entirely.
    """
    mxu_dtype = jnp.bfloat16 if use_bf16_matmul else jnp.float32
    w_mat, gamma2, beta2 = _prep_params(conv_w, bn_gamma, bn_beta, mxu_dtype)

    def to_nhwc_small(x):
        return jnp.transpose(x[:, :, ::stride, ::stride], (0, 2, 3, 1))

    out_nhwc = _fused_nhwc(to_nhwc_small(x15_nchw), to_nhwc_small(x23_nchw),
                           w_mat, gamma2, beta2,
                           stride=1, eps=eps, mxu_dtype=mxu_dtype)
    return jnp.transpose(out_nhwc, (0, 3, 1, 2))


if __name__ == "__main__":
    # Shapes from the original module: (1, 72, 56, 56) -> (1, 168, 28, 28).
    N, Cin, H, W = 1, 72, 56, 56
    Cout = 168

    key = jax.random.PRNGKey(0)
    k1, k2, k3, k4, k5 = jax.random.split(key, 5)
    x15 = jax.random.normal(k1, (N, Cin, H, W), dtype=jnp.float32)
    x23 = jax.random.normal(k2, (N, Cin, H, W), dtype=jnp.float32)

    # Deterministic synthetic parameters (not a checkpoint load).
    conv_w = jax.random.normal(k3, (Cout, Cin, 1, 1), dtype=jnp.float32) * 0.05
    bn_gamma = 1.0 + 0.1 * jax.random.normal(k4, (Cout,), dtype=jnp.float32)
    bn_beta = 0.1 * jax.random.normal(k5, (Cout,), dtype=jnp.float32)

    # Pure-JAX f32 reference of the module's forward (batch-statistics BN).
    x = jnp.maximum(x15 + x23, 0.0)[:, :, ::2, ::2]
    y = jnp.einsum("nchw,oc->nohw", x, conv_w.reshape(Cout, Cin),
                   precision=jax.lax.Precision.HIGHEST)
    mean = jnp.mean(y, axis=(0, 2, 3), keepdims=True)
    var = jnp.mean((y - mean) ** 2, axis=(0, 2, 3), keepdims=True)
    ref = ((y - mean) * jax.lax.rsqrt(var + 1e-5)
           * bn_gamma.reshape(1, -1, 1, 1) + bn_beta.reshape(1, -1, 1, 1))

    # 1) f32 MXU path: exact-parity check.
    fwd_f32 = jax.jit(functools.partial(fused_forward, use_bf16_matmul=False))
    out_f32 = jax.block_until_ready(fwd_f32(x15, x23, conv_w, bn_gamma, bn_beta))
    assert out_f32.shape == (N, Cout, H // 2, W // 2), out_f32.shape
    assert jnp.allclose(out_f32, ref, atol=2e-3, rtol=2e-3), \
        float(jnp.max(jnp.abs(out_f32 - ref)))

    # 2) Default path (bf16 MXU operands, f32 accumulation).
    fwd = jax.jit(fused_forward)
    out = jax.block_until_ready(fwd(x15, x23, conv_w, bn_gamma, bn_beta))
    assert jnp.allclose(out, ref, atol=3e-2, rtol=3e-2), \
        float(jnp.max(jnp.abs(out - ref)))

    # 3) Preferred zero-glue NHWC entry point (fused stride-2 subsample).
    x15_nhwc = jnp.transpose(x15, (0, 2, 3, 1))
    x23_nhwc = jnp.transpose(x23, (0, 2, 3, 1))
    fwd_nhwc = jax.jit(fused_forward_nhwc)
    out_nhwc = jax.block_until_ready(
        fwd_nhwc(x15_nhwc, x23_nhwc, conv_w, bn_gamma, bn_beta))
    ref_nhwc = jnp.transpose(ref, (0, 2, 3, 1))
    assert out_nhwc.shape == (N, H // 2, W // 2, Cout), out_nhwc.shape
    assert jnp.allclose(out_nhwc, ref_nhwc, atol=3e-2, rtol=3e-2), \
        float(jnp.max(jnp.abs(out_nhwc - ref_nhwc)))

    print("KERNEL_OK")
</pallas_src>

<mosaic_0001>
module attributes {stable_mosaic.version = 11 : i64} {
  func.func @_fused_kernel(%arg0: i32, %arg1: memref<1x28x28x72xf32, #tpu.memory_space<vmem>>, %arg2: memref<1x28x28x72xf32, #tpu.memory_space<vmem>>, %arg3: memref<72x168xf32, #tpu.memory_space<vmem>>, %arg4: memref<1x168xf32, #tpu.memory_space<vmem>>, %arg5: memref<1x168xf32, #tpu.memory_space<vmem>>, %arg6: memref<1x28x28x168xf32, #tpu.memory_space<vmem>>) attributes {dimension_semantics = [#tpu.dimension_semantics<arbitrary>], iteration_bounds = array<i64: 1>, scalar_prefetch = 0 : i64, scratch_operands = 0 : i64, tpu.core_type = #tpu.core_type<tc>, window_params = [{pipeline_mode = #tpu.pipeline_mode<synchronous>, transform_indices = @transform_0, window_bounds = array<i64: 1, 28, 28, 72>}, {pipeline_mode = #tpu.pipeline_mode<synchronous>, transform_indices = @transform_1, window_bounds = array<i64: 1, 28, 28, 72>}, {pipeline_mode = #tpu.pipeline_mode<synchronous>, transform_indices = @transform_2, window_bounds = array<i64: 72, 168>}, {pipeline_mode = #tpu.pipeline_mode<synchronous>, transform_indices = @transform_3, window_bounds = array<i64: 1, 168>}, {pipeline_mode = #tpu.pipeline_mode<synchronous>, transform_indices = @transform_4, window_bounds = array<i64: 1, 168>}, {pipeline_mode = #tpu.pipeline_mode<synchronous>, transform_indices = @transform_5, window_bounds = array<i64: 1, 28, 28, 168>}]} {
    %c0 = arith.constant 0 : index
    %c0_0 = arith.constant 0 : index
    %0 = vector.load %arg3[%c0, %c0_0] : memref<72x168xf32, #tpu.memory_space<vmem>>, vector<72x168xf32>
    %cst = arith.constant 0.000000e+00 : f32
    %1 = vector.broadcast %cst : f32 to vector<28x168xf32>
    %c0_1 = arith.constant 0 : index
    %c0_2 = arith.constant 0 : index
    %c0_3 = arith.constant 0 : index
    %c0_4 = arith.constant 0 : index
    %2 = vector.load %arg1[%c0_1, %c0_2, %c0_3, %c0_4] : memref<1x28x28x72xf32, #tpu.memory_space<vmem>>, vector<1x1x28x72xf32>
    %3 = vector.shape_cast %2 : vector<1x1x28x72xf32> to vector<28x72xf32>
    %c0_5 = arith.constant 0 : index
    %c0_6 = arith.constant 0 : index
    %c0_7 = arith.constant 0 : index
    %c0_8 = arith.constant 0 : index
    %4 = vector.load %arg2[%c0_5, %c0_6, %c0_7, %c0_8] : memref<1x28x28x72xf32, #tpu.memory_space<vmem>>, vector<1x1x28x72xf32>
    %5 = vector.shape_cast %4 : vector<1x1x28x72xf32> to vector<28x72xf32>
    %6 = arith.addf %3, %5 : vector<28x72xf32>
    %cst_9 = arith.constant 0.000000e+00 : f32
    %7 = vector.broadcast %cst_9 : f32 to vector<28x72xf32>
    %8 = arith.maximumf %6, %7 : vector<28x72xf32>
    %cst_10 = arith.constant dense<0.000000e+00> : vector<28x168xf32>
    %9 = tpu.matmul %8, %0, %cst_10 {dimension_numbers = #tpu.dot_dimension_numbers<[1], [0], [0], [1], [0, 0, 1, 1], [], []>} : vector<28x72xf32>, vector<72x168xf32>, vector<28x168xf32> -> vector<28x168xf32>
    %c0_11 = arith.constant 0 : index
    %c0_12 = arith.constant 0 : index
    %c0_13 = arith.constant 0 : index
    %c0_14 = arith.constant 0 : index
    %10 = vector.load %arg6[%c0_11, %c0_12, %c0_13, %c0_14] : memref<1x28x28x168xf32, #tpu.memory_space<vmem>>, vector<1x1x28x168xf32>
    %11 = vector.shape_cast %10 : vector<1x1x28x168xf32> to vector<28x168xf32>
    %12 = vector.shape_cast %9 : vector<28x168xf32> to vector<1x1x28x168xf32>
    tpu.vector_store %arg6[%c0_11, %c0_12, %c0_13, %c0_14], %12 {strides = array<i32>} : memref<1x28x28x168xf32, #tpu.memory_space<vmem>>, vector<1x1x28x168xf32>,
    %13 = arith.addf %1, %9 : vector<28x168xf32>
    %c0_15 = arith.constant 0 : index
    %c1 = arith.constant 1 : index
    %c0_16 = arith.constant 0 : index
    %c0_17 = arith.constant 0 : index
    %14 = vector.load %arg1[%c0_15, %c1, %c0_16, %c0_17] : memref<1x28x28x72xf32, #tpu.memory_space<vmem>>, vector<1x1x28x72xf32>
    %15 = vector.shape_cast %14 : vector<1x1x28x72xf32> to vector<28x72xf32>
    %c0_18 = arith.constant 0 : index
    %c1_19 = arith.constant 1 : index
    %c0_20 = arith.constant 0 : index
    %c0_21 = arith.constant 0 : index
    %16 = vector.load %arg2[%c0_18, %c1_19, %c0_20, %c0_21] : memref<1x28x28x72xf32, #tpu.memory_space<vmem>>, vector<1x1x28x72xf32>
    %17 = vector.shape_cast %16 : vector<1x1x28x72xf32> to vector<28x72xf32>
    %18 = arith.addf %15, %17 : vector<28x72xf32>
    %cst_22 = arith.constant 0.000000e+00 : f32
    %19 = vector.broadcast %cst_22 : f32 to vector<28x72xf32>
    %20 = arith.maximumf %18, %19 : vector<28x72xf32>
    %cst_23 = arith.constant dense<0.000000e+00> : vector<28x168xf32>
    %21 = tpu.matmul %20, %0, %cst_23 {dimension_numbers = #tpu.dot_dimension_numbers<[1], [0], [0], [1], [0, 0, 1, 1], [], []>} : vector<28x72xf32>, vector<72x168xf32>, vector<28x168xf32> -> vector<28x168xf32>
    %c0_24 = arith.constant 0 : index
    %c1_25 = arith.constant 1 : index
    %c0_26 = arith.constant 0 : index
    %c0_27 = arith.constant 0 : index
    %22 = vector.load %arg6[%c0_24, %c1_25, %c0_26, %c0_27] : memref<1x28x28x168xf32, #tpu.memory_space<vmem>>, vector<1x1x28x168xf32>
    %23 = vector.shape_cast %22 : vector<1x1x28x168xf32> to vector<28x168xf32>
    %24 = vector.shape_cast %21 : vector<28x168xf32> to vector<1x1x28x168xf32>
    tpu.vector_store %arg6[%c0_24, %c1_25, %c0_26, %c0_27], %24 {strides = array<i32>} : memref<1x28x28x168xf32, #tpu.memory_space<vmem>>, vector<1x1x28x168xf32>,
    %25 = arith.addf %13, %21 : vector<28x168xf32>
    %c0_28 = arith.constant 0 : index
    %c2 = arith.constant 2 : index
    %c0_29 = arith.constant 0 : index
    %c0_30 = arith.constant 0 : index
    %26 = vector.load %arg1[%c0_28, %c2, %c0_29, %c0_30] : memref<1x28x28x72xf32, #tpu.memory_space<vmem>>, vector<1x1x28x72xf32>
    %27 = vector.shape_cast %26 : vector<1x1x28x72xf32> to vector<28x72xf32>
    %c0_31 = arith.constant 0 : index
    %c2_32 = arith.constant 2 : index
    %c0_33 = arith.constant 0 : index
    %c0_34 = arith.constant 0 : index
    %28 = vector.load %arg2[%c0_31, %c2_32, %c0_33, %c0_34] : memref<1x28x28x72xf32, #tpu.memory_space<vmem>>, vector<1x1x28x72xf32>
    %29 = vector.shape_cast %28 : vector<1x1x28x72xf32> to vector<28x72xf32>
    %30 = arith.addf %27, %29 : vector<28x72xf32>
    %cst_35 = arith.constant 0.000000e+00 : f32
    %31 = vector.broadcast %cst_35 : f32 to vector<28x72xf32>
    %32 = arith.maximumf %30, %31 : vector<28x72xf32>
    %cst_36 = arith.constant dense<0.000000e+00> : vector<28x168xf32>
    %33 = tpu.matmul %32, %0, %cst_36 {dimension_numbers = #tpu.dot_dimension_numbers<[1], [0], [0], [1], [0, 0, 1, 1], [], []>} : vector<28x72xf32>, vector<72x168xf32>, vector<28x168xf32> -> vector<28x168xf32>
    %c0_37 = arith.constant 0 : index
    %c2_38 = arith.constant 2 : index
    %c0_39 = arith.constant 0 : index
    %c0_40 = arith.constant 0 : index
    %34 = vector.load %arg6[%c0_37, %c2_38, %c0_39, %c0_40] : memref<1x28x28x168xf32, #tpu.memory_space<vmem>>, vector<1x1x28x168xf32>
    %35 = vector.shape_cast %34 : vector<1x1x28x168xf32> to vector<28x168xf32>
    %36 = vector.shape_cast %33 : vector<28x168xf32> to vector<1x1x28x168xf32>
    tpu.vector_store %arg6[%c0_37, %c2_38, %c0_39, %c0_40], %36 {strides = array<i32>} : memref<1x28x28x168xf32, #tpu.memory_space<vmem>>, vector<1x1x28x168xf32>,
    %37 = arith.addf %25, %33 : vector<28x168xf32>
    %c0_41 = arith.constant 0 : index
    %c3 = arith.constant 3 : index
    %c0_42 = arith.constant 0 : index
    %c0_43 = arith.constant 0 : index
    %38 = vector.load %arg1[%c0_41, %c3, %c0_42, %c0_43] : memref<1x28x28x72xf32, #tpu.memory_space<vmem>>, vector<1x1x28x72xf32>
    %39 = vector.shape_cast %38 : vector<1x1x28x72xf32> to vector<28x72xf32>
    %c0_44 = arith.constant 0 : index
    %c3_45 = arith.constant 3 : index
    %c0_46 = arith.constant 0 : index
    %c0_47 = arith.constant 0 : index
    %40 = vector.load %arg2[%c0_44, %c3_45, %c0_46, %c0_47] : memref<1x28x28x72xf32, #tpu.memory_space<vmem>>, vector<1x1x28x72xf32>
    %41 = vector.shape_cast %40 : vector<1x1x28x72xf32> to vector<28x72xf32>
    %42 = arith.addf %39, %41 : vector<28x72xf32>
    %cst_48 = arith.constant 0.000000e+00 : f32
    %43 = vector.broadcast %cst_48 : f32 to vector<28x72xf32>
    %44 = arith.maximumf %42, %43 : vector<28x72xf32>
    %cst_49 = arith.constant dense<0.000000e+00> : vector<28x168xf32>
    %45 = tpu.matmul %44, %0, %cst_49 {dimension_numbers = #tpu.dot_dimension_numbers<[1], [0], [0], [1], [0, 0, 1, 1], [], []>} : vector<28x72xf32>, vector<72x168xf32>, vector<28x168xf32> -> vector<28x168xf32>
    %c0_50 = arith.constant 0 : index
    %c3_51 = arith.constant 3 : index
    %c0_52 = arith.constant 0 : index
    %c0_53 = arith.constant 0 : index
    %46 = vector.load %arg6[%c0_50, %c3_51, %c0_52, %c0_53] : memref<1x28x28x168xf32, #tpu.memory_space<vmem>>, vector<1x1x28x168xf32>
    %47 = vector.shape_cast %46 : vector<1x1x28x168xf32> to vector<28x168xf32>
    %48 = vector.shape_cast %45 : vector<28x168xf32> to vector<1x1x28x168xf32>
    tpu.vector_store %arg6[%c0_50, %c3_51, %c0_52, %c0_53], %48 {strides = array<i32>} : memref<1x28x28x168xf32, #tpu.memory_space<vmem>>, vector<1x1x28x168xf32>,
    %49 = arith.addf %37, %45 : vector<28x168xf32>
    %c0_54 = arith.constant 0 : index
    %c4 = arith.constant 4 : index
    %c0_55 = arith.constant 0 : index
    %c0_56 = arith.constant 0 : index
    %50 = vector.load %arg1[%c0_54, %c4, %c0_55, %c0_56] : memref<1x28x28x72xf32, #tpu.memory_space<vmem>>, vector<1x1x28x72xf32>
    %51 = vector.shape_cast %50 : vector<1x1x28x72xf32> to vector<28x72xf32>
    %c0_57 = arith.constant 0 : index
    %c4_58 = arith.constant 4 : index
    %c0_59 = arith.constant 0 : index
    %c0_60 = arith.constant 0 : index
    %52 = vector.load %arg2[%c0_57, %c4_58, %c0_59, %c0_60] : memref<1x28x28x72xf32, #tpu.memory_space<vmem>>, vector<1x1x28x72xf32>
    %53 = vector.shape_cast %52 : vector<1x1x28x72xf32> to vector<28x72xf32>
    %54 = arith.addf %51, %53 : vector<28x72xf32>
    %cst_61 = arith.constant 0.000000e+00 : f32
    %55 = vector.broadcast %cst_61 : f32 to vector<28x72xf32>
    %56 = arith.maximumf %54, %55 : vector<28x72xf32>
    %cst_62 = arith.constant dense<0.000000e+00> : vector<28x168xf32>
    %57 = tpu.matmul %56, %0, %cst_62 {dimension_numbers = #tpu.dot_dimension_numbers<[1], [0], [0], [1], [0, 0, 1, 1], [], []>} : vector<28x72xf32>, vector<72x168xf32>, vector<28x168xf32> -> vector<28x168xf32>
    %c0_63 = arith.constant 0 : index
    %c4_64 = arith.constant 4 : index
    %c0_65 = arith.constant 0 : index
    %c0_66 = arith.constant 0 : index
    %58 = vector.load %arg6[%c0_63, %c4_64, %c0_65, %c0_66] : memref<1x28x28x168xf32, #tpu.memory_space<vmem>>, vector<1x1x28x168xf32>
    %59 = vector.shape_cast %58 : vector<1x1x28x168xf32> to vector<28x168xf32>
    %60 = vector.shape_cast %57 : vector<28x168xf32> to vector<1x1x28x168xf32>
    tpu.vector_store %arg6[%c0_63, %c4_64, %c0_65, %c0_66], %60 {strides = array<i32>} : memref<1x28x28x168xf32, #tpu.memory_space<vmem>>, vector<1x1x28x168xf32>,
    %61 = arith.addf %49, %57 : vector<28x168xf32>
    %c0_67 = arith.constant 0 : index
    %c5 = arith.constant 5 : index
    %c0_68 = arith.constant 0 : index
    %c0_69 = arith.constant 0 : index
    %62 = vector.load %arg1[%c0_67, %c5, %c0_68, %c0_69] : memref<1x28x28x72xf32, #tpu.memory_space<vmem>>, vector<1x1x28x72xf32>
    %63 = vector.shape_cast %62 : vector<1x1x28x72xf32> to vector<28x72xf32>
    %c0_70 = arith.constant 0 : index
    %c5_71 = arith.constant 5 : index
    %c0_72 = arith.constant 0 : index
    %c0_73 = arith.constant 0 : index
    %64 = vector.load %arg2[%c0_70, %c5_71, %c0_72, %c0_73] : memref<1x28x28x72xf32, #tpu.memory_space<vmem>>, vector<1x1x28x72xf32>
    %65 = vector.shape_cast %64 : vector<1x1x28x72xf32> to vector<28x72xf32>
    %66 = arith.addf %63, %65 : vector<28x72xf32>
    %cst_74 = arith.constant 0.000000e+00 : f32
    %67 = vector.broadcast %cst_74 : f32 to vector<28x72xf32>
    %68 = arith.maximumf %66, %67 : vector<28x72xf32>
    %cst_75 = arith.constant dense<0.000000e+00> : vector<28x168xf32>
    %69 = tpu.matmul %68, %0, %cst_75 {dimension_numbers = #tpu.dot_dimension_numbers<[1], [0], [0], [1], [0, 0, 1, 1], [], []>} : vector<28x72xf32>, vector<72x168xf32>, vector<28x168xf32> -> vector<28x168xf32>
    %c0_76 = arith.constant 0 : index
    %c5_77 = arith.constant 5 : index
    %c0_78 = arith.constant 0 : index
    %c0_79 = arith.constant 0 : index
    %70 = vector.load %arg6[%c0_76, %c5_77, %c0_78, %c0_79] : memref<1x28x28x168xf32, #tpu.memory_space<vmem>>, vector<1x1x28x168xf32>
    %71 = vector.shape_cast %70 : vector<1x1x28x168xf32> to vector<28x168xf32>
    %72 = vector.shape_cast %69 : vector<28x168xf32> to vector<1x1x28x168xf32>
    tpu.vector_store %arg6[%c0_76, %c5_77, %c0_78, %c0_79], %72 {strides = array<i32>} : memref<1x28x28x168xf32, #tpu.memory_space<vmem>>, vector<1x1x28x168xf32>,
    %73 = arith.addf %61, %69 : vector<28x168xf32>
    %c0_80 = arith.constant 0 : index
    %c6 = arith.constant 6 : index
    %c0_81 = arith.constant 0 : index
    %c0_82 = arith.constant 0 : index
    %74 = vector.load %arg1[%c0_80, %c6, %c0_81, %c0_82] : memref<1x28x28x72xf32, #tpu.memory_space<vmem>>, vector<1x1x28x72xf32>
    %75 = vector.shape_cast %74 : vector<1x1x28x72xf32> to vector<28x72xf32>
    %c0_83 = arith.constant 0 : index
    %c6_84 = arith.constant 6 : index
    %c0_85 = arith.constant 0 : index
    %c0_86 = arith.constant 0 : index
    %76 = vector.load %arg2[%c0_83, %c6_84, %c0_85, %c0_86] : memref<1x28x28x72xf32, #tpu.memory_space<vmem>>, vector<1x1x28x72xf32>
    %77 = vector.shape_cast %76 : vector<1x1x28x72xf32> to vector<28x72xf32>
    %78 = arith.addf %75, %77 : vector<28x72xf32>
    %cst_87 = arith.constant 0.000000e+00 : f32
    %79 = vector.broadcast %cst_87 : f32 to vector<28x72xf32>
    %80 = arith.maximumf %78, %79 : vector<28x72xf32>
    %cst_88 = arith.constant dense<0.000000e+00> : vector<28x168xf32>
    %81 = tpu.matmul %80, %0, %cst_88 {dimension_numbers = #tpu.dot_dimension_numbers<[1], [0], [0], [1], [0, 0, 1, 1], [], []>} : vector<28x72xf32>, vector<72x168xf32>, vector<28x168xf32> -> vector<28x168xf32>
    %c0_89 = arith.constant 0 : index
    %c6_90 = arith.constant 6 : index
    %c0_91 = arith.constant 0 : index
    %c0_92 = arith.constant 0 : index
    %82 = vector.load %arg6[%c0_89, %c6_90, %c0_91, %c0_92] : memref<1x28x28x168xf32, #tpu.memory_space<vmem>>, vector<1x1x28x168xf32>
    %83 = vector.shape_cast %82 : vector<1x1x28x168xf32> to vector<28x168xf32>
    %84 = vector.shape_cast %81 : vector<28x168xf32> to vector<1x1x28x168xf32>
    tpu.vector_store %arg6[%c0_89, %c6_90, %c0_91, %c0_92], %84 {strides = array<i32>} : memref<1x28x28x168xf32, #tpu.memory_space<vmem>>, vector<1x1x28x168xf32>,
    %85 = arith.addf %73, %81 : vector<28x168xf32>
    %c0_93 = arith.constant 0 : index
    %c7 = arith.constant 7 : index
    %c0_94 = arith.constant 0 : index
    %c0_95 = arith.constant 0 : index
    %86 = vector.load %arg1[%c0_93, %c7, %c0_94, %c0_95] : memref<1x28x28x72xf32, #tpu.memory_space<vmem>>, vector<1x1x28x72xf32>
    %87 = vector.shape_cast %86 : vector<1x1x28x72xf32> to vector<28x72xf32>
    %c0_96 = arith.constant 0 : index
    %c7_97 = arith.constant 7 : index
    %c0_98 = arith.constant 0 : index
    %c0_99 = arith.constant 0 : index
    %88 = vector.load %arg2[%c0_96, %c7_97, %c0_98, %c0_99] : memref<1x28x28x72xf32, #tpu.memory_space<vmem>>, vector<1x1x28x72xf32>
    %89 = vector.shape_cast %88 : vector<1x1x28x72xf32> to vector<28x72xf32>
    %90 = arith.addf %87, %89 : vector<28x72xf32>
    %cst_100 = arith.constant 0.000000e+00 : f32
    %91 = vector.broadcast %cst_100 : f32 to vector<28x72xf32>
    %92 = arith.maximumf %90, %91 : vector<28x72xf32>
    %cst_101 = arith.constant dense<0.000000e+00> : vector<28x168xf32>
    %93 = tpu.matmul %92, %0, %cst_101 {dimension_numbers = #tpu.dot_dimension_numbers<[1], [0], [0], [1], [0, 0, 1, 1], [], []>} : vector<28x72xf32>, vector<72x168xf32>, vector<28x168xf32> -> vector<28x168xf32>
    %c0_102 = arith.constant 0 : index
    %c7_103 = arith.constant 7 : index
    %c0_104 = arith.constant 0 : index
    %c0_105 = arith.constant 0 : index
    %94 = vector.load %arg6[%c0_102, %c7_103, %c0_104, %c0_105] : memref<1x28x28x168xf32, #tpu.memory_space<vmem>>, vector<1x1x28x168xf32>
    %95 = vector.shape_cast %94 : vector<1x1x28x168xf32> to vector<28x168xf32>
    %96 = vector.shape_cast %93 : vector<28x168xf32> to vector<1x1x28x168xf32>
    tpu.vector_store %arg6[%c0_102, %c7_103, %c0_104, %c0_105], %96 {strides = array<i32>} : memref<1x28x28x168xf32, #tpu.memory_space<vmem>>, vector<1x1x28x168xf32>,
    %97 = arith.addf %85, %93 : vector<28x168xf32>
    %c0_106 = arith.constant 0 : index
    %c8 = arith.constant 8 : index
    %c0_107 = arith.constant 0 : index
    %c0_108 = arith.constant 0 : index
    %98 = vector.load %arg1[%c0_106, %c8, %c0_107, %c0_108] : memref<1x28x28x72xf32, #tpu.memory_space<vmem>>, vector<1x1x28x72xf32>
    %99 = vector.shape_cast %98 : vector<1x1x28x72xf32> to vector<28x72xf32>
    %c0_109 = arith.constant 0 : index
    %c8_110 = arith.constant 8 : index
    %c0_111 = arith.constant 0 : index
    %c0_112 = arith.constant 0 : index
    %100 = vector.load %arg2[%c0_109, %c8_110, %c0_111, %c0_112] : memref<1x28x28x72xf32, #tpu.memory_space<vmem>>, vector<1x1x28x72xf32>
    %101 = vector.shape_cast %100 : vector<1x1x28x72xf32> to vector<28x72xf32>
    %102 = arith.addf %99, %101 : vector<28x72xf32>
    %cst_113 = arith.constant 0.000000e+00 : f32
    %103 = vector.broadcast %cst_113 : f32 to vector<28x72xf32>
    %104 = arith.maximumf %102, %103 : vector<28x72xf32>
    %cst_114 = arith.constant dense<0.000000e+00> : vector<28x168xf32>
    %105 = tpu.matmul %104, %0, %cst_114 {dimension_numbers = #tpu.dot_dimension_numbers<[1], [0], [0], [1], [0, 0, 1, 1], [], []>} : vector<28x72xf32>, vector<72x168xf32>, vector<28x168xf32> -> vector<28x168xf32>
    %c0_115 = arith.constant 0 : index
    %c8_116 = arith.constant 8 : index
    %c0_117 = arith.constant 0 : index
    %c0_118 = arith.constant 0 : index
    %106 = vector.load %arg6[%c0_115, %c8_116, %c0_117, %c0_118] : memref<1x28x28x168xf32, #tpu.memory_space<vmem>>, vector<1x1x28x168xf32>
    %107 = vector.shape_cast %106 : vector<1x1x28x168xf32> to vector<28x168xf32>
    %108 = vector.shape_cast %105 : vector<28x168xf32> to vector<1x1x28x168xf32>
    tpu.vector_store %arg6[%c0_115, %c8_116, %c0_117, %c0_118], %108 {strides = array<i32>} : memref<1x28x28x168xf32, #tpu.memory_space<vmem>>, vector<1x1x28x168xf32>,
    %109 = arith.addf %97, %105 : vector<28x168xf32>
    %c0_119 = arith.constant 0 : index
    %c9 = arith.constant 9 : index
    %c0_120 = arith.constant 0 : index
    %c0_121 = arith.constant 0 : index
    %110 = vector.load %arg1[%c0_119, %c9, %c0_120, %c0_121] : memref<1x28x28x72xf32, #tpu.memory_space<vmem>>, vector<1x1x28x72xf32>
    %111 = vector.shape_cast %110 : vector<1x1x28x72xf32> to vector<28x72xf32>
    %c0_122 = arith.constant 0 : index
    %c9_123 = arith.constant 9 : index
    %c0_124 = arith.constant 0 : index
    %c0_125 = arith.constant 0 : index
    %112 = vector.load %arg2[%c0_122, %c9_123, %c0_124, %c0_125] : memref<1x28x28x72xf32, #tpu.memory_space<vmem>>, vector<1x1x28x72xf32>
    %113 = vector.shape_cast %112 : vector<1x1x28x72xf32> to vector<28x72xf32>
    %114 = arith.addf %111, %113 : vector<28x72xf32>
    %cst_126 = arith.constant 0.000000e+00 : f32
    %115 = vector.broadcast %cst_126 : f32 to vector<28x72xf32>
    %116 = arith.maximumf %114, %115 : vector<28x72xf32>
    %cst_127 = arith.constant dense<0.000000e+00> : vector<28x168xf32>
    %117 = tpu.matmul %116, %0, %cst_127 {dimension_numbers = #tpu.dot_dimension_numbers<[1], [0], [0], [1], [0, 0, 1, 1], [], []>} : vector<28x72xf32>, vector<72x168xf32>, vector<28x168xf32> -> vector<28x168xf32>
    %c0_128 = arith.constant 0 : index
    %c9_129 = arith.constant 9 : index
    %c0_130 = arith.constant 0 : index
    %c0_131 = arith.constant 0 : index
    %118 = vector.load %arg6[%c0_128, %c9_129, %c0_130, %c0_131] : memref<1x28x28x168xf32, #tpu.memory_space<vmem>>, vector<1x1x28x168xf32>
    %119 = vector.shape_cast %118 : vector<1x1x28x168xf32> to vector<28x168xf32>
    %120 = vector.shape_cast %117 : vector<28x168xf32> to vector<1x1x28x168xf32>
    tpu.vector_store %arg6[%c0_128, %c9_129, %c0_130, %c0_131], %120 {strides = array<i32>} : memref<1x28x28x168xf32, #tpu.memory_space<vmem>>, vector<1x1x28x168xf32>,
    %121 = arith.addf %109, %117 : vector<28x168xf32>
    %c0_132 = arith.constant 0 : index
    %c10 = arith.constant 10 : index
    %c0_133 = arith.constant 0 : index
    %c0_134 = arith.constant 0 : index
    %122 = vector.load %arg1[%c0_132, %c10, %c0_133, %c0_134] : memref<1x28x28x72xf32, #tpu.memory_space<vmem>>, vector<1x1x28x72xf32>
    %123 = vector.shape_cast %122 : vector<1x1x28x72xf32> to vector<28x72xf32>
    %c0_135 = arith.constant 0 : index
    %c10_136 = arith.constant 10 : index
    %c0_137 = arith.constant 0 : index
    %c0_138 = arith.constant 0 : index
    %124 = vector.load %arg2[%c0_135, %c10_136, %c0_137, %c0_138] : memref<1x28x28x72xf32, #tpu.memory_space<vmem>>, vector<1x1x28x72xf32>
    %125 = vector.shape_cast %124 : vector<1x1x28x72xf32> to vector<28x72xf32>
    %126 = arith.addf %123, %125 : vector<28x72xf32>
    %cst_139 = arith.constant 0.000000e+00 : f32
    %127 = vector.broadcast %cst_139 : f32 to vector<28x72xf32>
    %128 = arith.maximumf %126, %127 : vector<28x72xf32>
    %cst_140 = arith.constant dense<0.000000e+00> : vector<28x168xf32>
    %129 = tpu.matmul %128, %0, %cst_140 {dimension_numbers = #tpu.dot_dimension_numbers<[1], [0], [0], [1], [0, 0, 1, 1], [], []>} : vector<28x72xf32>, vector<72x168xf32>, vector<28x168xf32> -> vector<28x168xf32>
    %c0_141 = arith.constant 0 : index
    %c10_142 = arith.constant 10 : index
    %c0_143 = arith.constant 0 : index
    %c0_144 = arith.constant 0 : index
    %130 = vector.load %arg6[%c0_141, %c10_142, %c0_143, %c0_144] : memref<1x28x28x168xf32, #tpu.memory_space<vmem>>, vector<1x1x28x168xf32>
    %131 = vector.shape_cast %130 : vector<1x1x28x168xf32> to vector<28x168xf32>
    %132 = vector.shape_cast %129 : vector<28x168xf32> to vector<1x1x28x168xf32>
    tpu.vector_store %arg6[%c0_141, %c10_142, %c0_143, %c0_144], %132 {strides = array<i32>} : memref<1x28x28x168xf32, #tpu.memory_space<vmem>>, vector<1x1x28x168xf32>,
    %133 = arith.addf %121, %129 : vector<28x168xf32>
    %c0_145 = arith.constant 0 : index
    %c11 = arith.constant 11 : index
    %c0_146 = arith.constant 0 : index
    %c0_147 = arith.constant 0 : index
    %134 = vector.load %arg1[%c0_145, %c11, %c0_146, %c0_147] : memref<1x28x28x72xf32, #tpu.memory_space<vmem>>, vector<1x1x28x72xf32>
    %135 = vector.shape_cast %134 : vector<1x1x28x72xf32> to vector<28x72xf32>
    %c0_148 = arith.constant 0 : index
    %c11_149 = arith.constant 11 : index
    %c0_150 = arith.constant 0 : index
    %c0_151 = arith.constant 0 : index
    %136 = vector.load %arg2[%c0_148, %c11_149, %c0_150, %c0_151] : memref<1x28x28x72xf32, #tpu.memory_space<vmem>>, vector<1x1x28x72xf32>
    %137 = vector.shape_cast %136 : vector<1x1x28x72xf32> to vector<28x72xf32>
    %138 = arith.addf %135, %137 : vector<28x72xf32>
    %cst_152 = arith.constant 0.000000e+00 : f32
    %139 = vector.broadcast %cst_152 : f32 to vector<28x72xf32>
    %140 = arith.maximumf %138, %139 : vector<28x72xf32>
    %cst_153 = arith.constant dense<0.000000e+00> : vector<28x168xf32>
    %141 = tpu.matmul %140, %0, %cst_153 {dimension_numbers = #tpu.dot_dimension_numbers<[1], [0], [0], [1], [0, 0, 1, 1], [], []>} : vector<28x72xf32>, vector<72x168xf32>, vector<28x168xf32> -> vector<28x168xf32>
    %c0_154 = arith.constant 0 : index
    %c11_155 = arith.constant 11 : index
    %c0_156 = arith.constant 0 : index
    %c0_157 = arith.constant 0 : index
    %142 = vector.load %arg6[%c0_154, %c11_155, %c0_156, %c0_157] : memref<1x28x28x168xf32, #tpu.memory_space<vmem>>, vector<1x1x28x168xf32>
    %143 = vector.shape_cast %142 : vector<1x1x28x168xf32> to vector<28x168xf32>
    %144 = vector.shape_cast %141 : vector<28x168xf32> to vector<1x1x28x168xf32>
    tpu.vector_store %arg6[%c0_154, %c11_155, %c0_156, %c0_157], %144 {strides = array<i32>} : memref<1x28x28x168xf32, #tpu.memory_space<vmem>>, vector<1x1x28x168xf32>,
    %145 = arith.addf %133, %141 : vector<28x168xf32>
    %c0_158 = arith.constant 0 : index
    %c12 = arith.constant 12 : index
    %c0_159 = arith.constant 0 : index
    %c0_160 = arith.constant 0 : index
    %146 = vector.load %arg1[%c0_158, %c12, %c0_159, %c0_160] : memref<1x28x28x72xf32, #tpu.memory_space<vmem>>, vector<1x1x28x72xf32>
    %147 = vector.shape_cast %146 : vector<1x1x28x72xf32> to vector<28x72xf32>
    %c0_161 = arith.constant 0 : index
    %c12_162 = arith.constant 12 : index
    %c0_163 = arith.constant 0 : index
    %c0_164 = arith.constant 0 : index
    %148 = vector.load %arg2[%c0_161, %c12_162, %c0_163, %c0_164] : memref<1x28x28x72xf32, #tpu.memory_space<vmem>>, vector<1x1x28x72xf32>
    %149 = vector.shape_cast %148 : vector<1x1x28x72xf32> to vector<28x72xf32>
    %150 = arith.addf %147, %149 : vector<28x72xf32>
    %cst_165 = arith.constant 0.000000e+00 : f32
    %151 = vector.broadcast %cst_165 : f32 to vector<28x72xf32>
    %152 = arith.maximumf %150, %151 : vector<28x72xf32>
    %cst_166 = arith.constant dense<0.000000e+00> : vector<28x168xf32>
    %153 = tpu.matmul %152, %0, %cst_166 {dimension_numbers = #tpu.dot_dimension_numbers<[1], [0], [0], [1], [0, 0, 1, 1], [], []>} : vector<28x72xf32>, vector<72x168xf32>, vector<28x168xf32> -> vector<28x168xf32>
    %c0_167 = arith.constant 0 : index
    %c12_168 = arith.constant 12 : index
    %c0_169 = arith.constant 0 : index
    %c0_170 = arith.constant 0 : index
    %154 = vector.load %arg6[%c0_167, %c12_168, %c0_169, %c0_170] : memref<1x28x28x168xf32, #tpu.memory_space<vmem>>, vector<1x1x28x168xf32>
    %155 = vector.shape_cast %154 : vector<1x1x28x168xf32> to vector<28x168xf32>
    %156 = vector.shape_cast %153 : vector<28x168xf32> to vector<1x1x28x168xf32>
    tpu.vector_store %arg6[%c0_167, %c12_168, %c0_169, %c0_170], %156 {strides = array<i32>} : memref<1x28x28x168xf32, #tpu.memory_space<vmem>>, vector<1x1x28x168xf32>,
    %157 = arith.addf %145, %153 : vector<28x168xf32>
    %c0_171 = arith.constant 0 : index
    %c13 = arith.constant 13 : index
    %c0_172 = arith.constant 0 : index
    %c0_173 = arith.constant 0 : index
    %158 = vector.load %arg1[%c0_171, %c13, %c0_172, %c0_173] : memref<1x28x28x72xf32, #tpu.memory_space<vmem>>, vector<1x1x28x72xf32>
    %159 = vector.shape_cast %158 : vector<1x1x28x72xf32> to vector<28x72xf32>
    %c0_174 = arith.constant 0 : index
    %c13_175 = arith.constant 13 : index
    %c0_176 = arith.constant 0 : index
    %c0_177 = arith.constant 0 : index
    %160 = vector.load %arg2[%c0_174, %c13_175, %c0_176, %c0_177] : memref<1x28x28x72xf32, #tpu.memory_space<vmem>>, vector<1x1x28x72xf32>
    %161 = vector.shape_cast %160 : vector<1x1x28x72xf32> to vector<28x72xf32>
    %162 = arith.addf %159, %161 : vector<28x72xf32>
    %cst_178 = arith.constant 0.000000e+00 : f32
    %163 = vector.broadcast %cst_178 : f32 to vector<28x72xf32>
    %164 = arith.maximumf %162, %163 : vector<28x72xf32>
    %cst_179 = arith.constant dense<0.000000e+00> : vector<28x168xf32>
    %165 = tpu.matmul %164, %0, %cst_179 {dimension_numbers = #tpu.dot_dimension_numbers<[1], [0], [0], [1], [0, 0, 1, 1], [], []>} : vector<28x72xf32>, vector<72x168xf32>, vector<28x168xf32> -> vector<28x168xf32>
    %c0_180 = arith.constant 0 : index
    %c13_181 = arith.constant 13 : index
    %c0_182 = arith.constant 0 : index
    %c0_183 = arith.constant 0 : index
    %166 = vector.load %arg6[%c0_180, %c13_181, %c0_182, %c0_183] : memref<1x28x28x168xf32, #tpu.memory_space<vmem>>, vector<1x1x28x168xf32>
    %167 = vector.shape_cast %166 : vector<1x1x28x168xf32> to vector<28x168xf32>
    %168 = vector.shape_cast %165 : vector<28x168xf32> to vector<1x1x28x168xf32>
    tpu.vector_store %arg6[%c0_180, %c13_181, %c0_182, %c0_183], %168 {strides = array<i32>} : memref<1x28x28x168xf32, #tpu.memory_space<vmem>>, vector<1x1x28x168xf32>,
    %169 = arith.addf %157, %165 : vector<28x168xf32>
    %c0_184 = arith.constant 0 : index
    %c14 = arith.constant 14 : index
    %c0_185 = arith.constant 0 : index
    %c0_186 = arith.constant 0 : index
    %170 = vector.load %arg1[%c0_184, %c14, %c0_185, %c0_186] : memref<1x28x28x72xf32, #tpu.memory_space<vmem>>, vector<1x1x28x72xf32>
    %171 = vector.shape_cast %170 : vector<1x1x28x72xf32> to vector<28x72xf32>
    %c0_187 = arith.constant 0 : index
    %c14_188 = arith.constant 14 : index
    %c0_189 = arith.constant 0 : index
    %c0_190 = arith.constant 0 : index
    %172 = vector.load %arg2[%c0_187, %c14_188, %c0_189, %c0_190] : memref<1x28x28x72xf32, #tpu.memory_space<vmem>>, vector<1x1x28x72xf32>
    %173 = vector.shape_cast %172 : vector<1x1x28x72xf32> to vector<28x72xf32>
    %174 = arith.addf %171, %173 : vector<28x72xf32>
    %cst_191 = arith.constant 0.000000e+00 : f32
    %175 = vector.broadcast %cst_191 : f32 to vector<28x72xf32>
    %176 = arith.maximumf %174, %175 : vector<28x72xf32>
    %cst_192 = arith.constant dense<0.000000e+00> : vector<28x168xf32>
    %177 = tpu.matmul %176, %0, %cst_192 {dimension_numbers = #tpu.dot_dimension_numbers<[1], [0], [0], [1], [0, 0, 1, 1], [], []>} : vector<28x72xf32>, vector<72x168xf32>, vector<28x168xf32> -> vector<28x168xf32>
    %c0_193 = arith.constant 0 : index
    %c14_194 = arith.constant 14 : index
    %c0_195 = arith.constant 0 : index
    %c0_196 = arith.constant 0 : index
    %178 = vector.load %arg6[%c0_193, %c14_194, %c0_195, %c0_196] : memref<1x28x28x168xf32, #tpu.memory_space<vmem>>, vector<1x1x28x168xf32>
    %179 = vector.shape_cast %178 : vector<1x1x28x168xf32> to vector<28x168xf32>
    %180 = vector.shape_cast %177 : vector<28x168xf32> to vector<1x1x28x168xf32>
    tpu.vector_store %arg6[%c0_193, %c14_194, %c0_195, %c0_196], %180 {strides = array<i32>} : memref<1x28x28x168xf32, #tpu.memory_space<vmem>>, vector<1x1x28x168xf32>,
    %181 = arith.addf %169, %177 : vector<28x168xf32>
    %c0_197 = arith.constant 0 : index
    %c15 = arith.constant 15 : index
    %c0_198 = arith.constant 0 : index
    %c0_199 = arith.constant 0 : index
    %182 = vector.load %arg1[%c0_197, %c15, %c0_198, %c0_199] : memref<1x28x28x72xf32, #tpu.memory_space<vmem>>, vector<1x1x28x72xf32>
    %183 = vector.shape_cast %182 : vector<1x1x28x72xf32> to vector<28x72xf32>
    %c0_200 = arith.constant 0 : index
    %c15_201 = arith.constant 15 : index
    %c0_202 = arith.constant 0 : index
    %c0_203 = arith.constant 0 : index
    %184 = vector.load %arg2[%c0_200, %c15_201, %c0_202, %c0_203] : memref<1x28x28x72xf32, #tpu.memory_space<vmem>>, vector<1x1x28x72xf32>
    %185 = vector.shape_cast %184 : vector<1x1x28x72xf32> to vector<28x72xf32>
    %186 = arith.addf %183, %185 : vector<28x72xf32>
    %cst_204 = arith.constant 0.000000e+00 : f32
    %187 = vector.broadcast %cst_204 : f32 to vector<28x72xf32>
    %188 = arith.maximumf %186, %187 : vector<28x72xf32>
    %cst_205 = arith.constant dense<0.000000e+00> : vector<28x168xf32>
    %189 = tpu.matmul %188, %0, %cst_205 {dimension_numbers = #tpu.dot_dimension_numbers<[1], [0], [0], [1], [0, 0, 1, 1], [], []>} : vector<28x72xf32>, vector<72x168xf32>, vector<28x168xf32> -> vector<28x168xf32>
    %c0_206 = arith.constant 0 : index
    %c15_207 = arith.constant 15 : index
    %c0_208 = arith.constant 0 : index
    %c0_209 = arith.constant 0 : index
    %190 = vector.load %arg6[%c0_206, %c15_207, %c0_208, %c0_209] : memref<1x28x28x168xf32, #tpu.memory_space<vmem>>, vector<1x1x28x168xf32>
    %191 = vector.shape_cast %190 : vector<1x1x28x168xf32> to vector<28x168xf32>
    %192 = vector.shape_cast %189 : vector<28x168xf32> to vector<1x1x28x168xf32>
    tpu.vector_store %arg6[%c0_206, %c15_207, %c0_208, %c0_209], %192 {strides = array<i32>} : memref<1x28x28x168xf32, #tpu.memory_space<vmem>>, vector<1x1x28x168xf32>,
    %193 = arith.addf %181, %189 : vector<28x168xf32>
    %c0_210 = arith.constant 0 : index
    %c16 = arith.constant 16 : index
    %c0_211 = arith.constant 0 : index
    %c0_212 = arith.constant 0 : index
    %194 = vector.load %arg1[%c0_210, %c16, %c0_211, %c0_212] : memref<1x28x28x72xf32, #tpu.memory_space<vmem>>, vector<1x1x28x72xf32>
    %195 = vector.shape_cast %194 : vector<1x1x28x72xf32> to vector<28x72xf32>
    %c0_213 = arith.constant 0 : index
    %c16_214 = arith.constant 16 : index
    %c0_215 = arith.constant 0 : index
    %c0_216 = arith.constant 0 : index
    %196 = vector.load %arg2[%c0_213, %c16_214, %c0_215, %c0_216] : memref<1x28x28x72xf32, #tpu.memory_space<vmem>>, vector<1x1x28x72xf32>
    %197 = vector.shape_cast %196 : vector<1x1x28x72xf32> to vector<28x72xf32>
    %198 = arith.addf %195, %197 : vector<28x72xf32>
    %cst_217 = arith.constant 0.000000e+00 : f32
    %199 = vector.broadcast %cst_217 : f32 to vector<28x72xf32>
    %200 = arith.maximumf %198, %199 : vector<28x72xf32>
    %cst_218 = arith.constant dense<0.000000e+00> : vector<28x168xf32>
    %201 = tpu.matmul %200, %0, %cst_218 {dimension_numbers = #tpu.dot_dimension_numbers<[1], [0], [0], [1], [0, 0, 1, 1], [], []>} : vector<28x72xf32>, vector<72x168xf32>, vector<28x168xf32> -> vector<28x168xf32>
    %c0_219 = arith.constant 0 : index
    %c16_220 = arith.constant 16 : index
    %c0_221 = arith.constant 0 : index
    %c0_222 = arith.constant 0 : index
    %202 = vector.load %arg6[%c0_219, %c16_220, %c0_221, %c0_222] : memref<1x28x28x168xf32, #tpu.memory_space<vmem>>, vector<1x1x28x168xf32>
    %203 = vector.shape_cast %202 : vector<1x1x28x168xf32> to vector<28x168xf32>
    %204 = vector.shape_cast %201 : vector<28x168xf32> to vector<1x1x28x168xf32>
    tpu.vector_store %arg6[%c0_219, %c16_220, %c0_221, %c0_222], %204 {strides = array<i32>} : memref<1x28x28x168xf32, #tpu.memory_space<vmem>>, vector<1x1x28x168xf32>,
    %205 = arith.addf %193, %201 : vector<28x168xf32>
    %c0_223 = arith.constant 0 : index
    %c17 = arith.constant 17 : index
    %c0_224 = arith.constant 0 : index
    %c0_225 = arith.constant 0 : index
    %206 = vector.load %arg1[%c0_223, %c17, %c0_224, %c0_225] : memref<1x28x28x72xf32, #tpu.memory_space<vmem>>, vector<1x1x28x72xf32>
    %207 = vector.shape_cast %206 : vector<1x1x28x72xf32> to vector<28x72xf32>
    %c0_226 = arith.constant 0 : index
    %c17_227 = arith.constant 17 : index
    %c0_228 = arith.constant 0 : index
    %c0_229 = arith.constant 0 : index
    %208 = vector.load %arg2[%c0_226, %c17_227, %c0_228, %c0_229] : memref<1x28x28x72xf32, #tpu.memory_space<vmem>>, vector<1x1x28x72xf32>
    %209 = vector.shape_cast %208 : vector<1x1x28x72xf32> to vector<28x72xf32>
    %210 = arith.addf %207, %209 : vector<28x72xf32>
    %cst_230 = arith.constant 0.000000e+00 : f32
    %211 = vector.broadcast %cst_230 : f32 to vector<28x72xf32>
    %212 = arith.maximumf %210, %211 : vector<28x72xf32>
    %cst_231 = arith.constant dense<0.000000e+00> : vector<28x168xf32>
    %213 = tpu.matmul %212, %0, %cst_231 {dimension_numbers = #tpu.dot_dimension_numbers<[1], [0], [0], [1], [0, 0, 1, 1], [], []>} : vector<28x72xf32>, vector<72x168xf32>, vector<28x168xf32> -> vector<28x168xf32>
    %c0_232 = arith.constant 0 : index
    %c17_233 = arith.constant 17 : index
    %c0_234 = arith.constant 0 : index
    %c0_235 = arith.constant 0 : index
    %214 = vector.load %arg6[%c0_232, %c17_233, %c0_234, %c0_235] : memref<1x28x28x168xf32, #tpu.memory_space<vmem>>, vector<1x1x28x168xf32>
    %215 = vector.shape_cast %214 : vector<1x1x28x168xf32> to vector<28x168xf32>
    %216 = vector.shape_cast %213 : vector<28x168xf32> to vector<1x1x28x168xf32>
    tpu.vector_store %arg6[%c0_232, %c17_233, %c0_234, %c0_235], %216 {strides = array<i32>} : memref<1x28x28x168xf32, #tpu.memory_space<vmem>>, vector<1x1x28x168xf32>,
    %217 = arith.addf %205, %213 : vector<28x168xf32>
    %c0_236 = arith.constant 0 : index
    %c18 = arith.constant 18 : index
    %c0_237 = arith.constant 0 : index
    %c0_238 = arith.constant 0 : index
    %218 = vector.load %arg1[%c0_236, %c18, %c0_237, %c0_238] : memref<1x28x28x72xf32, #tpu.memory_space<vmem>>, vector<1x1x28x72xf32>
    %219 = vector.shape_cast %218 : vector<1x1x28x72xf32> to vector<28x72xf32>
    %c0_239 = arith.constant 0 : index
    %c18_240 = arith.constant 18 : index
    %c0_241 = arith.constant 0 : index
    %c0_242 = arith.constant 0 : index
    %220 = vector.load %arg2[%c0_239, %c18_240, %c0_241, %c0_242] : memref<1x28x28x72xf32, #tpu.memory_space<vmem>>, vector<1x1x28x72xf32>
    %221 = vector.shape_cast %220 : vector<1x1x28x72xf32> to vector<28x72xf32>
    %222 = arith.addf %219, %221 : vector<28x72xf32>
    %cst_243 = arith.constant 0.000000e+00 : f32
    %223 = vector.broadcast %cst_243 : f32 to vector<28x72xf32>
    %224 = arith.maximumf %222, %223 : vector<28x72xf32>
    %cst_244 = arith.constant dense<0.000000e+00> : vector<28x168xf32>
    %225 = tpu.matmul %224, %0, %cst_244 {dimension_numbers = #tpu.dot_dimension_numbers<[1], [0], [0], [1], [0, 0, 1, 1], [], []>} : vector<28x72xf32>, vector<72x168xf32>, vector<28x168xf32> -> vector<28x168xf32>
    %c0_245 = arith.constant 0 : index
    %c18_246 = arith.constant 18 : index
    %c0_247 = arith.constant 0 : index
    %c0_248 = arith.constant 0 : index
    %226 = vector.load %arg6[%c0_245, %c18_246, %c0_247, %c0_248] : memref<1x28x28x168xf32, #tpu.memory_space<vmem>>, vector<1x1x28x168xf32>
    %227 = vector.shape_cast %226 : vector<1x1x28x168xf32> to vector<28x168xf32>
    %228 = vector.shape_cast %225 : vector<28x168xf32> to vector<1x1x28x168xf32>
    tpu.vector_store %arg6[%c0_245, %c18_246, %c0_247, %c0_248], %228 {strides = array<i32>} : memref<1x28x28x168xf32, #tpu.memory_space<vmem>>, vector<1x1x28x168xf32>,
    %229 = arith.addf %217, %225 : vector<28x168xf32>
    %c0_249 = arith.constant 0 : index
    %c19 = arith.constant 19 : index
    %c0_250 = arith.constant 0 : index
    %c0_251 = arith.constant 0 : index
    %230 = vector.load %arg1[%c0_249, %c19, %c0_250, %c0_251] : memref<1x28x28x72xf32, #tpu.memory_space<vmem>>, vector<1x1x28x72xf32>
    %231 = vector.shape_cast %230 : vector<1x1x28x72xf32> to vector<28x72xf32>
    %c0_252 = arith.constant 0 : index
    %c19_253 = arith.constant 19 : index
    %c0_254 = arith.constant 0 : index
    %c0_255 = arith.constant 0 : index
    %232 = vector.load %arg2[%c0_252, %c19_253, %c0_254, %c0_255] : memref<1x28x28x72xf32, #tpu.memory_space<vmem>>, vector<1x1x28x72xf32>
    %233 = vector.shape_cast %232 : vector<1x1x28x72xf32> to vector<28x72xf32>
    %234 = arith.addf %231, %233 : vector<28x72xf32>
    %cst_256 = arith.constant 0.000000e+00 : f32
    %235 = vector.broadcast %cst_256 : f32 to vector<28x72xf32>
    %236 = arith.maximumf %234, %235 : vector<28x72xf32>
    %cst_257 = arith.constant dense<0.000000e+00> : vector<28x168xf32>
    %237 = tpu.matmul %236, %0, %cst_257 {dimension_numbers = #tpu.dot_dimension_numbers<[1], [0], [0], [1], [0, 0, 1, 1], [], []>} : vector<28x72xf32>, vector<72x168xf32>, vector<28x168xf32> -> vector<28x168xf32>
    %c0_258 = arith.constant 0 : index
    %c19_259 = arith.constant 19 : index
    %c0_260 = arith.constant 0 : index
    %c0_261 = arith.constant 0 : index
    %238 = vector.load %arg6[%c0_258, %c19_259, %c0_260, %c0_261] : memref<1x28x28x168xf32, #tpu.memory_space<vmem>>, vector<1x1x28x168xf32>
    %239 = vector.shape_cast %238 : vector<1x1x28x168xf32> to vector<28x168xf32>
    %240 = vector.shape_cast %237 : vector<28x168xf32> to vector<1x1x28x168xf32>
    tpu.vector_store %arg6[%c0_258, %c19_259, %c0_260, %c0_261], %240 {strides = array<i32>} : memref<1x28x28x168xf32, #tpu.memory_space<vmem>>, vector<1x1x28x168xf32>,
    %241 = arith.addf %229, %237 : vector<28x168xf32>
    %c0_262 = arith.constant 0 : index
    %c20 = arith.constant 20 : index
    %c0_263 = arith.constant 0 : index
    %c0_264 = arith.constant 0 : index
    %242 = vector.load %arg1[%c0_262, %c20, %c0_263, %c0_264] : memref<1x28x28x72xf32, #tpu.memory_space<vmem>>, vector<1x1x28x72xf32>
    %243 = vector.shape_cast %242 : vector<1x1x28x72xf32> to vector<28x72xf32>
    %c0_265 = arith.constant 0 : index
    %c20_266 = arith.constant 20 : index
    %c0_267 = arith.constant 0 : index
    %c0_268 = arith.constant 0 : index
    %244 = vector.load %arg2[%c0_265, %c20_266, %c0_267, %c0_268] : memref<1x28x28x72xf32, #tpu.memory_space<vmem>>, vector<1x1x28x72xf32>
    %245 = vector.shape_cast %244 : vector<1x1x28x72xf32> to vector<28x72xf32>
    %246 = arith.addf %243, %245 : vector<28x72xf32>
    %cst_269 = arith.constant 0.000000e+00 : f32
    %247 = vector.broadcast %cst_269 : f32 to vector<28x72xf32>
    %248 = arith.maximumf %246, %247 : vector<28x72xf32>
    %cst_270 = arith.constant dense<0.000000e+00> : vector<28x168xf32>
    %249 = tpu.matmul %248, %0, %cst_270 {dimension_numbers = #tpu.dot_dimension_numbers<[1], [0], [0], [1], [0, 0, 1, 1], [], []>} : vector<28x72xf32>, vector<72x168xf32>, vector<28x168xf32> -> vector<28x168xf32>
    %c0_271 = arith.constant 0 : index
    %c20_272 = arith.constant 20 : index
    %c0_273 = arith.constant 0 : index
    %c0_274 = arith.constant 0 : index
    %250 = vector.load %arg6[%c0_271, %c20_272, %c0_273, %c0_274] : memref<1x28x28x168xf32, #tpu.memory_space<vmem>>, vector<1x1x28x168xf32>
    %251 = vector.shape_cast %250 : vector<1x1x28x168xf32> to vector<28x168xf32>
    %252 = vector.shape_cast %249 : vector<28x168xf32> to vector<1x1x28x168xf32>
    tpu.vector_store %arg6[%c0_271, %c20_272, %c0_273, %c0_274], %252 {strides = array<i32>} : memref<1x28x28x168xf32, #tpu.memory_space<vmem>>, vector<1x1x28x168xf32>,
    %253 = arith.addf %241, %249 : vector<28x168xf32>
    %c0_275 = arith.constant 0 : index
    %c21 = arith.constant 21 : index
    %c0_276 = arith.constant 0 : index
    %c0_277 = arith.constant 0 : index
    %254 = vector.load %arg1[%c0_275, %c21, %c0_276, %c0_277] : memref<1x28x28x72xf32, #tpu.memory_space<vmem>>, vector<1x1x28x72xf32>
    %255 = vector.shape_cast %254 : vector<1x1x28x72xf32> to vector<28x72xf32>
    %c0_278 = arith.constant 0 : index
    %c21_279 = arith.constant 21 : index
    %c0_280 = arith.constant 0 : index
    %c0_281 = arith.constant 0 : index
    %256 = vector.load %arg2[%c0_278, %c21_279, %c0_280, %c0_281] : memref<1x28x28x72xf32, #tpu.memory_space<vmem>>, vector<1x1x28x72xf32>
    %257 = vector.shape_cast %256 : vector<1x1x28x72xf32> to vector<28x72xf32>
    %258 = arith.addf %255, %257 : vector<28x72xf32>
    %cst_282 = arith.constant 0.000000e+00 : f32
    %259 = vector.broadcast %cst_282 : f32 to vector<28x72xf32>
    %260 = arith.maximumf %258, %259 : vector<28x72xf32>
    %cst_283 = arith.constant dense<0.000000e+00> : vector<28x168xf32>
    %261 = tpu.matmul %260, %0, %cst_283 {dimension_numbers = #tpu.dot_dimension_numbers<[1], [0], [0], [1], [0, 0, 1, 1], [], []>} : vector<28x72xf32>, vector<72x168xf32>, vector<28x168xf32> -> vector<28x168xf32>
    %c0_284 = arith.constant 0 : index
    %c21_285 = arith.constant 21 : index
    %c0_286 = arith.constant 0 : index
    %c0_287 = arith.constant 0 : index
    %262 = vector.load %arg6[%c0_284, %c21_285, %c0_286, %c0_287] : memref<1x28x28x168xf32, #tpu.memory_space<vmem>>, vector<1x1x28x168xf32>
    %263 = vector.shape_cast %262 : vector<1x1x28x168xf32> to vector<28x168xf32>
    %264 = vector.shape_cast %261 : vector<28x168xf32> to vector<1x1x28x168xf32>
    tpu.vector_store %arg6[%c0_284, %c21_285, %c0_286, %c0_287], %264 {strides = array<i32>} : memref<1x28x28x168xf32, #tpu.memory_space<vmem>>, vector<1x1x28x168xf32>,
    %265 = arith.addf %253, %261 : vector<28x168xf32>
    %c0_288 = arith.constant 0 : index
    %c22 = arith.constant 22 : index
    %c0_289 = arith.constant 0 : index
    %c0_290 = arith.constant 0 : index
    %266 = vector.load %arg1[%c0_288, %c22, %c0_289, %c0_290] : memref<1x28x28x72xf32, #tpu.memory_space<vmem>>, vector<1x1x28x72xf32>
    %267 = vector.shape_cast %266 : vector<1x1x28x72xf32> to vector<28x72xf32>
    %c0_291 = arith.constant 0 : index
    %c22_292 = arith.constant 22 : index
    %c0_293 = arith.constant 0 : index
    %c0_294 = arith.constant 0 : index
    %268 = vector.load %arg2[%c0_291, %c22_292, %c0_293, %c0_294] : memref<1x28x28x72xf32, #tpu.memory_space<vmem>>, vector<1x1x28x72xf32>
    %269 = vector.shape_cast %268 : vector<1x1x28x72xf32> to vector<28x72xf32>
    %270 = arith.addf %267, %269 : vector<28x72xf32>
    %cst_295 = arith.constant 0.000000e+00 : f32
    %271 = vector.broadcast %cst_295 : f32 to vector<28x72xf32>
    %272 = arith.maximumf %270, %271 : vector<28x72xf32>
    %cst_296 = arith.constant dense<0.000000e+00> : vector<28x168xf32>
    %273 = tpu.matmul %272, %0, %cst_296 {dimension_numbers = #tpu.dot_dimension_numbers<[1], [0], [0], [1], [0, 0, 1, 1], [], []>} : vector<28x72xf32>, vector<72x168xf32>, vector<28x168xf32> -> vector<28x168xf32>
    %c0_297 = arith.constant 0 : index
    %c22_298 = arith.constant 22 : index
    %c0_299 = arith.constant 0 : index
    %c0_300 = arith.constant 0 : index
    %274 = vector.load %arg6[%c0_297, %c22_298, %c0_299, %c0_300] : memref<1x28x28x168xf32, #tpu.memory_space<vmem>>, vector<1x1x28x168xf32>
    %275 = vector.shape_cast %274 : vector<1x1x28x168xf32> to vector<28x168xf32>
    %276 = vector.shape_cast %273 : vector<28x168xf32> to vector<1x1x28x168xf32>
    tpu.vector_store %arg6[%c0_297, %c22_298, %c0_299, %c0_300], %276 {strides = array<i32>} : memref<1x28x28x168xf32, #tpu.memory_space<vmem>>, vector<1x1x28x168xf32>,
    %277 = arith.addf %265, %273 : vector<28x168xf32>
    %c0_301 = arith.constant 0 : index
    %c23 = arith.constant 23 : index
    %c0_302 = arith.constant 0 : index
    %c0_303 = arith.constant 0 : index
    %278 = vector.load %arg1[%c0_301, %c23, %c0_302, %c0_303] : memref<1x28x28x72xf32, #tpu.memory_space<vmem>>, vector<1x1x28x72xf32>
    %279 = vector.shape_cast %278 : vector<1x1x28x72xf32> to vector<28x72xf32>
    %c0_304 = arith.constant 0 : index
    %c23_305 = arith.constant 23 : index
    %c0_306 = arith.constant 0 : index
    %c0_307 = arith.constant 0 : index
    %280 = vector.load %arg2[%c0_304, %c23_305, %c0_306, %c0_307] : memref<1x28x28x72xf32, #tpu.memory_space<vmem>>, vector<1x1x28x72xf32>
    %281 = vector.shape_cast %280 : vector<1x1x28x72xf32> to vector<28x72xf32>
    %282 = arith.addf %279, %281 : vector<28x72xf32>
    %cst_308 = arith.constant 0.000000e+00 : f32
    %283 = vector.broadcast %cst_308 : f32 to vector<28x72xf32>
    %284 = arith.maximumf %282, %283 : vector<28x72xf32>
    %cst_309 = arith.constant dense<0.000000e+00> : vector<28x168xf32>
    %285 = tpu.matmul %284, %0, %cst_309 {dimension_numbers = #tpu.dot_dimension_numbers<[1], [0], [0], [1], [0, 0, 1, 1], [], []>} : vector<28x72xf32>, vector<72x168xf32>, vector<28x168xf32> -> vector<28x168xf32>
    %c0_310 = arith.constant 0 : index
    %c23_311 = arith.constant 23 : index
    %c0_312 = arith.constant 0 : index
    %c0_313 = arith.constant 0 : index
    %286 = vector.load %arg6[%c0_310, %c23_311, %c0_312, %c0_313] : memref<1x28x28x168xf32, #tpu.memory_space<vmem>>, vector<1x1x28x168xf32>
    %287 = vector.shape_cast %286 : vector<1x1x28x168xf32> to vector<28x168xf32>
    %288 = vector.shape_cast %285 : vector<28x168xf32> to vector<1x1x28x168xf32>
    tpu.vector_store %arg6[%c0_310, %c23_311, %c0_312, %c0_313], %288 {strides = array<i32>} : memref<1x28x28x168xf32, #tpu.memory_space<vmem>>, vector<1x1x28x168xf32>,
    %289 = arith.addf %277, %285 : vector<28x168xf32>
    %c0_314 = arith.constant 0 : index
    %c24 = arith.constant 24 : index
    %c0_315 = arith.constant 0 : index
    %c0_316 = arith.constant 0 : index
    %290 = vector.load %arg1[%c0_314, %c24, %c0_315, %c0_316] : memref<1x28x28x72xf32, #tpu.memory_space<vmem>>, vector<1x1x28x72xf32>
    %291 = vector.shape_cast %290 : vector<1x1x28x72xf32> to vector<28x72xf32>
    %c0_317 = arith.constant 0 : index
    %c24_318 = arith.constant 24 : index
    %c0_319 = arith.constant 0 : index
    %c0_320 = arith.constant 0 : index
    %292 = vector.load %arg2[%c0_317, %c24_318, %c0_319, %c0_320] : memref<1x28x28x72xf32, #tpu.memory_space<vmem>>, vector<1x1x28x72xf32>
    %293 = vector.shape_cast %292 : vector<1x1x28x72xf32> to vector<28x72xf32>
    %294 = arith.addf %291, %293 : vector<28x72xf32>
    %cst_321 = arith.constant 0.000000e+00 : f32
    %295 = vector.broadcast %cst_321 : f32 to vector<28x72xf32>
    %296 = arith.maximumf %294, %295 : vector<28x72xf32>
    %cst_322 = arith.constant dense<0.000000e+00> : vector<28x168xf32>
    %297 = tpu.matmul %296, %0, %cst_322 {dimension_numbers = #tpu.dot_dimension_numbers<[1], [0], [0], [1], [0, 0, 1, 1], [], []>} : vector<28x72xf32>, vector<72x168xf32>, vector<28x168xf32> -> vector<28x168xf32>
    %c0_323 = arith.constant 0 : index
    %c24_324 = arith.constant 24 : index
    %c0_325 = arith.constant 0 : index
    %c0_326 = arith.constant 0 : index
    %298 = vector.load %arg6[%c0_323, %c24_324, %c0_325, %c0_326] : memref<1x28x28x168xf32, #tpu.memory_space<vmem>>, vector<1x1x28x168xf32>
    %299 = vector.shape_cast %298 : vector<1x1x28x168xf32> to vector<28x168xf32>
    %300 = vector.shape_cast %297 : vector<28x168xf32> to vector<1x1x28x168xf32>
    tpu.vector_store %arg6[%c0_323, %c24_324, %c0_325, %c0_326], %300 {strides = array<i32>} : memref<1x28x28x168xf32, #tpu.memory_space<vmem>>, vector<1x1x28x168xf32>,
    %301 = arith.addf %289, %297 : vector<28x168xf32>
    %c0_327 = arith.constant 0 : index
    %c25 = arith.constant 25 : index
    %c0_328 = arith.constant 0 : index
    %c0_329 = arith.constant 0 : index
    %302 = vector.load %arg1[%c0_327, %c25, %c0_328, %c0_329] : memref<1x28x28x72xf32, #tpu.memory_space<vmem>>, vector<1x1x28x72xf32>
    %303 = vector.shape_cast %302 : vector<1x1x28x72xf32> to vector<28x72xf32>
    %c0_330 = arith.constant 0 : index
    %c25_331 = arith.constant 25 : index
    %c0_332 = arith.constant 0 : index
    %c0_333 = arith.constant 0 : index
    %304 = vector.load %arg2[%c0_330, %c25_331, %c0_332, %c0_333] : memref<1x28x28x72xf32, #tpu.memory_space<vmem>>, vector<1x1x28x72xf32>
    %305 = vector.shape_cast %304 : vector<1x1x28x72xf32> to vector<28x72xf32>
    %306 = arith.addf %303, %305 : vector<28x72xf32>
    %cst_334 = arith.constant 0.000000e+00 : f32
    %307 = vector.broadcast %cst_334 : f32 to vector<28x72xf32>
    %308 = arith.maximumf %306, %307 : vector<28x72xf32>
    %cst_335 = arith.constant dense<0.000000e+00> : vector<28x168xf32>
    %309 = tpu.matmul %308, %0, %cst_335 {dimension_numbers = #tpu.dot_dimension_numbers<[1], [0], [0], [1], [0, 0, 1, 1], [], []>} : vector<28x72xf32>, vector<72x168xf32>, vector<28x168xf32> -> vector<28x168xf32>
    %c0_336 = arith.constant 0 : index
    %c25_337 = arith.constant 25 : index
    %c0_338 = arith.constant 0 : index
    %c0_339 = arith.constant 0 : index
    %310 = vector.load %arg6[%c0_336, %c25_337, %c0_338, %c0_339] : memref<1x28x28x168xf32, #tpu.memory_space<vmem>>, vector<1x1x28x168xf32>
    %311 = vector.shape_cast %310 : vector<1x1x28x168xf32> to vector<28x168xf32>
    %312 = vector.shape_cast %309 : vector<28x168xf32> to vector<1x1x28x168xf32>
    tpu.vector_store %arg6[%c0_336, %c25_337, %c0_338, %c0_339], %312 {strides = array<i32>} : memref<1x28x28x168xf32, #tpu.memory_space<vmem>>, vector<1x1x28x168xf32>,
    %313 = arith.addf %301, %309 : vector<28x168xf32>
    %c0_340 = arith.constant 0 : index
    %c26 = arith.constant 26 : index
    %c0_341 = arith.constant 0 : index
    %c0_342 = arith.constant 0 : index
    %314 = vector.load %arg1[%c0_340, %c26, %c0_341, %c0_342] : memref<1x28x28x72xf32, #tpu.memory_space<vmem>>, vector<1x1x28x72xf32>
    %315 = vector.shape_cast %314 : vector<1x1x28x72xf32> to vector<28x72xf32>
    %c0_343 = arith.constant 0 : index
    %c26_344 = arith.constant 26 : index
    %c0_345 = arith.constant 0 : index
    %c0_346 = arith.constant 0 : index
    %316 = vector.load %arg2[%c0_343, %c26_344, %c0_345, %c0_346] : memref<1x28x28x72xf32, #tpu.memory_space<vmem>>, vector<1x1x28x72xf32>
    %317 = vector.shape_cast %316 : vector<1x1x28x72xf32> to vector<28x72xf32>
    %318 = arith.addf %315, %317 : vector<28x72xf32>
    %cst_347 = arith.constant 0.000000e+00 : f32
    %319 = vector.broadcast %cst_347 : f32 to vector<28x72xf32>
    %320 = arith.maximumf %318, %319 : vector<28x72xf32>
    %cst_348 = arith.constant dense<0.000000e+00> : vector<28x168xf32>
    %321 = tpu.matmul %320, %0, %cst_348 {dimension_numbers = #tpu.dot_dimension_numbers<[1], [0], [0], [1], [0, 0, 1, 1], [], []>} : vector<28x72xf32>, vector<72x168xf32>, vector<28x168xf32> -> vector<28x168xf32>
    %c0_349 = arith.constant 0 : index
    %c26_350 = arith.constant 26 : index
    %c0_351 = arith.constant 0 : index
    %c0_352 = arith.constant 0 : index
    %322 = vector.load %arg6[%c0_349, %c26_350, %c0_351, %c0_352] : memref<1x28x28x168xf32, #tpu.memory_space<vmem>>, vector<1x1x28x168xf32>
    %323 = vector.shape_cast %322 : vector<1x1x28x168xf32> to vector<28x168xf32>
    %324 = vector.shape_cast %321 : vector<28x168xf32> to vector<1x1x28x168xf32>
    tpu.vector_store %arg6[%c0_349, %c26_350, %c0_351, %c0_352], %324 {strides = array<i32>} : memref<1x28x28x168xf32, #tpu.memory_space<vmem>>, vector<1x1x28x168xf32>,
    %325 = arith.addf %313, %321 : vector<28x168xf32>
    %c0_353 = arith.constant 0 : index
    %c27 = arith.constant 27 : index
    %c0_354 = arith.constant 0 : index
    %c0_355 = arith.constant 0 : index
    %326 = vector.load %arg1[%c0_353, %c27, %c0_354, %c0_355] : memref<1x28x28x72xf32, #tpu.memory_space<vmem>>, vector<1x1x28x72xf32>
    %327 = vector.shape_cast %326 : vector<1x1x28x72xf32> to vector<28x72xf32>
    %c0_356 = arith.constant 0 : index
    %c27_357 = arith.constant 27 : index
    %c0_358 = arith.constant 0 : index
    %c0_359 = arith.constant 0 : index
    %328 = vector.load %arg2[%c0_356, %c27_357, %c0_358, %c0_359] : memref<1x28x28x72xf32, #tpu.memory_space<vmem>>, vector<1x1x28x72xf32>
    %329 = vector.shape_cast %328 : vector<1x1x28x72xf32> to vector<28x72xf32>
    %330 = arith.addf %327, %329 : vector<28x72xf32>
    %cst_360 = arith.constant 0.000000e+00 : f32
    %331 = vector.broadcast %cst_360 : f32 to vector<28x72xf32>
    %332 = arith.maximumf %330, %331 : vector<28x72xf32>
    %cst_361 = arith.constant dense<0.000000e+00> : vector<28x168xf32>
    %333 = tpu.matmul %332, %0, %cst_361 {dimension_numbers = #tpu.dot_dimension_numbers<[1], [0], [0], [1], [0, 0, 1, 1], [], []>} : vector<28x72xf32>, vector<72x168xf32>, vector<28x168xf32> -> vector<28x168xf32>
    %c0_362 = arith.constant 0 : index
    %c27_363 = arith.constant 27 : index
    %c0_364 = arith.constant 0 : index
    %c0_365 = arith.constant 0 : index
    %334 = vector.load %arg6[%c0_362, %c27_363, %c0_364, %c0_365] : memref<1x28x28x168xf32, #tpu.memory_space<vmem>>, vector<1x1x28x168xf32>
    %335 = vector.shape_cast %334 : vector<1x1x28x168xf32> to vector<28x168xf32>
    %336 = vector.shape_cast %333 : vector<28x168xf32> to vector<1x1x28x168xf32>
    tpu.vector_store %arg6[%c0_362, %c27_363, %c0_364, %c0_365], %336 {strides = array<i32>} : memref<1x28x28x168xf32, #tpu.memory_space<vmem>>, vector<1x1x28x168xf32>,
    %337 = arith.addf %325, %333 : vector<28x168xf32>
    %cst_366 = arith.constant dense<0.000000e+00> : vector<168xf32>
    %338 = vector.multi_reduction <add>, %337, %cst_366 [0] : vector<28x168xf32> to vector<168xf32>
    %339 = vector.shape_cast %338 : vector<168xf32> to vector<1x168xf32>
    %cst_367 = arith.constant 0.00127551018 : f32
    %340 = vector.broadcast %cst_367 : f32 to vector<1x168xf32>
    %341 = arith.mulf %339, %340 : vector<1x168xf32>
    %cst_368 = arith.constant 0.000000e+00 : f32
    %342 = vector.broadcast %cst_368 : f32 to vector<28x168xf32>
    %c0_369 = arith.constant 0 : index
    %c0_370 = arith.constant 0 : index
    %c0_371 = arith.constant 0 : index
    %c0_372 = arith.constant 0 : index
    %343 = vector.load %arg6[%c0_369, %c0_370, %c0_371, %c0_372] : memref<1x28x28x168xf32, #tpu.memory_space<vmem>>, vector<1x1x28x168xf32>
    %344 = vector.shape_cast %343 : vector<1x1x28x168xf32> to vector<28x168xf32>
    %345 = vector.broadcast %341 : vector<1x168xf32> to vector<28x168xf32>
    %346 = arith.subf %344, %345 : vector<28x168xf32>
    %347 = arith.mulf %346, %346 : vector<28x168xf32>
    %348 = arith.addf %342, %347 : vector<28x168xf32>
    %c0_373 = arith.constant 0 : index
    %c1_374 = arith.constant 1 : index
    %c0_375 = arith.constant 0 : index
    %c0_376 = arith.constant 0 : index
    %349 = vector.load %arg6[%c0_373, %c1_374, %c0_375, %c0_376] : memref<1x28x28x168xf32, #tpu.memory_space<vmem>>, vector<1x1x28x168xf32>
    %350 = vector.shape_cast %349 : vector<1x1x28x168xf32> to vector<28x168xf32>
    %351 = vector.broadcast %341 : vector<1x168xf32> to vector<28x168xf32>
    %352 = arith.subf %350, %351 : vector<28x168xf32>
    %353 = arith.mulf %352, %352 : vector<28x168xf32>
    %354 = arith.addf %348, %353 : vector<28x168xf32>
    %c0_377 = arith.constant 0 : index
    %c2_378 = arith.constant 2 : index
    %c0_379 = arith.constant 0 : index
    %c0_380 = arith.constant 0 : index
    %355 = vector.load %arg6[%c0_377, %c2_378, %c0_379, %c0_380] : memref<1x28x28x168xf32, #tpu.memory_space<vmem>>, vector<1x1x28x168xf32>
    %356 = vector.shape_cast %355 : vector<1x1x28x168xf32> to vector<28x168xf32>
    %357 = vector.broadcast %341 : vector<1x168xf32> to vector<28x168xf32>
    %358 = arith.subf %356, %357 : vector<28x168xf32>
    %359 = arith.mulf %358, %358 : vector<28x168xf32>
    %360 = arith.addf %354, %359 : vector<28x168xf32>
    %c0_381 = arith.constant 0 : index
    %c3_382 = arith.constant 3 : index
    %c0_383 = arith.constant 0 : index
    %c0_384 = arith.constant 0 : index
    %361 = vector.load %arg6[%c0_381, %c3_382, %c0_383, %c0_384] : memref<1x28x28x168xf32, #tpu.memory_space<vmem>>, vector<1x1x28x168xf32>
    %362 = vector.shape_cast %361 : vector<1x1x28x168xf32> to vector<28x168xf32>
    %363 = vector.broadcast %341 : vector<1x168xf32> to vector<28x168xf32>
    %364 = arith.subf %362, %363 : vector<28x168xf32>
    %365 = arith.mulf %364, %364 : vector<28x168xf32>
    %366 = arith.addf %360, %365 : vector<28x168xf32>
    %c0_385 = arith.constant 0 : index
    %c4_386 = arith.constant 4 : index
    %c0_387 = arith.constant 0 : index
    %c0_388 = arith.constant 0 : index
    %367 = vector.load %arg6[%c0_385, %c4_386, %c0_387, %c0_388] : memref<1x28x28x168xf32, #tpu.memory_space<vmem>>, vector<1x1x28x168xf32>
    %368 = vector.shape_cast %367 : vector<1x1x28x168xf32> to vector<28x168xf32>
    %369 = vector.broadcast %341 : vector<1x168xf32> to vector<28x168xf32>
    %370 = arith.subf %368, %369 : vector<28x168xf32>
    %371 = arith.mulf %370, %370 : vector<28x168xf32>
    %372 = arith.addf %366, %371 : vector<28x168xf32>
    %c0_389 = arith.constant 0 : index
    %c5_390 = arith.constant 5 : index
    %c0_391 = arith.constant 0 : index
    %c0_392 = arith.constant 0 : index
    %373 = vector.load %arg6[%c0_389, %c5_390, %c0_391, %c0_392] : memref<1x28x28x168xf32, #tpu.memory_space<vmem>>, vector<1x1x28x168xf32>
    %374 = vector.shape_cast %373 : vector<1x1x28x168xf32> to vector<28x168xf32>
    %375 = vector.broadcast %341 : vector<1x168xf32> to vector<28x168xf32>
    %376 = arith.subf %374, %375 : vector<28x168xf32>
    %377 = arith.mulf %376, %376 : vector<28x168xf32>
    %378 = arith.addf %372, %377 : vector<28x168xf32>
    %c0_393 = arith.constant 0 : index
    %c6_394 = arith.constant 6 : index
    %c0_395 = arith.constant 0 : index
    %c0_396 = arith.constant 0 : index
    %379 = vector.load %arg6[%c0_393, %c6_394, %c0_395, %c0_396] : memref<1x28x28x168xf32, #tpu.memory_space<vmem>>, vector<1x1x28x168xf32>
    %380 = vector.shape_cast %379 : vector<1x1x28x168xf32> to vector<28x168xf32>
    %381 = vector.broadcast %341 : vector<1x168xf32> to vector<28x168xf32>
    %382 = arith.subf %380, %381 : vector<28x168xf32>
    %383 = arith.mulf %382, %382 : vector<28x168xf32>
    %384 = arith.addf %378, %383 : vector<28x168xf32>
    %c0_397 = arith.constant 0 : index
    %c7_398 = arith.constant 7 : index
    %c0_399 = arith.constant 0 : index
    %c0_400 = arith.constant 0 : index
    %385 = vector.load %arg6[%c0_397, %c7_398, %c0_399, %c0_400] : memref<1x28x28x168xf32, #tpu.memory_space<vmem>>, vector<1x1x28x168xf32>
    %386 = vector.shape_cast %385 : vector<1x1x28x168xf32> to vector<28x168xf32>
    %387 = vector.broadcast %341 : vector<1x168xf32> to vector<28x168xf32>
    %388 = arith.subf %386, %387 : vector<28x168xf32>
    %389 = arith.mulf %388, %388 : vector<28x168xf32>
    %390 = arith.addf %384, %389 : vector<28x168xf32>
    %c0_401 = arith.constant 0 : index
    %c8_402 = arith.constant 8 : index
    %c0_403 = arith.constant 0 : index
    %c0_404 = arith.constant 0 : index
    %391 = vector.load %arg6[%c0_401, %c8_402, %c0_403, %c0_404] : memref<1x28x28x168xf32, #tpu.memory_space<vmem>>, vector<1x1x28x168xf32>
    %392 = vector.shape_cast %391 : vector<1x1x28x168xf32> to vector<28x168xf32>
    %393 = vector.broadcast %341 : vector<1x168xf32> to vector<28x168xf32>
    %394 = arith.subf %392, %393 : vector<28x168xf32>
    %395 = arith.mulf %394, %394 : vector<28x168xf32>
    %396 = arith.addf %390, %395 : vector<28x168xf32>
    %c0_405 = arith.constant 0 : index
    %c9_406 = arith.constant 9 : index
    %c0_407 = arith.constant 0 : index
    %c0_408 = arith.constant 0 : index
    %397 = vector.load %arg6[%c0_405, %c9_406, %c0_407, %c0_408] : memref<1x28x28x168xf32, #tpu.memory_space<vmem>>, vector<1x1x28x168xf32>
    %398 = vector.shape_cast %397 : vector<1x1x28x168xf32> to vector<28x168xf32>
    %399 = vector.broadcast %341 : vector<1x168xf32> to vector<28x168xf32>
    %400 = arith.subf %398, %399 : vector<28x168xf32>
    %401 = arith.mulf %400, %400 : vector<28x168xf32>
    %402 = arith.addf %396, %401 : vector<28x168xf32>
    %c0_409 = arith.constant 0 : index
    %c10_410 = arith.constant 10 : index
    %c0_411 = arith.constant 0 : index
    %c0_412 = arith.constant 0 : index
    %403 = vector.load %arg6[%c0_409, %c10_410, %c0_411, %c0_412] : memref<1x28x28x168xf32, #tpu.memory_space<vmem>>, vector<1x1x28x168xf32>
    %404 = vector.shape_cast %403 : vector<1x1x28x168xf32> to vector<28x168xf32>
    %405 = vector.broadcast %341 : vector<1x168xf32> to vector<28x168xf32>
    %406 = arith.subf %404, %405 : vector<28x168xf32>
    %407 = arith.mulf %406, %406 : vector<28x168xf32>
    %408 = arith.addf %402, %407 : vector<28x168xf32>
    %c0_413 = arith.constant 0 : index
    %c11_414 = arith.constant 11 : index
    %c0_415 = arith.constant 0 : index
    %c0_416 = arith.constant 0 : index
    %409 = vector.load %arg6[%c0_413, %c11_414, %c0_415, %c0_416] : memref<1x28x28x168xf32, #tpu.memory_space<vmem>>, vector<1x1x28x168xf32>
    %410 = vector.shape_cast %409 : vector<1x1x28x168xf32> to vector<28x168xf32>
    %411 = vector.broadcast %341 : vector<1x168xf32> to vector<28x168xf32>
    %412 = arith.subf %410, %411 : vector<28x168xf32>
    %413 = arith.mulf %412, %412 : vector<28x168xf32>
    %414 = arith.addf %408, %413 : vector<28x168xf32>
    %c0_417 = arith.constant 0 : index
    %c12_418 = arith.constant 12 : index
    %c0_419 = arith.constant 0 : index
    %c0_420 = arith.constant 0 : index
    %415 = vector.load %arg6[%c0_417, %c12_418, %c0_419, %c0_420] : memref<1x28x28x168xf32, #tpu.memory_space<vmem>>, vector<1x1x28x168xf32>
    %416 = vector.shape_cast %415 : vector<1x1x28x168xf32> to vector<28x168xf32>
    %417 = vector.broadcast %341 : vector<1x168xf32> to vector<28x168xf32>
    %418 = arith.subf %416, %417 : vector<28x168xf32>
    %419 = arith.mulf %418, %418 : vector<28x168xf32>
    %420 = arith.addf %414, %419 : vector<28x168xf32>
    %c0_421 = arith.constant 0 : index
    %c13_422 = arith.constant 13 : index
    %c0_423 = arith.constant 0 : index
    %c0_424 = arith.constant 0 : index
    %421 = vector.load %arg6[%c0_421, %c13_422, %c0_423, %c0_424] : memref<1x28x28x168xf32, #tpu.memory_space<vmem>>, vector<1x1x28x168xf32>
    %422 = vector.shape_cast %421 : vector<1x1x28x168xf32> to vector<28x168xf32>
    %423 = vector.broadcast %341 : vector<1x168xf32> to vector<28x168xf32>
    %424 = arith.subf %422, %423 : vector<28x168xf32>
    %425 = arith.mulf %424, %424 : vector<28x168xf32>
    %426 = arith.addf %420, %425 : vector<28x168xf32>
    %c0_425 = arith.constant 0 : index
    %c14_426 = arith.constant 14 : index
    %c0_427 = arith.constant 0 : index
    %c0_428 = arith.constant 0 : index
    %427 = vector.load %arg6[%c0_425, %c14_426, %c0_427, %c0_428] : memref<1x28x28x168xf32, #tpu.memory_space<vmem>>, vector<1x1x28x168xf32>
    %428 = vector.shape_cast %427 : vector<1x1x28x168xf32> to vector<28x168xf32>
    %429 = vector.broadcast %341 : vector<1x168xf32> to vector<28x168xf32>
    %430 = arith.subf %428, %429 : vector<28x168xf32>
    %431 = arith.mulf %430, %430 : vector<28x168xf32>
    %432 = arith.addf %426, %431 : vector<28x168xf32>
    %c0_429 = arith.constant 0 : index
    %c15_430 = arith.constant 15 : index
    %c0_431 = arith.constant 0 : index
    %c0_432 = arith.constant 0 : index
    %433 = vector.load %arg6[%c0_429, %c15_430, %c0_431, %c0_432] : memref<1x28x28x168xf32, #tpu.memory_space<vmem>>, vector<1x1x28x168xf32>
    %434 = vector.shape_cast %433 : vector<1x1x28x168xf32> to vector<28x168xf32>
    %435 = vector.broadcast %341 : vector<1x168xf32> to vector<28x168xf32>
    %436 = arith.subf %434, %435 : vector<28x168xf32>
    %437 = arith.mulf %436, %436 : vector<28x168xf32>
    %438 = arith.addf %432, %437 : vector<28x168xf32>
    %c0_433 = arith.constant 0 : index
    %c16_434 = arith.constant 16 : index
    %c0_435 = arith.constant 0 : index
    %c0_436 = arith.constant 0 : index
    %439 = vector.load %arg6[%c0_433, %c16_434, %c0_435, %c0_436] : memref<1x28x28x168xf32, #tpu.memory_space<vmem>>, vector<1x1x28x168xf32>
    %440 = vector.shape_cast %439 : vector<1x1x28x168xf32> to vector<28x168xf32>
    %441 = vector.broadcast %341 : vector<1x168xf32> to vector<28x168xf32>
    %442 = arith.subf %440, %441 : vector<28x168xf32>
    %443 = arith.mulf %442, %442 : vector<28x168xf32>
    %444 = arith.addf %438, %443 : vector<28x168xf32>
    %c0_437 = arith.constant 0 : index
    %c17_438 = arith.constant 17 : index
    %c0_439 = arith.constant 0 : index
    %c0_440 = arith.constant 0 : index
    %445 = vector.load %arg6[%c0_437, %c17_438, %c0_439, %c0_440] : memref<1x28x28x168xf32, #tpu.memory_space<vmem>>, vector<1x1x28x168xf32>
    %446 = vector.shape_cast %445 : vector<1x1x28x168xf32> to vector<28x168xf32>
    %447 = vector.broadcast %341 : vector<1x168xf32> to vector<28x168xf32>
    %448 = arith.subf %446, %447 : vector<28x168xf32>
    %449 = arith.mulf %448, %448 : vector<28x168xf32>
    %450 = arith.addf %444, %449 : vector<28x168xf32>
    %c0_441 = arith.constant 0 : index
    %c18_442 = arith.constant 18 : index
    %c0_443 = arith.constant 0 : index
    %c0_444 = arith.constant 0 : index
    %451 = vector.load %arg6[%c0_441, %c18_442, %c0_443, %c0_444] : memref<1x28x28x168xf32, #tpu.memory_space<vmem>>, vector<1x1x28x168xf32>
    %452 = vector.shape_cast %451 : vector<1x1x28x168xf32> to vector<28x168xf32>
    %453 = vector.broadcast %341 : vector<1x168xf32> to vector<28x168xf32>
    %454 = arith.subf %452, %453 : vector<28x168xf32>
    %455 = arith.mulf %454, %454 : vector<28x168xf32>
    %456 = arith.addf %450, %455 : vector<28x168xf32>
    %c0_445 = arith.constant 0 : index
    %c19_446 = arith.constant 19 : index
    %c0_447 = arith.constant 0 : index
    %c0_448 = arith.constant 0 : index
    %457 = vector.load %arg6[%c0_445, %c19_446, %c0_447, %c0_448] : memref<1x28x28x168xf32, #tpu.memory_space<vmem>>, vector<1x1x28x168xf32>
    %458 = vector.shape_cast %457 : vector<1x1x28x168xf32> to vector<28x168xf32>
    %459 = vector.broadcast %341 : vector<1x168xf32> to vector<28x168xf32>
    %460 = arith.subf %458, %459 : vector<28x168xf32>
    %461 = arith.mulf %460, %460 : vector<28x168xf32>
    %462 = arith.addf %456, %461 : vector<28x168xf32>
    %c0_449 = arith.constant 0 : index
    %c20_450 = arith.constant 20 : index
    %c0_451 = arith.constant 0 : index
    %c0_452 = arith.constant 0 : index
    %463 = vector.load %arg6[%c0_449, %c20_450, %c0_451, %c0_452] : memref<1x28x28x168xf32, #tpu.memory_space<vmem>>, vector<1x1x28x168xf32>
    %464 = vector.shape_cast %463 : vector<1x1x28x168xf32> to vector<28x168xf32>
    %465 = vector.broadcast %341 : vector<1x168xf32> to vector<28x168xf32>
    %466 = arith.subf %464, %465 : vector<28x168xf32>
    %467 = arith.mulf %466, %466 : vector<28x168xf32>
    %468 = arith.addf %462, %467 : vector<28x168xf32>
    %c0_453 = arith.constant 0 : index
    %c21_454 = arith.constant 21 : index
    %c0_455 = arith.constant 0 : index
    %c0_456 = arith.constant 0 : index
    %469 = vector.load %arg6[%c0_453, %c21_454, %c0_455, %c0_456] : memref<1x28x28x168xf32, #tpu.memory_space<vmem>>, vector<1x1x28x168xf32>
    %470 = vector.shape_cast %469 : vector<1x1x28x168xf32> to vector<28x168xf32>
    %471 = vector.broadcast %341 : vector<1x168xf32> to vector<28x168xf32>
    %472 = arith.subf %470, %471 : vector<28x168xf32>
    %473 = arith.mulf %472, %472 : vector<28x168xf32>
    %474 = arith.addf %468, %473 : vector<28x168xf32>
    %c0_457 = arith.constant 0 : index
    %c22_458 = arith.constant 22 : index
    %c0_459 = arith.constant 0 : index
    %c0_460 = arith.constant 0 : index
    %475 = vector.load %arg6[%c0_457, %c22_458, %c0_459, %c0_460] : memref<1x28x28x168xf32, #tpu.memory_space<vmem>>, vector<1x1x28x168xf32>
    %476 = vector.shape_cast %475 : vector<1x1x28x168xf32> to vector<28x168xf32>
    %477 = vector.broadcast %341 : vector<1x168xf32> to vector<28x168xf32>
    %478 = arith.subf %476, %477 : vector<28x168xf32>
    %479 = arith.mulf %478, %478 : vector<28x168xf32>
    %480 = arith.addf %474, %479 : vector<28x168xf32>
    %c0_461 = arith.constant 0 : index
    %c23_462 = arith.constant 23 : index
    %c0_463 = arith.constant 0 : index
    %c0_464 = arith.constant 0 : index
    %481 = vector.load %arg6[%c0_461, %c23_462, %c0_463, %c0_464] : memref<1x28x28x168xf32, #tpu.memory_space<vmem>>, vector<1x1x28x168xf32>
    %482 = vector.shape_cast %481 : vector<1x1x28x168xf32> to vector<28x168xf32>
    %483 = vector.broadcast %341 : vector<1x168xf32> to vector<28x168xf32>
    %484 = arith.subf %482, %483 : vector<28x168xf32>
    %485 = arith.mulf %484, %484 : vector<28x168xf32>
    %486 = arith.addf %480, %485 : vector<28x168xf32>
    %c0_465 = arith.constant 0 : index
    %c24_466 = arith.constant 24 : index
    %c0_467 = arith.constant 0 : index
    %c0_468 = arith.constant 0 : index
    %487 = vector.load %arg6[%c0_465, %c24_466, %c0_467, %c0_468] : memref<1x28x28x168xf32, #tpu.memory_space<vmem>>, vector<1x1x28x168xf32>
    %488 = vector.shape_cast %487 : vector<1x1x28x168xf32> to vector<28x168xf32>
    %489 = vector.broadcast %341 : vector<1x168xf32> to vector<28x168xf32>
    %490 = arith.subf %488, %489 : vector<28x168xf32>
    %491 = arith.mulf %490, %490 : vector<28x168xf32>
    %492 = arith.addf %486, %491 : vector<28x168xf32>
    %c0_469 = arith.constant 0 : index
    %c25_470 = arith.constant 25 : index
    %c0_471 = arith.constant 0 : index
    %c0_472 = arith.constant 0 : index
    %493 = vector.load %arg6[%c0_469, %c25_470, %c0_471, %c0_472] : memref<1x28x28x168xf32, #tpu.memory_space<vmem>>, vector<1x1x28x168xf32>
    %494 = vector.shape_cast %493 : vector<1x1x28x168xf32> to vector<28x168xf32>
    %495 = vector.broadcast %341 : vector<1x168xf32> to vector<28x168xf32>
    %496 = arith.subf %494, %495 : vector<28x168xf32>
    %497 = arith.mulf %496, %496 : vector<28x168xf32>
    %498 = arith.addf %492, %497 : vector<28x168xf32>
    %c0_473 = arith.constant 0 : index
    %c26_474 = arith.constant 26 : index
    %c0_475 = arith.constant 0 : index
    %c0_476 = arith.constant 0 : index
    %499 = vector.load %arg6[%c0_473, %c26_474, %c0_475, %c0_476] : memref<1x28x28x168xf32, #tpu.memory_space<vmem>>, vector<1x1x28x168xf32>
    %500 = vector.shape_cast %499 : vector<1x1x28x168xf32> to vector<28x168xf32>
    %501 = vector.broadcast %341 : vector<1x168xf32> to vector<28x168xf32>
    %502 = arith.subf %500, %501 : vector<28x168xf32>
    %503 = arith.mulf %502, %502 : vector<28x168xf32>
    %504 = arith.addf %498, %503 : vector<28x168xf32>
    %c0_477 = arith.constant 0 : index
    %c27_478 = arith.constant 27 : index
    %c0_479 = arith.constant 0 : index
    %c0_480 = arith.constant 0 : index
    %505 = vector.load %arg6[%c0_477, %c27_478, %c0_479, %c0_480] : memref<1x28x28x168xf32, #tpu.memory_space<vmem>>, vector<1x1x28x168xf32>
    %506 = vector.shape_cast %505 : vector<1x1x28x168xf32> to vector<28x168xf32>
    %507 = vector.broadcast %341 : vector<1x168xf32> to vector<28x168xf32>
    %508 = arith.subf %506, %507 : vector<28x168xf32>
    %509 = arith.mulf %508, %508 : vector<28x168xf32>
    %510 = arith.addf %504, %509 : vector<28x168xf32>
    %cst_481 = arith.constant dense<0.000000e+00> : vector<168xf32>
    %511 = vector.multi_reduction <add>, %510, %cst_481 [0] : vector<28x168xf32> to vector<168xf32>
    %512 = vector.shape_cast %511 : vector<168xf32> to vector<1x168xf32>
    %cst_482 = arith.constant 0.00127551018 : f32
    %513 = vector.broadcast %cst_482 : f32 to vector<1x168xf32>
    %514 = arith.mulf %512, %513 : vector<1x168xf32>
    %cst_483 = arith.constant 9.99999974E-6 : f32
    %515 = vector.broadcast %cst_483 : f32 to vector<1x168xf32>
    %516 = arith.addf %514, %515 : vector<1x168xf32>
    %517 = math.rsqrt %516 : vector<1x168xf32>
    %c0_484 = arith.constant 0 : index
    %c0_485 = arith.constant 0 : index
    %518 = vector.load %arg4[%c0_484, %c0_485] : memref<1x168xf32, #tpu.memory_space<vmem>>, vector<1x168xf32>
    %519 = arith.mulf %518, %517 : vector<1x168xf32>
    %c0_486 = arith.constant 0 : index
    %c0_487 = arith.constant 0 : index
    %520 = vector.load %arg5[%c0_486, %c0_487] : memref<1x168xf32, #tpu.memory_space<vmem>>, vector<1x168xf32>
    %521 = arith.mulf %341, %519 : vector<1x168xf32>
    %522 = arith.subf %520, %521 : vector<1x168xf32>
    %c0_488 = arith.constant 0 : index
    %c0_489 = arith.constant 0 : index
    %c0_490 = arith.constant 0 : index
    %c0_491 = arith.constant 0 : index
    %523 = vector.load %arg6[%c0_488, %c0_489, %c0_490, %c0_491] : memref<1x28x28x168xf32, #tpu.memory_space<vmem>>, vector<1x1x28x168xf32>
    %524 = vector.shape_cast %523 : vector<1x1x28x168xf32> to vector<28x168xf32>
    %525 = vector.broadcast %519 : vector<1x168xf32> to vector<28x168xf32>
    %526 = arith.mulf %524, %525 : vector<28x168xf32>
    %527 = vector.broadcast %522 : vector<1x168xf32> to vector<28x168xf32>
    %528 = arith.addf %526, %527 : vector<28x168xf32>
    %c0_492 = arith.constant 0 : index
    %c0_493 = arith.constant 0 : index
    %c0_494 = arith.constant 0 : index
    %c0_495 = arith.constant 0 : index
    %529 = vector.load %arg6[%c0_492, %c0_493, %c0_494, %c0_495] : memref<1x28x28x168xf32, #tpu.memory_space<vmem>>, vector<1x1x28x168xf32>
    %530 = vector.shape_cast %529 : vector<1x1x28x168xf32> to vector<28x168xf32>
    %531 = vector.shape_cast %528 : vector<28x168xf32> to vector<1x1x28x168xf32>
    tpu.vector_store %arg6[%c0_492, %c0_493, %c0_494, %c0_495], %531 {strides = array<i32>} : memref<1x28x28x168xf32, #tpu.memory_space<vmem>>, vector<1x1x28x168xf32>,
    %c0_496 = arith.constant 0 : index
    %c1_497 = arith.constant 1 : index
    %c0_498 = arith.constant 0 : index
    %c0_499 = arith.constant 0 : index
    %532 = vector.load %arg6[%c0_496, %c1_497, %c0_498, %c0_499] : memref<1x28x28x168xf32, #tpu.memory_space<vmem>>, vector<1x1x28x168xf32>
    %533 = vector.shape_cast %532 : vector<1x1x28x168xf32> to vector<28x168xf32>
    %534 = vector.broadcast %519 : vector<1x168xf32> to vector<28x168xf32>
    %535 = arith.mulf %533, %534 : vector<28x168xf32>
    %536 = vector.broadcast %522 : vector<1x168xf32> to vector<28x168xf32>
    %537 = arith.addf %535, %536 : vector<28x168xf32>
    %c0_500 = arith.constant 0 : index
    %c1_501 = arith.constant 1 : index
    %c0_502 = arith.constant 0 : index
    %c0_503 = arith.constant 0 : index
    %538 = vector.load %arg6[%c0_500, %c1_501, %c0_502, %c0_503] : memref<1x28x28x168xf32, #tpu.memory_space<vmem>>, vector<1x1x28x168xf32>
    %539 = vector.shape_cast %538 : vector<1x1x28x168xf32> to vector<28x168xf32>
    %540 = vector.shape_cast %537 : vector<28x168xf32> to vector<1x1x28x168xf32>
    tpu.vector_store %arg6[%c0_500, %c1_501, %c0_502, %c0_503], %540 {strides = array<i32>} : memref<1x28x28x168xf32, #tpu.memory_space<vmem>>, vector<1x1x28x168xf32>,
    %c0_504 = arith.constant 0 : index
    %c2_505 = arith.constant 2 : index
    %c0_506 = arith.constant 0 : index
    %c0_507 = arith.constant 0 : index
    %541 = vector.load %arg6[%c0_504, %c2_505, %c0_506, %c0_507] : memref<1x28x28x168xf32, #tpu.memory_space<vmem>>, vector<1x1x28x168xf32>
    %542 = vector.shape_cast %541 : vector<1x1x28x168xf32> to vector<28x168xf32>
    %543 = vector.broadcast %519 : vector<1x168xf32> to vector<28x168xf32>
    %544 = arith.mulf %542, %543 : vector<28x168xf32>
    %545 = vector.broadcast %522 : vector<1x168xf32> to vector<28x168xf32>
    %546 = arith.addf %544, %545 : vector<28x168xf32>
    %c0_508 = arith.constant 0 : index
    %c2_509 = arith.constant 2 : index
    %c0_510 = arith.constant 0 : index
    %c0_511 = arith.constant 0 : index
    %547 = vector.load %arg6[%c0_508, %c2_509, %c0_510, %c0_511] : memref<1x28x28x168xf32, #tpu.memory_space<vmem>>, vector<1x1x28x168xf32>
    %548 = vector.shape_cast %547 : vector<1x1x28x168xf32> to vector<28x168xf32>
    %549 = vector.shape_cast %546 : vector<28x168xf32> to vector<1x1x28x168xf32>
    tpu.vector_store %arg6[%c0_508, %c2_509, %c0_510, %c0_511], %549 {strides = array<i32>} : memref<1x28x28x168xf32, #tpu.memory_space<vmem>>, vector<1x1x28x168xf32>,
    %c0_512 = arith.constant 0 : index
    %c3_513 = arith.constant 3 : index
    %c0_514 = arith.constant 0 : index
    %c0_515 = arith.constant 0 : index
    %550 = vector.load %arg6[%c0_512, %c3_513, %c0_514, %c0_515] : memref<1x28x28x168xf32, #tpu.memory_space<vmem>>, vector<1x1x28x168xf32>
    %551 = vector.shape_cast %550 : vector<1x1x28x168xf32> to vector<28x168xf32>
    %552 = vector.broadcast %519 : vector<1x168xf32> to vector<28x168xf32>
    %553 = arith.mulf %551, %552 : vector<28x168xf32>
    %554 = vector.broadcast %522 : vector<1x168xf32> to vector<28x168xf32>
    %555 = arith.addf %553, %554 : vector<28x168xf32>
    %c0_516 = arith.constant 0 : index
    %c3_517 = arith.constant 3 : index
    %c0_518 = arith.constant 0 : index
    %c0_519 = arith.constant 0 : index
    %556 = vector.load %arg6[%c0_516, %c3_517, %c0_518, %c0_519] : memref<1x28x28x168xf32, #tpu.memory_space<vmem>>, vector<1x1x28x168xf32>
    %557 = vector.shape_cast %556 : vector<1x1x28x168xf32> to vector<28x168xf32>
    %558 = vector.shape_cast %555 : vector<28x168xf32> to vector<1x1x28x168xf32>
    tpu.vector_store %arg6[%c0_516, %c3_517, %c0_518, %c0_519], %558 {strides = array<i32>} : memref<1x28x28x168xf32, #tpu.memory_space<vmem>>, vector<1x1x28x168xf32>,
    %c0_520 = arith.constant 0 : index
    %c4_521 = arith.constant 4 : index
    %c0_522 = arith.constant 0 : index
    %c0_523 = arith.constant 0 : index
    %559 = vector.load %arg6[%c0_520, %c4_521, %c0_522, %c0_523] : memref<1x28x28x168xf32, #tpu.memory_space<vmem>>, vector<1x1x28x168xf32>
    %560 = vector.shape_cast %559 : vector<1x1x28x168xf32> to vector<28x168xf32>
    %561 = vector.broadcast %519 : vector<1x168xf32> to vector<28x168xf32>
    %562 = arith.mulf %560, %561 : vector<28x168xf32>
    %563 = vector.broadcast %522 : vector<1x168xf32> to vector<28x168xf32>
    %564 = arith.addf %562, %563 : vector<28x168xf32>
    %c0_524 = arith.constant 0 : index
    %c4_525 = arith.constant 4 : index
    %c0_526 = arith.constant 0 : index
    %c0_527 = arith.constant 0 : index
    %565 = vector.load %arg6[%c0_524, %c4_525, %c0_526, %c0_527] : memref<1x28x28x168xf32, #tpu.memory_space<vmem>>, vector<1x1x28x168xf32>
    %566 = vector.shape_cast %565 : vector<1x1x28x168xf32> to vector<28x168xf32>
    %567 = vector.shape_cast %564 : vector<28x168xf32> to vector<1x1x28x168xf32>
    tpu.vector_store %arg6[%c0_524, %c4_525, %c0_526, %c0_527], %567 {strides = array<i32>} : memref<1x28x28x168xf32, #tpu.memory_space<vmem>>, vector<1x1x28x168xf32>,
    %c0_528 = arith.constant 0 : index
    %c5_529 = arith.constant 5 : index
    %c0_530 = arith.constant 0 : index
    %c0_531 = arith.constant 0 : index
    %568 = vector.load %arg6[%c0_528, %c5_529, %c0_530, %c0_531] : memref<1x28x28x168xf32, #tpu.memory_space<vmem>>, vector<1x1x28x168xf32>
    %569 = vector.shape_cast %568 : vector<1x1x28x168xf32> to vector<28x168xf32>
    %570 = vector.broadcast %519 : vector<1x168xf32> to vector<28x168xf32>
    %571 = arith.mulf %569, %570 : vector<28x168xf32>
    %572 = vector.broadcast %522 : vector<1x168xf32> to vector<28x168xf32>
    %573 = arith.addf %571, %572 : vector<28x168xf32>
    %c0_532 = arith.constant 0 : index
    %c5_533 = arith.constant 5 : index
    %c0_534 = arith.constant 0 : index
    %c0_535 = arith.constant 0 : index
    %574 = vector.load %arg6[%c0_532, %c5_533, %c0_534, %c0_535] : memref<1x28x28x168xf32, #tpu.memory_space<vmem>>, vector<1x1x28x168xf32>
    %575 = vector.shape_cast %574 : vector<1x1x28x168xf32> to vector<28x168xf32>
    %576 = vector.shape_cast %573 : vector<28x168xf32> to vector<1x1x28x168xf32>
    tpu.vector_store %arg6[%c0_532, %c5_533, %c0_534, %c0_535], %576 {strides = array<i32>} : memref<1x28x28x168xf32, #tpu.memory_space<vmem>>, vector<1x1x28x168xf32>,
    %c0_536 = arith.constant 0 : index
    %c6_537 = arith.constant 6 : index
    %c0_538 = arith.constant 0 : index
    %c0_539 = arith.constant 0 : index
    %577 = vector.load %arg6[%c0_536, %c6_537, %c0_538, %c0_539] : memref<1x28x28x168xf32, #tpu.memory_space<vmem>>, vector<1x1x28x168xf32>
    %578 = vector.shape_cast %577 : vector<1x1x28x168xf32> to vector<28x168xf32>
    %579 = vector.broadcast %519 : vector<1x168xf32> to vector<28x168xf32>
    %580 = arith.mulf %578, %579 : vector<28x168xf32>
    %581 = vector.broadcast %522 : vector<1x168xf32> to vector<28x168xf32>
    %582 = arith.addf %580, %581 : vector<28x168xf32>
    %c0_540 = arith.constant 0 : index
    %c6_541 = arith.constant 6 : index
    %c0_542 = arith.constant 0 : index
    %c0_543 = arith.constant 0 : index
    %583 = vector.load %arg6[%c0_540, %c6_541, %c0_542, %c0_543] : memref<1x28x28x168xf32, #tpu.memory_space<vmem>>, vector<1x1x28x168xf32>
    %584 = vector.shape_cast %583 : vector<1x1x28x168xf32> to vector<28x168xf32>
    %585 = vector.shape_cast %582 : vector<28x168xf32> to vector<1x1x28x168xf32>
    tpu.vector_store %arg6[%c0_540, %c6_541, %c0_542, %c0_543], %585 {strides = array<i32>} : memref<1x28x28x168xf32, #tpu.memory_space<vmem>>, vector<1x1x28x168xf32>,
    %c0_544 = arith.constant 0 : index
    %c7_545 = arith.constant 7 : index
    %c0_546 = arith.constant 0 : index
    %c0_547 = arith.constant 0 : index
    %586 = vector.load %arg6[%c0_544, %c7_545, %c0_546, %c0_547] : memref<1x28x28x168xf32, #tpu.memory_space<vmem>>, vector<1x1x28x168xf32>
    %587 = vector.shape_cast %586 : vector<1x1x28x168xf32> to vector<28x168xf32>
    %588 = vector.broadcast %519 : vector<1x168xf32> to vector<28x168xf32>
    %589 = arith.mulf %587, %588 : vector<28x168xf32>
    %590 = vector.broadcast %522 : vector<1x168xf32> to vector<28x168xf32>
    %591 = arith.addf %589, %590 : vector<28x168xf32>
    %c0_548 = arith.constant 0 : index
    %c7_549 = arith.constant 7 : index
    %c0_550 = arith.constant 0 : index
    %c0_551 = arith.constant 0 : index
    %592 = vector.load %arg6[%c0_548, %c7_549, %c0_550, %c0_551] : memref<1x28x28x168xf32, #tpu.memory_space<vmem>>, vector<1x1x28x168xf32>
    %593 = vector.shape_cast %592 : vector<1x1x28x168xf32> to vector<28x168xf32>
    %594 = vector.shape_cast %591 : vector<28x168xf32> to vector<1x1x28x168xf32>
    tpu.vector_store %arg6[%c0_548, %c7_549, %c0_550, %c0_551], %594 {strides = array<i32>} : memref<1x28x28x168xf32, #tpu.memory_space<vmem>>, vector<1x1x28x168xf32>,
    %c0_552 = arith.constant 0 : index
    %c8_553 = arith.constant 8 : index
    %c0_554 = arith.constant 0 : index
    %c0_555 = arith.constant 0 : index
    %595 = vector.load %arg6[%c0_552, %c8_553, %c0_554, %c0_555] : memref<1x28x28x168xf32, #tpu.memory_space<vmem>>, vector<1x1x28x168xf32>
    %596 = vector.shape_cast %595 : vector<1x1x28x168xf32> to vector<28x168xf32>
    %597 = vector.broadcast %519 : vector<1x168xf32> to vector<28x168xf32>
    %598 = arith.mulf %596, %597 : vector<28x168xf32>
    %599 = vector.broadcast %522 : vector<1x168xf32> to vector<28x168xf32>
    %600 = arith.addf %598, %599 : vector<28x168xf32>
    %c0_556 = arith.constant 0 : index
    %c8_557 = arith.constant 8 : index
    %c0_558 = arith.constant 0 : index
    %c0_559 = arith.constant 0 : index
    %601 = vector.load %arg6[%c0_556, %c8_557, %c0_558, %c0_559] : memref<1x28x28x168xf32, #tpu.memory_space<vmem>>, vector<1x1x28x168xf32>
    %602 = vector.shape_cast %601 : vector<1x1x28x168xf32> to vector<28x168xf32>
    %603 = vector.shape_cast %600 : vector<28x168xf32> to vector<1x1x28x168xf32>
    tpu.vector_store %arg6[%c0_556, %c8_557, %c0_558, %c0_559], %603 {strides = array<i32>} : memref<1x28x28x168xf32, #tpu.memory_space<vmem>>, vector<1x1x28x168xf32>,
    %c0_560 = arith.constant 0 : index
    %c9_561 = arith.constant 9 : index
    %c0_562 = arith.constant 0 : index
    %c0_563 = arith.constant 0 : index
    %604 = vector.load %arg6[%c0_560, %c9_561, %c0_562, %c0_563] : memref<1x28x28x168xf32, #tpu.memory_space<vmem>>, vector<1x1x28x168xf32>
    %605 = vector.shape_cast %604 : vector<1x1x28x168xf32> to vector<28x168xf32>
    %606 = vector.broadcast %519 : vector<1x168xf32> to vector<28x168xf32>
    %607 = arith.mulf %605, %606 : vector<28x168xf32>
    %608 = vector.broadcast %522 : vector<1x168xf32> to vector<28x168xf32>
    %609 = arith.addf %607, %608 : vector<28x168xf32>
    %c0_564 = arith.constant 0 : index
    %c9_565 = arith.constant 9 : index
    %c0_566 = arith.constant 0 : index
    %c0_567 = arith.constant 0 : index
    %610 = vector.load %arg6[%c0_564, %c9_565, %c0_566, %c0_567] : memref<1x28x28x168xf32, #tpu.memory_space<vmem>>, vector<1x1x28x168xf32>
    %611 = vector.shape_cast %610 : vector<1x1x28x168xf32> to vector<28x168xf32>
    %612 = vector.shape_cast %609 : vector<28x168xf32> to vector<1x1x28x168xf32>
    tpu.vector_store %arg6[%c0_564, %c9_565, %c0_566, %c0_567], %612 {strides = array<i32>} : memref<1x28x28x168xf32, #tpu.memory_space<vmem>>, vector<1x1x28x168xf32>,
    %c0_568 = arith.constant 0 : index
    %c10_569 = arith.constant 10 : index
    %c0_570 = arith.constant 0 : index
    %c0_571 = arith.constant 0 : index
    %613 = vector.load %arg6[%c0_568, %c10_569, %c0_570, %c0_571] : memref<1x28x28x168xf32, #tpu.memory_space<vmem>>, vector<1x1x28x168xf32>
    %614 = vector.shape_cast %613 : vector<1x1x28x168xf32> to vector<28x168xf32>
    %615 = vector.broadcast %519 : vector<1x168xf32> to vector<28x168xf32>
    %616 = arith.mulf %614, %615 : vector<28x168xf32>
    %617 = vector.broadcast %522 : vector<1x168xf32> to vector<28x168xf32>
    %618 = arith.addf %616, %617 : vector<28x168xf32>
    %c0_572 = arith.constant 0 : index
    %c10_573 = arith.constant 10 : index
    %c0_574 = arith.constant 0 : index
    %c0_575 = arith.constant 0 : index
    %619 = vector.load %arg6[%c0_572, %c10_573, %c0_574, %c0_575] : memref<1x28x28x168xf32, #tpu.memory_space<vmem>>, vector<1x1x28x168xf32>
    %620 = vector.shape_cast %619 : vector<1x1x28x168xf32> to vector<28x168xf32>
    %621 = vector.shape_cast %618 : vector<28x168xf32> to vector<1x1x28x168xf32>
    tpu.vector_store %arg6[%c0_572, %c10_573, %c0_574, %c0_575], %621 {strides = array<i32>} : memref<1x28x28x168xf32, #tpu.memory_space<vmem>>, vector<1x1x28x168xf32>,
    %c0_576 = arith.constant 0 : index
    %c11_577 = arith.constant 11 : index
    %c0_578 = arith.constant 0 : index
    %c0_579 = arith.constant 0 : index
    %622 = vector.load %arg6[%c0_576, %c11_577, %c0_578, %c0_579] : memref<1x28x28x168xf32, #tpu.memory_space<vmem>>, vector<1x1x28x168xf32>
    %623 = vector.shape_cast %622 : vector<1x1x28x168xf32> to vector<28x168xf32>
    %624 = vector.broadcast %519 : vector<1x168xf32> to vector<28x168xf32>
    %625 = arith.mulf %623, %624 : vector<28x168xf32>
    %626 = vector.broadcast %522 : vector<1x168xf32> to vector<28x168xf32>
    %627 = arith.addf %625, %626 : vector<28x168xf32>
    %c0_580 = arith.constant 0 : index
    %c11_581 = arith.constant 11 : index
    %c0_582 = arith.constant 0 : index
    %c0_583 = arith.constant 0 : index
    %628 = vector.load %arg6[%c0_580, %c11_581, %c0_582, %c0_583] : memref<1x28x28x168xf32, #tpu.memory_space<vmem>>, vector<1x1x28x168xf32>
    %629 = vector.shape_cast %628 : vector<1x1x28x168xf32> to vector<28x168xf32>
    %630 = vector.shape_cast %627 : vector<28x168xf32> to vector<1x1x28x168xf32>
    tpu.vector_store %arg6[%c0_580, %c11_581, %c0_582, %c0_583], %630 {strides = array<i32>} : memref<1x28x28x168xf32, #tpu.memory_space<vmem>>, vector<1x1x28x168xf32>,
    %c0_584 = arith.constant 0 : index
    %c12_585 = arith.constant 12 : index
    %c0_586 = arith.constant 0 : index
    %c0_587 = arith.constant 0 : index
    %631 = vector.load %arg6[%c0_584, %c12_585, %c0_586, %c0_587] : memref<1x28x28x168xf32, #tpu.memory_space<vmem>>, vector<1x1x28x168xf32>
    %632 = vector.shape_cast %631 : vector<1x1x28x168xf32> to vector<28x168xf32>
    %633 = vector.broadcast %519 : vector<1x168xf32> to vector<28x168xf32>
    %634 = arith.mulf %632, %633 : vector<28x168xf32>
    %635 = vector.broadcast %522 : vector<1x168xf32> to vector<28x168xf32>
    %636 = arith.addf %634, %635 : vector<28x168xf32>
    %c0_588 = arith.constant 0 : index
    %c12_589 = arith.constant 12 : index
    %c0_590 = arith.constant 0 : index
    %c0_591 = arith.constant 0 : index
    %637 = vector.load %arg6[%c0_588, %c12_589, %c0_590, %c0_591] : memref<1x28x28x168xf32, #tpu.memory_space<vmem>>, vector<1x1x28x168xf32>
    %638 = vector.shape_cast %637 : vector<1x1x28x168xf32> to vector<28x168xf32>
    %639 = vector.shape_cast %636 : vector<28x168xf32> to vector<1x1x28x168xf32>
    tpu.vector_store %arg6[%c0_588, %c12_589, %c0_590, %c0_591], %639 {strides = array<i32>} : memref<1x28x28x168xf32, #tpu.memory_space<vmem>>, vector<1x1x28x168xf32>,
    %c0_592 = arith.constant 0 : index
    %c13_593 = arith.constant 13 : index
    %c0_594 = arith.constant 0 : index
    %c0_595 = arith.constant 0 : index
    %640 = vector.load %arg6[%c0_592, %c13_593, %c0_594, %c0_595] : memref<1x28x28x168xf32, #tpu.memory_space<vmem>>, vector<1x1x28x168xf32>
    %641 = vector.shape_cast %640 : vector<1x1x28x168xf32> to vector<28x168xf32>
    %642 = vector.broadcast %519 : vector<1x168xf32> to vector<28x168xf32>
    %643 = arith.mulf %641, %642 : vector<28x168xf32>
    %644 = vector.broadcast %522 : vector<1x168xf32> to vector<28x168xf32>
    %645 = arith.addf %643, %644 : vector<28x168xf32>
    %c0_596 = arith.constant 0 : index
    %c13_597 = arith.constant 13 : index
    %c0_598 = arith.constant 0 : index
    %c0_599 = arith.constant 0 : index
    %646 = vector.load %arg6[%c0_596, %c13_597, %c0_598, %c0_599] : memref<1x28x28x168xf32, #tpu.memory_space<vmem>>, vector<1x1x28x168xf32>
    %647 = vector.shape_cast %646 : vector<1x1x28x168xf32> to vector<28x168xf32>
    %648 = vector.shape_cast %645 : vector<28x168xf32> to vector<1x1x28x168xf32>
    tpu.vector_store %arg6[%c0_596, %c13_597, %c0_598, %c0_599], %648 {strides = array<i32>} : memref<1x28x28x168xf32, #tpu.memory_space<vmem>>, vector<1x1x28x168xf32>,
    %c0_600 = arith.constant 0 : index
    %c14_601 = arith.constant 14 : index
    %c0_602 = arith.constant 0 : index
    %c0_603 = arith.constant 0 : index
    %649 = vector.load %arg6[%c0_600, %c14_601, %c0_602, %c0_603] : memref<1x28x28x168xf32, #tpu.memory_space<vmem>>, vector<1x1x28x168xf32>
    %650 = vector.shape_cast %649 : vector<1x1x28x168xf32> to vector<28x168xf32>
    %651 = vector.broadcast %519 : vector<1x168xf32> to vector<28x168xf32>
    %652 = arith.mulf %650, %651 : vector<28x168xf32>
    %653 = vector.broadcast %522 : vector<1x168xf32> to vector<28x168xf32>
    %654 = arith.addf %652, %653 : vector<28x168xf32>
    %c0_604 = arith.constant 0 : index
    %c14_605 = arith.constant 14 : index
    %c0_606 = arith.constant 0 : index
    %c0_607 = arith.constant 0 : index
    %655 = vector.load %arg6[%c0_604, %c14_605, %c0_606, %c0_607] : memref<1x28x28x168xf32, #tpu.memory_space<vmem>>, vector<1x1x28x168xf32>
    %656 = vector.shape_cast %655 : vector<1x1x28x168xf32> to vector<28x168xf32>
    %657 = vector.shape_cast %654 : vector<28x168xf32> to vector<1x1x28x168xf32>
    tpu.vector_store %arg6[%c0_604, %c14_605, %c0_606, %c0_607], %657 {strides = array<i32>} : memref<1x28x28x168xf32, #tpu.memory_space<vmem>>, vector<1x1x28x168xf32>,
    %c0_608 = arith.constant 0 : index
    %c15_609 = arith.constant 15 : index
    %c0_610 = arith.constant 0 : index
    %c0_611 = arith.constant 0 : index
    %658 = vector.load %arg6[%c0_608, %c15_609, %c0_610, %c0_611] : memref<1x28x28x168xf32, #tpu.memory_space<vmem>>, vector<1x1x28x168xf32>
    %659 = vector.shape_cast %658 : vector<1x1x28x168xf32> to vector<28x168xf32>
    %660 = vector.broadcast %519 : vector<1x168xf32> to vector<28x168xf32>
    %661 = arith.mulf %659, %660 : vector<28x168xf32>
    %662 = vector.broadcast %522 : vector<1x168xf32> to vector<28x168xf32>
    %663 = arith.addf %661, %662 : vector<28x168xf32>
    %c0_612 = arith.constant 0 : index
    %c15_613 = arith.constant 15 : index
    %c0_614 = arith.constant 0 : index
    %c0_615 = arith.constant 0 : index
    %664 = vector.load %arg6[%c0_612, %c15_613, %c0_614, %c0_615] : memref<1x28x28x168xf32, #tpu.memory_space<vmem>>, vector<1x1x28x168xf32>
    %665 = vector.shape_cast %664 : vector<1x1x28x168xf32> to vector<28x168xf32>
    %666 = vector.shape_cast %663 : vector<28x168xf32> to vector<1x1x28x168xf32>
    tpu.vector_store %arg6[%c0_612, %c15_613, %c0_614, %c0_615], %666 {strides = array<i32>} : memref<1x28x28x168xf32, #tpu.memory_space<vmem>>, vector<1x1x28x168xf32>,
    %c0_616 = arith.constant 0 : index
    %c16_617 = arith.constant 16 : index
    %c0_618 = arith.constant 0 : index
    %c0_619 = arith.constant 0 : index
    %667 = vector.load %arg6[%c0_616, %c16_617, %c0_618, %c0_619] : memref<1x28x28x168xf32, #tpu.memory_space<vmem>>, vector<1x1x28x168xf32>
    %668 = vector.shape_cast %667 : vector<1x1x28x168xf32> to vector<28x168xf32>
    %669 = vector.broadcast %519 : vector<1x168xf32> to vector<28x168xf32>
    %670 = arith.mulf %668, %669 : vector<28x168xf32>
    %671 = vector.broadcast %522 : vector<1x168xf32> to vector<28x168xf32>
    %672 = arith.addf %670, %671 : vector<28x168xf32>
    %c0_620 = arith.constant 0 : index
    %c16_621 = arith.constant 16 : index
    %c0_622 = arith.constant 0 : index
    %c0_623 = arith.constant 0 : index
    %673 = vector.load %arg6[%c0_620, %c16_621, %c0_622, %c0_623] : memref<1x28x28x168xf32, #tpu.memory_space<vmem>>, vector<1x1x28x168xf32>
    %674 = vector.shape_cast %673 : vector<1x1x28x168xf32> to vector<28x168xf32>
    %675 = vector.shape_cast %672 : vector<28x168xf32> to vector<1x1x28x168xf32>
    tpu.vector_store %arg6[%c0_620, %c16_621, %c0_622, %c0_623], %675 {strides = array<i32>} : memref<1x28x28x168xf32, #tpu.memory_space<vmem>>, vector<1x1x28x168xf32>,
    %c0_624 = arith.constant 0 : index
    %c17_625 = arith.constant 17 : index
    %c0_626 = arith.constant 0 : index
    %c0_627 = arith.constant 0 : index
    %676 = vector.load %arg6[%c0_624, %c17_625, %c0_626, %c0_627] : memref<1x28x28x168xf32, #tpu.memory_space<vmem>>, vector<1x1x28x168xf32>
    %677 = vector.shape_cast %676 : vector<1x1x28x168xf32> to vector<28x168xf32>
    %678 = vector.broadcast %519 : vector<1x168xf32> to vector<28x168xf32>
    %679 = arith.mulf %677, %678 : vector<28x168xf32>
    %680 = vector.broadcast %522 : vector<1x168xf32> to vector<28x168xf32>
    %681 = arith.addf %679, %680 : vector<28x168xf32>
    %c0_628 = arith.constant 0 : index
    %c17_629 = arith.constant 17 : index
    %c0_630 = arith.constant 0 : index
    %c0_631 = arith.constant 0 : index
    %682 = vector.load %arg6[%c0_628, %c17_629, %c0_630, %c0_631] : memref<1x28x28x168xf32, #tpu.memory_space<vmem>>, vector<1x1x28x168xf32>
    %683 = vector.shape_cast %682 : vector<1x1x28x168xf32> to vector<28x168xf32>
    %684 = vector.shape_cast %681 : vector<28x168xf32> to vector<1x1x28x168xf32>
    tpu.vector_store %arg6[%c0_628, %c17_629, %c0_630, %c0_631], %684 {strides = array<i32>} : memref<1x28x28x168xf32, #tpu.memory_space<vmem>>, vector<1x1x28x168xf32>,
    %c0_632 = arith.constant 0 : index
    %c18_633 = arith.constant 18 : index
    %c0_634 = arith.constant 0 : index
    %c0_635 = arith.constant 0 : index
    %685 = vector.load %arg6[%c0_632, %c18_633, %c0_634, %c0_635] : memref<1x28x28x168xf32, #tpu.memory_space<vmem>>, vector<1x1x28x168xf32>
    %686 = vector.shape_cast %685 : vector<1x1x28x168xf32> to vector<28x168xf32>
    %687 = vector.broadcast %519 : vector<1x168xf32> to vector<28x168xf32>
    %688 = arith.mulf %686, %687 : vector<28x168xf32>
    %689 = vector.broadcast %522 : vector<1x168xf32> to vector<28x168xf32>
    %690 = arith.addf %688, %689 : vector<28x168xf32>
    %c0_636 = arith.constant 0 : index
    %c18_637 = arith.constant 18 : index
    %c0_638 = arith.constant 0 : index
    %c0_639 = arith.constant 0 : index
    %691 = vector.load %arg6[%c0_636, %c18_637, %c0_638, %c0_639] : memref<1x28x28x168xf32, #tpu.memory_space<vmem>>, vector<1x1x28x168xf32>
    %692 = vector.shape_cast %691 : vector<1x1x28x168xf32> to vector<28x168xf32>
    %693 = vector.shape_cast %690 : vector<28x168xf32> to vector<1x1x28x168xf32>
    tpu.vector_store %arg6[%c0_636, %c18_637, %c0_638, %c0_639], %693 {strides = array<i32>} : memref<1x28x28x168xf32, #tpu.memory_space<vmem>>, vector<1x1x28x168xf32>,
    %c0_640 = arith.constant 0 : index
    %c19_641 = arith.constant 19 : index
    %c0_642 = arith.constant 0 : index
    %c0_643 = arith.constant 0 : index
    %694 = vector.load %arg6[%c0_640, %c19_641, %c0_642, %c0_643] : memref<1x28x28x168xf32, #tpu.memory_space<vmem>>, vector<1x1x28x168xf32>
    %695 = vector.shape_cast %694 : vector<1x1x28x168xf32> to vector<28x168xf32>
    %696 = vector.broadcast %519 : vector<1x168xf32> to vector<28x168xf32>
    %697 = arith.mulf %695, %696 : vector<28x168xf32>
    %698 = vector.broadcast %522 : vector<1x168xf32> to vector<28x168xf32>
    %699 = arith.addf %697, %698 : vector<28x168xf32>
    %c0_644 = arith.constant 0 : index
    %c19_645 = arith.constant 19 : index
    %c0_646 = arith.constant 0 : index
    %c0_647 = arith.constant 0 : index
    %700 = vector.load %arg6[%c0_644, %c19_645, %c0_646, %c0_647] : memref<1x28x28x168xf32, #tpu.memory_space<vmem>>, vector<1x1x28x168xf32>
    %701 = vector.shape_cast %700 : vector<1x1x28x168xf32> to vector<28x168xf32>
    %702 = vector.shape_cast %699 : vector<28x168xf32> to vector<1x1x28x168xf32>
    tpu.vector_store %arg6[%c0_644, %c19_645, %c0_646, %c0_647], %702 {strides = array<i32>} : memref<1x28x28x168xf32, #tpu.memory_space<vmem>>, vector<1x1x28x168xf32>,
    %c0_648 = arith.constant 0 : index
    %c20_649 = arith.constant 20 : index
    %c0_650 = arith.constant 0 : index
    %c0_651 = arith.constant 0 : index
    %703 = vector.load %arg6[%c0_648, %c20_649, %c0_650, %c0_651] : memref<1x28x28x168xf32, #tpu.memory_space<vmem>>, vector<1x1x28x168xf32>
    %704 = vector.shape_cast %703 : vector<1x1x28x168xf32> to vector<28x168xf32>
    %705 = vector.broadcast %519 : vector<1x168xf32> to vector<28x168xf32>
    %706 = arith.mulf %704, %705 : vector<28x168xf32>
    %707 = vector.broadcast %522 : vector<1x168xf32> to vector<28x168xf32>
    %708 = arith.addf %706, %707 : vector<28x168xf32>
    %c0_652 = arith.constant 0 : index
    %c20_653 = arith.constant 20 : index
    %c0_654 = arith.constant 0 : index
    %c0_655 = arith.constant 0 : index
    %709 = vector.load %arg6[%c0_652, %c20_653, %c0_654, %c0_655] : memref<1x28x28x168xf32, #tpu.memory_space<vmem>>, vector<1x1x28x168xf32>
    %710 = vector.shape_cast %709 : vector<1x1x28x168xf32> to vector<28x168xf32>
    %711 = vector.shape_cast %708 : vector<28x168xf32> to vector<1x1x28x168xf32>
    tpu.vector_store %arg6[%c0_652, %c20_653, %c0_654, %c0_655], %711 {strides = array<i32>} : memref<1x28x28x168xf32, #tpu.memory_space<vmem>>, vector<1x1x28x168xf32>,
    %c0_656 = arith.constant 0 : index
    %c21_657 = arith.constant 21 : index
    %c0_658 = arith.constant 0 : index
    %c0_659 = arith.constant 0 : index
    %712 = vector.load %arg6[%c0_656, %c21_657, %c0_658, %c0_659] : memref<1x28x28x168xf32, #tpu.memory_space<vmem>>, vector<1x1x28x168xf32>
    %713 = vector.shape_cast %712 : vector<1x1x28x168xf32> to vector<28x168xf32>
    %714 = vector.broadcast %519 : vector<1x168xf32> to vector<28x168xf32>
    %715 = arith.mulf %713, %714 : vector<28x168xf32>
    %716 = vector.broadcast %522 : vector<1x168xf32> to vector<28x168xf32>
    %717 = arith.addf %715, %716 : vector<28x168xf32>
    %c0_660 = arith.constant 0 : index
    %c21_661 = arith.constant 21 : index
    %c0_662 = arith.constant 0 : index
    %c0_663 = arith.constant 0 : index
    %718 = vector.load %arg6[%c0_660, %c21_661, %c0_662, %c0_663] : memref<1x28x28x168xf32, #tpu.memory_space<vmem>>, vector<1x1x28x168xf32>
    %719 = vector.shape_cast %718 : vector<1x1x28x168xf32> to vector<28x168xf32>
    %720 = vector.shape_cast %717 : vector<28x168xf32> to vector<1x1x28x168xf32>
    tpu.vector_store %arg6[%c0_660, %c21_661, %c0_662, %c0_663], %720 {strides = array<i32>} : memref<1x28x28x168xf32, #tpu.memory_space<vmem>>, vector<1x1x28x168xf32>,
    %c0_664 = arith.constant 0 : index
    %c22_665 = arith.constant 22 : index
    %c0_666 = arith.constant 0 : index
    %c0_667 = arith.constant 0 : index
    %721 = vector.load %arg6[%c0_664, %c22_665, %c0_666, %c0_667] : memref<1x28x28x168xf32, #tpu.memory_space<vmem>>, vector<1x1x28x168xf32>
    %722 = vector.shape_cast %721 : vector<1x1x28x168xf32> to vector<28x168xf32>
    %723 = vector.broadcast %519 : vector<1x168xf32> to vector<28x168xf32>
    %724 = arith.mulf %722, %723 : vector<28x168xf32>
    %725 = vector.broadcast %522 : vector<1x168xf32> to vector<28x168xf32>
    %726 = arith.addf %724, %725 : vector<28x168xf32>
    %c0_668 = arith.constant 0 : index
    %c22_669 = arith.constant 22 : index
    %c0_670 = arith.constant 0 : index
    %c0_671 = arith.constant 0 : index
    %727 = vector.load %arg6[%c0_668, %c22_669, %c0_670, %c0_671] : memref<1x28x28x168xf32, #tpu.memory_space<vmem>>, vector<1x1x28x168xf32>
    %728 = vector.shape_cast %727 : vector<1x1x28x168xf32> to vector<28x168xf32>
    %729 = vector.shape_cast %726 : vector<28x168xf32> to vector<1x1x28x168xf32>
    tpu.vector_store %arg6[%c0_668, %c22_669, %c0_670, %c0_671], %729 {strides = array<i32>} : memref<1x28x28x168xf32, #tpu.memory_space<vmem>>, vector<1x1x28x168xf32>,
    %c0_672 = arith.constant 0 : index
    %c23_673 = arith.constant 23 : index
    %c0_674 = arith.constant 0 : index
    %c0_675 = arith.constant 0 : index
    %730 = vector.load %arg6[%c0_672, %c23_673, %c0_674, %c0_675] : memref<1x28x28x168xf32, #tpu.memory_space<vmem>>, vector<1x1x28x168xf32>
    %731 = vector.shape_cast %730 : vector<1x1x28x168xf32> to vector<28x168xf32>
    %732 = vector.broadcast %519 : vector<1x168xf32> to vector<28x168xf32>
    %733 = arith.mulf %731, %732 : vector<28x168xf32>
    %734 = vector.broadcast %522 : vector<1x168xf32> to vector<28x168xf32>
    %735 = arith.addf %733, %734 : vector<28x168xf32>
    %c0_676 = arith.constant 0 : index
    %c23_677 = arith.constant 23 : index
    %c0_678 = arith.constant 0 : index
    %c0_679 = arith.constant 0 : index
    %736 = vector.load %arg6[%c0_676, %c23_677, %c0_678, %c0_679] : memref<1x28x28x168xf32, #tpu.memory_space<vmem>>, vector<1x1x28x168xf32>
    %737 = vector.shape_cast %736 : vector<1x1x28x168xf32> to vector<28x168xf32>
    %738 = vector.shape_cast %735 : vector<28x168xf32> to vector<1x1x28x168xf32>
    tpu.vector_store %arg6[%c0_676, %c23_677, %c0_678, %c0_679], %738 {strides = array<i32>} : memref<1x28x28x168xf32, #tpu.memory_space<vmem>>, vector<1x1x28x168xf32>,
    %c0_680 = arith.constant 0 : index
    %c24_681 = arith.constant 24 : index
    %c0_682 = arith.constant 0 : index
    %c0_683 = arith.constant 0 : index
    %739 = vector.load %arg6[%c0_680, %c24_681, %c0_682, %c0_683] : memref<1x28x28x168xf32, #tpu.memory_space<vmem>>, vector<1x1x28x168xf32>
    %740 = vector.shape_cast %739 : vector<1x1x28x168xf32> to vector<28x168xf32>
    %741 = vector.broadcast %519 : vector<1x168xf32> to vector<28x168xf32>
    %742 = arith.mulf %740, %741 : vector<28x168xf32>
    %743 = vector.broadcast %522 : vector<1x168xf32> to vector<28x168xf32>
    %744 = arith.addf %742, %743 : vector<28x168xf32>
    %c0_684 = arith.constant 0 : index
    %c24_685 = arith.constant 24 : index
    %c0_686 = arith.constant 0 : index
    %c0_687 = arith.constant 0 : index
    %745 = vector.load %arg6[%c0_684, %c24_685, %c0_686, %c0_687] : memref<1x28x28x168xf32, #tpu.memory_space<vmem>>, vector<1x1x28x168xf32>
    %746 = vector.shape_cast %745 : vector<1x1x28x168xf32> to vector<28x168xf32>
    %747 = vector.shape_cast %744 : vector<28x168xf32> to vector<1x1x28x168xf32>
    tpu.vector_store %arg6[%c0_684, %c24_685, %c0_686, %c0_687], %747 {strides = array<i32>} : memref<1x28x28x168xf32, #tpu.memory_space<vmem>>, vector<1x1x28x168xf32>,
    %c0_688 = arith.constant 0 : index
    %c25_689 = arith.constant 25 : index
    %c0_690 = arith.constant 0 : index
    %c0_691 = arith.constant 0 : index
    %748 = vector.load %arg6[%c0_688, %c25_689, %c0_690, %c0_691] : memref<1x28x28x168xf32, #tpu.memory_space<vmem>>, vector<1x1x28x168xf32>
    %749 = vector.shape_cast %748 : vector<1x1x28x168xf32> to vector<28x168xf32>
    %750 = vector.broadcast %519 : vector<1x168xf32> to vector<28x168xf32>
    %751 = arith.mulf %749, %750 : vector<28x168xf32>
    %752 = vector.broadcast %522 : vector<1x168xf32> to vector<28x168xf32>
    %753 = arith.addf %751, %752 : vector<28x168xf32>
    %c0_692 = arith.constant 0 : index
    %c25_693 = arith.constant 25 : index
    %c0_694 = arith.constant 0 : index
    %c0_695 = arith.constant 0 : index
    %754 = vector.load %arg6[%c0_692, %c25_693, %c0_694, %c0_695] : memref<1x28x28x168xf32, #tpu.memory_space<vmem>>, vector<1x1x28x168xf32>
    %755 = vector.shape_cast %754 : vector<1x1x28x168xf32> to vector<28x168xf32>
    %756 = vector.shape_cast %753 : vector<28x168xf32> to vector<1x1x28x168xf32>
    tpu.vector_store %arg6[%c0_692, %c25_693, %c0_694, %c0_695], %756 {strides = array<i32>} : memref<1x28x28x168xf32, #tpu.memory_space<vmem>>, vector<1x1x28x168xf32>,
    %c0_696 = arith.constant 0 : index
    %c26_697 = arith.constant 26 : index
    %c0_698 = arith.constant 0 : index
    %c0_699 = arith.constant 0 : index
    %757 = vector.load %arg6[%c0_696, %c26_697, %c0_698, %c0_699] : memref<1x28x28x168xf32, #tpu.memory_space<vmem>>, vector<1x1x28x168xf32>
    %758 = vector.shape_cast %757 : vector<1x1x28x168xf32> to vector<28x168xf32>
    %759 = vector.broadcast %519 : vector<1x168xf32> to vector<28x168xf32>
    %760 = arith.mulf %758, %759 : vector<28x168xf32>
    %761 = vector.broadcast %522 : vector<1x168xf32> to vector<28x168xf32>
    %762 = arith.addf %760, %761 : vector<28x168xf32>
    %c0_700 = arith.constant 0 : index
    %c26_701 = arith.constant 26 : index
    %c0_702 = arith.constant 0 : index
    %c0_703 = arith.constant 0 : index
    %763 = vector.load %arg6[%c0_700, %c26_701, %c0_702, %c0_703] : memref<1x28x28x168xf32, #tpu.memory_space<vmem>>, vector<1x1x28x168xf32>
    %764 = vector.shape_cast %763 : vector<1x1x28x168xf32> to vector<28x168xf32>
    %765 = vector.shape_cast %762 : vector<28x168xf32> to vector<1x1x28x168xf32>
    tpu.vector_store %arg6[%c0_700, %c26_701, %c0_702, %c0_703], %765 {strides = array<i32>} : memref<1x28x28x168xf32, #tpu.memory_space<vmem>>, vector<1x1x28x168xf32>,
    %c0_704 = arith.constant 0 : index
    %c27_705 = arith.constant 27 : index
    %c0_706 = arith.constant 0 : index
    %c0_707 = arith.constant 0 : index
    %766 = vector.load %arg6[%c0_704, %c27_705, %c0_706, %c0_707] : memref<1x28x28x168xf32, #tpu.memory_space<vmem>>, vector<1x1x28x168xf32>
    %767 = vector.shape_cast %766 : vector<1x1x28x168xf32> to vector<28x168xf32>
    %768 = vector.broadcast %519 : vector<1x168xf32> to vector<28x168xf32>
    %769 = arith.mulf %767, %768 : vector<28x168xf32>
    %770 = vector.broadcast %522 : vector<1x168xf32> to vector<28x168xf32>
    %771 = arith.addf %769, %770 : vector<28x168xf32>
    %c0_708 = arith.constant 0 : index
    %c27_709 = arith.constant 27 : index
    %c0_710 = arith.constant 0 : index
    %c0_711 = arith.constant 0 : index
    %772 = vector.load %arg6[%c0_708, %c27_709, %c0_710, %c0_711] : memref<1x28x28x168xf32, #tpu.memory_space<vmem>>, vector<1x1x28x168xf32>
    %773 = vector.shape_cast %772 : vector<1x1x28x168xf32> to vector<28x168xf32>
    %774 = vector.shape_cast %771 : vector<28x168xf32> to vector<1x1x28x168xf32>
    tpu.vector_store %arg6[%c0_708, %c27_709, %c0_710, %c0_711], %774 {strides = array<i32>} : memref<1x28x28x168xf32, #tpu.memory_space<vmem>>, vector<1x1x28x168xf32>,
    return
  }
  func.func @transform_0(%arg0: i32) -> (i32, i32, i32, i32) {
    %c0_i32 = arith.constant 0 : i32
    %c0_i32_0 = arith.constant 0 : i32
    %c0_i32_1 = arith.constant 0 : i32
    %c0_i32_2 = arith.constant 0 : i32
    %c0_i32_3 = arith.constant 0 : i32
    return %c0_i32, %c0_i32_0, %c0_i32_1, %c0_i32_2 : i32, i32, i32, i32
  }
  func.func @transform_1(%arg0: i32) -> (i32, i32, i32, i32) {
    %c0_i32 = arith.constant 0 : i32
    %c0_i32_0 = arith.constant 0 : i32
    %c0_i32_1 = arith.constant 0 : i32
    %c0_i32_2 = arith.constant 0 : i32
    %c0_i32_3 = arith.constant 0 : i32
    return %c0_i32, %c0_i32_0, %c0_i32_1, %c0_i32_2 : i32, i32, i32, i32
  }
  func.func @transform_2(%arg0: i32) -> (i32, i32) {
    %c0_i32 = arith.constant 0 : i32
    %c0_i32_0 = arith.constant 0 : i32
    %c0_i32_1 = arith.constant 0 : i32
    return %c0_i32, %c0_i32_0 : i32, i32
  }
  func.func @transform_3(%arg0: i32) -> (i32, i32) {
    %c0_i32 = arith.constant 0 : i32
    %c0_i32_0 = arith.constant 0 : i32
    %c0_i32_1 = arith.constant 0 : i32
    return %c0_i32, %c0_i32_0 : i32, i32
  }
  func.func @transform_4(%arg0: i32) -> (i32, i32) {
    %c0_i32 = arith.constant 0 : i32
    %c0_i32_0 = arith.constant 0 : i32
    %c0_i32_1 = arith.constant 0 : i32
    return %c0_i32, %c0_i32_0 : i32, i32
  }
  func.func @transform_5(%arg0: i32) -> (i32, i32, i32, i32) {
    %c0_i32 = arith.constant 0 : i32
    %c0_i32_0 = arith.constant 0 : i32
    %c0_i32_1 = arith.constant 0 : i32
    %c0_i32_2 = arith.constant 0 : i32
    %c0_i32_3 = arith.constant 0 : i32
    return %c0_i32, %c0_i32_0, %c0_i32_1, %c0_i32_2 : i32, i32, i32, i32
  }
}

</mosaic_0001>

<bundles_post_ra>
// kernel: fused_forward.1
= control target key start
LH: loop header
LB: loop body
LE: loop exit
PB: predicated region body
PF: predicated region fallthrough
CT: control target
= control target key end

     0   :  { %v7479_v3 = vmov 0.0   ;;  %vm54_vm0 = vcmask 588800   ;;  %vm157_vm1 = vcmask 326656   ;;  %vm164_vm2 = vcmask 322560   ;;  %s12204_s2 = inlined_call_operand.vmem [shape: f32[72,168], index: 2, kind: input, shape index: {}]   ;;  %s12205_s0 = inlined_call_operand.vmem [shape: f32[1,28,28,72], index: 0, kind: input, shape index: {}]   ;;  %s12206_s1 = inlined_call_operand.vmem [shape: f32[1,28,28,72], index: 1, kind: input, shape index: {}]   ;;  %s12207_s5 = inlined_call_operand.vmem [shape: f32[1,28,28,168], index: 5, kind: output, shape index: {}]   ;;  %s12208_s3 = inlined_call_operand.vmem [shape: f32[1,168], index: 3, kind: input, shape index: {}]   ;;  %s12209_s4 = inlined_call_operand.vmem [shape: f32[1,168], index: 4, kind: input, shape index: {}]  }
   0x1   :  { %v21_v0 = vld [vmem:[%s12204_s2 + $0x8] sm:$0xff]  ;;  %v23_v1 = vld [vmem:[%s12204_s2 + $0x18] sm:$0xff]  ;;  %v20_v2 = vld [vmem:[%s12204_s2] sm:$0xff]  ;;  %131 = vmatprep.mubr.f32.mxu0 %v7479_v3  ;;  %268 = vmatprep.mubr.f32.mxu1 %v7479_v3  ;;  %vm3848_vm3 = vcmask 1043456  }
   0x2   :  { %v7522_v4 = vpack.c.bf16 %v23_v1, %v21_v0  ;;  %v22_v5 = vld [vmem:[%s12204_s2 + $0x10] sm:$0xff]  ;;  %v25_v6 = vld [vmem:[%s12204_s2 + $0x28] sm:$0xff]  ;;  %v27_v7 = vld [vmem:[%s12204_s2 + $0x38] sm:$0xff] }
   0x3   :  { %v7533_v8 = vpack.c.bf16 %v22_v5, %v20_v2  ;;  %v7535_v9 = vpack.c.bf16 %v27_v7, %v25_v6  ;;  %v24_v10 = vld [vmem:[%s12204_s2 + $0x20] sm:$0xff]  ;;  %v26_v11 = vld [vmem:[%s12204_s2 + $0x30] sm:$0xff]  ;;  %v29_v12 = vld [vmem:[%s12204_s2 + $0x48] sm:$0xff] }
   0x4   :  { %6946 = vmatprep.subr.bf16.mxu0 %v7522_v4  ;;  %6962 = vmatprep.subr.bf16.mxu1 %v7522_v4  ;;  %v31_v13 = vld [vmem:[%s12204_s2 + $0x58] sm:$0xff]  ;;  %v7553_v14 = vpack.c.bf16 %v26_v11, %v24_v10  ;;  %v28_v16 = vld [vmem:[%s12204_s2 + $0x40] sm:$0xff]  ;;  %v30_v17 = vld [vmem:[%s12204_s2 + $0x50] sm:$0xff] }
   0x5   :  { %6948 = vmatpush1.bf16.msra.mxu0 %v7533_v8  ;;  %6964 = vmatpush1.bf16.msra.mxu1 %v7533_v8  ;;  %v7557_v15 = vpack.c.bf16 %v31_v13, %v29_v12  ;;  %v33_v18 = vld [vmem:[%s12204_s2 + $0x68] sm:$0xff]  ;;  %v35_v19 = vld [vmem:[%s12204_s2 + $0x78] sm:$0xff]  ;;  %v7573_v20 = vpack.c.bf16 %v30_v17, %v28_v16  ;;  %v32_v22 = vld [vmem:[%s12204_s2 + $0x60] sm:$0xff] }
   0x6   :  { %6950 = vmatprep.subr.bf16.mxu0 %v7535_v9  ;;  %6966 = vmatprep.subr.bf16.mxu1 %v7535_v9  ;;  %v7577_v21 = vpack.c.bf16 %v35_v19, %v33_v18  ;;  %v34_v23 = vld [vmem:[%s12204_s2 + $0x70] sm:$0xff]  ;;  %v38_v24 = vld [vmem:[%s12205_s0] sm:$0xff]  ;;  %v7606_v31 = vld [vmem:[%s12204_s2 + $0x88] sm:$0xff] }
   0x7   :  { %v42_v25 = vld [vmem:[%s12206_s1] sm:$0xff]  ;;  %v7599_v28 = vpack.c.bf16 %v34_v23, %v32_v22  ;;  %v39_v32 = vld [vmem:[%s12205_s0 + $0x8] sm:$0xff]  ;;  %v40_v41 = vld [vmem:[%s12205_s0 + $0x10] sm:$0xff] }
   0x8   :  { %v5757_v26 = vld [vmem:[%s12205_s0 + $0x20] sm:$0xff]  ;;  %v46_v29 = vadd.f32 %v42_v25, %v38_v24  ;;  %v43_v33 = vld [vmem:[%s12206_s1 + $0x8] sm:$0xff]  ;;  %v44_v42 = vld [vmem:[%s12206_s1 + $0x10] sm:$0xff] }
   0x9   :  { %6952 = vmatpush1.bf16.msra.mxu0 %v7553_v14  ;;  %6968 = vmatpush1.bf16.msra.mxu1 %v7553_v14  ;;  %v5761_v27 = vld [vmem:[%s12206_s1 + $0x20] sm:$0xff]  ;;  %v5758_v34 = vld [vmem:[%s12205_s0 + $0x28] sm:$0xff]  ;;  %v47_v39 = vadd.f32 %v43_v33, %v39_v32  ;;  %v5759_v43 = vld [vmem:[%s12205_s0 + $0x30] sm:$0xff]  ;;  %v48_v46 = vadd.f32 %v44_v42, %v40_v41 }
   0xa   :  { %6954 = vmatprep.subr.bf16.mxu0 %v7557_v15  ;;  %6970 = vmatprep.subr.bf16.mxu1 %v7557_v15  ;;  %v184_v30 = vadd.f32 %v5761_v27, %v5757_v26  ;;  %v5762_v35 = vld [vmem:[%s12206_s1 + $0x28] sm:$0xff]  ;;  %v7627_v36 = vld [vmem:[%s12204_s2 + $0x80] sm:$0xff]  ;;  %v50_v37 = vmax.f32 %v46_v29, 0.0  ;;  %v5763_v44 = vld [vmem:[%s12206_s1 + $0x30] sm:$0xff] }
   0xb   :  { %v185_v40 = vadd.f32 %v5762_v35, %v5758_v34  ;;  %v51_v45 = vmax.f32 %v47_v39, 0.0  ;;  %v186_v48 = vadd.f32 %v5763_v44, %v5759_v43  ;;  %v41_v49 = vld [vmem:[%s12205_s0 + $0x18] sm:$0xf]  ;;  %v52_v53 = vmax.f32 %v48_v46, 0.0  ;;  %v5777_v58 = vld [vmem:[%s12205_s0 + $0x40] sm:$0xff]  ;;  %v5778_v1 = vld [vmem:[%s12205_s0 + $0x48] sm:$0xff] }
   0xc   :  { %v188_v38 = vmax.f32 %v184_v30, 0.0  ;;  %v45_v50 = vld [vmem:[%s12206_s1 + $0x18] sm:$0xf]  ;;  %v5781_v59 = vld [vmem:[%s12206_s1 + $0x40] sm:$0xff]  ;;  %v5782_v2 = vld [vmem:[%s12206_s1 + $0x48] sm:$0xff] }
   0xd   :  { %6956 = vmatpush1.bf16.msra.mxu0 %v7573_v20  ;;  %6972 = vmatpush1.bf16.msra.mxu1 %v7573_v20  ;;  %v189_v47 = vmax.f32 %v185_v40, 0.0  ;;  %v5760_v51 = vld [vmem:[%s12205_s0 + $0x38] sm:$0xf]  ;;  %v49_v54 = vadd.f32 %v45_v50, %v41_v49  ;;  %v190_v55 = vmax.f32 %v186_v48, 0.0  ;;  %v5797_v61 = vld [vmem:[%s12205_s0 + $0x60] sm:$0xff]  ;;  %v320_v63 = vadd.f32 %v5781_v59, %v5777_v58  ;;  %v5798_v5 = vld [vmem:[%s12205_s0 + $0x68] sm:$0xff] }
   0xe   :  { %6958 = vmatprep.subr.bf16.mxu0 %v7577_v21  ;;  %6974 = vmatprep.subr.bf16.mxu1 %v7577_v21  ;;  %v5764_v52 = vld [vmem:[%s12206_s1 + $0x38] sm:$0xf]  ;;  %v5801_v62 = vld [vmem:[%s12206_s1 + $0x60] sm:$0xff]  ;;  %v5802_v6 = vld [vmem:[%s12206_s1 + $0x68] sm:$0xff]  ;;  %v321_v10 = vadd.f32 %v5782_v2, %v5778_v1 }
   0xf   :  { %v187_v56 = vadd.f32 %v5764_v52, %v5760_v51  ;;  %v53_v57 = vmax.f32 %v49_v54, 0.0  ;;  %v456_v0 = vadd.f32 %v5801_v62, %v5797_v61  ;;  %v324_v7 = vmax.f32 %v320_v63, 0.0  ;;  %v5779_v13 = vld [vmem:[%s12205_s0 + $0x50] sm:$0xff]  ;;  %v5780_v25 = vld [vmem:[%s12205_s0 + $0x58] sm:$0xf]  ;;  %v5817_v35 = vld [vmem:[%s12205_s0 + $0x80] sm:$0xff] }
  0x10   :  { %v457_v12 = vadd.f32 %v5802_v6, %v5798_v5  ;;  %v5783_v16 = vld [vmem:[%s12206_s1 + $0x50] sm:$0xff]  ;;  %v325_v19 = vmax.f32 %v321_v10, 0.0  ;;  %v5784_v26 = vld [vmem:[%s12206_s1 + $0x58] sm:$0xf]  ;;  %v5837_v40 = vld [vmem:[%s12205_s0 + $0xa0] sm:$0xff] }
  0x11   :  { %6960 = vmatpush1.bf16.msra.mxu0 %v7599_v28  ;;  %6976 = vmatpush1.bf16.msra.mxu1 %v7599_v28  ;;  %v191_v60 = vmax.f32 %v187_v56, 0.0  ;;  %v460_v11 = vmax.f32 %v456_v0, 0.0  ;;  %v5799_v17 = vld [vmem:[%s12205_s0 + $0x70] sm:$0xff]  ;;  %v322_v22 = vadd.f32 %v5783_v16, %v5779_v13  ;;  %v5800_v27 = vld [vmem:[%s12205_s0 + $0x78] sm:$0xf]  ;;  %v323_v32 = vadd.f32 %v5784_v26, %v5780_v25  ;;  %v5841_v41 = vld [vmem:[%s12206_s1 + $0xa0] sm:$0xff] }
  0x12   :  { %83 = vmatprep.subr.mxu0 %v7606_v31  ;;  %220 = vmatprep.subr.mxu1 %v7606_v31  ;;  %v5803_v18 = vld [vmem:[%s12206_s1 + $0x70] sm:$0xff]  ;;  %v461_v23 = vmax.f32 %v457_v12, 0.0  ;;  %v5804_v29 = vld [vmem:[%s12206_s1 + $0x78] sm:$0xf]  ;;  %v5818_v43 = vld [vmem:[%s12205_s0 + $0x88] sm:$0xff] }
  0x13   :  { %v458_v24 = vadd.f32 %v5803_v18, %v5799_v17  ;;  %v326_v30 = vmax.f32 %v322_v22, 0.0  ;;  %v459_v34 = vadd.f32 %v5804_v29, %v5800_v27  ;;  %v5822_v44 = vld [vmem:[%s12206_s1 + $0x88] sm:$0xff]  ;;  %v5819_v50 = vld [vmem:[%s12205_s0 + $0x90] sm:$0xff]  ;;  %v5820_v58 = vld [vmem:[%s12205_s0 + $0x98] sm:$0xf] }
  0x14   :  { %v5838_v46 = vld [vmem:[%s12205_s0 + $0xa8] sm:$0xff]  ;;  %v593_v49 = vadd.f32 %v5822_v44, %v5818_v43  ;;  %v5823_v51 = vld [vmem:[%s12206_s1 + $0x90] sm:$0xff]  ;;  %v5824_v59 = vld [vmem:[%s12206_s1 + $0x98] sm:$0xf] }
  0x15   :  { %84 = vmatpush1.msra.mxu0 %v7627_v36  ;;  %221 = vmatpush1.msra.mxu1 %v7627_v36  ;;  %v462_v33 = vmax.f32 %v458_v24, 0.0  ;;  %v463_v39 = vmax.f32 %v459_v34, 0.0  ;;  %v5839_v54 = vld [vmem:[%s12205_s0 + $0xb0] sm:$0xff]  ;;  %v5840_v62 = vld [vmem:[%s12205_s0 + $0xb8] sm:$0xf]  ;;  %v595_v1 = vadd.f32 %v5824_v59, %v5820_v58  ;;  %v5857_v6 = vld [vmem:[%s12205_s0 + $0xc0] sm:$0xff] }
  0x16   :  { %5753 = vmatmul.mubr.msk.f32.vlgmr.msra.gmra.mrb[0].mxu0 %vm54_vm0, %v50_v37  ;;  %5765 = vmatmul.mubr.msk.f32.vlgmr.msra.gmra.mrb[0].mxu1 %vm54_vm0, %v188_v38  ;;  %v5821_v37 = vld [vmem:[%s12206_s1 + $0x80] sm:$0xff]  ;;  %v327_v38 = vmax.f32 %v323_v32, 0.0  ;;  %v597_v56 = vmax.f32 %v593_v49, 0.0  ;;  %v5844_v63 = vld [vmem:[%s12206_s1 + $0xb8] sm:$0xf]  ;;  %v5858_v17 = vld [vmem:[%s12205_s0 + $0xc8] sm:$0xff] }
  0x17   :  { %6978 = vmatprep.subr.bf16.mxu0 %v7522_v4  ;;  %6994 = vmatprep.subr.bf16.mxu1 %v7522_v4  ;;  %v592_v42 = vadd.f32 %v5821_v37, %v5817_v35  ;;  %v731_v5 = vadd.f32 %v5844_v63, %v5840_v62  ;;  %v599_v10 = vmax.f32 %v595_v1, 0.0  ;;  %v5881_v12 = vld [vmem:[%s12206_s1 + $0xe0] sm:$0xff]  ;;  %v5862_v18 = vld [vmem:[%s12206_s1 + $0xc8] sm:$0xff]  ;;  %v5859_v26 = vld [vmem:[%s12205_s0 + $0xd0] sm:$0xff] }
  0x18   :  { %6980 = vmatpush1.bf16.msra.mxu0 %v7533_v8  ;;  %6996 = vmatpush1.bf16.msra.mxu1 %v7533_v8  ;;  %v5878_v22 = vld [vmem:[%s12205_s0 + $0xe8] sm:$0xff]  ;;  %v865_v25 = vadd.f32 %v5862_v18, %v5858_v17  ;;  %v5863_v27 = vld [vmem:[%s12206_s1 + $0xd0] sm:$0xff]  ;;  %v5860_v37 = vld [vmem:[%s12205_s0 + $0xd8] sm:$0xf] }
  0x19   :  { %6982 = vmatprep.subr.bf16.mxu0 %v7535_v9  ;;  %137 = vmatprep.mubr.f32.mxu0 %v7479_v3  ;;  %v596_v48 = vmax.f32 %v592_v42, 0.0  ;;  %v735_v13 = vmax.f32 %v731_v5, 0.0  ;;  %v5879_v32 = vld [vmem:[%s12205_s0 + $0xf0] sm:$0xff]  ;;  %v866_v35 = vadd.f32 %v5863_v27, %v5859_v26  ;;  %v5884_v42 = vld [vmem:[%s12206_s1 + $0xf8] sm:$0xf]  ;;  %v5922_v58 = vld [vmem:[%s12206_s1 + $0x128] sm:$0xff] }
  0x1a   :  { %274 = vmatprep.mubr.f32.mxu1 %v7479_v3  ;;  %5754 = vmatmul.mubr.msk.f32.gmra.mrb[2].mxu0 %vm54_vm0, %v51_v45  ;;  %v728_v45 = vadd.f32 %v5841_v41, %v5837_v40  ;;  %v869_v34 = vmax.f32 %v865_v25, 0.0  ;;  %v5880_v41 = vld [vmem:[%s12205_s0 + $0xf8] sm:$0xf]  ;;  %v5903_v62 = vld [vmem:[%s12206_s1 + $0x110] sm:$0xff]  ;;  %v5957_v26 = vld [vmem:[%s12205_s0 + $0x160] sm:$0xff] }
  0x1b   :  { %5766 = vmatmul.mubr.msk.f32.gmra.mrb[2].mxu1 %vm54_vm0, %v189_v47  ;;  %6998 = vmatprep.subr.bf16.mxu1 %v7535_v9  ;;  %v5842_v47 = vld [vmem:[%s12206_s1 + $0xa8] sm:$0xff]  ;;  %v870_v43 = vmax.f32 %v866_v35, 0.0  ;;  %v5919_v1 = vld [vmem:[%s12205_s0 + $0x130] sm:$0xff]  ;;  %v5961_v27 = vld [vmem:[%s12206_s1 + $0x160] sm:$0xff] }
  0x1c   :  { %6984 = vmatpush1.bf16.msra.mxu0 %v7553_v14  ;;  %7000 = vmatpush1.bf16.msra.mxu1 %v7553_v14  ;;  %v732_v52 = vmax.f32 %v728_v45, 0.0  ;;  %v5958_v35 = vld [vmem:[%s12205_s0 + $0x168] sm:$0xff] }
  0x1d   :  { %6986 = vmatprep.subr.bf16.mxu0 %v7557_v15  ;;  %143 = vmatprep.mubr.f32.mxu0 %v7479_v3 }
  0x1e   :  { %280 = vmatprep.mubr.f32.mxu1 %v7479_v3  ;;  %5755 = vmatmul.mubr.msk.f32.gmra.mrb[4].mxu0 %vm54_vm0, %v52_v53  ;;  %v729_v53 = vadd.f32 %v5842_v47, %v5838_v46  ;;  %v1003_v46 = vadd.f32 %v5884_v42, %v5880_v41  ;;  %v5897_v47 = vld [vmem:[%s12205_s0 + $0x100] sm:$0xff]  ;;  %v5943_v41 = vld [vmem:[%s12206_s1 + $0x150] sm:$0xff] }
  0x1f   :  { %5767 = vmatmul.mubr.msk.f32.gmra.mrb[4].mxu1 %vm54_vm0, %v190_v55  ;;  %7002 = vmatprep.subr.bf16.mxu1 %v7557_v15  ;;  %v5843_v55 = vld [vmem:[%s12206_s1 + $0xb0] sm:$0xff] }
  0x20   :  { %6988 = vmatpush1.bf16.msra.mxu0 %v7573_v20  ;;  %7004 = vmatpush1.bf16.msra.mxu1 %v7573_v20  ;;  %v730_v61 = vadd.f32 %v5843_v55, %v5839_v54  ;;  %v5898_v54 = vld [vmem:[%s12205_s0 + $0x108] sm:$0xff] }
  0x21   :  { %6990 = vmatprep.subr.bf16.mxu0 %v7577_v21  ;;  %149 = vmatprep.mubr.f32.mxu0 %v7479_v3  ;;  %v5902_v55 = vld [vmem:[%s12206_s1 + $0x108] sm:$0xff] }
  0x22   :  { %286 = vmatprep.mubr.f32.mxu1 %v7479_v3  ;;  %5756 = vmatmul.mubr.msk.f32.gmra.mrb[6].mxu0 %vm54_vm0, %v53_v57  ;;  %v594_v57 = vadd.f32 %v5823_v51, %v5819_v50  ;;  %v734_v2 = vmax.f32 %v730_v61, 0.0  ;;  %v5917_v50 = vld [vmem:[%s12205_s0 + $0x120] sm:$0xff]  ;;  %v5899_v61 = vld [vmem:[%s12205_s0 + $0x110] sm:$0xff] }
  0x23   :  { %5768 = vmatmul.mubr.msk.f32.gmra.mrb[6].mxu1 %vm54_vm0, %v191_v60  ;;  %7006 = vmatprep.subr.bf16.mxu1 %v7577_v21  ;;  %v733_v60 = vmax.f32 %v729_v53, 0.0  ;;  %v5921_v51 = vld [vmem:[%s12206_s1 + $0x120] sm:$0xff] }
  0x24   :  { %6992 = vmatpush1.bf16.msra.mxu0 %v7599_v28  ;;  %7008 = vmatpush1.bf16.msra.mxu1 %v7599_v28  ;;  %v598_v0 = vmax.f32 %v594_v57, 0.0  ;;  %v5918_v57 = vld [vmem:[%s12205_s0 + $0x128] sm:$0xff] }
  0x25   :  { %356 = vmatprep.subr.mxu0 %v7606_v31  ;;  %404 = vmatprep.mubr.f32.mxu0 %v7479_v3 }
  0x26   :  { %492 = vmatprep.subr.mxu1 %v7606_v31  ;;  %540 = vmatprep.mubr.f32.mxu1 %v7479_v3 }
  0x28   :  { %357 = vmatpush1.msra.mxu0 %v7627_v36  ;;  %493 = vmatpush1.msra.mxu1 %v7627_v36 }
  0x29   :  { %5785 = vmatmul.mubr.msk.f32.vlgmr.msra.gmra.mrb[8].mxu0 %vm54_vm0, %v324_v7  ;;  %7010 = vmatprep.subr.bf16.mxu0 %v7522_v4  ;;  %v5861_v7 = vld [vmem:[%s12206_s1 + $0xc0] sm:$0xff] }
  0x2a   :  { %7012 = vmatpush1.bf16.msra.mxu0 %v7533_v8  ;;  %5805 = vmatmul.mubr.msk.f32.vlgmr.msra.gmra.mrb[8].mxu1 %vm54_vm0, %v460_v11  ;;  %v5877_v11 = vld [vmem:[%s12205_s0 + $0xe0] sm:$0xff]  ;;  %v864_v16 = vadd.f32 %v5861_v7, %v5857_v6  ;;  %v1138_v6 = vadd.f32 %v5903_v62, %v5899_v61  ;;  %v5900_v7 = vld [vmem:[%s12205_s0 + $0x118] sm:$0xf] }
  0x2b   :  { %7026 = vmatprep.subr.bf16.mxu1 %v7522_v4  ;;  %410 = vmatprep.mubr.f32.mxu0 %v7479_v3  ;;  %v5997_v61 = vld [vmem:[%s12205_s0 + $0x1a0] sm:$0xff] }
  0x2c   :  { %7028 = vmatpush1.bf16.msra.mxu1 %v7533_v8  ;;  %7014 = vmatprep.subr.bf16.mxu0 %v7535_v9  ;;  %v868_v24 = vmax.f32 %v864_v16, 0.0  ;;  %v5924_v16 = vld [vmem:[%s12206_s1 + $0x138] sm:$0xf]  ;;  %v1142_v17 = vmax.f32 %v1138_v6, 0.0  ;;  %v6001_v62 = vld [vmem:[%s12206_s1 + $0x1a0] sm:$0xff]  ;;  %v5998_v6 = vld [vmem:[%s12205_s0 + $0x1a8] sm:$0xff] }
  0x2d   :  { %5786 = vmatmul.mubr.msk.f32.gmra.mrb[10].mxu0 %vm54_vm0, %v325_v19  ;;  %546 = vmatprep.mubr.f32.mxu1 %v7479_v3  ;;  %v1000_v19 = vadd.f32 %v5881_v12, %v5877_v11 }
  0x2e   :  { %7016 = vmatpush1.bf16.msra.mxu0 %v7553_v14  ;;  %5806 = vmatmul.mubr.msk.f32.gmra.mrb[10].mxu1 %vm54_vm0, %v461_v23  ;;  %v5882_v23 = vld [vmem:[%s12206_s1 + $0xe8] sm:$0xff] }
  0x2f   :  { %7030 = vmatprep.subr.bf16.mxu1 %v7535_v9  ;;  %416 = vmatprep.mubr.f32.mxu0 %v7479_v3  ;;  %v1004_v29 = vmax.f32 %v1000_v19, 0.0 }
  0x30   :  { %7032 = vmatpush1.bf16.msra.mxu1 %v7553_v14  ;;  %7018 = vmatprep.subr.bf16.mxu0 %v7557_v15 }
  0x31   :  { %5787 = vmatmul.mubr.msk.f32.gmra.mrb[12].mxu0 %vm54_vm0, %v326_v30  ;;  %552 = vmatprep.mubr.f32.mxu1 %v7479_v3  ;;  %v1001_v30 = vadd.f32 %v5882_v23, %v5878_v22  ;;  %v5937_v23 = vld [vmem:[%s12205_s0 + $0x140] sm:$0xff] }
  0x32   :  { %7020 = vmatpush1.bf16.msra.mxu0 %v7573_v20  ;;  %5807 = vmatmul.mubr.msk.f32.gmra.mrb[12].mxu1 %vm54_vm0, %v462_v33  ;;  %v5883_v33 = vld [vmem:[%s12206_s1 + $0xf0] sm:$0xff] }
  0x33   :  { %7034 = vmatprep.subr.bf16.mxu1 %v7557_v15  ;;  %422 = vmatprep.mubr.f32.mxu0 %v7479_v3  ;;  %v1002_v40 = vadd.f32 %v5883_v33, %v5879_v32  ;;  %v5938_v32 = vld [vmem:[%s12205_s0 + $0x148] sm:$0xff] }
  0x34   :  { %7036 = vmatpush1.bf16.msra.mxu1 %v7573_v20  ;;  %7022 = vmatprep.subr.bf16.mxu0 %v7577_v21  ;;  %v5942_v33 = vld [vmem:[%s12206_s1 + $0x148] sm:$0xff] }
  0x35   :  { %5788 = vmatmul.mubr.msk.f32.gmra.mrb[14].mxu0 %vm54_vm0, %v327_v38  ;;  %558 = vmatprep.mubr.f32.mxu1 %v7479_v3  ;;  %v5864_v38 = vld [vmem:[%s12206_s1 + $0xd8] sm:$0xf]  ;;  %v1006_v45 = vmax.f32 %v1002_v40, 0.0  ;;  %v5939_v40 = vld [vmem:[%s12205_s0 + $0x150] sm:$0xff] }
  0x36   :  { %7024 = vmatpush1.bf16.msra.mxu0 %v7599_v28  ;;  %5808 = vmatmul.mubr.msk.f32.gmra.mrb[14].mxu1 %vm54_vm0, %v463_v39  ;;  %v1005_v39 = vmax.f32 %v1001_v30, 0.0  ;;  %v867_v44 = vadd.f32 %v5864_v38, %v5860_v37  ;;  %v5962_v37 = vld [vmem:[%s12206_s1 + $0x168] sm:$0xff] }
  0x37   :  { %7038 = vmatprep.subr.bf16.mxu1 %v7577_v21  ;;  %628 = vmatprep.subr.mxu0 %v7606_v31 }
  0x38   :  { %7040 = vmatpush1.bf16.msra.mxu1 %v7599_v28  ;;  %676 = vmatprep.mubr.f32.mxu0 %v7479_v3  ;;  %v871_v49 = vmax.f32 %v867_v44, 0.0  ;;  %v5959_v44 = vld [vmem:[%s12205_s0 + $0x170] sm:$0xff] }
  0x39   :  { %764 = vmatprep.subr.mxu1 %v7606_v31  ;;  %812 = vmatprep.mubr.f32.mxu1 %v7479_v3 }
  0x3a   :  { %629 = vmatpush1.msra.mxu0 %v7627_v36 }
  0x3b   :  { %5825 = vmatmul.mubr.msk.f32.vlgmr.msra.gmra.mrb[16].mxu0 %vm54_vm0, %v596_v48  ;;  %7042 = vmatprep.subr.bf16.mxu0 %v7522_v4  ;;  %v5901_v48 = vld [vmem:[%s12206_s1 + $0x100] sm:$0xff] }
  0x3c   :  { %765 = vmatpush1.msra.mxu1 %v7627_v36  ;;  %7044 = vmatpush1.bf16.msra.mxu0 %v7533_v8  ;;  %v1136_v53 = vadd.f32 %v5901_v48, %v5897_v47  ;;  %v1410_v47 = vadd.f32 %v5943_v41, %v5939_v40  ;;  %v5940_v48 = vld [vmem:[%s12205_s0 + $0x158] sm:$0xf]  ;;  %v6037_v40 = vld [vmem:[%s12205_s0 + $0x1e0] sm:$0xff] }
  0x3d   :  { %5845 = vmatmul.mubr.msk.f32.vlgmr.msra.gmra.mrb[16].mxu1 %vm54_vm0, %v732_v52  ;;  %7058 = vmatprep.subr.bf16.mxu1 %v7522_v4  ;;  %v1007_v52 = vmax.f32 %v1003_v46, 0.0  ;;  %v6041_v41 = vld [vmem:[%s12206_s1 + $0x1e0] sm:$0xff] }
  0x3e   :  { %682 = vmatprep.mubr.f32.mxu0 %v7479_v3  ;;  %7060 = vmatpush1.bf16.msra.mxu1 %v7533_v8  ;;  %v1140_v59 = vmax.f32 %v1136_v53, 0.0  ;;  %v5964_v53 = vld [vmem:[%s12206_s1 + $0x178] sm:$0xf] }
  0x3f   :  { %5826 = vmatmul.mubr.msk.f32.gmra.mrb[18].mxu0 %vm54_vm0, %v597_v56  ;;  %7046 = vmatprep.subr.bf16.mxu0 %v7535_v9  ;;  %v1272_v56 = vadd.f32 %v5921_v51, %v5917_v50 }
  0x40   :  { %818 = vmatprep.mubr.f32.mxu1 %v7479_v3  ;;  %7048 = vmatpush1.bf16.msra.mxu0 %v7553_v14 }
  0x41   :  { %5846 = vmatmul.mubr.msk.f32.gmra.mrb[18].mxu1 %vm54_vm0, %v733_v60  ;;  %7062 = vmatprep.subr.bf16.mxu1 %v7535_v9  ;;  %v1137_v60 = vadd.f32 %v5902_v55, %v5898_v54  ;;  %v1276_v63 = vmax.f32 %v1272_v56, 0.0  ;;  %v1414_v54 = vmax.f32 %v1410_v47, 0.0  ;;  %v6038_v47 = vld [vmem:[%s12205_s0 + $0x1e8] sm:$0xff] }
  0x42   :  { %688 = vmatprep.mubr.f32.mxu0 %v7479_v3  ;;  %7064 = vmatpush1.bf16.msra.mxu1 %v7553_v14 }
  0x43   :  { %5827 = vmatmul.mubr.msk.f32.gmra.mrb[20].mxu0 %vm54_vm0, %v598_v0  ;;  %7050 = vmatprep.subr.bf16.mxu0 %v7557_v15  ;;  %v1273_v0 = vadd.f32 %v5922_v58, %v5918_v57  ;;  %v1141_v5 = vmax.f32 %v1137_v60, 0.0  ;;  %v5977_v58 = vld [vmem:[%s12205_s0 + $0x180] sm:$0xff] }
  0x44   :  { %824 = vmatprep.mubr.f32.mxu1 %v7479_v3  ;;  %7052 = vmatpush1.bf16.msra.mxu0 %v7573_v20 }
  0x45   :  { %5847 = vmatmul.mubr.msk.f32.gmra.mrb[20].mxu1 %vm54_vm0, %v734_v2  ;;  %7066 = vmatprep.subr.bf16.mxu1 %v7557_v15  ;;  %v5923_v2 = vld [vmem:[%s12206_s1 + $0x130] sm:$0xff]  ;;  %v1277_v11 = vmax.f32 %v1273_v0, 0.0 }
  0x46   :  { %694 = vmatprep.mubr.f32.mxu0 %v7479_v3  ;;  %7068 = vmatpush1.bf16.msra.mxu1 %v7573_v20  ;;  %v1274_v12 = vadd.f32 %v5923_v2, %v5919_v1  ;;  %v5978_v1 = vld [vmem:[%s12205_s0 + $0x188] sm:$0xff] }
  0x47   :  { %5828 = vmatmul.mubr.msk.f32.gmra.mrb[22].mxu0 %vm54_vm0, %v599_v10  ;;  %7054 = vmatprep.subr.bf16.mxu0 %v7577_v21  ;;  %v5904_v10 = vld [vmem:[%s12206_s1 + $0x118] sm:$0xf]  ;;  %v5982_v2 = vld [vmem:[%s12206_s1 + $0x188] sm:$0xff] }
  0x48   :  { %830 = vmatprep.mubr.f32.mxu1 %v7479_v3  ;;  %7056 = vmatpush1.bf16.msra.mxu0 %v7599_v28  ;;  %v1139_v18 = vadd.f32 %v5904_v10, %v5900_v7  ;;  %v1278_v19 = vmax.f32 %v1274_v12, 0.0  ;;  %v6002_v7 = vld [vmem:[%s12206_s1 + $0x1a8] sm:$0xff]  ;;  %v5979_v12 = vld [vmem:[%s12205_s0 + $0x190] sm:$0xff] }
  0x49   :  { %5848 = vmatmul.mubr.msk.f32.gmra.mrb[22].mxu1 %vm54_vm0, %v735_v13  ;;  %7070 = vmatprep.subr.bf16.mxu1 %v7577_v21  ;;  %v5920_v13 = vld [vmem:[%s12205_s0 + $0x138] sm:$0xf] }
  0x4a   :  { %7072 = vmatpush1.bf16.msra.mxu1 %v7599_v28  ;;  %900 = vmatprep.subr.mxu0 %v7606_v31  ;;  %v1275_v22 = vadd.f32 %v5924_v16, %v5920_v13  ;;  %v1143_v25 = vmax.f32 %v1139_v18, 0.0  ;;  %v5983_v13 = vld [vmem:[%s12206_s1 + $0x190] sm:$0xff] }
  0x4b   :  { %948 = vmatprep.mubr.f32.mxu0 %v7479_v3  ;;  %1036 = vmatprep.subr.mxu1 %v7606_v31  ;;  %v5999_v18 = vld [vmem:[%s12205_s0 + $0x1b0] sm:$0xff] }
  0x4c   :  { %901 = vmatpush1.msra.mxu0 %v7627_v36  ;;  %1084 = vmatprep.mubr.f32.mxu1 %v7479_v3 }
  0x4d   :  { %5865 = vmatmul.mubr.msk.f32.vlgmr.msra.gmra.mrb[24].mxu0 %vm54_vm0, %v868_v24  ;;  %7074 = vmatprep.subr.bf16.mxu0 %v7522_v4  ;;  %v5941_v24 = vld [vmem:[%s12206_s1 + $0x140] sm:$0xff] }
  0x4e   :  { %1037 = vmatpush1.msra.mxu1 %v7627_v36  ;;  %7076 = vmatpush1.bf16.msra.mxu0 %v7533_v8  ;;  %v1408_v30 = vadd.f32 %v5941_v24, %v5937_v23  ;;  %v1682_v23 = vadd.f32 %v5983_v13, %v5979_v12  ;;  %v5980_v24 = vld [vmem:[%s12205_s0 + $0x198] sm:$0xf] }
  0x4f   :  { %5885 = vmatmul.mubr.msk.f32.vlgmr.msra.gmra.mrb[24].mxu1 %vm54_vm0, %v1004_v29  ;;  %7090 = vmatprep.subr.bf16.mxu1 %v7522_v4  ;;  %v1279_v29 = vmax.f32 %v1275_v22, 0.0 }
  0x50   :  { %954 = vmatprep.mubr.f32.mxu0 %v7479_v3  ;;  %7092 = vmatpush1.bf16.msra.mxu1 %v7533_v8  ;;  %v1412_v38 = vmax.f32 %v1408_v30, 0.0  ;;  %v6004_v30 = vld [vmem:[%s12206_s1 + $0x1b8] sm:$0xf] }
  0x51   :  { %5866 = vmatmul.mubr.msk.f32.gmra.mrb[26].mxu0 %vm54_vm0, %v869_v34  ;;  %7078 = vmatprep.subr.bf16.mxu0 %v7535_v9  ;;  %v1544_v34 = vadd.f32 %v5961_v27, %v5957_v26 }
  0x52   :  { %1090 = vmatprep.mubr.f32.mxu1 %v7479_v3  ;;  %7080 = vmatpush1.bf16.msra.mxu0 %v7553_v14 }
  0x53   :  { %5886 = vmatmul.mubr.msk.f32.gmra.mrb[26].mxu1 %vm54_vm0, %v1005_v39  ;;  %7094 = vmatprep.subr.bf16.mxu1 %v7535_v9  ;;  %v1409_v39 = vadd.f32 %v5942_v33, %v5938_v32  ;;  %v1548_v42 = vmax.f32 %v1544_v34, 0.0  ;;  %v1686_v32 = vmax.f32 %v1682_v23, 0.0 }
  0x54   :  { %960 = vmatprep.mubr.f32.mxu0 %v7479_v3  ;;  %7096 = vmatpush1.bf16.msra.mxu1 %v7553_v14 }
  0x55   :  { %5867 = vmatmul.mubr.msk.f32.gmra.mrb[28].mxu0 %vm54_vm0, %v870_v43  ;;  %7082 = vmatprep.subr.bf16.mxu0 %v7557_v15  ;;  %v1545_v43 = vadd.f32 %v5962_v37, %v5958_v35  ;;  %v1413_v46 = vmax.f32 %v1409_v39, 0.0  ;;  %v6017_v37 = vld [vmem:[%s12205_s0 + $0x1c0] sm:$0xff] }
  0x56   :  { %1096 = vmatprep.mubr.f32.mxu1 %v7479_v3  ;;  %7084 = vmatpush1.bf16.msra.mxu0 %v7573_v20 }
  0x57   :  { %5887 = vmatmul.mubr.msk.f32.gmra.mrb[28].mxu1 %vm54_vm0, %v1006_v45  ;;  %7098 = vmatprep.subr.bf16.mxu1 %v7557_v15  ;;  %v5963_v45 = vld [vmem:[%s12206_s1 + $0x170] sm:$0xff]  ;;  %v1549_v50 = vmax.f32 %v1545_v43, 0.0 }
  0x58   :  { %966 = vmatprep.mubr.f32.mxu0 %v7479_v3  ;;  %7100 = vmatpush1.bf16.msra.mxu1 %v7573_v20  ;;  %v1546_v51 = vadd.f32 %v5963_v45, %v5959_v44  ;;  %v6018_v44 = vld [vmem:[%s12205_s0 + $0x1c8] sm:$0xff] }
  0x59   :  { %5868 = vmatmul.mubr.msk.f32.gmra.mrb[30].mxu0 %vm54_vm0, %v871_v49  ;;  %7086 = vmatprep.subr.bf16.mxu0 %v7577_v21  ;;  %v5944_v49 = vld [vmem:[%s12206_s1 + $0x158] sm:$0xf]  ;;  %v6022_v45 = vld [vmem:[%s12206_s1 + $0x1c8] sm:$0xff] }
  0x5a   :  { %1102 = vmatprep.mubr.f32.mxu1 %v7479_v3  ;;  %7088 = vmatpush1.bf16.msra.mxu0 %v7599_v28  ;;  %v1411_v55 = vadd.f32 %v5944_v49, %v5940_v48  ;;  %v1550_v56 = vmax.f32 %v1546_v51, 0.0  ;;  %v6042_v48 = vld [vmem:[%s12206_s1 + $0x1e8] sm:$0xff]  ;;  %v6019_v51 = vld [vmem:[%s12205_s0 + $0x1d0] sm:$0xff] }
  0x5b   :  { %5888 = vmatmul.mubr.msk.f32.gmra.mrb[30].mxu1 %vm54_vm0, %v1007_v52  ;;  %7102 = vmatprep.subr.bf16.mxu1 %v7577_v21  ;;  %v5960_v52 = vld [vmem:[%s12205_s0 + $0x178] sm:$0xf] }
  0x5c   :  { %7104 = vmatpush1.bf16.msra.mxu1 %v7599_v28  ;;  %1172 = vmatprep.subr.mxu0 %v7606_v31  ;;  %v1547_v57 = vadd.f32 %v5964_v53, %v5960_v52  ;;  %v1415_v60 = vmax.f32 %v1411_v55, 0.0  ;;  %v6023_v52 = vld [vmem:[%s12206_s1 + $0x1d0] sm:$0xff] }
  0x5d   :  { %1220 = vmatprep.mubr.f32.mxu0 %v7479_v3  ;;  %1308 = vmatprep.subr.mxu1 %v7606_v31  ;;  %v6039_v55 = vld [vmem:[%s12205_s0 + $0x1f0] sm:$0xff] }
  0x5e   :  { %1173 = vmatpush1.msra.mxu0 %v7627_v36  ;;  %1356 = vmatprep.mubr.f32.mxu1 %v7479_v3 }
  0x5f   :  { %5905 = vmatmul.mubr.msk.f32.vlgmr.msra.gmra.mrb[32].mxu0 %vm54_vm0, %v1140_v59  ;;  %7106 = vmatprep.subr.bf16.mxu0 %v7522_v4  ;;  %v5981_v59 = vld [vmem:[%s12206_s1 + $0x180] sm:$0xff] }
  0x60   :  { %1309 = vmatpush1.msra.mxu1 %v7627_v36  ;;  %7108 = vmatpush1.bf16.msra.mxu0 %v7533_v8  ;;  %v1680_v0 = vadd.f32 %v5981_v59, %v5977_v58  ;;  %v6020_v58 = vld [vmem:[%s12205_s0 + $0x1d8] sm:$0xf] }
  0x61   :  { %5925 = vmatmul.mubr.msk.f32.vlgmr.msra.gmra.mrb[32].mxu1 %vm54_vm0, %v1276_v63  ;;  %7122 = vmatprep.subr.bf16.mxu1 %v7522_v4  ;;  %v1551_v63 = vmax.f32 %v1547_v57, 0.0  ;;  %v6024_v59 = vld [vmem:[%s12206_s1 + $0x1d8] sm:$0xf] }
  0x62   :  { %1226 = vmatprep.mubr.f32.mxu0 %v7479_v3  ;;  %7124 = vmatpush1.bf16.msra.mxu1 %v7533_v8  ;;  %v1684_v10 = vmax.f32 %v1680_v0, 0.0  ;;  %v1955_v0 = vadd.f32 %v6024_v59, %v6020_v58  ;;  %v6122_v58 = vld [vmem:[%s12206_s1 + $0x268] sm:$0xff] }
  0x63   :  { %5906 = vmatmul.mubr.msk.f32.gmra.mrb[34].mxu0 %vm54_vm0, %v1141_v5  ;;  %7110 = vmatprep.subr.bf16.mxu0 %v7535_v9  ;;  %v1816_v5 = vadd.f32 %v6001_v62, %v5997_v61  ;;  %v6044_v62 = vld [vmem:[%s12206_s1 + $0x1f8] sm:$0xf] }
  0x64   :  { %1362 = vmatprep.mubr.f32.mxu1 %v7479_v3  ;;  %7112 = vmatpush1.bf16.msra.mxu0 %v7553_v14 }
  0x65   :  { %5926 = vmatmul.mubr.msk.f32.gmra.mrb[34].mxu1 %vm54_vm0, %v1277_v11  ;;  %7126 = vmatprep.subr.bf16.mxu1 %v7535_v9  ;;  %v1681_v11 = vadd.f32 %v5982_v2, %v5978_v1  ;;  %v1820_v16 = vmax.f32 %v1816_v5, 0.0  ;;  %v6057_v5 = vld [vmem:[%s12205_s0 + $0x200] sm:$0xff] }
  0x66   :  { %1232 = vmatprep.mubr.f32.mxu0 %v7479_v3  ;;  %7128 = vmatpush1.bf16.msra.mxu1 %v7553_v14 }
  0x67   :  { %5907 = vmatmul.mubr.msk.f32.gmra.mrb[36].mxu0 %vm54_vm0, %v1142_v17  ;;  %7114 = vmatprep.subr.bf16.mxu0 %v7557_v15  ;;  %v1817_v17 = vadd.f32 %v6002_v7, %v5998_v6  ;;  %v1685_v22 = vmax.f32 %v1681_v11, 0.0  ;;  %v6061_v6 = vld [vmem:[%s12206_s1 + $0x200] sm:$0xff]  ;;  %v1959_v7 = vmax.f32 %v1955_v0, 0.0  ;;  %v6119_v0 = vld [vmem:[%s12205_s0 + $0x270] sm:$0xff] }
  0x68   :  { %1368 = vmatprep.mubr.f32.mxu1 %v7479_v3  ;;  %7116 = vmatpush1.bf16.msra.mxu0 %v7573_v20  ;;  %v6081_v11 = vld [vmem:[%s12206_s1 + $0x220] sm:$0xff]  ;;  %v2224_v13 = vadd.f32 %v6061_v6, %v6057_v5  ;;  %v6100_v6 = vld [vmem:[%s12205_s0 + $0x258] sm:$0xf] }
  0x69   :  { %5927 = vmatmul.mubr.msk.f32.gmra.mrb[36].mxu1 %vm54_vm0, %v1278_v19  ;;  %7130 = vmatprep.subr.bf16.mxu1 %v7557_v15  ;;  %v6003_v19 = vld [vmem:[%s12206_s1 + $0x1b0] sm:$0xff]  ;;  %v1821_v26 = vmax.f32 %v1817_v17, 0.0  ;;  %v6062_v17 = vld [vmem:[%s12206_s1 + $0x208] sm:$0xff] }
  0x6a   :  { %1238 = vmatprep.mubr.f32.mxu0 %v7479_v3  ;;  %7132 = vmatpush1.bf16.msra.mxu1 %v7573_v20  ;;  %v1818_v27 = vadd.f32 %v6003_v19, %v5999_v18  ;;  %v6078_v19 = vld [vmem:[%s12205_s0 + $0x228] sm:$0xff]  ;;  %v2228_v23 = vmax.f32 %v2224_v13, 0.0  ;;  %v6124_v13 = vld [vmem:[%s12206_s1 + $0x278] sm:$0xf] }
  0x6b   :  { %5908 = vmatmul.mubr.msk.f32.gmra.mrb[38].mxu0 %vm54_vm0, %v1143_v25  ;;  %7118 = vmatprep.subr.bf16.mxu0 %v7577_v21  ;;  %v5984_v25 = vld [vmem:[%s12206_s1 + $0x198] sm:$0xf] }
  0x6c   :  { %1374 = vmatprep.mubr.f32.mxu1 %v7479_v3  ;;  %7120 = vmatpush1.bf16.msra.mxu0 %v7599_v28  ;;  %v1683_v33 = vadd.f32 %v5984_v25, %v5980_v24  ;;  %v1822_v34 = vmax.f32 %v1818_v27, 0.0  ;;  %v8300_v25 = vld [vmem:[%s12204_s2 + $0x88] sm:$0xff]  ;;  %v6063_v27 = vld [vmem:[%s12206_s1 + $0x210] sm:$0xff] }
  0x6d   :  { %5928 = vmatmul.mubr.msk.f32.gmra.mrb[38].mxu1 %vm54_vm0, %v1279_v29  ;;  %7134 = vmatprep.subr.bf16.mxu1 %v7577_v21  ;;  %v6000_v29 = vld [vmem:[%s12205_s0 + $0x1b8] sm:$0xf] }
  0x6e   :  { %7136 = vmatpush1.bf16.msra.mxu1 %v7599_v28  ;;  %1444 = vmatprep.subr.mxu0 %v7606_v31  ;;  %v1819_v35 = vadd.f32 %v6004_v30, %v6000_v29  ;;  %v1687_v39 = vmax.f32 %v1683_v33, 0.0  ;;  %v6079_v33 = vld [vmem:[%s12205_s0 + $0x230] sm:$0xff] }
  0x6f   :  { %1492 = vmatprep.mubr.f32.mxu0 %v7479_v3  ;;  %1580 = vmatprep.subr.mxu1 %v7606_v31 }
  0x70   :  { %1445 = vmatpush1.msra.mxu0 %v7627_v36  ;;  %1628 = vmatprep.mubr.f32.mxu1 %v7479_v3 }
  0x71   :  { %5945 = vmatmul.mubr.msk.f32.vlgmr.msra.gmra.mrb[40].mxu0 %vm54_vm0, %v1412_v38  ;;  %7138 = vmatprep.subr.bf16.mxu0 %v7522_v4  ;;  %v6021_v38 = vld [vmem:[%s12206_s1 + $0x1c0] sm:$0xff] }
  0x72   :  { %1581 = vmatpush1.msra.mxu1 %v7627_v36  ;;  %7140 = vmatpush1.bf16.msra.mxu0 %v7533_v8  ;;  %v1952_v43 = vadd.f32 %v6021_v38, %v6017_v37  ;;  %v6060_v38 = vld [vmem:[%s12205_s0 + $0x218] sm:$0xf] }
  0x73   :  { %5965 = vmatmul.mubr.msk.f32.vlgmr.msra.gmra.mrb[40].mxu1 %vm54_vm0, %v1548_v42  ;;  %7154 = vmatprep.subr.bf16.mxu1 %v7522_v4  ;;  %v1823_v42 = vmax.f32 %v1819_v35, 0.0 }
  0x74   :  { %1498 = vmatprep.mubr.f32.mxu0 %v7479_v3  ;;  %7156 = vmatpush1.bf16.msra.mxu1 %v7533_v8  ;;  %v1956_v49 = vmax.f32 %v1952_v43, 0.0  ;;  %v6084_v43 = vld [vmem:[%s12206_s1 + $0x238] sm:$0xf] }
  0x75   :  { %5946 = vmatmul.mubr.msk.f32.gmra.mrb[42].mxu0 %vm54_vm0, %v1413_v46  ;;  %7142 = vmatprep.subr.bf16.mxu0 %v7535_v9  ;;  %v2088_v46 = vadd.f32 %v6041_v41, %v6037_v40 }
  0x76   :  { %1634 = vmatprep.mubr.f32.mxu1 %v7479_v3  ;;  %7144 = vmatpush1.bf16.msra.mxu0 %v7553_v14 }
  0x77   :  { %5966 = vmatmul.mubr.msk.f32.gmra.mrb[42].mxu1 %vm54_vm0, %v1549_v50  ;;  %7158 = vmatprep.subr.bf16.mxu1 %v7535_v9  ;;  %v1953_v50 = vadd.f32 %v6022_v45, %v6018_v44  ;;  %v2092_v53 = vmax.f32 %v2088_v46, 0.0 }
  0x78   :  { %1504 = vmatprep.mubr.f32.mxu0 %v7479_v3  ;;  %7160 = vmatpush1.bf16.msra.mxu1 %v7553_v14 }
  0x79   :  { %5947 = vmatmul.mubr.msk.f32.gmra.mrb[44].mxu0 %vm54_vm0, %v1414_v54  ;;  %7146 = vmatprep.subr.bf16.mxu0 %v7557_v15  ;;  %v2089_v54 = vadd.f32 %v6042_v48, %v6038_v47  ;;  %v1957_v57 = vmax.f32 %v1953_v50, 0.0  ;;  %v6097_v48 = vld [vmem:[%s12205_s0 + $0x240] sm:$0xff] }
  0x7a   :  { %1640 = vmatprep.mubr.f32.mxu1 %v7479_v3  ;;  %7148 = vmatpush1.bf16.msra.mxu0 %v7573_v20 }
  0x7b   :  { %5967 = vmatmul.mubr.msk.f32.gmra.mrb[44].mxu1 %vm54_vm0, %v1550_v56  ;;  %7162 = vmatprep.subr.bf16.mxu1 %v7557_v15  ;;  %v6043_v56 = vld [vmem:[%s12206_s1 + $0x1f0] sm:$0xff] }
  0x7c   :  { %1510 = vmatprep.mubr.f32.mxu0 %v7479_v3  ;;  %7164 = vmatpush1.bf16.msra.mxu1 %v7573_v20  ;;  %v2090_v61 = vadd.f32 %v6043_v56, %v6039_v55  ;;  %v6098_v55 = vld [vmem:[%s12205_s0 + $0x248] sm:$0xff] }
  0x7d   :  { %5948 = vmatmul.mubr.msk.f32.gmra.mrb[46].mxu0 %vm54_vm0, %v1415_v60  ;;  %7150 = vmatprep.subr.bf16.mxu0 %v7577_v21  ;;  %v2093_v60 = vmax.f32 %v2089_v54, 0.0  ;;  %v6102_v56 = vld [vmem:[%s12206_s1 + $0x248] sm:$0xff] }
  0x7e   :  { %1646 = vmatprep.mubr.f32.mxu1 %v7479_v3  ;;  %7152 = vmatpush1.bf16.msra.mxu0 %v7599_v28  ;;  %v2094_v1 = vmax.f32 %v2090_v61, 0.0  ;;  %v6099_v61 = vld [vmem:[%s12205_s0 + $0x250] sm:$0xff] }
  0x7f   :  { %5968 = vmatmul.mubr.msk.f32.gmra.mrb[46].mxu1 %vm54_vm0, %v1551_v63  ;;  %7166 = vmatprep.subr.bf16.mxu1 %v7577_v21 }
  0x80   :  { %7168 = vmatpush1.bf16.msra.mxu1 %v7599_v28  ;;  %1716 = vmatprep.subr.mxu0 %v7606_v31 }
  0x81   :  { %1764 = vmatprep.mubr.f32.mxu0 %v7479_v3  ;;  %1852 = vmatprep.subr.mxu1 %v7606_v31 }
  0x82   :  { %1717 = vmatpush1.msra.mxu0 %v7627_v36  ;;  %1900 = vmatprep.mubr.f32.mxu1 %v7479_v3 }
  0x83   :  { %5985 = vmatmul.mubr.msk.f32.vlgmr.msra.gmra.mrb[48].mxu0 %vm54_vm0, %v1684_v10  ;;  %7170 = vmatprep.subr.bf16.mxu0 %v7522_v4  ;;  %v6077_v10 = vld [vmem:[%s12205_s0 + $0x220] sm:$0xff] }
  0x84   :  { %1853 = vmatpush1.msra.mxu1 %v7627_v36  ;;  %7172 = vmatpush1.bf16.msra.mxu0 %v7533_v8  ;;  %v2360_v18 = vadd.f32 %v6081_v11, %v6077_v10 }
  0x85   :  { %6005 = vmatmul.mubr.msk.f32.vlgmr.msra.gmra.mrb[48].mxu1 %vm54_vm0, %v1820_v16  ;;  %7186 = vmatprep.subr.bf16.mxu1 %v7522_v4  ;;  %v6058_v16 = vld [vmem:[%s12205_s0 + $0x208] sm:$0xff] }
  0x86   :  { %1770 = vmatprep.mubr.f32.mxu0 %v7479_v3  ;;  %7188 = vmatpush1.bf16.msra.mxu1 %v7533_v8  ;;  %v2225_v24 = vadd.f32 %v6062_v17, %v6058_v16  ;;  %v2364_v29 = vmax.f32 %v2360_v18, 0.0 }
  0x87   :  { %5986 = vmatmul.mubr.msk.f32.gmra.mrb[50].mxu0 %vm54_vm0, %v1685_v22  ;;  %7174 = vmatprep.subr.bf16.mxu0 %v7535_v9  ;;  %v6082_v22 = vld [vmem:[%s12206_s1 + $0x228] sm:$0xff] }
  0x88   :  { %1906 = vmatprep.mubr.f32.mxu1 %v7479_v3  ;;  %7176 = vmatpush1.bf16.msra.mxu0 %v7553_v14  ;;  %v2361_v30 = vadd.f32 %v6082_v22, %v6078_v19  ;;  %v2229_v35 = vmax.f32 %v2225_v24, 0.0  ;;  %v6137_v22 = vld [vmem:[%s12205_s0 + $0x280] sm:$0xff] }
  0x89   :  { %6006 = vmatmul.mubr.msk.f32.gmra.mrb[50].mxu1 %vm54_vm0, %v1821_v26  ;;  %7190 = vmatprep.subr.bf16.mxu1 %v7535_v9  ;;  %v6059_v26 = vld [vmem:[%s12205_s0 + $0x210] sm:$0xff] }
  0x8a   :  { %1776 = vmatprep.mubr.f32.mxu0 %v7479_v3  ;;  %7192 = vmatpush1.bf16.msra.mxu1 %v7553_v14  ;;  %v2226_v37 = vadd.f32 %v6063_v27, %v6059_v26  ;;  %v2365_v40 = vmax.f32 %v2361_v30, 0.0  ;;  %v6157_v26 = vld [vmem:[%s12205_s0 + $0x2a0] sm:$0xff] }
  0x8b   :  { %5987 = vmatmul.mubr.msk.f32.gmra.mrb[52].mxu0 %vm54_vm0, %v1686_v32  ;;  %7178 = vmatprep.subr.bf16.mxu0 %v7557_v15  ;;  %v8314_v32 = vld [vmem:[%s12204_s2 + $0x80] sm:$0xff] }
  0x8c   :  { %1912 = vmatprep.mubr.f32.mxu1 %v7479_v3  ;;  %7180 = vmatpush1.bf16.msra.mxu0 %v7573_v20  ;;  %v2230_v44 = vmax.f32 %v2226_v37, 0.0  ;;  %v6161_v27 = vld [vmem:[%s12206_s1 + $0x2a0] sm:$0xff]  ;;  %v6158_v37 = vld [vmem:[%s12205_s0 + $0x2a8] sm:$0xff] }
  0x8d   :  { %6007 = vmatmul.mubr.msk.f32.gmra.mrb[52].mxu1 %vm54_vm0, %v1822_v34  ;;  %7194 = vmatprep.subr.bf16.mxu1 %v7557_v15  ;;  %v6083_v34 = vld [vmem:[%s12206_s1 + $0x230] sm:$0xff] }
  0x8e   :  { %1782 = vmatprep.mubr.f32.mxu0 %v7479_v3  ;;  %7196 = vmatpush1.bf16.msra.mxu1 %v7573_v20  ;;  %v2362_v41 = vadd.f32 %v6083_v34, %v6079_v33  ;;  %v6138_v33 = vld [vmem:[%s12205_s0 + $0x288] sm:$0xff] }
  0x8f   :  { %5988 = vmatmul.mubr.msk.f32.gmra.mrb[54].mxu0 %vm54_vm0, %v1687_v39  ;;  %7182 = vmatprep.subr.bf16.mxu0 %v7577_v21  ;;  %v6064_v39 = vld [vmem:[%s12206_s1 + $0x218] sm:$0xf]  ;;  %v6142_v34 = vld [vmem:[%s12206_s1 + $0x288] sm:$0xff] }
  0x90   :  { %1918 = vmatprep.mubr.f32.mxu1 %v7479_v3  ;;  %7184 = vmatpush1.bf16.msra.mxu0 %v7599_v28  ;;  %v2227_v45 = vadd.f32 %v6064_v39, %v6060_v38  ;;  %v2366_v46 = vmax.f32 %v2362_v41, 0.0  ;;  %v6162_v38 = vld [vmem:[%s12206_s1 + $0x2a8] sm:$0xff]  ;;  %v6139_v41 = vld [vmem:[%s12205_s0 + $0x290] sm:$0xff] }
  0x91   :  { %6008 = vmatmul.mubr.msk.f32.gmra.mrb[54].mxu1 %vm54_vm0, %v1823_v42  ;;  %7198 = vmatprep.subr.bf16.mxu1 %v7577_v21  ;;  %v6080_v42 = vld [vmem:[%s12205_s0 + $0x238] sm:$0xf] }
  0x92   :  { %7200 = vmatpush1.bf16.msra.mxu1 %v7599_v28  ;;  %1988 = vmatprep.subr.mxu0 %v7606_v31  ;;  %v2363_v47 = vadd.f32 %v6084_v43, %v6080_v42  ;;  %v2231_v50 = vmax.f32 %v2227_v45, 0.0  ;;  %v6143_v42 = vld [vmem:[%s12206_s1 + $0x290] sm:$0xff] }
  0x93   :  { %2036 = vmatprep.mubr.f32.mxu0 %v7479_v3  ;;  %2124 = vmatprep.subr.mxu1 %v7606_v31  ;;  %v1954_v31 = vadd.f32 %v6023_v52, %v6019_v51  ;;  %v6117_v51 = vld [vmem:[%s12205_s0 + $0x260] sm:$0xff]  ;;  %v6159_v45 = vld [vmem:[%s12205_s0 + $0x2b0] sm:$0xff] }
  0x94   :  { %1989 = vmatpush1.msra.mxu0 %v7627_v36  ;;  %2172 = vmatprep.mubr.f32.mxu1 %v7479_v3  ;;  %v6121_v52 = vld [vmem:[%s12206_s1 + $0x260] sm:$0xff] }
  0x95   :  { %6025 = vmatmul.mubr.msk.f32.vlgmr.msra.gmra.mrb[56].mxu0 %vm54_vm0, %v1956_v49  ;;  %7202 = vmatprep.subr.bf16.mxu0 %v7522_v4  ;;  %v1958_v63 = vmax.f32 %v1954_v31, 0.0  ;;  %v6101_v49 = vld [vmem:[%s12206_s1 + $0x240] sm:$0xff]  ;;  %v6118_v31 = vld [vmem:[%s12205_s0 + $0x268] sm:$0xff] }
  0x96   :  { %2125 = vmatpush1.msra.mxu1 %v7627_v36  ;;  %7204 = vmatpush1.bf16.msra.mxu0 %v7533_v8  ;;  %v6040_v36 = vld [vmem:[%s12205_s0 + $0x1f8] sm:$0xf]  ;;  %v2496_v54 = vadd.f32 %v6101_v49, %v6097_v48  ;;  %v2770_v48 = vadd.f32 %v6143_v42, %v6139_v41  ;;  %v6237_v41 = vld [vmem:[%s12205_s0 + $0x320] sm:$0xff] }
  0x97   :  { %6045 = vmatmul.mubr.msk.f32.vlgmr.msra.gmra.mrb[56].mxu1 %vm54_vm0, %v2092_v53  ;;  %7218 = vmatprep.subr.bf16.mxu1 %v7522_v4  ;;  %v2091_v2 = vadd.f32 %v6044_v62, %v6040_v36  ;;  %v2367_v53 = vmax.f32 %v2363_v47, 0.0  ;;  %v6103_v36 = vld [vmem:[%s12206_s1 + $0x250] sm:$0xff]  ;;  %v6140_v49 = vld [vmem:[%s12205_s0 + $0x298] sm:$0xf]  ;;  %v6241_v42 = vld [vmem:[%s12206_s1 + $0x320] sm:$0xff] }
  0x98   :  { %2042 = vmatprep.mubr.f32.mxu0 %v7479_v3  ;;  %7220 = vmatpush1.bf16.msra.mxu1 %v7533_v8  ;;  %v2500_v59 = vmax.f32 %v2496_v54, 0.0  ;;  %v2498_v5 = vadd.f32 %v6103_v36, %v6099_v61  ;;  %v6164_v54 = vld [vmem:[%s12206_s1 + $0x2b8] sm:$0xf]  ;;  %v6197_v61 = vld [vmem:[%s12205_s0 + $0x2e0] sm:$0xff] }
  0x99   :  { %6026 = vmatmul.mubr.msk.f32.gmra.mrb[58].mxu0 %vm54_vm0, %v1957_v57  ;;  %7206 = vmatprep.subr.bf16.mxu0 %v7535_v9  ;;  %v2095_v12 = vmax.f32 %v2091_v2, 0.0  ;;  %v2632_v57 = vadd.f32 %v6121_v52, %v6117_v51  ;;  %v6201_v36 = vld [vmem:[%s12206_s1 + $0x2e0] sm:$0xff] }
  0x9a   :  { %2178 = vmatprep.mubr.f32.mxu1 %v7479_v3  ;;  %7208 = vmatpush1.bf16.msra.mxu0 %v7553_v14  ;;  %v2502_v16 = vmax.f32 %v2498_v5, 0.0  ;;  %v6198_v5 = vld [vmem:[%s12205_s0 + $0x2e8] sm:$0xff] }
  0x9b   :  { %6046 = vmatmul.mubr.msk.f32.gmra.mrb[58].mxu1 %vm54_vm0, %v2093_v60  ;;  %7222 = vmatprep.subr.bf16.mxu1 %v7535_v9  ;;  %v2497_v60 = vadd.f32 %v6102_v56, %v6098_v55  ;;  %v2636_v62 = vmax.f32 %v2632_v57, 0.0  ;;  %v2774_v55 = vmax.f32 %v2770_v48, 0.0 }
  0x9c   :  { %2048 = vmatprep.mubr.f32.mxu0 %v7479_v3  ;;  %7224 = vmatpush1.bf16.msra.mxu1 %v7553_v14 }
  0x9d   :  { %6027 = vmatmul.mubr.msk.f32.gmra.mrb[60].mxu0 %vm54_vm0, %v1958_v63  ;;  %7210 = vmatprep.subr.bf16.mxu0 %v7557_v15  ;;  %v2633_v63 = vadd.f32 %v6122_v58, %v6118_v31  ;;  %v2501_v2 = vmax.f32 %v2497_v60, 0.0  ;;  %v6177_v58 = vld [vmem:[%s12205_s0 + $0x2c0] sm:$0xff] }
  0x9e   :  { %2184 = vmatprep.mubr.f32.mxu1 %v7479_v3  ;;  %7212 = vmatpush1.bf16.msra.mxu0 %v7573_v20 }
  0x9f   :  { %6047 = vmatmul.mubr.msk.f32.gmra.mrb[60].mxu1 %vm54_vm0, %v2094_v1  ;;  %7226 = vmatprep.subr.bf16.mxu1 %v7557_v15  ;;  %v6123_v1 = vld [vmem:[%s12206_s1 + $0x270] sm:$0xff]  ;;  %v2637_v10 = vmax.f32 %v2633_v63, 0.0 }
  0xa0   :  { %2054 = vmatprep.mubr.f32.mxu0 %v7479_v3  ;;  %7228 = vmatpush1.bf16.msra.mxu1 %v7573_v20  ;;  %v2634_v11 = vadd.f32 %v6123_v1, %v6119_v0  ;;  %v6178_v0 = vld [vmem:[%s12205_s0 + $0x2c8] sm:$0xff] }
  0xa1   :  { %6028 = vmatmul.mubr.msk.f32.gmra.mrb[62].mxu0 %vm54_vm0, %v1959_v7  ;;  %7214 = vmatprep.subr.bf16.mxu0 %v7577_v21  ;;  %v6104_v7 = vld [vmem:[%s12206_s1 + $0x258] sm:$0xf]  ;;  %v6182_v1 = vld [vmem:[%s12206_s1 + $0x2c8] sm:$0xff] }
  0xa2   :  { %2190 = vmatprep.mubr.f32.mxu1 %v7479_v3  ;;  %7216 = vmatpush1.bf16.msra.mxu0 %v7599_v28  ;;  %v2499_v17 = vadd.f32 %v6104_v7, %v6100_v6  ;;  %v2638_v18 = vmax.f32 %v2634_v11, 0.0  ;;  %v6202_v6 = vld [vmem:[%s12206_s1 + $0x2e8] sm:$0xff]  ;;  %v6179_v11 = vld [vmem:[%s12205_s0 + $0x2d0] sm:$0xff] }
  0xa3   :  { %6048 = vmatmul.mubr.msk.f32.gmra.mrb[62].mxu1 %vm54_vm0, %v2095_v12  ;;  %7230 = vmatprep.subr.bf16.mxu1 %v7577_v21  ;;  %v6120_v12 = vld [vmem:[%s12205_s0 + $0x278] sm:$0xf] }
  0xa4   :  { %7232 = vmatpush1.bf16.msra.mxu1 %v7599_v28  ;;  %2260 = vmatprep.subr.mxu0 %v8300_v25  ;;  %v2635_v19 = vadd.f32 %v6124_v13, %v6120_v12  ;;  %v2503_v24 = vmax.f32 %v2499_v17, 0.0  ;;  %v6183_v12 = vld [vmem:[%s12206_s1 + $0x2d0] sm:$0xff] }
  0xa5   :  { %2308 = vmatprep.mubr.f32.mxu0 %v7479_v3  ;;  %2396 = vmatprep.subr.mxu1 %v8300_v25  ;;  %v6199_v17 = vld [vmem:[%s12205_s0 + $0x2f0] sm:$0xff] }
  0xa6   :  { %2261 = vmatpush1.msra.mxu0 %v8314_v32  ;;  %2444 = vmatprep.mubr.f32.mxu1 %v7479_v3 }
  0xa7   :  { %6065 = vmatmul.mubr.msk.f32.vlgmr.msra.gmra.mrb[64].mxu0 %vm54_vm0, %v2228_v23  ;;  %7234 = vmatprep.subr.bf16.mxu0 %v7522_v4  ;;  %v6141_v23 = vld [vmem:[%s12206_s1 + $0x280] sm:$0xff] }
  0xa8   :  { %2397 = vmatpush1.msra.mxu1 %v8314_v32  ;;  %7236 = vmatpush1.bf16.msra.mxu0 %v7533_v8  ;;  %v2768_v30 = vadd.f32 %v6141_v23, %v6137_v22  ;;  %v3042_v22 = vadd.f32 %v6183_v12, %v6179_v11  ;;  %v6180_v23 = vld [vmem:[%s12205_s0 + $0x2d8] sm:$0xf] }
  0xa9   :  { %6085 = vmatmul.mubr.msk.f32.vlgmr.msra.gmra.mrb[64].mxu1 %vm54_vm0, %v2364_v29  ;;  %7250 = vmatprep.subr.bf16.mxu1 %v7522_v4  ;;  %v2639_v29 = vmax.f32 %v2635_v19, 0.0  ;;  %v6224_v11 = vld [vmem:[%s12206_s1 + $0x318] sm:$0xf] }
  0xaa   :  { %2314 = vmatprep.mubr.f32.mxu0 %v7479_v3  ;;  %7252 = vmatpush1.bf16.msra.mxu1 %v7533_v8  ;;  %v2772_v39 = vmax.f32 %v2768_v30, 0.0  ;;  %v6204_v30 = vld [vmem:[%s12206_s1 + $0x2f8] sm:$0xf] }
  0xab   :  { %6066 = vmatmul.mubr.msk.f32.gmra.mrb[66].mxu0 %vm54_vm0, %v2229_v35  ;;  %7238 = vmatprep.subr.bf16.mxu0 %v7535_v9  ;;  %v2904_v35 = vadd.f32 %v6161_v27, %v6157_v26 }
  0xac   :  { %2450 = vmatprep.mubr.f32.mxu1 %v7479_v3  ;;  %7240 = vmatpush1.bf16.msra.mxu0 %v7553_v14 }
  0xad   :  { %6086 = vmatmul.mubr.msk.f32.gmra.mrb[66].mxu1 %vm54_vm0, %v2365_v40  ;;  %7254 = vmatprep.subr.bf16.mxu1 %v7535_v9  ;;  %v2769_v40 = vadd.f32 %v6142_v34, %v6138_v33  ;;  %v2908_v43 = vmax.f32 %v2904_v35, 0.0  ;;  %v3046_v33 = vmax.f32 %v3042_v22, 0.0  ;;  %v6244_v22 = vld [vmem:[%s12206_s1 + $0x338] sm:$0xf] }
  0xae   :  { %2320 = vmatprep.mubr.f32.mxu0 %v7479_v3  ;;  %7256 = vmatpush1.bf16.msra.mxu1 %v7553_v14 }
  0xaf   :  { %6067 = vmatmul.mubr.msk.f32.gmra.mrb[68].mxu0 %vm54_vm0, %v2230_v44  ;;  %7242 = vmatprep.subr.bf16.mxu0 %v7557_v15  ;;  %v2905_v44 = vadd.f32 %v6162_v38, %v6158_v37  ;;  %v2773_v47 = vmax.f32 %v2769_v40, 0.0  ;;  %v6217_v38 = vld [vmem:[%s12205_s0 + $0x300] sm:$0xff] }
  0xb0   :  { %2456 = vmatprep.mubr.f32.mxu1 %v7479_v3  ;;  %7244 = vmatpush1.bf16.msra.mxu0 %v7573_v20 }
  0xb1   :  { %6087 = vmatmul.mubr.msk.f32.gmra.mrb[68].mxu1 %vm54_vm0, %v2366_v46  ;;  %7258 = vmatprep.subr.bf16.mxu1 %v7557_v15  ;;  %v6163_v46 = vld [vmem:[%s12206_s1 + $0x2b0] sm:$0xff]  ;;  %v2909_v51 = vmax.f32 %v2905_v44, 0.0 }
  0xb2   :  { %2326 = vmatprep.mubr.f32.mxu0 %v7479_v3  ;;  %7260 = vmatpush1.bf16.msra.mxu1 %v7573_v20  ;;  %v2906_v52 = vadd.f32 %v6163_v46, %v6159_v45  ;;  %v6218_v45 = vld [vmem:[%s12205_s0 + $0x308] sm:$0xff] }
  0xb3   :  { %6068 = vmatmul.mubr.msk.f32.gmra.mrb[70].mxu0 %vm54_vm0, %v2231_v50  ;;  %7246 = vmatprep.subr.bf16.mxu0 %v7577_v21  ;;  %v6144_v50 = vld [vmem:[%s12206_s1 + $0x298] sm:$0xf]  ;;  %v6222_v46 = vld [vmem:[%s12206_s1 + $0x308] sm:$0xff] }
  0xb4   :  { %2462 = vmatprep.mubr.f32.mxu1 %v7479_v3  ;;  %7248 = vmatpush1.bf16.msra.mxu0 %v7599_v28  ;;  %v2771_v56 = vadd.f32 %v6144_v50, %v6140_v49  ;;  %v2910_v57 = vmax.f32 %v2906_v52, 0.0  ;;  %v3448_v49 = vadd.f32 %v6241_v42, %v6237_v41  ;;  %v6281_v41 = vld [vmem:[%s12206_s1 + $0x360] sm:$0xff] }
  0xb5   :  { %6088 = vmatmul.mubr.msk.f32.gmra.mrb[70].mxu1 %vm54_vm0, %v2367_v53  ;;  %7262 = vmatprep.subr.bf16.mxu1 %v7577_v21  ;;  %v6160_v53 = vld [vmem:[%s12205_s0 + $0x2b8] sm:$0xf] }
  0xb6   :  { %7264 = vmatpush1.bf16.msra.mxu1 %v7599_v28  ;;  %2532 = vmatprep.subr.mxu0 %v8300_v25  ;;  %v2907_v31 = vadd.f32 %v6164_v54, %v6160_v53  ;;  %v2775_v60 = vmax.f32 %v2771_v56, 0.0  ;;  %v6238_v53 = vld [vmem:[%s12205_s0 + $0x328] sm:$0xff] }
  0xb7   :  { %2580 = vmatprep.mubr.f32.mxu0 %v7479_v3  ;;  %2668 = vmatprep.subr.mxu1 %v8300_v25  ;;  %v6242_v54 = vld [vmem:[%s12206_s1 + $0x328] sm:$0xff] }
  0xb8   :  { %2533 = vmatpush1.msra.mxu0 %v8314_v32  ;;  %2716 = vmatprep.mubr.f32.mxu1 %v7479_v3 }
  0xb9   :  { %6105 = vmatmul.mubr.msk.f32.vlgmr.msra.gmra.mrb[72].mxu0 %vm54_vm0, %v2500_v59  ;;  %7266 = vmatprep.subr.bf16.mxu0 %v7522_v4  ;;  %v6181_v59 = vld [vmem:[%s12206_s1 + $0x2c0] sm:$0xff] }
  0xba   :  { %2669 = vmatpush1.msra.mxu1 %v8314_v32  ;;  %7268 = vmatpush1.bf16.msra.mxu0 %v7533_v8  ;;  %v3040_v63 = vadd.f32 %v6181_v59, %v6177_v58  ;;  %v6223_v58 = vld [vmem:[%s12206_s1 + $0x310] sm:$0xff] }
  0xbb   :  { %6125 = vmatmul.mubr.msk.f32.vlgmr.msra.gmra.mrb[72].mxu1 %vm54_vm0, %v2636_v62  ;;  %7282 = vmatprep.subr.bf16.mxu1 %v7522_v4  ;;  %v2911_v62 = vmax.f32 %v2907_v31, 0.0  ;;  %v6219_v31 = vld [vmem:[%s12205_s0 + $0x310] sm:$0xff] }
  0xbc   :  { %2586 = vmatprep.mubr.f32.mxu0 %v7479_v3  ;;  %7284 = vmatpush1.bf16.msra.mxu1 %v7533_v8  ;;  %v3044_v7 = vmax.f32 %v3040_v63, 0.0  ;;  %v6239_v63 = vld [vmem:[%s12205_s0 + $0x330] sm:$0xff] }
  0xbd   :  { %6106 = vmatmul.mubr.msk.f32.gmra.mrb[74].mxu0 %vm54_vm0, %v2501_v2  ;;  %7270 = vmatprep.subr.bf16.mxu0 %v7535_v9  ;;  %v3176_v2 = vadd.f32 %v6201_v36, %v6197_v61  ;;  %v3449_v61 = vadd.f32 %v6242_v54, %v6238_v53 }
  0xbe   :  { %2722 = vmatprep.mubr.f32.mxu1 %v7479_v3  ;;  %7272 = vmatpush1.bf16.msra.mxu0 %v7553_v14 }
  0xbf   :  { %6126 = vmatmul.mubr.msk.f32.gmra.mrb[74].mxu1 %vm54_vm0, %v2637_v10  ;;  %7286 = vmatprep.subr.bf16.mxu1 %v7535_v9  ;;  %v3041_v10 = vadd.f32 %v6182_v1, %v6178_v0  ;;  %v3180_v13 = vmax.f32 %v3176_v2, 0.0  ;;  %v6243_v0 = vld [vmem:[%s12206_s1 + $0x330] sm:$0xff] }
  0xc0   :  { %2592 = vmatprep.mubr.f32.mxu0 %v7479_v3  ;;  %7288 = vmatpush1.bf16.msra.mxu1 %v7553_v14 }
  0xc1   :  { %6107 = vmatmul.mubr.msk.f32.gmra.mrb[76].mxu0 %vm54_vm0, %v2502_v16  ;;  %7274 = vmatprep.subr.bf16.mxu0 %v7557_v15  ;;  %v3177_v16 = vadd.f32 %v6202_v6, %v6198_v5  ;;  %v3045_v19 = vmax.f32 %v3041_v10, 0.0  ;;  %v3314_v6 = vadd.f32 %v6223_v58, %v6219_v31  ;;  %v6220_v10 = vld [vmem:[%s12205_s0 + $0x318] sm:$0xf] }
  0xc2   :  { %2728 = vmatprep.mubr.f32.mxu1 %v7479_v3  ;;  %7276 = vmatpush1.bf16.msra.mxu0 %v7573_v20 }
  0xc3   :  { %6127 = vmatmul.mubr.msk.f32.gmra.mrb[76].mxu1 %vm54_vm0, %v2638_v18  ;;  %7290 = vmatprep.subr.bf16.mxu1 %v7557_v15  ;;  %v6203_v18 = vld [vmem:[%s12206_s1 + $0x2f0] sm:$0xff]  ;;  %v3181_v26 = vmax.f32 %v3177_v16, 0.0  ;;  %v3450_v16 = vadd.f32 %v6243_v0, %v6239_v63 }
  0xc4   :  { %2598 = vmatprep.mubr.f32.mxu0 %v7479_v3  ;;  %7292 = vmatpush1.bf16.msra.mxu1 %v7573_v20  ;;  %v3178_v27 = vadd.f32 %v6203_v18, %v6199_v17 }
  0xc5   :  { %6108 = vmatmul.mubr.msk.f32.gmra.mrb[78].mxu0 %vm54_vm0, %v2503_v24  ;;  %7278 = vmatprep.subr.bf16.mxu0 %v7577_v21  ;;  %v6184_v24 = vld [vmem:[%s12206_s1 + $0x2d8] sm:$0xf] }
  0xc6   :  { %2734 = vmatprep.mubr.f32.mxu1 %v7479_v3  ;;  %7280 = vmatpush1.bf16.msra.mxu0 %v7599_v28  ;;  %v3043_v34 = vadd.f32 %v6184_v24, %v6180_v23  ;;  %v3182_v35 = vmax.f32 %v3178_v27, 0.0  ;;  %v3318_v23 = vmax.f32 %v3314_v6, 0.0  ;;  %v3315_v24 = vadd.f32 %v6224_v11, %v6220_v10 }
  0xc7   :  { %6128 = vmatmul.mubr.msk.f32.gmra.mrb[78].mxu1 %vm54_vm0, %v2639_v29  ;;  %7294 = vmatprep.subr.bf16.mxu1 %v7577_v21  ;;  %v6200_v29 = vld [vmem:[%s12205_s0 + $0x2f8] sm:$0xf] }
  0xc8   :  { %7296 = vmatpush1.bf16.msra.mxu1 %v7599_v28  ;;  %2804 = vmatprep.subr.mxu0 %v8300_v25  ;;  %v3179_v37 = vadd.f32 %v6204_v30, %v6200_v29  ;;  %v3047_v40 = vmax.f32 %v3043_v34, 0.0  ;;  %v3454_v29 = vmax.f32 %v3450_v16, 0.0 }
  0xc9   :  { %2852 = vmatprep.mubr.f32.mxu0 %v7479_v3  ;;  %2940 = vmatprep.subr.mxu1 %v8300_v25 }
  0xca   :  { %2805 = vmatpush1.msra.mxu0 %v8314_v32  ;;  %2988 = vmatprep.mubr.f32.mxu1 %v7479_v3 }
  0xcb   :  { %6145 = vmatmul.mubr.msk.f32.vlgmr.msra.gmra.mrb[80].mxu0 %vm54_vm0, %v2772_v39  ;;  %7298 = vmatprep.subr.bf16.mxu0 %v7522_v4  ;;  %v6221_v39 = vld [vmem:[%s12206_s1 + $0x300] sm:$0xff] }
  0xcc   :  { %2941 = vmatpush1.msra.mxu1 %v8314_v32  ;;  %7300 = vmatpush1.bf16.msra.mxu0 %v7533_v8  ;;  %v3312_v44 = vadd.f32 %v6221_v39, %v6217_v38  ;;  %v3319_v38 = vmax.f32 %v3315_v24, 0.0 }
  0xcd   :  { %6165 = vmatmul.mubr.msk.f32.vlgmr.msra.gmra.mrb[80].mxu1 %vm54_vm0, %v2908_v43  ;;  %7314 = vmatprep.subr.bf16.mxu1 %v7522_v4  ;;  %v3183_v43 = vmax.f32 %v3179_v37, 0.0 }
  0xce   :  { %2858 = vmatprep.mubr.f32.mxu0 %v7479_v3  ;;  %7316 = vmatpush1.bf16.msra.mxu1 %v7533_v8  ;;  %v3316_v56 = vmax.f32 %v3312_v44, 0.0  ;;  %v6258_v44 = vld [vmem:[%s12205_s0 + $0x348] sm:$0xff] }
  0xcf   :  { %6146 = vmatmul.mubr.msk.f32.gmra.mrb[82].mxu0 %vm54_vm0, %v2773_v47  ;;  %7302 = vmatprep.subr.bf16.mxu0 %v7535_v9 }
  0xd0   :  { %2994 = vmatprep.mubr.f32.mxu1 %v7479_v3  ;;  %7304 = vmatpush1.bf16.msra.mxu0 %v7553_v14 }
  0xd1   :  { %6166 = vmatmul.mubr.msk.f32.gmra.mrb[82].mxu1 %vm54_vm0, %v2909_v51  ;;  %7318 = vmatprep.subr.bf16.mxu1 %v7535_v9 }
  0xd2   :  { %2864 = vmatprep.mubr.f32.mxu0 %v7479_v3  ;;  %7320 = vmatpush1.bf16.msra.mxu1 %v7553_v14 }
  0xd3   :  { %6147 = vmatmul.mubr.msk.f32.gmra.mrb[84].mxu0 %vm54_vm0, %v2774_v55  ;;  %7306 = vmatprep.subr.bf16.mxu0 %v7557_v15 }
  0xd4   :  { %3000 = vmatprep.mubr.f32.mxu1 %v7479_v3  ;;  %7308 = vmatpush1.bf16.msra.mxu0 %v7573_v20 }
  0xd5   :  { %6167 = vmatmul.mubr.msk.f32.gmra.mrb[84].mxu1 %vm54_vm0, %v2910_v57  ;;  %7322 = vmatprep.subr.bf16.mxu1 %v7557_v15  ;;  %v3313_v57 = vadd.f32 %v6222_v46, %v6218_v45  ;;  %v6262_v45 = vld [vmem:[%s12206_s1 + $0x348] sm:$0xff] }
  0xd6   :  { %2870 = vmatprep.mubr.f32.mxu0 %v7479_v3  ;;  %7324 = vmatpush1.bf16.msra.mxu1 %v7573_v20 }
  0xd7   :  { %6148 = vmatmul.mubr.msk.f32.gmra.mrb[86].mxu0 %vm54_vm0, %v2775_v60  ;;  %7310 = vmatprep.subr.bf16.mxu0 %v7577_v21  ;;  %v3452_v60 = vmax.f32 %v3448_v49, 0.0  ;;  %v3317_v5 = vmax.f32 %v3313_v57, 0.0  ;;  %v6282_v49 = vld [vmem:[%s12206_s1 + $0x368] sm:$0xff] }
  0xd8   :  { %3006 = vmatprep.mubr.f32.mxu1 %v7479_v3  ;;  %7312 = vmatpush1.bf16.msra.mxu0 %v7599_v28 }
  0xd9   :  { %6168 = vmatmul.mubr.msk.f32.gmra.mrb[86].mxu1 %vm54_vm0, %v2911_v62  ;;  %7326 = vmatprep.subr.bf16.mxu1 %v7577_v21 }
  0xda   :  { %7328 = vmatpush1.bf16.msra.mxu1 %v7599_v28  ;;  %3076 = vmatprep.subr.mxu0 %v8300_v25 }
  0xdb   :  { %3124 = vmatprep.mubr.f32.mxu0 %v7479_v3  ;;  %3212 = vmatprep.subr.mxu1 %v8300_v25 }
  0xdc   :  { %3077 = vmatpush1.msra.mxu0 %v8314_v32  ;;  %3260 = vmatprep.mubr.f32.mxu1 %v7479_v3 }
  0xdd   :  { %6185 = vmatmul.mubr.msk.f32.vlgmr.msra.gmra.mrb[88].mxu0 %vm54_vm0, %v3044_v7  ;;  %7330 = vmatprep.subr.bf16.mxu0 %v7522_v4 }
  0xde   :  { %3213 = vmatpush1.msra.mxu1 %v8314_v32  ;;  %7332 = vmatpush1.bf16.msra.mxu0 %v7533_v8 }
  0xdf   :  { %6205 = vmatmul.mubr.msk.f32.vlgmr.msra.gmra.mrb[88].mxu1 %vm54_vm0, %v3180_v13  ;;  %7346 = vmatprep.subr.bf16.mxu1 %v7522_v4  ;;  %v3453_v13 = vmax.f32 %v3449_v61, 0.0 }
  0xe0   :  { %3130 = vmatprep.mubr.f32.mxu0 %v7479_v3  ;;  %7348 = vmatpush1.bf16.msra.mxu1 %v7533_v8 }
  0xe1   :  { %6186 = vmatmul.mubr.msk.f32.gmra.mrb[90].mxu0 %vm54_vm0, %v3045_v19  ;;  %7334 = vmatprep.subr.bf16.mxu0 %v7535_v9  ;;  %v6240_v19 = vld [vmem:[%s12205_s0 + $0x338] sm:$0xf] }
  0xe2   :  { %3266 = vmatprep.mubr.f32.mxu1 %v7479_v3  ;;  %7336 = vmatpush1.bf16.msra.mxu0 %v7553_v14  ;;  %v3451_v30 = vadd.f32 %v6244_v22, %v6240_v19  ;;  %v6280_v22 = vld [vmem:[%s12205_s0 + $0x378] sm:$0xf] }
  0xe3   :  { %6206 = vmatmul.mubr.msk.f32.gmra.mrb[90].mxu1 %vm54_vm0, %v3181_v26  ;;  %7350 = vmatprep.subr.bf16.mxu1 %v7535_v9 }
  0xe4   :  { %3136 = vmatprep.mubr.f32.mxu0 %v7479_v3  ;;  %7352 = vmatpush1.bf16.msra.mxu1 %v7553_v14  ;;  %v3455_v42 = vmax.f32 %v3451_v30, 0.0 }
  0xe5   :  { %6187 = vmatmul.mubr.msk.f32.gmra.mrb[92].mxu0 %vm54_vm0, %v3046_v33  ;;  %7338 = vmatprep.subr.bf16.mxu0 %v7557_v15 }
  0xe6   :  { %3272 = vmatprep.mubr.f32.mxu1 %v7479_v3  ;;  %7340 = vmatpush1.bf16.msra.mxu0 %v7573_v20 }
  0xe7   :  { %6207 = vmatmul.mubr.msk.f32.gmra.mrb[92].mxu1 %vm54_vm0, %v3182_v35  ;;  %7354 = vmatprep.subr.bf16.mxu1 %v7557_v15  ;;  %v6257_v35 = vld [vmem:[%s12205_s0 + $0x340] sm:$0xff] }
  0xe8   :  { %3142 = vmatprep.mubr.f32.mxu0 %v7479_v3  ;;  %7356 = vmatpush1.bf16.msra.mxu1 %v7573_v20 }
  0xe9   :  { %6188 = vmatmul.mubr.msk.f32.gmra.mrb[94].mxu0 %vm54_vm0, %v3047_v40  ;;  %7342 = vmatprep.subr.bf16.mxu0 %v7577_v21  ;;  %v8632_v47 = vpop.f32.mrb[0].mxu0  ;;  %v8634_v48 = vpop.f32.mrb[0].mxu1  ;;  %v6277_v40 = vld [vmem:[%s12205_s0 + $0x360] sm:$0xff] }
  0xea   :  { %v8638_v50 = vadd.f32 %v8634_v48, %v8632_v47  ;;  %3278 = vmatprep.mubr.f32.mxu1 %v7479_v3  ;;  %7344 = vmatpush1.bf16.msra.mxu0 %v7599_v28  ;;  %v135_v51 = vpop.f32.mrb[1].mxu0  ;;  %v272_v52 = vpop.f32.mrb[1].mxu1  ;;  %v3720_v46 = vadd.f32 %v6281_v41, %v6277_v40 }
  0xeb   :  { %158 = vst.msk [vmem:[%s12207_s5 + $0x8] sm:$0xff] %vm157_vm1, %v135_v51  ;;  %5770 = vst.msk [vmem:[%s12207_s5 + $0x48] sm:$0xff] %vm157_vm1, %v272_v52  ;;  %v8656_v55 = vadd.f32 %v272_v52, %v135_v51  ;;  %6208 = vmatmul.mubr.msk.f32.gmra.mrb[94].mxu1 %vm54_vm0, %v3183_v43  ;;  %7358 = vmatprep.subr.bf16.mxu1 %v7577_v21 }
  0xec   :  { %7360 = vmatpush1.bf16.msra.mxu1 %v7599_v28  ;;  %3348 = vmatprep.subr.mxu0 %v8300_v25 }
  0xed   :  { %3396 = vmatprep.mubr.f32.mxu0 %v7479_v3  ;;  %3484 = vmatprep.subr.mxu1 %v8300_v25  ;;  %v8670_v59 = vpop.f32.mrb[2].mxu0 }
  0xee   :  { %3349 = vmatpush1.msra.mxu0 %v8314_v32  ;;  %v8673_v36 = vpop.f32.mrb[2].mxu1  ;;  %3532 = vmatprep.mubr.f32.mxu1 %v7479_v3  ;;  %v141_v62 = vpop.f32.mrb[3].mxu0 }
  0xef   :  { %12301 = vst [vmem:[#allocation2_spill] sm:$0xff] %v8673_v36  ;;  %6225 = vmatmul.mubr.msk.f32.vlgmr.msra.gmra.mrb[96].mxu0 %vm54_vm0, %v3316_v56  ;;  %7362 = vmatprep.subr.bf16.mxu0 %v7522_v4  ;;  %v8686_v1 = vadd.f32 %v8673_v36, %v8670_v59  ;;  %160 = vst.msk [vmem:[%s12207_s5 + $0x18] sm:$0xff] %vm157_vm1, %v141_v62  ;;  %v278_v2 = vpop.f32.mrb[3].mxu1  ;;  %v3585_v56 = vadd.f32 %v6262_v45, %v6258_v44 }
  0xf0   :  { %3485 = vmatpush1.msra.mxu1 %v8314_v32  ;;  %7364 = vmatpush1.bf16.msra.mxu0 %v7533_v8  ;;  %5772 = vst.msk [vmem:[%s12207_s5 + $0x58] sm:$0xff] %vm157_vm1, %v278_v2  ;;  %v8698_v7 = vadd.f32 %v278_v2, %v141_v62  ;;  %v6279_v62 = vld [vmem:[%s12205_s0 + $0x370] sm:$0xff] }
  0xf1   :  { %6245 = vmatmul.mubr.msk.f32.vlgmr.msra.gmra.mrb[96].mxu1 %vm54_vm0, %v3452_v60  ;;  %7378 = vmatprep.subr.bf16.mxu1 %v7522_v4  ;;  %v8708_v12 = vpop.f32.mrb[4].mxu0 }
  0xf2   :  { %3402 = vmatprep.mubr.f32.mxu0 %v7479_v3  ;;  %7380 = vmatpush1.bf16.msra.mxu1 %v7533_v8  ;;  %v8712_v17 = vpop.f32.mrb[4].mxu1  ;;  %v147_v18 = vpop.f32.mrb[5].mxu0 }
  0xf3   :  { %12302 = vst [vmem:[#allocation3_spill] sm:$0xff] %v8712_v17  ;;  %6226 = vmatmul.mubr.msk.f32.gmra.mrb[98].mxu0 %vm54_vm0, %v3317_v5  ;;  %7366 = vmatprep.subr.bf16.mxu0 %v7535_v9  ;;  %v8724_v4 = vadd.f32 %v8712_v17, %v8708_v12  ;;  %162 = vst.msk [vmem:[%s12207_s5 + $0x28] sm:$0xff] %vm157_vm1, %v147_v18  ;;  %v284_v8 = vpop.f32.mrb[5].mxu1  ;;  %v3589_v5 = vmax.f32 %v3585_v56, 0.0 }
  0xf4   :  { %3538 = vmatprep.mubr.f32.mxu1 %v7479_v3  ;;  %7368 = vmatpush1.bf16.msra.mxu0 %v7553_v14  ;;  %5774 = vst.msk [vmem:[%s12207_s5 + $0x68] sm:$0xff] %vm157_vm1, %v284_v8  ;;  %v8736_v26 = vadd.f32 %v284_v8, %v147_v18  ;;  %v6284_v8 = vld [vmem:[%s12206_s1 + $0x378] sm:$0xf] }
  0xf5   :  { %6246 = vmatmul.mubr.msk.f32.gmra.mrb[98].mxu1 %vm54_vm0, %v3453_v13  ;;  %7382 = vmatprep.subr.bf16.mxu1 %v7535_v9  ;;  %v151_v27 = vpop.f32.mrb[6].mxu0  ;;  %v6261_v9 = vld [vmem:[%s12206_s1 + $0x340] sm:$0xff]  ;;  %v6264_v13 = vld [vmem:[%s12206_s1 + $0x358] sm:$0xf] }
  0xf6   :  { %3408 = vmatprep.mubr.f32.mxu0 %v7479_v3  ;;  %7384 = vmatpush1.bf16.msra.mxu1 %v7553_v14  ;;  %163 = vst [vmem:[%s12207_s5 + $0x30] sm:$0xf] %v151_v27  ;;  %v288_v33 = vpop.f32.mrb[6].mxu1  ;;  %v153_v34 = vpop.f32.mrb[7].mxu0  ;;  %v3584_v43 = vadd.f32 %v6261_v9, %v6257_v35  ;;  %v3723_v9 = vadd.f32 %v6284_v8, %v6280_v22 }
  0xf7   :  { %6227 = vmatmul.mubr.msk.f32.gmra.mrb[100].mxu0 %vm54_vm0, %v3318_v23  ;;  %7370 = vmatprep.subr.bf16.mxu0 %v7557_v15  ;;  %5775 = vst [vmem:[%s12207_s5 + $0x70] sm:$0xf] %v288_v33  ;;  %v8756_v14 = vadd.f32 %v288_v33, %v151_v27  ;;  %165 = vst.msk [vmem:[%s12207_s5 + $0x38] sm:$0xf] %vm164_vm2, %v153_v34  ;;  %v290_v37 = vpop.f32.mrb[7].mxu1 }
  0xf8   :  { %3544 = vmatprep.mubr.f32.mxu1 %v7479_v3  ;;  %7372 = vmatpush1.bf16.msra.mxu0 %v7573_v20  ;;  %5776 = vst.msk [vmem:[%s12207_s5 + $0x78] sm:$0xf] %vm164_vm2, %v290_v37  ;;  %v8768_v39 = vadd.f32 %v290_v37, %v153_v34  ;;  %v3588_v54 = vmax.f32 %v3584_v43, 0.0  ;;  %v3727_v45 = vmax.f32 %v3723_v9, 0.0 }
  0xf9   :  { %6247 = vmatmul.mubr.msk.f32.gmra.mrb[100].mxu1 %vm54_vm0, %v3454_v29  ;;  %7386 = vmatprep.subr.bf16.mxu1 %v7557_v15 }
  0xfa   :  { %3414 = vmatprep.mubr.f32.mxu0 %v7479_v3  ;;  %7388 = vmatpush1.bf16.msra.mxu1 %v7573_v20  ;;  %v6278_v20 = vld [vmem:[%s12205_s0 + $0x368] sm:$0xff] }
  0xfb   :  { %6228 = vmatmul.mubr.msk.f32.gmra.mrb[102].mxu0 %vm54_vm0, %v3319_v38  ;;  %7374 = vmatprep.subr.bf16.mxu0 %v7577_v21 }
  0xfc   :  { %v8788_v15 = vpop.f32.mrb[8].mxu0  ;;  %3550 = vmatprep.mubr.f32.mxu1 %v7479_v3  ;;  %7376 = vmatpush1.bf16.msra.mxu0 %v7599_v28 }
  0xfd   :  { %12303 = vst [vmem:[#allocation4_spill] sm:$0xff] %v8788_v15  ;;  %v438_v51 = vadd.f32 %v8788_v15, %v8638_v50  ;;  %v408_v52 = vpop.f32.mrb[9].mxu0  ;;  %6248 = vmatmul.mubr.msk.f32.gmra.mrb[102].mxu1 %vm54_vm0, %v3455_v42  ;;  %7390 = vmatprep.subr.bf16.mxu1 %v7577_v21  ;;  %v8802_v53 = vpop.f32.mrb[8].mxu1  ;;  %v6259_v50 = vld [vmem:[%s12205_s0 + $0x350] sm:$0xff] }
  0xfe   :  { %5790 = vst.msk [vmem:[%s12207_s5 + $0x88] sm:$0xff] %vm157_vm1, %v408_v52  ;;  %v439_v57 = vadd.f32 %v408_v52, %v8656_v55  ;;  %7392 = vmatpush1.bf16.msra.mxu1 %v7599_v28  ;;  %3620 = vmatprep.subr.mxu0 %v8300_v25  ;;  %v6263_v21 = vld [vmem:[%s12206_s1 + $0x350] sm:$0xff]  ;;  %v544_v58 = vpop.f32.mrb[9].mxu1  ;;  %v3724_v55 = vmax.f32 %v3720_v46, 0.0  ;;  %v3721_v28 = vadd.f32 %v6282_v49, %v6278_v20 }
  0xff   :  { %v8818_v31 = vadd.f32 %v8802_v53, %v438_v51  ;;  %3668 = vmatprep.mubr.f32.mxu0 %v7479_v3  ;;  %3756 = vmatprep.subr.mxu1 %v8300_v25  ;;  %5810 = vst.msk [vmem:[%s12207_s5 + $0xc8] sm:$0xff] %vm157_vm1, %v544_v58  ;;  %v6283_v25 = vld [vmem:[%s12206_s1 + $0x370] sm:$0xff]  ;;  %v3586_v6 = vadd.f32 %v6263_v21, %v6259_v50 }
 0x100   :  { %v8826_v60 = vadd.f32 %v544_v58, %v439_v57  ;;  %v8828_v61 = vpop.f32.mrb[10].mxu0  ;;  %3621 = vmatpush1.msra.mxu0 %v8314_v32  ;;  %3804 = vmatprep.mubr.f32.mxu1 %v7479_v3 }
 0x101   :  { %12304 = vst [vmem:[#allocation5_spill] sm:$0xff] %v8828_v61  ;;  %v440_v63 = vadd.f32 %v8828_v61, %v8686_v1  ;;  %v414_v0 = vpop.f32.mrb[11].mxu0  ;;  %6265 = vmatmul.mubr.msk.f32.vlgmr.msra.gmra.mrb[104].mxu0 %vm54_vm0, %v3588_v54  ;;  %v8841_v2 = vpop.f32.mrb[10].mxu1  ;;  %v6260_v1 = vld [vmem:[%s12205_s0 + $0x358] sm:$0xf]  ;;  %v3590_v29 = vmax.f32 %v3586_v6, 0.0 }
 0x102   :  { %5792 = vst.msk [vmem:[%s12207_s5 + $0x98] sm:$0xff] %vm157_vm1, %v414_v0  ;;  %v441_v10 = vadd.f32 %v414_v0, %v8698_v7  ;;  %3757 = vmatpush1.msra.mxu1 %v8314_v32  ;;  %v550_v11 = vpop.f32.mrb[11].mxu1  ;;  %3674 = vmatprep.mubr.f32.mxu0 %v7479_v3  ;;  %v3725_v32 = vmax.f32 %v3721_v28, 0.0  ;;  %v3722_v7 = vadd.f32 %v6283_v25, %v6279_v62 }
 0x103   :  { %v576_v16 = vadd.f32 %v8841_v2, %v440_v63  ;;  %5812 = vst.msk [vmem:[%s12207_s5 + $0xd8] sm:$0xff] %vm157_vm1, %v550_v11  ;;  %6285 = vmatmul.mubr.msk.f32.vlgmr.msra.gmra.mrb[104].mxu1 %vm54_vm0, %v3724_v55  ;;  %v3587_v30 = vadd.f32 %v6264_v13, %v6260_v1 }
 0x104   :  { %v577_v18 = vadd.f32 %v550_v11, %v441_v10  ;;  %v8862_v19 = vpop.f32.mrb[12].mxu0  ;;  %3810 = vmatprep.mubr.f32.mxu1 %v7479_v3 }
 0x105   :  { %12305 = vst [vmem:[#allocation6_spill] sm:$0xff] %v8862_v19  ;;  %v442_v23 = vadd.f32 %v8862_v19, %v8724_v4  ;;  %v420_v24 = vpop.f32.mrb[13].mxu0  ;;  %6266 = vmatmul.mubr.msk.f32.gmra.mrb[106].mxu0 %vm54_vm0, %v3589_v5  ;;  %v8874_v27 = vpop.f32.mrb[12].mxu1  ;;  %v3726_v4 = vmax.f32 %v3722_v7, 0.0  ;;  %v3591_v42 = vmax.f32 %v3587_v30, 0.0 }
 0x106   :  { %5794 = vst.msk [vmem:[%s12207_s5 + $0xa8] sm:$0xff] %vm157_vm1, %v420_v24  ;;  %v443_v33 = vadd.f32 %v420_v24, %v8736_v26  ;;  %v556_v34 = vpop.f32.mrb[13].mxu1  ;;  %3680 = vmatprep.mubr.f32.mxu0 %v7479_v3 }
 0x107   :  { %v578_v35 = vadd.f32 %v8874_v27, %v442_v23  ;;  %5814 = vst.msk [vmem:[%s12207_s5 + $0xe8] sm:$0xff] %vm157_vm1, %v556_v34  ;;  %6286 = vmatmul.mubr.msk.f32.gmra.mrb[106].mxu1 %vm54_vm0, %v3725_v32 }
 0x108   :  { %v579_v37 = vadd.f32 %v556_v34, %v443_v33  ;;  %v424_v38 = vpop.f32.mrb[14].mxu0  ;;  %3816 = vmatprep.mubr.f32.mxu1 %v7479_v3 }
 0x109   :  { %5795 = vst [vmem:[%s12207_s5 + $0xb0] sm:$0xf] %v424_v38  ;;  %v444_v26 = vadd.f32 %v424_v38, %v8756_v14  ;;  %v426_v40 = vpop.f32.mrb[15].mxu0  ;;  %6267 = vmatmul.mubr.msk.f32.gmra.mrb[108].mxu0 %vm54_vm0, %v3590_v29  ;;  %v560_v41 = vpop.f32.mrb[14].mxu1 }
 0x10a   :  { %5796 = vst.msk [vmem:[%s12207_s5 + $0xb8] sm:$0xf] %vm164_vm2, %v426_v40  ;;  %v445_v43 = vadd.f32 %v426_v40, %v8768_v39  ;;  %5815 = vst [vmem:[%s12207_s5 + $0xf0] sm:$0xf] %v560_v41  ;;  %v562_v44 = vpop.f32.mrb[15].mxu1  ;;  %3686 = vmatprep.mubr.f32.mxu0 %v7479_v3 }
 0x10b   :  { %v580_v14 = vadd.f32 %v560_v41, %v444_v26  ;;  %5816 = vst.msk [vmem:[%s12207_s5 + $0xf8] sm:$0xf] %vm164_vm2, %v562_v44  ;;  %6287 = vmatmul.mubr.msk.f32.gmra.mrb[108].mxu1 %vm54_vm0, %v3726_v4 }
 0x10c   :  { %v581_v46 = vadd.f32 %v562_v44, %v445_v43  ;;  %3822 = vmatprep.mubr.f32.mxu1 %v7479_v3 }
 0x10d   :  { %6268 = vmatmul.mubr.msk.f32.gmra.mrb[110].mxu0 %vm54_vm0, %v3591_v42 }
 0x10e   :  { %v8910_v39 = vpop.f32.mrb[16].mxu0 }
 0x10f   :  { %v710_v20 = vadd.f32 %v8910_v39, %v8818_v31  ;;  %v680_v49 = vpop.f32.mrb[17].mxu0  ;;  %6288 = vmatmul.mubr.msk.f32.gmra.mrb[110].mxu1 %vm54_vm0, %v3727_v45 }
 0x110   :  { %5830 = vst.msk [vmem:[%s12207_s5 + $0x108] sm:$0xff] %vm157_vm1, %v680_v49  ;;  %v711_v51 = vadd.f32 %v680_v49, %v8826_v60  ;;  %v8920_v52 = vpop.f32.mrb[16].mxu1 }
 0x111   :  { %v846_v3 = vadd.f32 %v8920_v52, %v710_v20  ;;  %v816_v54 = vpop.f32.mrb[17].mxu1 }
 0x112   :  { %v8923_v56 = vpop.f32.mrb[18].mxu0  ;;  %5850 = vst.msk [vmem:[%s12207_s5 + $0x148] sm:$0xff] %vm157_vm1, %v816_v54  ;;  %v847_v57 = vadd.f32 %v816_v54, %v711_v51 }
 0x113   :  { %v712_v50 = vadd.f32 %v8923_v56, %v576_v16  ;;  %v686_v21 = vpop.f32.mrb[19].mxu0 }
 0x114   :  { %v8930_v31 = vpop.f32.mrb[18].mxu1  ;;  %5832 = vst.msk [vmem:[%s12207_s5 + $0x118] sm:$0xff] %vm157_vm1, %v686_v21  ;;  %v713_v58 = vadd.f32 %v686_v21, %v577_v18 }
 0x115   :  { %v822_v55 = vpop.f32.mrb[19].mxu1  ;;  %v848_v28 = vadd.f32 %v8930_v31, %v712_v50 }
 0x116   :  { %5852 = vst.msk [vmem:[%s12207_s5 + $0x158] sm:$0xff] %vm157_vm1, %v822_v55  ;;  %v8941_v60 = vpop.f32.mrb[20].mxu0  ;;  %v849_v62 = vadd.f32 %v822_v55, %v713_v58 }
 0x117   :  { %v714_v25 = vadd.f32 %v8941_v60, %v578_v35  ;;  %v692_v63 = vpop.f32.mrb[21].mxu0 }
 0x118   :  { %5834 = vst.msk [vmem:[%s12207_s5 + $0x128] sm:$0xff] %vm157_vm1, %v692_v63  ;;  %v715_v0 = vadd.f32 %v692_v63, %v579_v37  ;;  %v8948_v5 = vpop.f32.mrb[20].mxu1 }
 0x119   :  { %v850_v6 = vadd.f32 %v8948_v5, %v714_v25  ;;  %v828_v10 = vpop.f32.mrb[21].mxu1 }
 0x11a   :  { %5854 = vst.msk [vmem:[%s12207_s5 + $0x168] sm:$0xff] %vm157_vm1, %v828_v10  ;;  %v851_v11 = vadd.f32 %v828_v10, %v715_v0  ;;  %v696_v1 = vpop.f32.mrb[22].mxu0 }
 0x11b   :  { %5835 = vst [vmem:[%s12207_s5 + $0x130] sm:$0xf] %v696_v1  ;;  %v716_v13 = vadd.f32 %v696_v1, %v580_v14  ;;  %v698_v16 = vpop.f32.mrb[23].mxu0 }
 0x11c   :  { %5836 = vst.msk [vmem:[%s12207_s5 + $0x138] sm:$0xf] %vm164_vm2, %v698_v16  ;;  %v717_v32 = vadd.f32 %v698_v16, %v581_v46  ;;  %v832_v7 = vpop.f32.mrb[22].mxu1 }
 0x11d   :  { %5855 = vst [vmem:[%s12207_s5 + $0x170] sm:$0xf] %v832_v7  ;;  %v852_v18 = vadd.f32 %v832_v7, %v716_v13  ;;  %v834_v22 = vpop.f32.mrb[23].mxu1 }
 0x11e   :  { %5856 = vst.msk [vmem:[%s12207_s5 + $0x178] sm:$0xf] %vm164_vm2, %v834_v22  ;;  %v853_v8 = vadd.f32 %v834_v22, %v717_v32 }
 0x120   :  { %v8969_v23 = vpop.f32.mrb[24].mxu0 }
 0x121   :  { %v982_v24 = vadd.f32 %v8969_v23, %v846_v3  ;;  %v952_v29 = vpop.f32.mrb[25].mxu0 }
 0x122   :  { %5870 = vst.msk [vmem:[%s12207_s5 + $0x188] sm:$0xff] %vm157_vm1, %v952_v29  ;;  %v983_v30 = vadd.f32 %v952_v29, %v847_v57  ;;  %v8976_v33 = vpop.f32.mrb[24].mxu1 }
 0x123   :  { %v1118_v34 = vadd.f32 %v8976_v33, %v982_v24  ;;  %v1088_v35 = vpop.f32.mrb[25].mxu1 }
 0x124   :  { %5890 = vst.msk [vmem:[%s12207_s5 + $0x1c8] sm:$0xff] %vm157_vm1, %v1088_v35  ;;  %v1119_v4 = vadd.f32 %v1088_v35, %v983_v30  ;;  %v8983_v9 = vpop.f32.mrb[26].mxu0 }
 0x125   :  { %v984_v37 = vadd.f32 %v8983_v9, %v848_v28  ;;  %v958_v38 = vpop.f32.mrb[27].mxu0 }
 0x126   :  { %5872 = vst.msk [vmem:[%s12207_s5 + $0x198] sm:$0xff] %vm157_vm1, %v958_v38  ;;  %v985_v26 = vadd.f32 %v958_v38, %v849_v62  ;;  %v8990_v40 = vpop.f32.mrb[26].mxu1 }
 0x127   :  { %v1120_v41 = vadd.f32 %v8990_v40, %v984_v37  ;;  %v1094_v42 = vpop.f32.mrb[27].mxu1 }
 0x128   :  { %5892 = vst.msk [vmem:[%s12207_s5 + $0x1d8] sm:$0xff] %vm157_vm1, %v1094_v42  ;;  %v1121_v43 = vadd.f32 %v1094_v42, %v985_v26  ;;  %v8997_v44 = vpop.f32.mrb[28].mxu0 }
 0x129   :  { %v986_v14 = vadd.f32 %v8997_v44, %v850_v6  ;;  %v964_v45 = vpop.f32.mrb[29].mxu0 }
 0x12a   :  { %5874 = vst.msk [vmem:[%s12207_s5 + $0x1a8] sm:$0xff] %vm157_vm1, %v964_v45  ;;  %v987_v46 = vadd.f32 %v964_v45, %v851_v11  ;;  %v9004_v20 = vpop.f32.mrb[28].mxu1 }
 0x12b   :  { %12306 = vst [vmem:[#allocation7_spill] sm:$0xff] %v9004_v20  ;;  %v1122_v49 = vadd.f32 %v9004_v20, %v986_v14  ;;  %v1100_v51 = vpop.f32.mrb[29].mxu1 }
 0x12c   :  { %5894 = vst.msk [vmem:[%s12207_s5 + $0x1e8] sm:$0xff] %vm157_vm1, %v1100_v51  ;;  %v1123_v3 = vadd.f32 %v1100_v51, %v987_v46  ;;  %v968_v54 = vpop.f32.mrb[30].mxu0 }
 0x12d   :  { %5875 = vst [vmem:[%s12207_s5 + $0x1b0] sm:$0xf] %v968_v54  ;;  %v988_v57 = vadd.f32 %v968_v54, %v852_v18  ;;  %v970_v50 = vpop.f32.mrb[31].mxu0 }
 0x12e   :  { %5876 = vst.msk [vmem:[%s12207_s5 + $0x1b8] sm:$0xf] %vm164_vm2, %v970_v50  ;;  %v989_v21 = vadd.f32 %v970_v50, %v853_v8  ;;  %v1104_v58 = vpop.f32.mrb[30].mxu1 }
 0x12f   :  { %5895 = vst [vmem:[%s12207_s5 + $0x1f0] sm:$0xf] %v1104_v58  ;;  %v1124_v55 = vadd.f32 %v1104_v58, %v988_v57  ;;  %v1106_v28 = vpop.f32.mrb[31].mxu1 }
 0x130   :  { %5896 = vst.msk [vmem:[%s12207_s5 + $0x1f8] sm:$0xf] %vm164_vm2, %v1106_v28  ;;  %v1125_v62 = vadd.f32 %v1106_v28, %v989_v21 }
 0x132   :  { %v9025_v25 = vpop.f32.mrb[32].mxu0 }
 0x133   :  { %12307 = vst [vmem:[#allocation8_spill] sm:$0xff] %v9025_v25  ;;  %v1254_v63 = vadd.f32 %v9025_v25, %v1118_v34  ;;  %v1224_v0 = vpop.f32.mrb[33].mxu0 }
 0x134   :  { %5910 = vst.msk [vmem:[%s12207_s5 + $0x208] sm:$0xff] %vm157_vm1, %v1224_v0  ;;  %v1255_v6 = vadd.f32 %v1224_v0, %v1119_v4  ;;  %v9032_v10 = vpop.f32.mrb[32].mxu1 }
 0x135   :  { %12308 = vst [vmem:[#allocation9_spill] sm:$0xff] %v9032_v10  ;;  %v1390_v11 = vadd.f32 %v9032_v10, %v1254_v63  ;;  %v1360_v1 = vpop.f32.mrb[33].mxu1 }
 0x136   :  { %5930 = vst.msk [vmem:[%s12207_s5 + $0x248] sm:$0xff] %vm157_vm1, %v1360_v1  ;;  %v1391_v13 = vadd.f32 %v1360_v1, %v1255_v6  ;;  %v9039_v16 = vpop.f32.mrb[34].mxu0 }
 0x137   :  { %12309 = vst [vmem:[#allocation10_spill] sm:$0xff] %v9039_v16  ;;  %v1256_v32 = vadd.f32 %v9039_v16, %v1120_v41  ;;  %v1230_v7 = vpop.f32.mrb[35].mxu0 }
 0x138   :  { %5912 = vst.msk [vmem:[%s12207_s5 + $0x218] sm:$0xff] %vm157_vm1, %v1230_v7  ;;  %v1257_v18 = vadd.f32 %v1230_v7, %v1121_v43  ;;  %v9046_v22 = vpop.f32.mrb[34].mxu1 }
 0x139   :  { %12310 = vst [vmem:[#allocation11_spill] sm:$0xff] %v9046_v22  ;;  %v1392_v8 = vadd.f32 %v9046_v22, %v1256_v32  ;;  %v1366_v24 = vpop.f32.mrb[35].mxu1 }
 0x13a   :  { %5932 = vst.msk [vmem:[%s12207_s5 + $0x258] sm:$0xff] %vm157_vm1, %v1366_v24  ;;  %v1393_v29 = vadd.f32 %v1366_v24, %v1257_v18  ;;  %v9053_v30 = vpop.f32.mrb[36].mxu0 }
 0x13b   :  { %12311 = vst [vmem:[#allocation12_spill] sm:$0xff] %v9053_v30  ;;  %v1258_v34 = vadd.f32 %v9053_v30, %v1122_v49  ;;  %v1236_v35 = vpop.f32.mrb[37].mxu0 }
 0x13c   :  { %5914 = vst.msk [vmem:[%s12207_s5 + $0x228] sm:$0xff] %vm157_vm1, %v1236_v35  ;;  %v1259_v4 = vadd.f32 %v1236_v35, %v1123_v3  ;;  %v9060_v37 = vpop.f32.mrb[36].mxu1 }
 0x13d   :  { %12312 = vst [vmem:[#allocation13_spill] sm:$0xff] %v9060_v37  ;;  %v1394_v38 = vadd.f32 %v9060_v37, %v1258_v34  ;;  %v1372_v26 = vpop.f32.mrb[37].mxu1 }
 0x13e   :  { %5934 = vst.msk [vmem:[%s12207_s5 + $0x268] sm:$0xff] %vm157_vm1, %v1372_v26  ;;  %v1395_v41 = vadd.f32 %v1372_v26, %v1259_v4  ;;  %v1240_v42 = vpop.f32.mrb[38].mxu0 }
 0x13f   :  { %5915 = vst [vmem:[%s12207_s5 + $0x230] sm:$0xf] %v1240_v42  ;;  %v1260_v43 = vadd.f32 %v1240_v42, %v1124_v55  ;;  %v1242_v14 = vpop.f32.mrb[39].mxu0 }
 0x140   :  { %5916 = vst.msk [vmem:[%s12207_s5 + $0x238] sm:$0xf] %vm164_vm2, %v1242_v14  ;;  %v1261_v45 = vadd.f32 %v1242_v14, %v1125_v62  ;;  %v1376_v46 = vpop.f32.mrb[38].mxu1 }
 0x141   :  { %5935 = vst [vmem:[%s12207_s5 + $0x270] sm:$0xf] %v1376_v46  ;;  %v1396_v49 = vadd.f32 %v1376_v46, %v1260_v43  ;;  %v1378_v51 = vpop.f32.mrb[39].mxu1 }
 0x142   :  { %5936 = vst.msk [vmem:[%s12207_s5 + $0x278] sm:$0xf] %vm164_vm2, %v1378_v51  ;;  %v1397_v3 = vadd.f32 %v1378_v51, %v1261_v45 }
 0x144   :  { %v9081_v54 = vpop.f32.mrb[40].mxu0 }
 0x145   :  { %12313 = vst [vmem:[#allocation14_spill] sm:$0xff] %v9081_v54  ;;  %v1526_v57 = vadd.f32 %v9081_v54, %v1390_v11  ;;  %v1496_v50 = vpop.f32.mrb[41].mxu0 }
 0x146   :  { %5950 = vst.msk [vmem:[%s12207_s5 + $0x288] sm:$0xff] %vm157_vm1, %v1496_v50  ;;  %v1527_v21 = vadd.f32 %v1496_v50, %v1391_v13  ;;  %v9088_v58 = vpop.f32.mrb[40].mxu1 }
 0x147   :  { %12314 = vst [vmem:[#allocation15_spill] sm:$0xff] %v9088_v58  ;;  %v1662_v55 = vadd.f32 %v9088_v58, %v1526_v57  ;;  %v1632_v28 = vpop.f32.mrb[41].mxu1 }
 0x148   :  { %5970 = vst.msk [vmem:[%s12207_s5 + $0x2c8] sm:$0xff] %vm157_vm1, %v1632_v28  ;;  %v1663_v62 = vadd.f32 %v1632_v28, %v1527_v21  ;;  %v9095_v63 = vpop.f32.mrb[42].mxu0 }
 0x149   :  { %12315 = vst [vmem:[#allocation16_spill] sm:$0xff] %v9095_v63  ;;  %v1528_v0 = vadd.f32 %v9095_v63, %v1392_v8  ;;  %v1502_v6 = vpop.f32.mrb[43].mxu0 }
 0x14a   :  { %5952 = vst.msk [vmem:[%s12207_s5 + $0x298] sm:$0xff] %vm157_vm1, %v1502_v6  ;;  %v1529_v11 = vadd.f32 %v1502_v6, %v1393_v29  ;;  %v9102_v1 = vpop.f32.mrb[42].mxu1 }
 0x14b   :  { %12316 = vst [vmem:[#allocation17_spill] sm:$0xff] %v9102_v1  ;;  %v1664_v13 = vadd.f32 %v9102_v1, %v1528_v0  ;;  %v1638_v32 = vpop.f32.mrb[43].mxu1 }
 0x14c   :  { %5972 = vst.msk [vmem:[%s12207_s5 + $0x2d8] sm:$0xff] %vm157_vm1, %v1638_v32  ;;  %v1665_v7 = vadd.f32 %v1638_v32, %v1529_v11  ;;  %v9109_v18 = vpop.f32.mrb[44].mxu0 }
 0x14d   :  { %12317 = vst [vmem:[#allocation18_spill] sm:$0xff] %v9109_v18  ;;  %v1530_v8 = vadd.f32 %v9109_v18, %v1394_v38  ;;  %v1508_v24 = vpop.f32.mrb[45].mxu0 }
 0x14e   :  { %5954 = vst.msk [vmem:[%s12207_s5 + $0x2a8] sm:$0xff] %vm157_vm1, %v1508_v24  ;;  %v1531_v29 = vadd.f32 %v1508_v24, %v1395_v41  ;;  %v9116_v34 = vpop.f32.mrb[44].mxu1 }
 0x14f   :  { %12318 = vst [vmem:[#allocation19_spill] sm:$0xff] %v9116_v34  ;;  %v1666_v35 = vadd.f32 %v9116_v34, %v1530_v8  ;;  %v1644_v4 = vpop.f32.mrb[45].mxu1 }
 0x150   :  { %5974 = vst.msk [vmem:[%s12207_s5 + $0x2e8] sm:$0xff] %vm157_vm1, %v1644_v4  ;;  %v1667_v26 = vadd.f32 %v1644_v4, %v1531_v29  ;;  %v1512_v42 = vpop.f32.mrb[46].mxu0 }
 0x151   :  { %5955 = vst [vmem:[%s12207_s5 + $0x2b0] sm:$0xf] %v1512_v42  ;;  %v1532_v38 = vadd.f32 %v1512_v42, %v1396_v49  ;;  %v1514_v43 = vpop.f32.mrb[47].mxu0 }
 0x152   :  { %5956 = vst.msk [vmem:[%s12207_s5 + $0x2b8] sm:$0xf] %vm164_vm2, %v1514_v43  ;;  %v1533_v41 = vadd.f32 %v1514_v43, %v1397_v3  ;;  %v1648_v14 = vpop.f32.mrb[46].mxu1 }
 0x153   :  { %5975 = vst [vmem:[%s12207_s5 + $0x2f0] sm:$0xf] %v1648_v14  ;;  %v1668_v45 = vadd.f32 %v1648_v14, %v1532_v38  ;;  %v1650_v46 = vpop.f32.mrb[47].mxu1 }
 0x154   :  { %5976 = vst.msk [vmem:[%s12207_s5 + $0x2f8] sm:$0xf] %vm164_vm2, %v1650_v46  ;;  %v1669_v49 = vadd.f32 %v1650_v46, %v1533_v41 }
 0x156   :  { %v9137_v51 = vpop.f32.mrb[48].mxu0 }
 0x157   :  { %12319 = vst [vmem:[#allocation20_spill] sm:$0xff] %v9137_v51  ;;  %v1798_v57 = vadd.f32 %v9137_v51, %v1662_v55  ;;  %v1768_v50 = vpop.f32.mrb[49].mxu0 }
 0x158   :  { %5990 = vst.msk [vmem:[%s12207_s5 + $0x308] sm:$0xff] %vm157_vm1, %v1768_v50  ;;  %v1799_v3 = vadd.f32 %v1768_v50, %v1663_v62  ;;  %v9144_v21 = vpop.f32.mrb[48].mxu1 }
 0x159   :  { %12320 = vst [vmem:[#allocation21_spill] sm:$0xff] %v9144_v21  ;;  %v1934_v28 = vadd.f32 %v9144_v21, %v1798_v57  ;;  %v1904_v0 = vpop.f32.mrb[49].mxu1 }
 0x15a   :  { %6010 = vst.msk [vmem:[%s12207_s5 + $0x348] sm:$0xff] %vm157_vm1, %v1904_v0  ;;  %v1935_v6 = vadd.f32 %v1904_v0, %v1799_v3  ;;  %v9151_v11 = vpop.f32.mrb[50].mxu0 }
 0x15b   :  { %12321 = vst [vmem:[#allocation22_spill] sm:$0xff] %v9151_v11  ;;  %v1800_v55 = vadd.f32 %v9151_v11, %v1664_v13  ;;  %v1774_v32 = vpop.f32.mrb[51].mxu0 }
 0x15c   :  { %5992 = vst.msk [vmem:[%s12207_s5 + $0x318] sm:$0xff] %vm157_vm1, %v1774_v32  ;;  %v1801_v62 = vadd.f32 %v1774_v32, %v1665_v7  ;;  %v9158_v8 = vpop.f32.mrb[50].mxu1 }
 0x15d   :  { %12322 = vst [vmem:[#allocation23_spill] sm:$0xff] %v9158_v8  ;;  %v1936_v24 = vadd.f32 %v9158_v8, %v1800_v55  ;;  %v1910_v29 = vpop.f32.mrb[51].mxu1 }
 0x15e   :  { %6012 = vst.msk [vmem:[%s12207_s5 + $0x358] sm:$0xff] %vm157_vm1, %v1910_v29  ;;  %v1937_v4 = vadd.f32 %v1910_v29, %v1801_v62  ;;  %v9165_v42 = vpop.f32.mrb[52].mxu0 }
 0x15f   :  { %12323 = vst [vmem:[#allocation24_spill] sm:$0xff] %v9165_v42  ;;  %v1802_v13 = vadd.f32 %v9165_v42, %v1666_v35  ;;  %v1780_v38 = vpop.f32.mrb[53].mxu0 }
 0x160   :  { %5994 = vst.msk [vmem:[%s12207_s5 + $0x328] sm:$0xff] %vm157_vm1, %v1780_v38  ;;  %v1803_v7 = vadd.f32 %v1780_v38, %v1667_v26  ;;  %v9172_v43 = vpop.f32.mrb[52].mxu1 }
 0x161   :  { %12324 = vst [vmem:[#allocation25_spill] sm:$0xff] %v9172_v43  ;;  %v1938_v41 = vadd.f32 %v9172_v43, %v1802_v13  ;;  %v1916_v14 = vpop.f32.mrb[53].mxu1 }
 0x162   :  { %6014 = vst.msk [vmem:[%s12207_s5 + $0x368] sm:$0xff] %vm157_vm1, %v1916_v14  ;;  %v1939_v46 = vadd.f32 %v1916_v14, %v1803_v7  ;;  %v1784_v57 = vpop.f32.mrb[54].mxu0 }
 0x163   :  { %5995 = vst [vmem:[%s12207_s5 + $0x330] sm:$0xf] %v1784_v57  ;;  %v1804_v35 = vadd.f32 %v1784_v57, %v1668_v45  ;;  %v1786_v50 = vpop.f32.mrb[55].mxu0 }
 0x164   :  { %5996 = vst.msk [vmem:[%s12207_s5 + $0x338] sm:$0xf] %vm164_vm2, %v1786_v50  ;;  %v1805_v26 = vadd.f32 %v1786_v50, %v1669_v49  ;;  %v1920_v3 = vpop.f32.mrb[54].mxu1 }
 0x165   :  { %6015 = vst [vmem:[%s12207_s5 + $0x370] sm:$0xf] %v1920_v3  ;;  %v1940_v0 = vadd.f32 %v1920_v3, %v1804_v35  ;;  %v1922_v55 = vpop.f32.mrb[55].mxu1 }
 0x166   :  { %6016 = vst.msk [vmem:[%s12207_s5 + $0x378] sm:$0xf] %vm164_vm2, %v1922_v55  ;;  %v1941_v45 = vadd.f32 %v1922_v55, %v1805_v26 }
 0x168   :  { %v9193_v32 = vpop.f32.mrb[56].mxu0 }
 0x169   :  { %12325 = vst [vmem:[#allocation26_spill] sm:$0xff] %v9193_v32  ;;  %v2070_v62 = vadd.f32 %v9193_v32, %v1934_v28  ;;  %v2040_v29 = vpop.f32.mrb[57].mxu0 }
 0x16a   :  { %6030 = vst.msk [vmem:[%s12207_s5 + $0x388] sm:$0xff] %vm157_vm1, %v2040_v29  ;;  %v2071_v49 = vadd.f32 %v2040_v29, %v1935_v6  ;;  %v9200_v13 = vpop.f32.mrb[56].mxu1 }
 0x16b   :  { %12326 = vst [vmem:[#allocation27_spill] sm:$0xff] %v9200_v13  ;;  %v2206_v38 = vadd.f32 %v9200_v13, %v2070_v62  ;;  %v2176_v7 = vpop.f32.mrb[57].mxu1 }
 0x16c   :  { %6050 = vst.msk [vmem:[%s12207_s5 + $0x3c8] sm:$0xff] %vm157_vm1, %v2176_v7  ;;  %v2207_v14 = vadd.f32 %v2176_v7, %v2071_v49  ;;  %v9207_v57 = vpop.f32.mrb[58].mxu0 }
 0x16d   :  { %12327 = vst [vmem:[#allocation28_spill] sm:$0xff] %v9207_v57  ;;  %v2072_v28 = vadd.f32 %v9207_v57, %v1936_v24  ;;  %v2046_v35 = vpop.f32.mrb[59].mxu0 }
 0x16e   :  { %6032 = vst.msk [vmem:[%s12207_s5 + $0x398] sm:$0xff] %vm157_vm1, %v2046_v35  ;;  %v2073_v6 = vadd.f32 %v2046_v35, %v1937_v4  ;;  %v9214_v50 = vpop.f32.mrb[58].mxu1 }
 0x16f   :  { %12328 = vst [vmem:[#allocation29_spill] sm:$0xff] %v9214_v50  ;;  %v2208_v26 = vadd.f32 %v9214_v50, %v2072_v28  ;;  %v2182_v3 = vpop.f32.mrb[59].mxu1 }
 0x170   :  { %6052 = vst.msk [vmem:[%s12207_s5 + $0x3d8] sm:$0xff] %vm157_vm1, %v2182_v3  ;;  %v2209_v55 = vadd.f32 %v2182_v3, %v2073_v6  ;;  %v9221_v62 = vpop.f32.mrb[60].mxu0 }
 0x171   :  { %12329 = vst [vmem:[#allocation30_spill] sm:$0xff] %v9221_v62  ;;  %v2074_v24 = vadd.f32 %v9221_v62, %v1938_v41  ;;  %v2052_v29 = vpop.f32.mrb[61].mxu0 }
 0x172   :  { %6034 = vst.msk [vmem:[%s12207_s5 + $0x3a8] sm:$0xff] %vm157_vm1, %v2052_v29  ;;  %v2075_v4 = vadd.f32 %v2052_v29, %v1939_v46  ;;  %v9228_v49 = vpop.f32.mrb[60].mxu1 }
 0x173   :  { %12330 = vst [vmem:[#allocation31_spill] sm:$0xff] %v9228_v49  ;;  %v2210_v7 = vadd.f32 %v9228_v49, %v2074_v24  ;;  %v2188_v28 = vpop.f32.mrb[61].mxu1 }
 0x174   :  { %6054 = vst.msk [vmem:[%s12207_s5 + $0x3e8] sm:$0xff] %vm157_vm1, %v2188_v28  ;;  %v2211_v35 = vadd.f32 %v2188_v28, %v2075_v4  ;;  %v2056_v6 = vpop.f32.mrb[62].mxu0 }
 0x175   :  { %6035 = vst [vmem:[%s12207_s5 + $0x3b0] sm:$0xf] %v2056_v6  ;;  %v2076_v41 = vadd.f32 %v2056_v6, %v1940_v0  ;;  %v2058_v3 = vpop.f32.mrb[63].mxu0 }
 0x176   :  { %6036 = vst.msk [vmem:[%s12207_s5 + $0x3b8] sm:$0xf] %vm164_vm2, %v2058_v3  ;;  %v2077_v46 = vadd.f32 %v2058_v3, %v1941_v45  ;;  %v2192_v24 = vpop.f32.mrb[62].mxu1 }
 0x177   :  { %6055 = vst [vmem:[%s12207_s5 + $0x3f0] sm:$0xf] %v2192_v24  ;;  %v2212_v29 = vadd.f32 %v2192_v24, %v2076_v41  ;;  %v2194_v4 = vpop.f32.mrb[63].mxu1 }
 0x178   :  { %6056 = vst.msk [vmem:[%s12207_s5 + $0x3f8] sm:$0xf] %vm164_vm2, %v2194_v4  ;;  %v2213_v0 = vadd.f32 %v2194_v4, %v2077_v46 }
 0x17a   :  { %v9249_v28 = vpop.f32.mrb[64].mxu0 }
 0x17b   :  { %12331 = vst [vmem:[#allocation32_spill] sm:$0xff] %v9249_v28  ;;  %v2342_v6 = vadd.f32 %v9249_v28, %v2206_v38  ;;  %v2312_v49 = vpop.f32.mrb[65].mxu0 }
 0x17c   :  { %6070 = vst.msk [vmem:[%s12207_s5 + $0x408] sm:$0xff] %vm157_vm1, %v2312_v49  ;;  %v2343_v45 = vadd.f32 %v2312_v49, %v2207_v14  ;;  %v9256_v3 = vpop.f32.mrb[64].mxu1 }
 0x17d   :  { %12332 = vst [vmem:[#allocation33_spill] sm:$0xff] %v9256_v3  ;;  %v2478_v41 = vadd.f32 %v9256_v3, %v2342_v6  ;;  %v2448_v24 = vpop.f32.mrb[65].mxu1 }
 0x17e   :  { %6090 = vst.msk [vmem:[%s12207_s5 + $0x448] sm:$0xff] %vm157_vm1, %v2448_v24  ;;  %v2479_v46 = vadd.f32 %v2448_v24, %v2343_v45  ;;  %v9263_v4 = vpop.f32.mrb[66].mxu0 }
 0x17f   :  { %12333 = vst [vmem:[#allocation34_spill] sm:$0xff] %v9263_v4  ;;  %v2344_v38 = vadd.f32 %v9263_v4, %v2208_v26  ;;  %v2318_v28 = vpop.f32.mrb[67].mxu0 }
 0x180   :  { %6072 = vst.msk [vmem:[%s12207_s5 + $0x418] sm:$0xff] %vm157_vm1, %v2318_v28  ;;  %v2345_v14 = vadd.f32 %v2318_v28, %v2209_v55  ;;  %v9270_v49 = vpop.f32.mrb[66].mxu1 }
 0x181   :  { %12334 = vst [vmem:[#allocation35_spill] sm:$0xff] %v9270_v49  ;;  %v2480_v6 = vadd.f32 %v9270_v49, %v2344_v38  ;;  %v2454_v3 = vpop.f32.mrb[67].mxu1 }
 0x182   :  { %6092 = vst.msk [vmem:[%s12207_s5 + $0x458] sm:$0xff] %vm157_vm1, %v2454_v3  ;;  %v2481_v45 = vadd.f32 %v2454_v3, %v2345_v14  ;;  %v9277_v24 = vpop.f32.mrb[68].mxu0 }
 0x183   :  { %12335 = vst [vmem:[#allocation36_spill] sm:$0xff] %v9277_v24  ;;  %v2346_v26 = vadd.f32 %v9277_v24, %v2210_v7  ;;  %v2324_v4 = vpop.f32.mrb[69].mxu0 }
 0x184   :  { %6074 = vst.msk [vmem:[%s12207_s5 + $0x428] sm:$0xff] %vm157_vm1, %v2324_v4  ;;  %v2347_v55 = vadd.f32 %v2324_v4, %v2211_v35  ;;  %v9284_v28 = vpop.f32.mrb[68].mxu1 }
 0x185   :  { %12336 = vst [vmem:[#allocation37_spill] sm:$0xff] %v9284_v28  ;;  %v2482_v38 = vadd.f32 %v9284_v28, %v2346_v26  ;;  %v2460_v49 = vpop.f32.mrb[69].mxu1 }
 0x186   :  { %6094 = vst.msk [vmem:[%s12207_s5 + $0x468] sm:$0xff] %vm157_vm1, %v2460_v49  ;;  %v2483_v3 = vadd.f32 %v2460_v49, %v2347_v55  ;;  %v2328_v14 = vpop.f32.mrb[70].mxu0 }
 0x187   :  { %6075 = vst [vmem:[%s12207_s5 + $0x430] sm:$0xf] %v2328_v14  ;;  %v2348_v7 = vadd.f32 %v2328_v14, %v2212_v29  ;;  %v2330_v24 = vpop.f32.mrb[71].mxu0 }
 0x188   :  { %6076 = vst.msk [vmem:[%s12207_s5 + $0x438] sm:$0xf] %vm164_vm2, %v2330_v24  ;;  %v2349_v35 = vadd.f32 %v2330_v24, %v2213_v0  ;;  %v2464_v4 = vpop.f32.mrb[70].mxu1 }
 0x189   :  { %6095 = vst [vmem:[%s12207_s5 + $0x470] sm:$0xf] %v2464_v4  ;;  %v2484_v26 = vadd.f32 %v2464_v4, %v2348_v7  ;;  %v2466_v49 = vpop.f32.mrb[71].mxu1 }
 0x18a   :  { %6096 = vst.msk [vmem:[%s12207_s5 + $0x478] sm:$0xf] %vm164_vm2, %v2466_v49  ;;  %v2485_v29 = vadd.f32 %v2466_v49, %v2349_v35 }
 0x18c   :  { %v9305_v55 = vpop.f32.mrb[72].mxu0 }
 0x18d   :  { %12337 = vst [vmem:[#allocation38_spill] sm:$0xff] %v9305_v55  ;;  %v2614_v14 = vadd.f32 %v9305_v55, %v2478_v41  ;;  %v2584_v28 = vpop.f32.mrb[73].mxu0 }
 0x18e   :  { %6110 = vst.msk [vmem:[%s12207_s5 + $0x488] sm:$0xff] %vm157_vm1, %v2584_v28  ;;  %v2615_v0 = vadd.f32 %v2584_v28, %v2479_v46  ;;  %v2718_v24 = vpop.f32.mrb[72].mxu1 }
 0x18f   :  { %6129 = vst [vmem:[%s12207_s5 + $0x4c0] sm:$0xff] %v2718_v24  ;;  %v2750_v7 = vadd.f32 %v2718_v24, %v2614_v14  ;;  %v2720_v4 = vpop.f32.mrb[73].mxu1 }
 0x190   :  { %6130 = vst.msk [vmem:[%s12207_s5 + $0x4c8] sm:$0xff] %vm157_vm1, %v2720_v4  ;;  %v2751_v41 = vadd.f32 %v2720_v4, %v2615_v0  ;;  %v9319_v35 = vpop.f32.mrb[74].mxu0 }
 0x191   :  { %12338 = vst [vmem:[#allocation39_spill] sm:$0xff] %v9319_v35  ;;  %v2616_v49 = vadd.f32 %v9319_v35, %v2480_v6  ;;  %v2590_v55 = vpop.f32.mrb[75].mxu0 }
 0x192   :  { %6112 = vst.msk [vmem:[%s12207_s5 + $0x498] sm:$0xff] %vm157_vm1, %v2590_v55  ;;  %v2617_v46 = vadd.f32 %v2590_v55, %v2481_v45  ;;  %v2724_v28 = vpop.f32.mrb[74].mxu1 }
 0x193   :  { %6131 = vst [vmem:[%s12207_s5 + $0x4d0] sm:$0xff] %v2724_v28  ;;  %v2752_v14 = vadd.f32 %v2724_v28, %v2616_v49  ;;  %v2726_v24 = vpop.f32.mrb[75].mxu1 }
 0x194   :  { %6132 = vst.msk [vmem:[%s12207_s5 + $0x4d8] sm:$0xff] %vm157_vm1, %v2726_v24  ;;  %v2753_v6 = vadd.f32 %v2726_v24, %v2617_v46  ;;  %v2594_v0 = vpop.f32.mrb[76].mxu0 }
 0x195   :  { %6113 = vst [vmem:[%s12207_s5 + $0x4a0] sm:$0xff] %v2594_v0  ;;  %v2618_v4 = vadd.f32 %v2594_v0, %v2482_v38  ;;  %v2596_v45 = vpop.f32.mrb[77].mxu0 }
 0x196   :  { %6114 = vst.msk [vmem:[%s12207_s5 + $0x4a8] sm:$0xff] %vm157_vm1, %v2596_v45  ;;  %v2619_v55 = vadd.f32 %v2596_v45, %v2483_v3  ;;  %v2730_v49 = vpop.f32.mrb[76].mxu1 }
 0x197   :  { %6133 = vst [vmem:[%s12207_s5 + $0x4e0] sm:$0xff] %v2730_v49  ;;  %v2754_v28 = vadd.f32 %v2730_v49, %v2618_v4  ;;  %v2732_v46 = vpop.f32.mrb[77].mxu1 }
 0x198   :  { %6134 = vst.msk [vmem:[%s12207_s5 + $0x4e8] sm:$0xff] %vm157_vm1, %v2732_v46  ;;  %v2755_v38 = vadd.f32 %v2732_v46, %v2619_v55  ;;  %v2600_v24 = vpop.f32.mrb[78].mxu0 }
 0x199   :  { %6115 = vst [vmem:[%s12207_s5 + $0x4b0] sm:$0xf] %v2600_v24  ;;  %v2620_v0 = vadd.f32 %v2600_v24, %v2484_v26  ;;  %v2602_v3 = vpop.f32.mrb[79].mxu0 }
 0x19a   :  { %6116 = vst.msk [vmem:[%s12207_s5 + $0x4b8] sm:$0xf] %vm164_vm2, %v2602_v3  ;;  %v2621_v4 = vadd.f32 %v2602_v3, %v2485_v29  ;;  %v2736_v45 = vpop.f32.mrb[78].mxu1 }
 0x19b   :  { %6135 = vst [vmem:[%s12207_s5 + $0x4f0] sm:$0xf] %v2736_v45  ;;  %v2756_v49 = vadd.f32 %v2736_v45, %v2620_v0  ;;  %v2738_v55 = vpop.f32.mrb[79].mxu1 }
 0x19c   :  { %6136 = vst.msk [vmem:[%s12207_s5 + $0x4f8] sm:$0xf] %vm164_vm2, %v2738_v55  ;;  %v2757_v26 = vadd.f32 %v2738_v55, %v2621_v4 }
 0x19e   :  { %v2854_v46 = vpop.f32.mrb[80].mxu0 }
 0x19f   :  { %6149 = vst [vmem:[%s12207_s5 + $0x500] sm:$0xff] %v2854_v46  ;;  %v2886_v24 = vadd.f32 %v2854_v46, %v2750_v7  ;;  %v2856_v29 = vpop.f32.mrb[81].mxu0 }
 0x1a0   :  { %6150 = vst.msk [vmem:[%s12207_s5 + $0x508] sm:$0xff] %vm157_vm1, %v2856_v29  ;;  %v2887_v0 = vadd.f32 %v2856_v29, %v2751_v41  ;;  %v2990_v3 = vpop.f32.mrb[80].mxu1 }
 0x1a1   :  { %6169 = vst [vmem:[%s12207_s5 + $0x540] sm:$0xff] %v2990_v3  ;;  %v3022_v45 = vadd.f32 %v2990_v3, %v2886_v24  ;;  %v2992_v4 = vpop.f32.mrb[81].mxu1 }
 0x1a2   :  { %6170 = vst.msk [vmem:[%s12207_s5 + $0x548] sm:$0xff] %vm157_vm1, %v2992_v4  ;;  %v3023_v7 = vadd.f32 %v2992_v4, %v2887_v0  ;;  %v2860_v55 = vpop.f32.mrb[82].mxu0 }
 0x1a3   :  { %6151 = vst [vmem:[%s12207_s5 + $0x510] sm:$0xff] %v2860_v55  ;;  %v2888_v46 = vadd.f32 %v2860_v55, %v2752_v14  ;;  %v2862_v41 = vpop.f32.mrb[83].mxu0 }
 0x1a4   :  { %6152 = vst.msk [vmem:[%s12207_s5 + $0x518] sm:$0xff] %vm157_vm1, %v2862_v41  ;;  %v2889_v24 = vadd.f32 %v2862_v41, %v2753_v6  ;;  %v2996_v29 = vpop.f32.mrb[82].mxu1 }
 0x1a5   :  { %6171 = vst [vmem:[%s12207_s5 + $0x550] sm:$0xff] %v2996_v29  ;;  %v3024_v3 = vadd.f32 %v2996_v29, %v2888_v46  ;;  %v2998_v0 = vpop.f32.mrb[83].mxu1 }
 0x1a6   :  { %6172 = vst.msk [vmem:[%s12207_s5 + $0x558] sm:$0xff] %vm157_vm1, %v2998_v0  ;;  %v3025_v14 = vadd.f32 %v2998_v0, %v2889_v24  ;;  %v9389_v4 = vpop.f32.mrb[84].mxu0 }
 0x1a7   :  { %12339 = vst [vmem:[#allocation40_spill] sm:$0xff] %v9389_v4  ;;  %v2890_v55 = vadd.f32 %v9389_v4, %v2754_v28  ;;  %v2868_v35 = vpop.f32.mrb[85].mxu0 }
 0x1a8   :  { %6154 = vst.msk [vmem:[%s12207_s5 + $0x528] sm:$0xff] %vm157_vm1, %v2868_v35  ;;  %v2891_v6 = vadd.f32 %v2868_v35, %v2755_v38  ;;  %v9396_v41 = vpop.f32.mrb[84].mxu1 }
 0x1a9   :  { %12340 = vst [vmem:[#allocation41_spill] sm:$0xff] %v9396_v41  ;;  %v3026_v46 = vadd.f32 %v9396_v41, %v2890_v55  ;;  %v3004_v29 = vpop.f32.mrb[85].mxu1 }
 0x1aa   :  { %6174 = vst.msk [vmem:[%s12207_s5 + $0x568] sm:$0xff] %vm157_vm1, %v3004_v29  ;;  %v3027_v24 = vadd.f32 %v3004_v29, %v2891_v6  ;;  %v2872_v0 = vpop.f32.mrb[86].mxu0 }
 0x1ab   :  { %6155 = vst [vmem:[%s12207_s5 + $0x530] sm:$0xf] %v2872_v0  ;;  %v2892_v28 = vadd.f32 %v2872_v0, %v2756_v49  ;;  %v2874_v4 = vpop.f32.mrb[87].mxu0 }
 0x1ac   :  { %6156 = vst.msk [vmem:[%s12207_s5 + $0x538] sm:$0xf] %vm164_vm2, %v2874_v4  ;;  %v2893_v35 = vadd.f32 %v2874_v4, %v2757_v26  ;;  %v3008_v38 = vpop.f32.mrb[86].mxu1 }
 0x1ad   :  { %6175 = vst [vmem:[%s12207_s5 + $0x570] sm:$0xf] %v3008_v38  ;;  %v3028_v55 = vadd.f32 %v3008_v38, %v2892_v28  ;;  %v3010_v6 = vpop.f32.mrb[87].mxu1 }
 0x1ae   :  { %6176 = vst.msk [vmem:[%s12207_s5 + $0x578] sm:$0xf] %vm164_vm2, %v3010_v6  ;;  %v3029_v49 = vadd.f32 %v3010_v6, %v2893_v35 }
 0x1b0   :  { %v9417_v29 = vpop.f32.mrb[88].mxu0 }
 0x1b1   :  { %12341 = vst [vmem:[#allocation42_spill] sm:$0xff] %v9417_v29  ;;  %v3158_v0 = vadd.f32 %v9417_v29, %v3022_v45  ;;  %v3128_v41 = vpop.f32.mrb[89].mxu0 }
 0x1b2   :  { %6190 = vst.msk [vmem:[%s12207_s5 + $0x588] sm:$0xff] %vm157_vm1, %v3128_v41  ;;  %v3159_v26 = vadd.f32 %v3128_v41, %v3023_v7  ;;  %v9424_v4 = vpop.f32.mrb[88].mxu1 }
 0x1b3   :  { %12342 = vst [vmem:[#allocation43_spill] sm:$0xff] %v9424_v4  ;;  %v3294_v28 = vadd.f32 %v9424_v4, %v3158_v0  ;;  %v3264_v38 = vpop.f32.mrb[89].mxu1 }
 0x1b4   :  { %6210 = vst.msk [vmem:[%s12207_s5 + $0x5c8] sm:$0xff] %vm157_vm1, %v3264_v38  ;;  %v3295_v35 = vadd.f32 %v3264_v38, %v3159_v26  ;;  %v9431_v6 = vpop.f32.mrb[90].mxu0 }
 0x1b5   :  { %12343 = vst [vmem:[#allocation44_spill] sm:$0xff] %v9431_v6  ;;  %v3160_v45 = vadd.f32 %v9431_v6, %v3024_v3  ;;  %v3134_v29 = vpop.f32.mrb[91].mxu0 }
 0x1b6   :  { %6192 = vst.msk [vmem:[%s12207_s5 + $0x598] sm:$0xff] %vm157_vm1, %v3134_v29  ;;  %v3161_v7 = vadd.f32 %v3134_v29, %v3025_v14  ;;  %v9438_v41 = vpop.f32.mrb[90].mxu1 }
 0x1b7   :  { %12344 = vst [vmem:[#allocation45_spill] sm:$0xff] %v9438_v41  ;;  %v3296_v0 = vadd.f32 %v9438_v41, %v3160_v45  ;;  %v3270_v4 = vpop.f32.mrb[91].mxu1 }
 0x1b8   :  { %6212 = vst.msk [vmem:[%s12207_s5 + $0x5d8] sm:$0xff] %vm157_vm1, %v3270_v4  ;;  %v3297_v26 = vadd.f32 %v3270_v4, %v3161_v7  ;;  %v9445_v38 = vpop.f32.mrb[92].mxu0 }
 0x1b9   :  { %12345 = vst [vmem:[#allocation46_spill] sm:$0xff] %v9445_v38  ;;  %v3162_v3 = vadd.f32 %v9445_v38, %v3026_v46  ;;  %v3140_v6 = vpop.f32.mrb[93].mxu0 }
 0x1ba   :  { %6194 = vst.msk [vmem:[%s12207_s5 + $0x5a8] sm:$0xff] %vm157_vm1, %v3140_v6  ;;  %v3163_v14 = vadd.f32 %v3140_v6, %v3027_v24  ;;  %v9452_v29 = vpop.f32.mrb[92].mxu1 }
 0x1bb   :  { %12346 = vst [vmem:[#allocation47_spill] sm:$0xff] %v9452_v29  ;;  %v3298_v45 = vadd.f32 %v9452_v29, %v3162_v3  ;;  %v3276_v41 = vpop.f32.mrb[93].mxu1 }
 0x1bc   :  { %6214 = vst.msk [vmem:[%s12207_s5 + $0x5e8] sm:$0xff] %vm157_vm1, %v3276_v41  ;;  %v3299_v4 = vadd.f32 %v3276_v41, %v3163_v14  ;;  %v3144_v7 = vpop.f32.mrb[94].mxu0 }
 0x1bd   :  { %6195 = vst [vmem:[%s12207_s5 + $0x5b0] sm:$0xf] %v3144_v7  ;;  %v3164_v46 = vadd.f32 %v3144_v7, %v3028_v55  ;;  %v3146_v38 = vpop.f32.mrb[95].mxu0 }
 0x1be   :  { %6196 = vst.msk [vmem:[%s12207_s5 + $0x5b8] sm:$0xf] %vm164_vm2, %v3146_v38  ;;  %v3165_v24 = vadd.f32 %v3146_v38, %v3029_v49  ;;  %v3280_v6 = vpop.f32.mrb[94].mxu1 }
 0x1bf   :  { %6215 = vst [vmem:[%s12207_s5 + $0x5f0] sm:$0xf] %v3280_v6  ;;  %v3300_v3 = vadd.f32 %v3280_v6, %v3164_v46  ;;  %v3282_v41 = vpop.f32.mrb[95].mxu1 }
 0x1c0   :  { %6216 = vst.msk [vmem:[%s12207_s5 + $0x5f8] sm:$0xf] %vm164_vm2, %v3282_v41  ;;  %v3301_v55 = vadd.f32 %v3282_v41, %v3165_v24 }
 0x1c2   :  { %v9473_v14 = vpop.f32.mrb[96].mxu0 }
 0x1c3   :  { %12347 = vst [vmem:[#allocation48_spill] sm:$0xff] %v9473_v14  ;;  %v3430_v7 = vadd.f32 %v9473_v14, %v3294_v28  ;;  %v3400_v29 = vpop.f32.mrb[97].mxu0 }
 0x1c4   :  { %6230 = vst.msk [vmem:[%s12207_s5 + $0x608] sm:$0xff] %vm157_vm1, %v3400_v29  ;;  %v3431_v49 = vadd.f32 %v3400_v29, %v3295_v35  ;;  %v9480_v38 = vpop.f32.mrb[96].mxu1 }
 0x1c5   :  { %12348 = vst [vmem:[#allocation49_spill] sm:$0xff] %v9480_v38  ;;  %v3566_v46 = vadd.f32 %v9480_v38, %v3430_v7  ;;  %v3536_v6 = vpop.f32.mrb[97].mxu1 }
 0x1c6   :  { %6250 = vst.msk [vmem:[%s12207_s5 + $0x648] sm:$0xff] %vm157_vm1, %v3536_v6  ;;  %v3567_v24 = vadd.f32 %v3536_v6, %v3431_v49  ;;  %v9487_v41 = vpop.f32.mrb[98].mxu0 }
 0x1c7   :  { %12349 = vst [vmem:[#allocation50_spill] sm:$0xff] %v9487_v41  ;;  %v3432_v28 = vadd.f32 %v9487_v41, %v3296_v0  ;;  %v3406_v14 = vpop.f32.mrb[99].mxu0 }
 0x1c8   :  { %6232 = vst.msk [vmem:[%s12207_s5 + $0x618] sm:$0xff] %vm157_vm1, %v3406_v14  ;;  %v3433_v35 = vadd.f32 %v3406_v14, %v3297_v26  ;;  %v9494_v29 = vpop.f32.mrb[98].mxu1 }
 0x1c9   :  { %12350 = vst [vmem:[#allocation51_spill] sm:$0xff] %v9494_v29  ;;  %v3568_v7 = vadd.f32 %v9494_v29, %v3432_v28  ;;  %v3542_v38 = vpop.f32.mrb[99].mxu1 }
 0x1ca   :  { %6252 = vst.msk [vmem:[%s12207_s5 + $0x658] sm:$0xff] %vm157_vm1, %v3542_v38  ;;  %v3569_v49 = vadd.f32 %v3542_v38, %v3433_v35  ;;  %v9501_v6 = vpop.f32.mrb[100].mxu0 }
 0x1cb   :  { %12351 = vst [vmem:[#allocation52_spill] sm:$0xff] %v9501_v6  ;;  %v3434_v0 = vadd.f32 %v9501_v6, %v3298_v45  ;;  %v3412_v41 = vpop.f32.mrb[101].mxu0 }
 0x1cc   :  { %6234 = vst.msk [vmem:[%s12207_s5 + $0x628] sm:$0xff] %vm157_vm1, %v3412_v41  ;;  %v3435_v26 = vadd.f32 %v3412_v41, %v3299_v4  ;;  %v9508_v14 = vpop.f32.mrb[100].mxu1 }
 0x1cd   :  { %12352 = vst [vmem:[#allocation53_spill] sm:$0xff] %v9508_v14  ;;  %v3570_v28 = vadd.f32 %v9508_v14, %v3434_v0  ;;  %v3548_v29 = vpop.f32.mrb[101].mxu1 }
 0x1ce   :  { %6254 = vst.msk [vmem:[%s12207_s5 + $0x668] sm:$0xff] %vm157_vm1, %v3548_v29  ;;  %v3571_v38 = vadd.f32 %v3548_v29, %v3435_v26  ;;  %v3416_v35 = vpop.f32.mrb[102].mxu0 }
 0x1cf   :  { %6235 = vst [vmem:[%s12207_s5 + $0x630] sm:$0xf] %v3416_v35  ;;  %v3436_v45 = vadd.f32 %v3416_v35, %v3300_v3  ;;  %v3418_v6 = vpop.f32.mrb[103].mxu0 }
 0x1d0   :  { %6236 = vst.msk [vmem:[%s12207_s5 + $0x638] sm:$0xf] %vm164_vm2, %v3418_v6  ;;  %v3437_v4 = vadd.f32 %v3418_v6, %v3301_v55  ;;  %v3552_v41 = vpop.f32.mrb[102].mxu1 }
 0x1d1   :  { %6255 = vst [vmem:[%s12207_s5 + $0x670] sm:$0xf] %v3552_v41  ;;  %v3572_v0 = vadd.f32 %v3552_v41, %v3436_v45  ;;  %v3554_v29 = vpop.f32.mrb[103].mxu1 }
 0x1d2   :  { %6256 = vst.msk [vmem:[%s12207_s5 + $0x678] sm:$0xf] %vm164_vm2, %v3554_v29  ;;  %v3573_v3 = vadd.f32 %v3554_v29, %v3437_v4 }
 0x1d4   :  { %v9529_v26 = vpop.f32.mrb[104].mxu0 }
 0x1d5   :  { %12353 = vst [vmem:[#allocation54_spill] sm:$0xff] %v9529_v26  ;;  %v3702_v35 = vadd.f32 %v9529_v26, %v3566_v46  ;;  %v3672_v14 = vpop.f32.mrb[105].mxu0 }
 0x1d6   :  { %6270 = vst.msk [vmem:[%s12207_s5 + $0x688] sm:$0xff] %vm157_vm1, %v3672_v14  ;;  %v3703_v55 = vadd.f32 %v3672_v14, %v3567_v24  ;;  %v9536_v6 = vpop.f32.mrb[104].mxu1 }
 0x1d7   :  { %12354 = vst [vmem:[#allocation55_spill] sm:$0xff] %v9536_v6  ;;  %v3838_v45 = vadd.f32 %v9536_v6, %v3702_v35  ;;  %v3808_v41 = vpop.f32.mrb[105].mxu1 }
 0x1d8   :  { %6290 = vst.msk [vmem:[%s12207_s5 + $0x6c8] sm:$0xff] %vm157_vm1, %v3808_v41  ;;  %v3839_v4 = vadd.f32 %v3808_v41, %v3703_v55  ;;  %v9543_v29 = vpop.f32.mrb[106].mxu0 }
 0x1d9   :  { %12355 = vst [vmem:[#allocation56_spill] sm:$0xff] %v9543_v29  ;;  %v3704_v46 = vadd.f32 %v9543_v29, %v3568_v7  ;;  %v3678_v26 = vpop.f32.mrb[107].mxu0 }
 0x1da   :  { %6272 = vst.msk [vmem:[%s12207_s5 + $0x698] sm:$0xff] %vm157_vm1, %v3678_v26  ;;  %v3705_v24 = vadd.f32 %v3678_v26, %v3569_v49  ;;  %v9550_v14 = vpop.f32.mrb[106].mxu1  ;;  %v3857_v13 = vsel %vm157_vm1, %v3839_v4, 0.0 }
 0x1db   :  { %12356 = vst [vmem:[#allocation57_spill] sm:$0xff] %v9550_v14  ;;  %v3840_v35 = vadd.f32 %v9550_v14, %v3704_v46  ;;  %v3814_v6 = vpop.f32.mrb[107].mxu1 }
 0x1dc   :  { %6292 = vst.msk [vmem:[%s12207_s5 + $0x6d8] sm:$0xff] %vm157_vm1, %v3814_v6  ;;  %v3841_v55 = vadd.f32 %v3814_v6, %v3705_v24  ;;  %v9557_v41 = vpop.f32.mrb[108].mxu0 }
 0x1dd   :  { %12357 = vst [vmem:[#allocation58_spill] sm:$0xff] %v9557_v41  ;;  %v3846_v7 = vadd.f32 %v3840_v35, %v3838_v45  ;;  %v3706_v29 = vadd.f32 %v9557_v41, %v3570_v28  ;;  %v3684_v50 = vpop.f32.mrb[109].mxu0 }
 0x1de   :  { %v3858_v49 = vsel %vm157_vm1, %v3841_v55, 0.0  ;;  %6274 = vst.msk [vmem:[%s12207_s5 + $0x6a8] sm:$0xff] %vm157_vm1, %v3684_v50  ;;  %v3707_v26 = vadd.f32 %v3684_v50, %v3571_v38  ;;  %v9566_v46 = vpop.f32.mrb[108].mxu1 }
 0x1df   :  { %12358 = vst [vmem:[#allocation59_spill] sm:$0xff] %v9566_v46  ;;  %v3859_v14 = vadd.f32 %v3858_v49, %v3857_v13  ;;  %v3842_v6 = vadd.f32 %v9566_v46, %v3706_v29  ;;  %v3820_v24 = vpop.f32.mrb[109].mxu1 }
 0x1e0   :  { %6294 = vst.msk [vmem:[%s12207_s5 + $0x6e8] sm:$0xff] %vm157_vm1, %v3820_v24  ;;  %v3843_v28 = vadd.f32 %v3820_v24, %v3707_v26  ;;  %v3688_v45 = vpop.f32.mrb[110].mxu0 }
 0x1e1   :  { %v3847_v4 = vadd.f32 %v3846_v7, %v3842_v6  ;;  %6275 = vst [vmem:[%s12207_s5 + $0x6b0] sm:$0xf] %v3688_v45  ;;  %v3708_v35 = vadd.f32 %v3688_v45, %v3572_v0  ;;  %v3690_v50 = vpop.f32.mrb[111].mxu0 }
 0x1e2   :  { %v3860_v38 = vsel %vm157_vm1, %v3843_v28, 0.0  ;;  %6276 = vst.msk [vmem:[%s12207_s5 + $0x6b8] sm:$0xf] %vm164_vm2, %v3690_v50  ;;  %v3709_v13 = vadd.f32 %v3690_v50, %v3573_v3  ;;  %v3824_v29 = vpop.f32.mrb[110].mxu1 }
 0x1e3   :  { %v3861_v55 = vadd.f32 %v3860_v38, %v3859_v14  ;;  %6295 = vst [vmem:[%s12207_s5 + $0x6f0] sm:$0xf] %v3824_v29  ;;  %v3844_v7 = vadd.f32 %v3824_v29, %v3708_v35  ;;  %v3826_v49 = vpop.f32.mrb[111].mxu1 }
 0x1e4   :  { %6296 = vst.msk [vmem:[%s12207_s5 + $0x6f8] sm:$0xf] %vm164_vm2, %v3826_v49  ;;  %v3845_v0 = vadd.f32 %v3826_v49, %v3709_v13 }
 0x1e5   :  { %v3849_v26 = vsel %vm3848_vm3, %v3844_v7, 0.0 }
 0x1e6   :  { %v3850_v6 = vadd.f32 %v3849_v26, %v3847_v4  ;;  %v3862_v3 = vsel %vm164_vm2, %v3845_v0, 0.0  ;;  %v3878_v4 = vld [vmem:[%s12207_s5 + $0x30] sm:$0xf] }
 0x1e7   :  { %v3863_v24 = vadd.f32 %v3862_v3, %v3861_v55  ;;  %v6303_v55 = vld [vmem:[%s12207_s5 + $0x70] sm:$0xf] }
 0x1e8   :  { %v3851_v28 = vrot.slane %v3850_v6, 4 }
 0x1e9   :  { %v3864_v14 = vrot.slane %v3863_v24, 4 }
 0x1ea   :  { %v3852_v45 = vadd.f32 %v3851_v28, %v3850_v6 }
 0x1eb   :  { %v3865_v50 = vadd.f32 %v3864_v14, %v3863_v24 }
 0x1ec   :  { %v3853_v38 = vrot.slane %v3852_v45, 2 }
 0x1ed   :  { %v3866_v46 = vrot.slane %v3865_v50, 2 }
 0x1ee   :  { %v3854_v35 = vadd.f32 %v3853_v38, %v3852_v45 }
 0x1ef   :  { %v9590_v41 = vadd.f32 %v3866_v46, %v3865_v50  ;;  %v6311_v50 = vld [vmem:[%s12207_s5 + $0xb0] sm:$0xf] }
 0x1f0   :  { %v3855_v29 = vrot.slane %v3854_v35, 1 }
 0x1f2   :  { %v3856_v62 = vadd.f32 %v3855_v29, %v3854_v35 }
 0x1f4   :  { %v9592_v57 = vmul.f32 0.0012755102, %v3856_v62 }
 0x1f6   :  { %v3880_v7 = vsub.f32 %v8632_v47, %v9592_v57  ;;  %v3882_v46 = vsub.f32 %v8670_v59, %v9592_v57  ;;  %v3884_v62 = vsub.f32 %v8708_v12, %v9592_v57  ;;  %v3886_v49 = vsub.f32 %v3878_v4, %v9592_v57 }
 0x1f7   :  { %v3912_v0 = vsub.f32 %v8634_v48, %v9592_v57  ;;  %v3914_v26 = vsub.f32 %v8673_v36, %v9592_v57  ;;  %v3916_v6 = vsub.f32 %v8712_v17, %v9592_v57  ;;  %v3918_v3 = vsub.f32 %v6303_v55, %v9592_v57 }
 0x1f8   :  { %v3888_v24 = vmul.f32 %v3880_v7, %v3880_v7  ;;  %v3890_v28 = vmul.f32 %v3882_v46, %v3882_v46  ;;  %v3892_v14 = vmul.f32 %v3884_v62, %v3884_v62  ;;  %v3894_v45 = vmul.f32 %v3886_v49, %v3886_v49 }
 0x1f9   :  { %v3920_v38 = vmul.f32 %v3912_v0, %v3912_v0  ;;  %v3922_v35 = vmul.f32 %v3914_v26, %v3914_v26  ;;  %v3924_v29 = vmul.f32 %v3916_v6, %v3916_v6  ;;  %v3926_v4 = vmul.f32 %v3918_v3, %v3918_v3  ;;  %v6319_v0 = vld [vmem:[%s12207_s5 + $0xf0] sm:$0xf] }
 0x1fa   :  { %v3944_v13 = vsub.f32 %v8788_v15, %v9592_v57  ;;  %v3946_v17 = vsub.f32 %v8828_v61, %v9592_v57  ;;  %v3948_v55 = vsub.f32 %v8862_v19, %v9592_v57  ;;  %v3950_v7 = vsub.f32 %v6311_v50, %v9592_v57 }
 0x1fb   :  { %v3928_v46 = vadd.f32 %v3920_v38, %v3888_v24  ;;  %v3930_v62 = vadd.f32 %v3922_v35, %v3890_v28  ;;  %v3932_v49 = vadd.f32 %v3924_v29, %v3892_v14  ;;  %v3934_v36 = vadd.f32 %v3926_v4, %v3894_v45 }
 0x1fc   :  { %v3952_v26 = vmul.f32 %v3944_v13, %v3944_v13  ;;  %v3954_v6 = vmul.f32 %v3946_v17, %v3946_v17  ;;  %v3956_v3 = vmul.f32 %v3948_v55, %v3948_v55  ;;  %v3958_v15 = vmul.f32 %v3950_v7, %v3950_v7  ;;  %v6327_v17 = vld [vmem:[%s12207_s5 + $0x130] sm:$0xf] }
 0x1fd   :  { %v3976_v61 = vsub.f32 %v8802_v53, %v9592_v57  ;;  %v3978_v19 = vsub.f32 %v8841_v2, %v9592_v57  ;;  %v3980_v24 = vsub.f32 %v8874_v27, %v9592_v57  ;;  %v3982_v28 = vsub.f32 %v6319_v0, %v9592_v57 }
 0x1fe   :  { %v3960_v14 = vadd.f32 %v3952_v26, %v3928_v46  ;;  %v3962_v45 = vadd.f32 %v3954_v6, %v3930_v62  ;;  %v3964_v50 = vadd.f32 %v3956_v3, %v3932_v49  ;;  %v3966_v38 = vadd.f32 %v3958_v15, %v3934_v36 }
 0x1ff   :  { %v3984_v13 = vmul.f32 %v3976_v61, %v3976_v61  ;;  %v3986_v35 = vmul.f32 %v3978_v19, %v3978_v19  ;;  %v3988_v29 = vmul.f32 %v3980_v24, %v3980_v24  ;;  %v3990_v4 = vmul.f32 %v3982_v28, %v3982_v28  ;;  %v6335_v61 = vld [vmem:[%s12207_s5 + $0x170] sm:$0xf] }
 0x200   :  { %v4008_v55 = vsub.f32 %v8910_v39, %v9592_v57  ;;  %v4010_v7 = vsub.f32 %v8923_v56, %v9592_v57  ;;  %v4012_v46 = vsub.f32 %v8941_v60, %v9592_v57  ;;  %v4014_v62 = vsub.f32 %v6327_v17, %v9592_v57 }
 0x201   :  { %v3992_v36 = vadd.f32 %v3984_v13, %v3960_v14  ;;  %v3994_v15 = vadd.f32 %v3986_v35, %v3962_v45  ;;  %v3996_v49 = vadd.f32 %v3988_v29, %v3964_v50  ;;  %v3998_v0 = vadd.f32 %v3990_v4, %v3966_v38  ;;  %v6343_v35 = vld [vmem:[%s12207_s5 + $0x1b0] sm:$0xf] }
 0x202   :  { %v4016_v19 = vmul.f32 %v4008_v55, %v4008_v55  ;;  %v4018_v26 = vmul.f32 %v4010_v7, %v4010_v7  ;;  %v4020_v6 = vmul.f32 %v4012_v46, %v4012_v46  ;;  %v4022_v3 = vmul.f32 %v4014_v62, %v4014_v62 }
 0x203   :  { %v4040_v24 = vsub.f32 %v8920_v52, %v9592_v57  ;;  %v4042_v28 = vsub.f32 %v8930_v31, %v9592_v57  ;;  %v4044_v14 = vsub.f32 %v8948_v5, %v9592_v57  ;;  %v4046_v45 = vsub.f32 %v6335_v61, %v9592_v57 }
 0x204   :  { %v4024_v50 = vadd.f32 %v4016_v19, %v3992_v36  ;;  %v4026_v38 = vadd.f32 %v4018_v26, %v3994_v15  ;;  %v4028_v17 = vadd.f32 %v4020_v6, %v3996_v49  ;;  %v4030_v13 = vadd.f32 %v4022_v3, %v3998_v0  ;;  %v6351_v26 = vld [vmem:[%s12207_s5 + $0x1f0] sm:$0xf] }
 0x205   :  { %v4048_v29 = vmul.f32 %v4040_v24, %v4040_v24  ;;  %v4050_v4 = vmul.f32 %v4042_v28, %v4042_v28  ;;  %v4052_v55 = vmul.f32 %v4044_v14, %v4044_v14  ;;  %v4054_v7 = vmul.f32 %v4046_v45, %v4046_v45 }
 0x206   :  { %v4072_v46 = vsub.f32 %v8969_v23, %v9592_v57  ;;  %v4074_v62 = vsub.f32 %v8983_v9, %v9592_v57  ;;  %v4076_v36 = vsub.f32 %v8997_v44, %v9592_v57  ;;  %v4078_v15 = vsub.f32 %v6343_v35, %v9592_v57 }
 0x207   :  { %v4056_v49 = vadd.f32 %v4048_v29, %v4024_v50  ;;  %v4058_v0 = vadd.f32 %v4050_v4, %v4026_v38  ;;  %v4060_v61 = vadd.f32 %v4052_v55, %v4028_v17  ;;  %v4062_v19 = vadd.f32 %v4054_v7, %v4030_v13  ;;  %v6359_v4 = vld [vmem:[%s12207_s5 + $0x230] sm:$0xf] }
 0x208   :  { %v4080_v6 = vmul.f32 %v4072_v46, %v4072_v46  ;;  %v4082_v3 = vmul.f32 %v4074_v62, %v4074_v62  ;;  %v4084_v24 = vmul.f32 %v4076_v36, %v4076_v36  ;;  %v4086_v28 = vmul.f32 %v4078_v15, %v4078_v15 }
 0x209   :  { %v4104_v14 = vsub.f32 %v8976_v33, %v9592_v57  ;;  %v4106_v45 = vsub.f32 %v8990_v40, %v9592_v57  ;;  %v4108_v50 = vsub.f32 %v9004_v20, %v9592_v57  ;;  %v4110_v38 = vsub.f32 %v6351_v26, %v9592_v57 }
 0x20a   :  { %v4088_v17 = vadd.f32 %v4080_v6, %v4056_v49  ;;  %v4090_v13 = vadd.f32 %v4082_v3, %v4058_v0  ;;  %v4092_v35 = vadd.f32 %v4084_v24, %v4060_v61  ;;  %v4094_v29 = vadd.f32 %v4086_v28, %v4062_v19  ;;  %v6367_v3 = vld [vmem:[%s12207_s5 + $0x270] sm:$0xf] }
 0x20b   :  { %v4112_v55 = vmul.f32 %v4104_v14, %v4104_v14  ;;  %v4114_v7 = vmul.f32 %v4106_v45, %v4106_v45  ;;  %v4116_v46 = vmul.f32 %v4108_v50, %v4108_v50  ;;  %v4118_v62 = vmul.f32 %v4110_v38, %v4110_v38 }
 0x20c   :  { %v4136_v36 = vsub.f32 %v9025_v25, %v9592_v57  ;;  %v4138_v15 = vsub.f32 %v9039_v16, %v9592_v57  ;;  %v4140_v49 = vsub.f32 %v9053_v30, %v9592_v57  ;;  %v4142_v0 = vsub.f32 %v6359_v4, %v9592_v57 }
 0x20d   :  { %v4120_v61 = vadd.f32 %v4112_v55, %v4088_v17  ;;  %v4122_v19 = vadd.f32 %v4114_v7, %v4090_v13  ;;  %v4124_v26 = vadd.f32 %v4116_v46, %v4092_v35  ;;  %v4126_v6 = vadd.f32 %v4118_v62, %v4094_v29  ;;  %v6375_v7 = vld [vmem:[%s12207_s5 + $0x2b0] sm:$0xf] }
 0x20e   :  { %v4144_v24 = vmul.f32 %v4136_v36, %v4136_v36  ;;  %v4146_v28 = vmul.f32 %v4138_v15, %v4138_v15  ;;  %v4148_v14 = vmul.f32 %v4140_v49, %v4140_v49  ;;  %v4150_v45 = vmul.f32 %v4142_v0, %v4142_v0 }
 0x20f   :  { %v4168_v50 = vsub.f32 %v9032_v10, %v9592_v57  ;;  %v4170_v38 = vsub.f32 %v9046_v22, %v9592_v57  ;;  %v4172_v17 = vsub.f32 %v9060_v37, %v9592_v57  ;;  %v4174_v13 = vsub.f32 %v6367_v3, %v9592_v57  ;;  %v6330_v10 = vld [vmem:[%s12207_s5 + $0x148] sm:$0xff] }
 0x210   :  { %v4152_v35 = vadd.f32 %v4144_v24, %v4120_v61  ;;  %v4154_v29 = vadd.f32 %v4146_v28, %v4122_v19  ;;  %v4156_v4 = vadd.f32 %v4148_v14, %v4124_v26  ;;  %v4158_v55 = vadd.f32 %v4150_v45, %v4126_v6  ;;  %v6383_v28 = vld [vmem:[%s12207_s5 + $0x2f0] sm:$0xf] }
 0x211   :  { %v4176_v46 = vmul.f32 %v4168_v50, %v4168_v50  ;;  %v4178_v62 = vmul.f32 %v4170_v38, %v4170_v38  ;;  %v4180_v36 = vmul.f32 %v4172_v17, %v4172_v17  ;;  %v4182_v15 = vmul.f32 %v4174_v13, %v4174_v13 }
 0x212   :  { %v4200_v49 = vsub.f32 %v9081_v54, %v9592_v57  ;;  %v4202_v0 = vsub.f32 %v9095_v63, %v9592_v57  ;;  %v4204_v61 = vsub.f32 %v9109_v18, %v9592_v57  ;;  %v4206_v19 = vsub.f32 %v6375_v7, %v9592_v57  ;;  %v9977_v54 = vld [vmem:[%s12207_s5 + $0xc8] sm:$0xff] }
 0x213   :  { %v4184_v26 = vadd.f32 %v4176_v46, %v4152_v35  ;;  %v4186_v6 = vadd.f32 %v4178_v62, %v4154_v29  ;;  %v4188_v3 = vadd.f32 %v4180_v36, %v4156_v4  ;;  %v4190_v24 = vadd.f32 %v4182_v15, %v4158_v55  ;;  %v6391_v62 = vld [vmem:[%s12207_s5 + $0x330] sm:$0xf] }
 0x214   :  { %v4208_v14 = vmul.f32 %v4200_v49, %v4200_v49  ;;  %v4210_v45 = vmul.f32 %v4202_v0, %v4202_v0  ;;  %v4212_v50 = vmul.f32 %v4204_v61, %v4204_v61  ;;  %v4214_v38 = vmul.f32 %v4206_v19, %v4206_v19 }
 0x215   :  { %v4232_v17 = vsub.f32 %v9088_v58, %v9592_v57  ;;  %v4234_v13 = vsub.f32 %v9102_v1, %v9592_v57  ;;  %v4236_v35 = vsub.f32 %v9116_v34, %v9592_v57  ;;  %v4238_v29 = vsub.f32 %v6383_v28, %v9592_v57 }
 0x216   :  { %v4216_v4 = vadd.f32 %v4208_v14, %v4184_v26  ;;  %v4218_v55 = vadd.f32 %v4210_v45, %v4186_v6  ;;  %v4220_v7 = vadd.f32 %v4212_v50, %v4188_v3  ;;  %v4222_v46 = vadd.f32 %v4214_v38, %v4190_v24  ;;  %v6399_v45 = vld [vmem:[%s12207_s5 + $0x370] sm:$0xf] }
 0x217   :  { %v4240_v36 = vmul.f32 %v4232_v17, %v4232_v17  ;;  %v4242_v15 = vmul.f32 %v4234_v13, %v4234_v13  ;;  %v4244_v49 = vmul.f32 %v4236_v35, %v4236_v35  ;;  %v4246_v0 = vmul.f32 %v4238_v29, %v4238_v29 }
 0x218   :  { %v4264_v61 = vsub.f32 %v9137_v51, %v9592_v57  ;;  %v4266_v19 = vsub.f32 %v9151_v11, %v9592_v57  ;;  %v4268_v26 = vsub.f32 %v9165_v42, %v9592_v57  ;;  %v4270_v6 = vsub.f32 %v6391_v62, %v9592_v57 }
 0x219   :  { %v4248_v3 = vadd.f32 %v4240_v36, %v4216_v4  ;;  %v4250_v24 = vadd.f32 %v4242_v15, %v4218_v55  ;;  %v4252_v28 = vadd.f32 %v4244_v49, %v4220_v7  ;;  %v4254_v14 = vadd.f32 %v4246_v0, %v4222_v46  ;;  %v6407_v15 = vld [vmem:[%s12207_s5 + $0x3b0] sm:$0xf] }
 0x21a   :  { %v4272_v50 = vmul.f32 %v4264_v61, %v4264_v61  ;;  %v4274_v38 = vmul.f32 %v4266_v19, %v4266_v19  ;;  %v4276_v17 = vmul.f32 %v4268_v26, %v4268_v26  ;;  %v4278_v13 = vmul.f32 %v4270_v6, %v4270_v6  ;;  %v12359_v6 = vld [vmem:[#allocation28_spill] sm:$0xff] }
 0x21b   :  { %v4296_v35 = vsub.f32 %v9144_v21, %v9592_v57  ;;  %v4298_v29 = vsub.f32 %v9158_v8, %v9592_v57  ;;  %v4300_v4 = vsub.f32 %v9172_v43, %v9592_v57  ;;  %v4302_v55 = vsub.f32 %v6399_v45, %v9592_v57  ;;  %v12360_v45 = vld [vmem:[#allocation30_spill] sm:$0xff] }
 0x21c   :  { %v4280_v7 = vadd.f32 %v4272_v50, %v4248_v3  ;;  %v4282_v46 = vadd.f32 %v4274_v38, %v4250_v24  ;;  %v4284_v62 = vadd.f32 %v4276_v17, %v4252_v28  ;;  %v4286_v36 = vadd.f32 %v4278_v13, %v4254_v14  ;;  %v6415_v17 = vld [vmem:[%s12207_s5 + $0x3f0] sm:$0xf] }
 0x21d   :  { %v4304_v49 = vmul.f32 %v4296_v35, %v4296_v35  ;;  %v4306_v0 = vmul.f32 %v4298_v29, %v4298_v29  ;;  %v4308_v61 = vmul.f32 %v4300_v4, %v4300_v4  ;;  %v4310_v19 = vmul.f32 %v4302_v55, %v4302_v55  ;;  %v12361_v55 = vld [vmem:[#allocation27_spill] sm:$0xff] }
 0x21e   :  { %v4328_v26 = vsub.f32 %v9193_v32, %v9592_v57  ;;  %v4330_v43 = vsub.f32 %v12359_v6, %v9592_v57  ;;  %v4332_v3 = vsub.f32 %v12360_v45, %v9592_v57  ;;  %v4334_v24 = vsub.f32 %v6407_v15, %v9592_v57  ;;  %v12362_v32 = vld [vmem:[#allocation29_spill] sm:$0xff]  ;;  %v12363_v15 = vld [vmem:[#allocation31_spill] sm:$0xff] }
 0x21f   :  { %v4312_v28 = vadd.f32 %v4304_v49, %v4280_v7  ;;  %v4314_v14 = vadd.f32 %v4306_v0, %v4282_v46  ;;  %v4316_v50 = vadd.f32 %v4308_v61, %v4284_v62  ;;  %v4318_v38 = vadd.f32 %v4310_v19, %v4286_v36 }
 0x220   :  { %v4336_v13 = vmul.f32 %v4328_v26, %v4328_v26  ;;  %v4338_v35 = vmul.f32 %v4330_v43, %v4330_v43  ;;  %v4340_v29 = vmul.f32 %v4332_v3, %v4332_v3  ;;  %v4342_v4 = vmul.f32 %v4334_v24, %v4334_v24  ;;  %v6423_v3 = vld [vmem:[%s12207_s5 + $0x430] sm:$0xf] }
 0x221   :  { %v4360_v6 = vsub.f32 %v12361_v55, %v9592_v57  ;;  %v4362_v45 = vsub.f32 %v12362_v32, %v9592_v57  ;;  %v4364_v7 = vsub.f32 %v12363_v15, %v9592_v57  ;;  %v4366_v46 = vsub.f32 %v6415_v17, %v9592_v57  ;;  %v12364_v24 = vld [vmem:[#allocation32_spill] sm:$0xff]  ;;  %v12365_v55 = vld [vmem:[#allocation34_spill] sm:$0xff] }
 0x222   :  { %v4344_v62 = vadd.f32 %v4336_v13, %v4312_v28  ;;  %v4346_v36 = vadd.f32 %v4338_v35, %v4314_v14  ;;  %v4348_v49 = vadd.f32 %v4340_v29, %v4316_v50  ;;  %v4350_v0 = vadd.f32 %v4342_v4, %v4318_v38  ;;  %v12366_v17 = vld [vmem:[#allocation36_spill] sm:$0xff] }
 0x223   :  { %v4368_v61 = vmul.f32 %v4360_v6, %v4360_v6  ;;  %v4370_v19 = vmul.f32 %v4362_v45, %v4362_v45  ;;  %v4372_v43 = vmul.f32 %v4364_v7, %v4364_v7  ;;  %v4374_v26 = vmul.f32 %v4366_v46, %v4366_v46  ;;  %v6431_v7 = vld [vmem:[%s12207_s5 + $0x470] sm:$0xf]  ;;  %v12367_v46 = vld [vmem:[#allocation33_spill] sm:$0xff] }
 0x224   :  { %v4392_v32 = vsub.f32 %v12364_v24, %v9592_v57  ;;  %v4394_v15 = vsub.f32 %v12365_v55, %v9592_v57  ;;  %v4396_v28 = vsub.f32 %v12366_v17, %v9592_v57  ;;  %v4398_v14 = vsub.f32 %v6423_v3, %v9592_v57  ;;  %v12368_v24 = vld [vmem:[#allocation35_spill] sm:$0xff]  ;;  %v12369_v3 = vld [vmem:[#allocation37_spill] sm:$0xff] }
 0x225   :  { %v4376_v50 = vadd.f32 %v4368_v61, %v4344_v62  ;;  %v4378_v6 = vadd.f32 %v4370_v19, %v4346_v36  ;;  %v4380_v45 = vadd.f32 %v4372_v43, %v4348_v49  ;;  %v4382_v38 = vadd.f32 %v4374_v26, %v4350_v0 }
 0x226   :  { %v4400_v13 = vmul.f32 %v4392_v32, %v4392_v32  ;;  %v4402_v35 = vmul.f32 %v4394_v15, %v4394_v15  ;;  %v4404_v29 = vmul.f32 %v4396_v28, %v4396_v28  ;;  %v4406_v4 = vmul.f32 %v4398_v14, %v4398_v14  ;;  %v6437_v28 = vld [vmem:[%s12207_s5 + $0x4a0] sm:$0xff]  ;;  %v6439_v14 = vld [vmem:[%s12207_s5 + $0x4b0] sm:$0xf] }
 0x227   :  { %v4424_v55 = vsub.f32 %v12367_v46, %v9592_v57  ;;  %v4426_v17 = vsub.f32 %v12368_v24, %v9592_v57  ;;  %v4428_v62 = vsub.f32 %v12369_v3, %v9592_v57  ;;  %v4430_v36 = vsub.f32 %v6431_v7, %v9592_v57  ;;  %v12370_v3 = vld [vmem:[#allocation38_spill] sm:$0xff]  ;;  %v12375_v46 = vld [vmem:[#allocation44_spill] sm:$0xff] }
 0x228   :  { %v4408_v49 = vadd.f32 %v4400_v13, %v4376_v50  ;;  %v4410_v32 = vadd.f32 %v4402_v35, %v4378_v6  ;;  %v4412_v15 = vadd.f32 %v4404_v29, %v4380_v45  ;;  %v4414_v0 = vadd.f32 %v4406_v4, %v4382_v38  ;;  %v12371_v50 = vld [vmem:[#allocation39_spill] sm:$0xff]  ;;  %v6441_v29 = vld [vmem:[%s12207_s5 + $0x4c0] sm:$0xff] }
 0x229   :  { %v4432_v61 = vmul.f32 %v4424_v55, %v4424_v55  ;;  %v4434_v19 = vmul.f32 %v4426_v17, %v4426_v17  ;;  %v4436_v43 = vmul.f32 %v4428_v62, %v4428_v62  ;;  %v4438_v26 = vmul.f32 %v4430_v36, %v4430_v36 }
 0x22a   :  { %v4456_v24 = vsub.f32 %v12370_v3, %v9592_v57  ;;  %v4458_v6 = vsub.f32 %v12371_v50, %v9592_v57  ;;  %v4460_v45 = vsub.f32 %v6437_v28, %v9592_v57  ;;  %v4462_v55 = vsub.f32 %v6439_v14, %v9592_v57  ;;  %v6443_v50 = vld [vmem:[%s12207_s5 + $0x4d0] sm:$0xff]  ;;  %v6445_v28 = vld [vmem:[%s12207_s5 + $0x4e0] sm:$0xff] }
 0x22b   :  { %v4440_v17 = vadd.f32 %v4432_v61, %v4408_v49  ;;  %v4442_v38 = vadd.f32 %v4434_v19, %v4410_v32  ;;  %v4444_v13 = vadd.f32 %v4436_v43, %v4412_v15  ;;  %v4446_v35 = vadd.f32 %v4438_v26, %v4414_v0  ;;  %v6447_v49 = vld [vmem:[%s12207_s5 + $0x4f0] sm:$0xf]  ;;  %v6449_v3 = vld [vmem:[%s12207_s5 + $0x500] sm:$0xff] }
 0x22c   :  { %v4464_v4 = vmul.f32 %v4456_v24, %v4456_v24  ;;  %v4466_v7 = vmul.f32 %v4458_v6, %v4458_v6  ;;  %v4468_v62 = vmul.f32 %v4460_v45, %v4460_v45  ;;  %v4470_v36 = vmul.f32 %v4462_v55, %v4462_v55 }
 0x22d   :  { %v4488_v32 = vsub.f32 %v6441_v29, %v9592_v57  ;;  %v4490_v15 = vsub.f32 %v6443_v50, %v9592_v57  ;;  %v4492_v24 = vsub.f32 %v6445_v28, %v9592_v57  ;;  %v4494_v0 = vsub.f32 %v6447_v49, %v9592_v57  ;;  %v6451_v50 = vld [vmem:[%s12207_s5 + $0x510] sm:$0xff] }
 0x22e   :  { %v4472_v61 = vadd.f32 %v4464_v4, %v4440_v17  ;;  %v4474_v19 = vadd.f32 %v4466_v7, %v4442_v38  ;;  %v4476_v43 = vadd.f32 %v4468_v62, %v4444_v13  ;;  %v4478_v26 = vadd.f32 %v4470_v36, %v4446_v35  ;;  %v6455_v29 = vld [vmem:[%s12207_s5 + $0x530] sm:$0xf] }
 0x22f   :  { %v4496_v14 = vmul.f32 %v4488_v32, %v4488_v32  ;;  %v4498_v6 = vmul.f32 %v4490_v15, %v4490_v15  ;;  %v4500_v45 = vmul.f32 %v4492_v24, %v4492_v24  ;;  %v4502_v55 = vmul.f32 %v4494_v0, %v4494_v0  ;;  %v12372_v13 = vld [vmem:[#allocation40_spill] sm:$0xff]  ;;  %v6457_v0 = vld [vmem:[%s12207_s5 + $0x540] sm:$0xff] }
 0x230   :  { %v4520_v17 = vsub.f32 %v6449_v3, %v9592_v57  ;;  %v4522_v38 = vsub.f32 %v6451_v50, %v9592_v57  ;;  %v4524_v35 = vsub.f32 %v12372_v13, %v9592_v57  ;;  %v4526_v4 = vsub.f32 %v6455_v29, %v9592_v57  ;;  %v6459_v3 = vld [vmem:[%s12207_s5 + $0x550] sm:$0xff] }
 0x231   :  { %v4504_v7 = vadd.f32 %v4496_v14, %v4472_v61  ;;  %v4506_v62 = vadd.f32 %v4498_v6, %v4474_v19  ;;  %v4508_v36 = vadd.f32 %v4500_v45, %v4476_v43  ;;  %v4510_v28 = vadd.f32 %v4502_v55, %v4478_v26  ;;  %v6463_v50 = vld [vmem:[%s12207_s5 + $0x570] sm:$0xf]  ;;  %v12373_v43 = vld [vmem:[#allocation41_spill] sm:$0xff] }
 0x232   :  { %v4528_v49 = vmul.f32 %v4520_v17, %v4520_v17  ;;  %v4530_v32 = vmul.f32 %v4522_v38, %v4522_v38  ;;  %v4532_v15 = vmul.f32 %v4524_v35, %v4524_v35  ;;  %v4534_v24 = vmul.f32 %v4526_v4, %v4526_v4  ;;  %v6471_v13 = vld [vmem:[%s12207_s5 + $0x5b0] sm:$0xf] }
 0x233   :  { %v4552_v61 = vsub.f32 %v6457_v0, %v9592_v57  ;;  %v4554_v19 = vsub.f32 %v6459_v3, %v9592_v57  ;;  %v4556_v26 = vsub.f32 %v12373_v43, %v9592_v57  ;;  %v4558_v14 = vsub.f32 %v6463_v50, %v9592_v57  ;;  %v12374_v0 = vld [vmem:[#allocation42_spill] sm:$0xff] }
 0x234   :  { %v4536_v6 = vadd.f32 %v4528_v49, %v4504_v7  ;;  %v4538_v45 = vadd.f32 %v4530_v32, %v4506_v62  ;;  %v4540_v55 = vadd.f32 %v4532_v15, %v4508_v36  ;;  %v4542_v29 = vadd.f32 %v4534_v24, %v4510_v28  ;;  %v12376_v50 = vld [vmem:[#allocation46_spill] sm:$0xff] }
 0x235   :  { %v4560_v17 = vmul.f32 %v4552_v61, %v4552_v61  ;;  %v4562_v38 = vmul.f32 %v4554_v19, %v4554_v19  ;;  %v4564_v35 = vmul.f32 %v4556_v26, %v4556_v26  ;;  %v4566_v4 = vmul.f32 %v4558_v14, %v4558_v14  ;;  %v6479_v26 = vld [vmem:[%s12207_s5 + $0x5f0] sm:$0xf]  ;;  %v12377_v14 = vld [vmem:[#allocation43_spill] sm:$0xff] }
 0x236   :  { %v4584_v3 = vsub.f32 %v12374_v0, %v9592_v57  ;;  %v4586_v43 = vsub.f32 %v12375_v46, %v9592_v57  ;;  %v4588_v7 = vsub.f32 %v12376_v50, %v9592_v57  ;;  %v4590_v62 = vsub.f32 %v6471_v13, %v9592_v57  ;;  %v12378_v0 = vld [vmem:[#allocation45_spill] sm:$0xff]  ;;  %v12379_v13 = vld [vmem:[#allocation47_spill] sm:$0xff] }
 0x237   :  { %v4568_v36 = vadd.f32 %v4560_v17, %v4536_v6  ;;  %v4570_v28 = vadd.f32 %v4562_v38, %v4538_v45  ;;  %v4572_v49 = vadd.f32 %v4564_v35, %v4540_v55  ;;  %v4574_v32 = vadd.f32 %v4566_v4, %v4542_v29 }
 0x238   :  { %v4592_v15 = vmul.f32 %v4584_v3, %v4584_v3  ;;  %v4594_v24 = vmul.f32 %v4586_v43, %v4586_v43  ;;  %v4596_v61 = vmul.f32 %v4588_v7, %v4588_v7  ;;  %v4598_v19 = vmul.f32 %v4590_v62, %v4590_v62  ;;  %v6487_v7 = vld [vmem:[%s12207_s5 + $0x630] sm:$0xf] }
 0x239   :  { %v4616_v46 = vsub.f32 %v12377_v14, %v9592_v57  ;;  %v4618_v50 = vsub.f32 %v12378_v0, %v9592_v57  ;;  %v4620_v6 = vsub.f32 %v12379_v13, %v9592_v57  ;;  %v4622_v45 = vsub.f32 %v6479_v26, %v9592_v57  ;;  %v12380_v62 = vld [vmem:[#allocation48_spill] sm:$0xff]  ;;  %v12381_v14 = vld [vmem:[#allocation50_spill] sm:$0xff] }
 0x23a   :  { %v4600_v55 = vadd.f32 %v4592_v15, %v4568_v36  ;;  %v4602_v29 = vadd.f32 %v4594_v24, %v4570_v28  ;;  %v4604_v43 = vadd.f32 %v4596_v61, %v4572_v49  ;;  %v4606_v17 = vadd.f32 %v4598_v19, %v4574_v32  ;;  %v12382_v26 = vld [vmem:[#allocation52_spill] sm:$0xff] }
 0x23b   :  { %v4624_v38 = vmul.f32 %v4616_v46, %v4616_v46  ;;  %v4626_v35 = vmul.f32 %v4618_v50, %v4618_v50  ;;  %v4628_v4 = vmul.f32 %v4620_v6, %v4620_v6  ;;  %v4630_v3 = vmul.f32 %v4622_v45, %v4622_v45 }
 0x23c   :  { %v4648_v0 = vsub.f32 %v12380_v62, %v9592_v57  ;;  %v4650_v13 = vsub.f32 %v12381_v14, %v9592_v57  ;;  %v4652_v36 = vsub.f32 %v12382_v26, %v9592_v57  ;;  %v4654_v28 = vsub.f32 %v6487_v7, %v9592_v57  ;;  %v6495_v14 = vld [vmem:[%s12207_s5 + $0x670] sm:$0xf]  ;;  %v12384_v26 = vld [vmem:[#allocation49_spill] sm:$0xff] }
 0x23d   :  { %v4632_v49 = vadd.f32 %v4624_v38, %v4600_v55  ;;  %v4634_v46 = vadd.f32 %v4626_v35, %v4602_v29  ;;  %v4636_v50 = vadd.f32 %v4628_v4, %v4604_v43  ;;  %v12383_v32 = vrot.slane %v9590_v41, 1  ;;  %v12385_v55 = vld [vmem:[#allocation51_spill] sm:$0xff]  ;;  %v12386_v43 = vld [vmem:[#allocation53_spill] sm:$0xff] }
 0x23e   :  { %v4638_v24 = vadd.f32 %v4630_v3, %v4606_v17  ;;  %v4656_v61 = vmul.f32 %v4648_v0, %v4648_v0  ;;  %v4658_v19 = vmul.f32 %v4650_v13, %v4650_v13  ;;  %v4660_v6 = vmul.f32 %v4652_v36, %v4652_v36 }
 0x23f   :  { %v3869_v15 = vadd.f32 %v12383_v32, %v9590_v41  ;;  %v4662_v45 = vmul.f32 %v4654_v28, %v4654_v28  ;;  %v4680_v62 = vsub.f32 %v12384_v26, %v9592_v57  ;;  %v4682_v29 = vsub.f32 %v12385_v55, %v9592_v57  ;;  %v6503_v28 = vld [vmem:[%s12207_s5 + $0x6b0] sm:$0xf]  ;;  %v12387_v32 = vld [vmem:[#allocation54_spill] sm:$0xff] }
 0x240   :  { %v4684_v38 = vsub.f32 %v12386_v43, %v9592_v57  ;;  %v4664_v35 = vadd.f32 %v4656_v61, %v4632_v49  ;;  %v4666_v41 = vadd.f32 %v4658_v19, %v4634_v46  ;;  %v4668_v17 = vadd.f32 %v4660_v6, %v4636_v50  ;;  %v12388_v43 = vld [vmem:[#allocation56_spill] sm:$0xff]  ;;  %v12389_v46 = vld [vmem:[#allocation58_spill] sm:$0xff] }
 0x241   :  { %v4686_v0 = vsub.f32 %v6495_v14, %v9592_v57  ;;  %v4688_v13 = vmul.f32 %v4680_v62, %v4680_v62  ;;  %v4690_v4 = vmul.f32 %v4682_v29, %v4682_v29  ;;  %v9874_v7 = vmul.f32 0.0012755102, %v3869_v15  ;;  %v12390_v29 = vld [vmem:[#allocation55_spill] sm:$0xff] }
 0x242   :  { %v4692_v3 = vmul.f32 %v4684_v38, %v4684_v38  ;;  %v4670_v36 = vadd.f32 %v4662_v45, %v4638_v24  ;;  %v4712_v55 = vsub.f32 %v12387_v32, %v9592_v57  ;;  %v4714_v49 = vsub.f32 %v12388_v43, %v9592_v57  ;;  %v12391_v32 = vld [vmem:[#allocation57_spill] sm:$0xff]  ;;  %v12392_v43 = vld [vmem:[#allocation59_spill] sm:$0xff] }
 0x243   :  { %v4716_v50 = vsub.f32 %v12389_v46, %v9592_v57  ;;  %v4696_v14 = vadd.f32 %v4688_v13, %v4664_v35  ;;  %v4698_v62 = vadd.f32 %v4690_v4, %v4666_v41  ;;  %v4718_v15 = vsub.f32 %v6503_v28, %v9592_v57  ;;  %v9895_v35 = vld [vmem:[%s12207_s5 + $0x8] sm:$0xff]  ;;  %v9900_v13 = vld [vmem:[%s12207_s5 + $0x18] sm:$0xff] }
 0x244   :  { %v4700_v61 = vadd.f32 %v4692_v3, %v4668_v17  ;;  %v4694_v19 = vmul.f32 %v4686_v0, %v4686_v0  ;;  %v4720_v24 = vmul.f32 %v4712_v55, %v4712_v55  ;;  %v4722_v6 = vmul.f32 %v4714_v49, %v4714_v49  ;;  %v9905_v4 = vld [vmem:[%s12207_s5 + $0x28] sm:$0xff]  ;;  %v9910_v3 = vld [vmem:[%s12207_s5 + $0x38] sm:$0xf] }
 0x245   :  { %v4724_v45 = vmul.f32 %v4716_v50, %v4716_v50  ;;  %v4744_v38 = vsub.f32 %v12390_v29, %v9592_v57  ;;  %v4746_v26 = vsub.f32 %v12391_v32, %v9592_v57  ;;  %v4748_v8 = vsub.f32 %v12392_v43, %v9592_v57  ;;  %v9937_v43 = vld [vmem:[%s12207_s5 + $0x68] sm:$0xff] }
 0x246   :  { %v4702_v41 = vadd.f32 %v4694_v19, %v4670_v36  ;;  %v4728_v17 = vadd.f32 %v4720_v24, %v4696_v14  ;;  %v4730_v0 = vadd.f32 %v4722_v6, %v4698_v62  ;;  %v4726_v28 = vmul.f32 %v4718_v15, %v4718_v15  ;;  %v6511_v14 = vld [vmem:[%s12207_s5 + $0x6f0] sm:$0xf] }
 0x247   :  { %v4732_v55 = vadd.f32 %v4724_v45, %v4700_v61  ;;  %v4752_v36 = vmul.f32 %v4744_v38, %v4744_v38  ;;  %v4754_v49 = vmul.f32 %v4746_v26, %v4746_v26  ;;  %v4756_v50 = vmul.f32 %v4748_v8, %v4748_v8  ;;  %v9927_v45 = vld [vmem:[%s12207_s5 + $0x48] sm:$0xff]  ;;  %v9932_v38 = vld [vmem:[%s12207_s5 + $0x58] sm:$0xff] }
 0x248   :  { %v3881_v62 = vsub.f32 %v9895_v35, %v9874_v7  ;;  %v3883_v61 = vsub.f32 %v9900_v13, %v9874_v7  ;;  %v3885_v19 = vsub.f32 %v9905_v4, %v9874_v7  ;;  %v3887_v24 = vsub.f32 %v9910_v3, %v9874_v7 }
 0x249   :  { %v4750_v15 = vsub.f32 %v6511_v14, %v9592_v57  ;;  %v4760_v26 = vadd.f32 %v4752_v36, %v4728_v17  ;;  %v4762_v8 = vadd.f32 %v4754_v49, %v4730_v0  ;;  %v4764_v6 = vadd.f32 %v4756_v50, %v4732_v55  ;;  %v6304_v55 = vld [vmem:[%s12207_s5 + $0x78] sm:$0xf]  ;;  %v9945_v36 = vld [vmem:[%s12207_s5 + $0x88] sm:$0xff] }
 0x24a   :  { %v4734_v32 = vadd.f32 %v4726_v28, %v4702_v41  ;;  %v3889_v14 = vmul.f32 %v3881_v62, %v3881_v62  ;;  %v3891_v17 = vmul.f32 %v3883_v61, %v3883_v61  ;;  %v3893_v0 = vmul.f32 %v3885_v19, %v3885_v19  ;;  %v9950_v49 = vld [vmem:[%s12207_s5 + $0x98] sm:$0xff]  ;;  %v9959_v62 = vld [vmem:[%s12207_s5 + $0xa8] sm:$0xff] }
 0x24b   :  { %v4768_v50 = vadd.f32 %v4762_v8, %v4760_v26  ;;  %v3895_v29 = vmul.f32 %v3887_v24, %v3887_v24  ;;  %v3913_v41 = vsub.f32 %v9927_v45, %v9874_v7  ;;  %v3915_v28 = vsub.f32 %v9932_v38, %v9874_v7  ;;  %v6312_v8 = vld [vmem:[%s12207_s5 + $0xb8] sm:$0xf] }
 0x24c   :  { %v3917_v61 = vsub.f32 %v9937_v43, %v9874_v7  ;;  %v3919_v19 = vsub.f32 %v6304_v55, %v9874_v7  ;;  %v3945_v26 = vsub.f32 %v9945_v36, %v9874_v7  ;;  %v3947_v24 = vsub.f32 %v9950_v49, %v9874_v7 }
 0x24d   :  { %v4769_v46 = vadd.f32 %v4768_v50, %v4764_v6  ;;  %v3921_v21 = vmul.f32 %v3913_v41, %v3913_v41  ;;  %v3923_v42 = vmul.f32 %v3915_v28, %v3915_v28  ;;  %v3949_v11 = vsub.f32 %v9959_v62, %v9874_v7  ;;  %v9982_v28 = vld [vmem:[%s12207_s5 + $0xd8] sm:$0xff] }
 0x24e   :  { %v3925_v51 = vmul.f32 %v3917_v61, %v3917_v61  ;;  %v3927_v34 = vmul.f32 %v3919_v19, %v3919_v19  ;;  %v3951_v55 = vsub.f32 %v6312_v8, %v9874_v7  ;;  %v4758_v1 = vmul.f32 %v4750_v15, %v4750_v15  ;;  %v6328_v19 = vld [vmem:[%s12207_s5 + $0x138] sm:$0xf] }
 0x24f   :  { %v3929_v58 = vadd.f32 %v3921_v21, %v3889_v14  ;;  %v3931_v18 = vadd.f32 %v3923_v42, %v3891_v17  ;;  %v3953_v63 = vmul.f32 %v3945_v26, %v3945_v26  ;;  %v3955_v50 = vmul.f32 %v3947_v24, %v3947_v24  ;;  %v9987_v21 = vld [vmem:[%s12207_s5 + $0xe8] sm:$0xff] }
 0x250   :  { %v3933_v37 = vadd.f32 %v3925_v51, %v3893_v0  ;;  %v3935_v6 = vadd.f32 %v3927_v34, %v3895_v29  ;;  %v3957_v41 = vmul.f32 %v3949_v11, %v3949_v11  ;;  %v4766_v42 = vadd.f32 %v4758_v1, %v4734_v32  ;;  %v6320_v34 = vld [vmem:[%s12207_s5 + $0xf8] sm:$0xf]  ;;  %v9997_v51 = vld [vmem:[%s12207_s5 + $0x108] sm:$0xff] }
 0x251   :  { %v3959_v15 = vmul.f32 %v3951_v55, %v3951_v55  ;;  %v3961_v14 = vadd.f32 %v3953_v63, %v3929_v58  ;;  %v3977_v17 = vsub.f32 %v9977_v54, %v9874_v7  ;;  %v3963_v11 = vadd.f32 %v3955_v50, %v3931_v18  ;;  %v10006_v63 = vld [vmem:[%s12207_s5 + $0x118] sm:$0xff]  ;;  %v10011_v1 = vld [vmem:[%s12207_s5 + $0x128] sm:$0xff] }
 0x252   :  { %v3965_v29 = vadd.f32 %v3957_v41, %v3933_v37  ;;  %v3979_v0 = vsub.f32 %v9982_v28, %v9874_v7  ;;  %v3981_v58 = vsub.f32 %v9987_v21, %v9874_v7  ;;  %v3983_v18 = vsub.f32 %v6320_v34, %v9874_v7 }
 0x253   :  { %v3967_v32 = vadd.f32 %v3959_v15, %v3935_v6  ;;  %v3985_v37 = vmul.f32 %v3977_v17, %v3977_v17  ;;  %v4009_v61 = vsub.f32 %v9997_v51, %v9874_v7  ;;  %v4011_v8 = vsub.f32 %v10006_v63, %v9874_v7 }
 0x254   :  { %v3987_v26 = vmul.f32 %v3979_v0, %v3979_v0  ;;  %v3989_v24 = vmul.f32 %v3981_v58, %v3981_v58  ;;  %v4013_v55 = vsub.f32 %v10011_v1, %v9874_v7  ;;  %v3991_v50 = vmul.f32 %v3983_v18, %v3983_v18  ;;  %v6332_v0 = vld [vmem:[%s12207_s5 + $0x158] sm:$0xff] }
 0x255   :  { %v3993_v6 = vadd.f32 %v3985_v37, %v3961_v14  ;;  %v4015_v41 = vsub.f32 %v6328_v19, %v9874_v7  ;;  %v4017_v34 = vmul.f32 %v4009_v61, %v4009_v61  ;;  %v4019_v22 = vmul.f32 %v4011_v8, %v4011_v8  ;;  %v6334_v14 = vld [vmem:[%s12207_s5 + $0x168] sm:$0xff]  ;;  %v6336_v19 = vld [vmem:[%s12207_s5 + $0x178] sm:$0xf] }
 0x256   :  { %v3995_v15 = vadd.f32 %v3987_v26, %v3963_v11  ;;  %v3997_v17 = vadd.f32 %v3989_v24, %v3965_v29  ;;  %v4770_v58 = vsel %vm3848_vm3, %v4766_v42, 0.0  ;;  %v3999_v30 = vadd.f32 %v3991_v50, %v3967_v32  ;;  %v6338_v42 = vld [vmem:[%s12207_s5 + $0x188] sm:$0xff] }
 0x257   :  { %v4021_v16 = vmul.f32 %v4013_v55, %v4013_v55  ;;  %v4023_v18 = vmul.f32 %v4015_v41, %v4015_v41  ;;  %v4025_v11 = vadd.f32 %v4017_v34, %v3993_v6  ;;  %v4041_v37 = vsub.f32 %v6330_v10, %v9874_v7  ;;  %v6342_v10 = vld [vmem:[%s12207_s5 + $0x1a8] sm:$0xff] }
 0x258   :  { %v4027_v29 = vadd.f32 %v4019_v22, %v3995_v15  ;;  %v4043_v61 = vsub.f32 %v6332_v0, %v9874_v7  ;;  %v4771_v32 = vadd.f32 %v4770_v58, %v4769_v46  ;;  %v4045_v8 = vsub.f32 %v6334_v14, %v9874_v7  ;;  %v6340_v22 = vld [vmem:[%s12207_s5 + $0x198] sm:$0xff] }
 0x259   :  { %v4029_v26 = vadd.f32 %v4021_v16, %v3997_v17  ;;  %v4031_v24 = vadd.f32 %v4023_v18, %v3999_v30  ;;  %v4047_v55 = vsub.f32 %v6336_v19, %v9874_v7  ;;  %v4049_v50 = vmul.f32 %v4041_v37, %v4041_v37  ;;  %v6344_v16 = vld [vmem:[%s12207_s5 + $0x1b8] sm:$0xf]  ;;  %v6346_v18 = vld [vmem:[%s12207_s5 + $0x1c8] sm:$0xff] }
 0x25a   :  { %v4051_v6 = vmul.f32 %v4043_v61, %v4043_v61  ;;  %v4073_v41 = vsub.f32 %v6338_v42, %v9874_v7  ;;  %v4053_v30 = vmul.f32 %v4045_v8, %v4045_v8  ;;  %v4075_v46 = vsub.f32 %v6340_v22, %v9874_v7  ;;  %v6348_v42 = vld [vmem:[%s12207_s5 + $0x1d8] sm:$0xff] }
 0x25b   :  { %v4077_v15 = vsub.f32 %v6342_v10, %v9874_v7  ;;  %v4055_v17 = vmul.f32 %v4047_v55, %v4047_v55  ;;  %v4057_v34 = vadd.f32 %v4049_v50, %v4025_v11  ;;  %v4079_v58 = vsub.f32 %v6344_v16, %v9874_v7  ;;  %v6352_v55 = vld [vmem:[%s12207_s5 + $0x1f8] sm:$0xf] }
 0x25c   :  { %v4059_v0 = vadd.f32 %v4051_v6, %v4027_v29  ;;  %v4772_v14 = vrot.slane %v4771_v32, 4  ;;  %v4061_v37 = vadd.f32 %v4053_v30, %v4029_v26  ;;  %v4081_v61 = vmul.f32 %v4073_v41, %v4073_v41  ;;  %v6350_v29 = vld [vmem:[%s12207_s5 + $0x1e8] sm:$0xff] }
 0x25d   :  { %v4083_v19 = vmul.f32 %v4075_v46, %v4075_v46  ;;  %v4063_v8 = vadd.f32 %v4055_v17, %v4031_v24  ;;  %v4085_v22 = vmul.f32 %v4077_v15, %v4077_v15  ;;  %v4087_v10 = vmul.f32 %v4079_v58, %v4079_v58  ;;  %v6354_v24 = vld [vmem:[%s12207_s5 + $0x208] sm:$0xff]  ;;  %v6356_v15 = vld [vmem:[%s12207_s5 + $0x218] sm:$0xff] }
 0x25e   :  { %v4105_v11 = vsub.f32 %v6346_v18, %v9874_v7  ;;  %v4089_v26 = vadd.f32 %v4081_v61, %v4057_v34  ;;  %v4107_v6 = vsub.f32 %v6348_v42, %v9874_v7  ;;  %v4109_v30 = vsub.f32 %v6350_v29, %v9874_v7  ;;  %v6358_v17 = vld [vmem:[%s12207_s5 + $0x228] sm:$0xff] }
 0x25f   :  { %v4091_v50 = vadd.f32 %v4083_v19, %v4059_v0  ;;  %v4093_v41 = vadd.f32 %v4085_v22, %v4061_v37  ;;  %v4095_v16 = vadd.f32 %v4087_v10, %v4063_v8  ;;  %v4111_v46 = vsub.f32 %v6352_v55, %v9874_v7  ;;  %v6360_v37 = vld [vmem:[%s12207_s5 + $0x238] sm:$0xf] }
 0x260   :  { %v10082_v34 = vadd.f32 %v4772_v14, %v4771_v32  ;;  %v4113_v0 = vmul.f32 %v4105_v11, %v4105_v11  ;;  %v4115_v58 = vmul.f32 %v4107_v6, %v4107_v6  ;;  %v4137_v18 = vsub.f32 %v6354_v24, %v9874_v7  ;;  %v6362_v14 = vld [vmem:[%s12207_s5 + $0x248] sm:$0xff]  ;;  %v6364_v11 = vld [vmem:[%s12207_s5 + $0x258] sm:$0xff] }
 0x261   :  { %v4117_v61 = vmul.f32 %v4109_v30, %v4109_v30  ;;  %v4119_v19 = vmul.f32 %v4111_v46, %v4111_v46  ;;  %v4139_v42 = vsub.f32 %v6356_v15, %v9874_v7  ;;  %v4141_v8 = vsub.f32 %v6358_v17, %v9874_v7 }
 0x262   :  { %v4121_v22 = vadd.f32 %v4113_v0, %v4089_v26  ;;  %v4123_v10 = vadd.f32 %v4115_v58, %v4091_v50  ;;  %v4143_v29 = vsub.f32 %v6360_v37, %v9874_v7  ;;  %v4145_v32 = vmul.f32 %v4137_v18, %v4137_v18  ;;  %v6366_v26 = vld [vmem:[%s12207_s5 + $0x268] sm:$0xff]  ;;  %v6368_v50 = vld [vmem:[%s12207_s5 + $0x278] sm:$0xf] }
 0x263   :  { %v4125_v55 = vadd.f32 %v4117_v61, %v4093_v41  ;;  %v4127_v6 = vadd.f32 %v4119_v19, %v4095_v16  ;;  %v4147_v24 = vmul.f32 %v4139_v42, %v4139_v42  ;;  %v4149_v30 = vmul.f32 %v4141_v8, %v4141_v8  ;;  %v6370_v41 = vld [vmem:[%s12207_s5 + $0x288] sm:$0xff]  ;;  %v6372_v61 = vld [vmem:[%s12207_s5 + $0x298] sm:$0xff] }
 0x264   :  { %v4151_v46 = vmul.f32 %v4143_v29, %v4143_v29  ;;  %v4153_v15 = vadd.f32 %v4145_v32, %v4121_v22  ;;  %v4169_v17 = vsub.f32 %v6362_v14, %v9874_v7  ;;  %v4171_v0 = vsub.f32 %v6364_v11, %v9874_v7  ;;  %v6374_v19 = vld [vmem:[%s12207_s5 + $0x2a8] sm:$0xff] }
 0x265   :  { %v4155_v16 = vadd.f32 %v4147_v24, %v4123_v10  ;;  %v4157_v58 = vadd.f32 %v4149_v30, %v4125_v55  ;;  %v4173_v18 = vsub.f32 %v6366_v26, %v9874_v7  ;;  %v4175_v37 = vsub.f32 %v6368_v50, %v9874_v7  ;;  %v6376_v10 = vld [vmem:[%s12207_s5 + $0x2b8] sm:$0xf] }
 0x266   :  { %v4159_v42 = vadd.f32 %v4151_v46, %v4127_v6  ;;  %v4177_v8 = vmul.f32 %v4169_v17, %v4169_v17  ;;  %v4179_v22 = vmul.f32 %v4171_v0, %v4171_v0  ;;  %v4201_v29 = vsub.f32 %v6370_v41, %v9874_v7  ;;  %v6378_v6 = vld [vmem:[%s12207_s5 + $0x2c8] sm:$0xff]  ;;  %v6380_v46 = vld [vmem:[%s12207_s5 + $0x2d8] sm:$0xff] }
 0x267   :  { %v4181_v32 = vmul.f32 %v4173_v18, %v4173_v18  ;;  %v4183_v14 = vmul.f32 %v4175_v37, %v4175_v37  ;;  %v4203_v11 = vsub.f32 %v6372_v61, %v9874_v7  ;;  %v4205_v55 = vsub.f32 %v6374_v19, %v9874_v7 }
 0x268   :  { %v4185_v24 = vadd.f32 %v4177_v8, %v4153_v15  ;;  %v4187_v30 = vadd.f32 %v4179_v22, %v4155_v16  ;;  %v4207_v26 = vsub.f32 %v6376_v10, %v9874_v7  ;;  %v4209_v50 = vmul.f32 %v4201_v29, %v4201_v29  ;;  %v6382_v15 = vld [vmem:[%s12207_s5 + $0x2e8] sm:$0xff]  ;;  %v6384_v16 = vld [vmem:[%s12207_s5 + $0x2f8] sm:$0xf] }
 0x269   :  { %v4189_v17 = vadd.f32 %v4181_v32, %v4157_v58  ;;  %v4191_v0 = vadd.f32 %v4183_v14, %v4159_v42  ;;  %v4211_v41 = vmul.f32 %v4203_v11, %v4203_v11  ;;  %v4213_v18 = vmul.f32 %v4205_v55, %v4205_v55  ;;  %v6386_v58 = vld [vmem:[%s12207_s5 + $0x308] sm:$0xff]  ;;  %v6388_v32 = vld [vmem:[%s12207_s5 + $0x318] sm:$0xff] }
 0x26a   :  { %v4215_v37 = vmul.f32 %v4207_v26, %v4207_v26  ;;  %v4217_v61 = vadd.f32 %v4209_v50, %v4185_v24  ;;  %v4233_v19 = vsub.f32 %v6378_v6, %v9874_v7  ;;  %v4235_v8 = vsub.f32 %v6380_v46, %v9874_v7  ;;  %v6390_v14 = vld [vmem:[%s12207_s5 + $0x328] sm:$0xff] }
 0x26b   :  { %v4219_v42 = vadd.f32 %v4211_v41, %v4187_v30  ;;  %v4221_v22 = vadd.f32 %v4213_v18, %v4189_v17  ;;  %v4237_v29 = vsub.f32 %v6382_v15, %v9874_v7  ;;  %v4239_v10 = vsub.f32 %v6384_v16, %v9874_v7  ;;  %v6392_v30 = vld [vmem:[%s12207_s5 + $0x338] sm:$0xf] }
 0x26c   :  { %v4223_v11 = vadd.f32 %v4215_v37, %v4191_v0  ;;  %v4241_v55 = vmul.f32 %v4233_v19, %v4233_v19  ;;  %v4243_v24 = vmul.f32 %v4235_v8, %v4235_v8  ;;  %v4265_v26 = vsub.f32 %v6386_v58, %v9874_v7  ;;  %v6394_v0 = vld [vmem:[%s12207_s5 + $0x348] sm:$0xff]  ;;  %v6396_v37 = vld [vmem:[%s12207_s5 + $0x358] sm:$0xff] }
 0x26d   :  { %v4245_v50 = vmul.f32 %v4237_v29, %v4237_v29  ;;  %v4247_v6 = vmul.f32 %v4239_v10, %v4239_v10  ;;  %v4267_v46 = vsub.f32 %v6388_v32, %v9874_v7  ;;  %v4269_v17 = vsub.f32 %v6390_v14, %v9874_v7 }
 0x26e   :  { %v4249_v41 = vadd.f32 %v4241_v55, %v4217_v61  ;;  %v4251_v18 = vadd.f32 %v4243_v24, %v4219_v42  ;;  %v4271_v15 = vsub.f32 %v6392_v30, %v9874_v7  ;;  %v4273_v16 = vmul.f32 %v4265_v26, %v4265_v26  ;;  %v6398_v61 = vld [vmem:[%s12207_s5 + $0x368] sm:$0xff]  ;;  %v6400_v42 = vld [vmem:[%s12207_s5 + $0x378] sm:$0xf] }
 0x26f   :  { %v4253_v19 = vadd.f32 %v4245_v50, %v4221_v22  ;;  %v4255_v8 = vadd.f32 %v4247_v6, %v4223_v11  ;;  %v4275_v58 = vmul.f32 %v4267_v46, %v4267_v46  ;;  %v4277_v29 = vmul.f32 %v4269_v17, %v4269_v17  ;;  %v6402_v22 = vld [vmem:[%s12207_s5 + $0x388] sm:$0xff]  ;;  %v6404_v50 = vld [vmem:[%s12207_s5 + $0x398] sm:$0xff] }
 0x270   :  { %v4279_v10 = vmul.f32 %v4271_v15, %v4271_v15  ;;  %v4281_v32 = vadd.f32 %v4273_v16, %v4249_v41  ;;  %v4297_v14 = vsub.f32 %v6394_v0, %v9874_v7  ;;  %v4299_v55 = vsub.f32 %v6396_v37, %v9874_v7  ;;  %v6406_v6 = vld [vmem:[%s12207_s5 + $0x3a8] sm:$0xff] }
 0x271   :  { %v4283_v11 = vadd.f32 %v4275_v58, %v4251_v18  ;;  %v4285_v24 = vadd.f32 %v4277_v29, %v4253_v19  ;;  %v4301_v26 = vsub.f32 %v6398_v61, %v9874_v7  ;;  %v4303_v30 = vsub.f32 %v6400_v42, %v9874_v7  ;;  %v6408_v18 = vld [vmem:[%s12207_s5 + $0x3b8] sm:$0xf] }
 0x272   :  { %v4287_v46 = vadd.f32 %v4279_v10, %v4255_v8  ;;  %v4305_v17 = vmul.f32 %v4297_v14, %v4297_v14  ;;  %v4307_v41 = vmul.f32 %v4299_v55, %v4299_v55  ;;  %v4329_v15 = vsub.f32 %v6402_v22, %v9874_v7  ;;  %v6410_v8 = vld [vmem:[%s12207_s5 + $0x3c8] sm:$0xff]  ;;  %v6412_v10 = vld [vmem:[%s12207_s5 + $0x3d8] sm:$0xff] }
 0x273   :  { %v4309_v16 = vmul.f32 %v4301_v26, %v4301_v26  ;;  %v4311_v0 = vmul.f32 %v4303_v30, %v4303_v30  ;;  %v4331_v37 = vsub.f32 %v6404_v50, %v9874_v7  ;;  %v4333_v19 = vsub.f32 %v6406_v6, %v9874_v7 }
 0x274   :  { %v4313_v58 = vadd.f32 %v4305_v17, %v4281_v32  ;;  %v4315_v29 = vadd.f32 %v4307_v41, %v4283_v11  ;;  %v4335_v61 = vsub.f32 %v6408_v18, %v9874_v7  ;;  %v4337_v42 = vmul.f32 %v4329_v15, %v4329_v15  ;;  %v6414_v32 = vld [vmem:[%s12207_s5 + $0x3e8] sm:$0xff]  ;;  %v6416_v11 = vld [vmem:[%s12207_s5 + $0x3f8] sm:$0xf] }
 0x275   :  { %v4317_v14 = vadd.f32 %v4309_v16, %v4285_v24  ;;  %v4319_v55 = vadd.f32 %v4311_v0, %v4287_v46  ;;  %v4339_v22 = vmul.f32 %v4331_v37, %v4331_v37  ;;  %v4341_v26 = vmul.f32 %v4333_v19, %v4333_v19  ;;  %v6418_v24 = vld [vmem:[%s12207_s5 + $0x408] sm:$0xff]  ;;  %v6420_v16 = vld [vmem:[%s12207_s5 + $0x418] sm:$0xff] }
 0x276   :  { %v4343_v30 = vmul.f32 %v4335_v61, %v4335_v61  ;;  %v4345_v50 = vadd.f32 %v4337_v42, %v4313_v58  ;;  %v4361_v6 = vsub.f32 %v6410_v8, %v9874_v7  ;;  %v4363_v17 = vsub.f32 %v6412_v10, %v9874_v7  ;;  %v6422_v0 = vld [vmem:[%s12207_s5 + $0x428] sm:$0xff] }
 0x277   :  { %v4347_v46 = vadd.f32 %v4339_v22, %v4315_v29  ;;  %v4349_v41 = vadd.f32 %v4341_v26, %v4317_v14  ;;  %v4365_v15 = vsub.f32 %v6414_v32, %v9874_v7  ;;  %v4367_v18 = vsub.f32 %v6416_v11, %v9874_v7  ;;  %v6424_v29 = vld [vmem:[%s12207_s5 + $0x438] sm:$0xf] }
 0x278   :  { %v4351_v37 = vadd.f32 %v4343_v30, %v4319_v55  ;;  %v4369_v19 = vmul.f32 %v4361_v6, %v4361_v6  ;;  %v4371_v58 = vmul.f32 %v4363_v17, %v4363_v17  ;;  %v4393_v61 = vsub.f32 %v6418_v24, %v9874_v7  ;;  %v6426_v55 = vld [vmem:[%s12207_s5 + $0x448] sm:$0xff]  ;;  %v6428_v30 = vld [vmem:[%s12207_s5 + $0x458] sm:$0xff] }
 0x279   :  { %v4373_v42 = vmul.f32 %v4365_v15, %v4365_v15  ;;  %v4375_v8 = vmul.f32 %v4367_v18, %v4367_v18  ;;  %v4395_v10 = vsub.f32 %v6420_v16, %v9874_v7  ;;  %v4397_v14 = vsub.f32 %v6422_v0, %v9874_v7 }
 0x27a   :  { %v4377_v22 = vadd.f32 %v4369_v19, %v4345_v50  ;;  %v4379_v26 = vadd.f32 %v4371_v58, %v4347_v46  ;;  %v4399_v32 = vsub.f32 %v6424_v29, %v9874_v7  ;;  %v4401_v11 = vmul.f32 %v4393_v61, %v4393_v61  ;;  %v6430_v50 = vld [vmem:[%s12207_s5 + $0x468] sm:$0xff]  ;;  %v6432_v46 = vld [vmem:[%s12207_s5 + $0x478] sm:$0xf] }
 0x27b   :  { %v4381_v6 = vadd.f32 %v4373_v42, %v4349_v41  ;;  %v4383_v17 = vadd.f32 %v4375_v8, %v4351_v37  ;;  %v4403_v24 = vmul.f32 %v4395_v10, %v4395_v10  ;;  %v4405_v15 = vmul.f32 %v4397_v14, %v4397_v14  ;;  %v6434_v41 = vld [vmem:[%s12207_s5 + $0x488] sm:$0xff]  ;;  %v6436_v42 = vld [vmem:[%s12207_s5 + $0x498] sm:$0xff] }
 0x27c   :  { %v4407_v18 = vmul.f32 %v4399_v32, %v4399_v32  ;;  %v4409_v16 = vadd.f32 %v4401_v11, %v4377_v22  ;;  %v4425_v0 = vsub.f32 %v6426_v55, %v9874_v7  ;;  %v4427_v19 = vsub.f32 %v6428_v30, %v9874_v7  ;;  %v6438_v8 = vld [vmem:[%s12207_s5 + $0x4a8] sm:$0xff] }
 0x27d   :  { %v4411_v37 = vadd.f32 %v4403_v24, %v4379_v26  ;;  %v4413_v58 = vadd.f32 %v4405_v15, %v4381_v6  ;;  %v4429_v61 = vsub.f32 %v6430_v50, %v9874_v7  ;;  %v4431_v29 = vsub.f32 %v6432_v46, %v9874_v7  ;;  %v6440_v26 = vld [vmem:[%s12207_s5 + $0x4b8] sm:$0xf] }
 0x27e   :  { %v4415_v10 = vadd.f32 %v4407_v18, %v4383_v17  ;;  %v4433_v14 = vmul.f32 %v4425_v0, %v4425_v0  ;;  %v4435_v22 = vmul.f32 %v4427_v19, %v4427_v19  ;;  %v4457_v32 = vsub.f32 %v6434_v41, %v9874_v7  ;;  %v6442_v17 = vld [vmem:[%s12207_s5 + $0x4c8] sm:$0xff]  ;;  %v6444_v18 = vld [vmem:[%s12207_s5 + $0x4d8] sm:$0xff] }
 0x27f   :  { %v4437_v11 = vmul.f32 %v4429_v61, %v4429_v61  ;;  %v4439_v55 = vmul.f32 %v4431_v29, %v4431_v29  ;;  %v4459_v30 = vsub.f32 %v6436_v42, %v9874_v7  ;;  %v4461_v6 = vsub.f32 %v6438_v8, %v9874_v7 }
 0x280   :  { %v4441_v24 = vadd.f32 %v4433_v14, %v4409_v16  ;;  %v4443_v15 = vadd.f32 %v4435_v22, %v4411_v37  ;;  %v4463_v50 = vsub.f32 %v6440_v26, %v9874_v7  ;;  %v4465_v46 = vmul.f32 %v4457_v32, %v4457_v32  ;;  %v6446_v16 = vld [vmem:[%s12207_s5 + $0x4e8] sm:$0xff]  ;;  %v6448_v37 = vld [vmem:[%s12207_s5 + $0x4f8] sm:$0xf] }
 0x281   :  { %v4445_v0 = vadd.f32 %v4437_v11, %v4413_v58  ;;  %v4447_v19 = vadd.f32 %v4439_v55, %v4415_v10  ;;  %v4467_v41 = vmul.f32 %v4459_v30, %v4459_v30  ;;  %v4469_v61 = vmul.f32 %v4461_v6, %v4461_v6  ;;  %v6450_v58 = vld [vmem:[%s12207_s5 + $0x508] sm:$0xff]  ;;  %v6452_v11 = vld [vmem:[%s12207_s5 + $0x518] sm:$0xff] }
 0x282   :  { %v4471_v29 = vmul.f32 %v4463_v50, %v4463_v50  ;;  %v4473_v42 = vadd.f32 %v4465_v46, %v4441_v24  ;;  %v4489_v8 = vsub.f32 %v6442_v17, %v9874_v7  ;;  %v4491_v14 = vsub.f32 %v6444_v18, %v9874_v7  ;;  %v6454_v55 = vld [vmem:[%s12207_s5 + $0x528] sm:$0xff] }
 0x283   :  { %v4475_v10 = vadd.f32 %v4467_v41, %v4443_v15  ;;  %v4477_v22 = vadd.f32 %v4469_v61, %v4445_v0  ;;  %v4493_v32 = vsub.f32 %v6446_v16, %v9874_v7  ;;  %v4495_v26 = vsub.f32 %v6448_v37, %v9874_v7  ;;  %v6456_v15 = vld [vmem:[%s12207_s5 + $0x538] sm:$0xf] }
 0x284   :  { %v4479_v30 = vadd.f32 %v4471_v29, %v4447_v19  ;;  %v4497_v6 = vmul.f32 %v4489_v8, %v4489_v8  ;;  %v4499_v24 = vmul.f32 %v4491_v14, %v4491_v14  ;;  %v4521_v50 = vsub.f32 %v6450_v58, %v9874_v7  ;;  %v6458_v19 = vld [vmem:[%s12207_s5 + $0x548] sm:$0xff]  ;;  %v6460_v29 = vld [vmem:[%s12207_s5 + $0x558] sm:$0xff] }
 0x285   :  { %v4501_v46 = vmul.f32 %v4493_v32, %v4493_v32  ;;  %v4503_v17 = vmul.f32 %v4495_v26, %v4495_v26  ;;  %v4523_v18 = vsub.f32 %v6452_v11, %v9874_v7  ;;  %v4525_v0 = vsub.f32 %v6454_v55, %v9874_v7 }
 0x286   :  { %v4505_v41 = vadd.f32 %v4497_v6, %v4473_v42  ;;  %v4507_v61 = vadd.f32 %v4499_v24, %v4475_v10  ;;  %v4527_v16 = vsub.f32 %v6456_v15, %v9874_v7  ;;  %v4529_v37 = vmul.f32 %v4521_v50, %v4521_v50  ;;  %v6462_v42 = vld [vmem:[%s12207_s5 + $0x568] sm:$0xff]  ;;  %v6464_v10 = vld [vmem:[%s12207_s5 + $0x578] sm:$0xf] }
 0x287   :  { %v4509_v8 = vadd.f32 %v4501_v46, %v4477_v22  ;;  %v4511_v14 = vadd.f32 %v4503_v17, %v4479_v30  ;;  %v4531_v58 = vmul.f32 %v4523_v18, %v4523_v18  ;;  %v4533_v32 = vmul.f32 %v4525_v0, %v4525_v0  ;;  %v6466_v22 = vld [vmem:[%s12207_s5 + $0x588] sm:$0xff]  ;;  %v6468_v46 = vld [vmem:[%s12207_s5 + $0x598] sm:$0xff] }
 0x288   :  { %v4535_v26 = vmul.f32 %v4527_v16, %v4527_v16  ;;  %v4537_v11 = vadd.f32 %v4529_v37, %v4505_v41  ;;  %v4553_v55 = vsub.f32 %v6458_v19, %v9874_v7  ;;  %v4555_v6 = vsub.f32 %v6460_v29, %v9874_v7  ;;  %v6470_v17 = vld [vmem:[%s12207_s5 + $0x5a8] sm:$0xff] }
 0x289   :  { %v4539_v30 = vadd.f32 %v4531_v58, %v4507_v61  ;;  %v4541_v24 = vadd.f32 %v4533_v32, %v4509_v8  ;;  %v4557_v50 = vsub.f32 %v6462_v42, %v9874_v7  ;;  %v4559_v15 = vsub.f32 %v6464_v10, %v9874_v7  ;;  %v6472_v61 = vld [vmem:[%s12207_s5 + $0x5b8] sm:$0xf] }
 0x28a   :  { %v4543_v18 = vadd.f32 %v4535_v26, %v4511_v14  ;;  %v4561_v0 = vmul.f32 %v4553_v55, %v4553_v55  ;;  %v4563_v41 = vmul.f32 %v4555_v6, %v4555_v6  ;;  %v4585_v16 = vsub.f32 %v6466_v22, %v9874_v7  ;;  %v6474_v14 = vld [vmem:[%s12207_s5 + $0x5c8] sm:$0xff]  ;;  %v6476_v26 = vld [vmem:[%s12207_s5 + $0x5d8] sm:$0xff] }
 0x28b   :  { %v4565_v37 = vmul.f32 %v4557_v50, %v4557_v50  ;;  %v4567_v19 = vmul.f32 %v4559_v15, %v4559_v15  ;;  %v4587_v29 = vsub.f32 %v6468_v46, %v9874_v7  ;;  %v4589_v8 = vsub.f32 %v6470_v17, %v9874_v7 }
 0x28c   :  { %v4569_v58 = vadd.f32 %v4561_v0, %v4537_v11  ;;  %v4571_v32 = vadd.f32 %v4563_v41, %v4539_v30  ;;  %v4591_v42 = vsub.f32 %v6472_v61, %v9874_v7  ;;  %v4593_v10 = vmul.f32 %v4585_v16, %v4585_v16  ;;  %v6478_v11 = vld [vmem:[%s12207_s5 + $0x5e8] sm:$0xff]  ;;  %v6480_v30 = vld [vmem:[%s12207_s5 + $0x5f8] sm:$0xf] }
 0x28d   :  { %v4573_v55 = vadd.f32 %v4565_v37, %v4541_v24  ;;  %v4575_v6 = vadd.f32 %v4567_v19, %v4543_v18  ;;  %v4595_v22 = vmul.f32 %v4587_v29, %v4587_v29  ;;  %v4597_v50 = vmul.f32 %v4589_v8, %v4589_v8  ;;  %v6482_v24 = vld [vmem:[%s12207_s5 + $0x608] sm:$0xff]  ;;  %v6484_v37 = vld [vmem:[%s12207_s5 + $0x618] sm:$0xff] }
 0x28e   :  { %v4599_v15 = vmul.f32 %v4591_v42, %v4591_v42  ;;  %v4601_v46 = vadd.f32 %v4593_v10, %v4569_v58  ;;  %v4617_v17 = vsub.f32 %v6474_v14, %v9874_v7  ;;  %v4619_v0 = vsub.f32 %v6476_v26, %v9874_v7  ;;  %v6486_v19 = vld [vmem:[%s12207_s5 + $0x628] sm:$0xff]  ;;  %v6488_v14 = vld [vmem:[%s12207_s5 + $0x638] sm:$0xf] }
 0x28f   :  { %v4603_v18 = vadd.f32 %v4595_v22, %v4571_v32  ;;  %v4605_v41 = vadd.f32 %v4597_v50, %v4573_v55  ;;  %v4621_v16 = vsub.f32 %v6478_v11, %v9874_v7  ;;  %v4623_v61 = vsub.f32 %v6480_v30, %v9874_v7 }
 0x290   :  { %v4607_v29 = vadd.f32 %v4599_v15, %v4575_v6  ;;  %v4625_v8 = vmul.f32 %v4617_v17, %v4617_v17  ;;  %v4627_v58 = vmul.f32 %v4619_v0, %v4619_v0  ;;  %v4649_v42 = vsub.f32 %v6482_v24, %v9874_v7  ;;  %v6490_v6 = vld [vmem:[%s12207_s5 + $0x648] sm:$0xff]  ;;  %v6492_v15 = vld [vmem:[%s12207_s5 + $0x658] sm:$0xff] }
 0x291   :  { %v4629_v10 = vmul.f32 %v4621_v16, %v4621_v16  ;;  %v4631_v32 = vmul.f32 %v4623_v61, %v4623_v61  ;;  %v4651_v26 = vsub.f32 %v6484_v37, %v9874_v7  ;;  %v4653_v55 = vsub.f32 %v6486_v19, %v9874_v7  ;;  %v6496_v37 = vld [vmem:[%s12207_s5 + $0x678] sm:$0xf] }
 0x292   :  { %v4633_v22 = vadd.f32 %v4625_v8, %v4601_v46  ;;  %v4635_v50 = vadd.f32 %v4627_v58, %v4603_v18  ;;  %v4655_v11 = vsub.f32 %v6488_v14, %v9874_v7  ;;  %v4657_v30 = vmul.f32 %v4649_v42, %v4649_v42  ;;  %v6494_v46 = vld [vmem:[%s12207_s5 + $0x668] sm:$0xff] }
 0x293   :  { %v4637_v17 = vadd.f32 %v4629_v10, %v4605_v41  ;;  %v4639_v0 = vadd.f32 %v4631_v32, %v4607_v29  ;;  %v4659_v24 = vmul.f32 %v4651_v26, %v4651_v26  ;;  %v4661_v16 = vmul.f32 %v4653_v55, %v4653_v55  ;;  %v6498_v41 = vld [vmem:[%s12207_s5 + $0x688] sm:$0xff]  ;;  %v6500_v32 = vld [vmem:[%s12207_s5 + $0x698] sm:$0xff] }
 0x294   :  { %v4663_v18 = vmul.f32 %v4655_v11, %v4655_v11  ;;  %v4665_v61 = vadd.f32 %v4657_v30, %v4633_v22  ;;  %v4681_v19 = vsub.f32 %v6490_v6, %v9874_v7  ;;  %v4683_v8 = vsub.f32 %v6492_v15, %v9874_v7  ;;  %v6502_v14 = vld [vmem:[%s12207_s5 + $0x6a8] sm:$0xff]  ;;  %v6504_v6 = vld [vmem:[%s12207_s5 + $0x6b8] sm:$0xf] }
 0x295   :  { %v4667_v29 = vadd.f32 %v4659_v24, %v4635_v50  ;;  %v4669_v58 = vadd.f32 %v4661_v16, %v4637_v17  ;;  %v4685_v42 = vsub.f32 %v6494_v46, %v9874_v7  ;;  %v4687_v10 = vsub.f32 %v6496_v37, %v9874_v7 }
 0x296   :  { %v4671_v26 = vadd.f32 %v4663_v18, %v4639_v0  ;;  %v4689_v55 = vmul.f32 %v4681_v19, %v4681_v19  ;;  %v4691_v22 = vmul.f32 %v4683_v8, %v4683_v8  ;;  %v4713_v11 = vsub.f32 %v6498_v41, %v9874_v7  ;;  %v6506_v0 = vld [vmem:[%s12207_s5 + $0x6c8] sm:$0xff]  ;;  %v6508_v18 = vld [vmem:[%s12207_s5 + $0x6d8] sm:$0xff] }
 0x297   :  { %v4693_v30 = vmul.f32 %v4685_v42, %v4685_v42  ;;  %v4695_v50 = vmul.f32 %v4687_v10, %v4687_v10  ;;  %v4715_v15 = vsub.f32 %v6500_v32, %v9874_v7  ;;  %v4717_v17 = vsub.f32 %v6502_v14, %v9874_v7  ;;  %v6512_v32 = vld [vmem:[%s12207_s5 + $0x6f8] sm:$0xf] }
 0x298   :  { %v4697_v24 = vadd.f32 %v4689_v55, %v4665_v61  ;;  %v4699_v16 = vadd.f32 %v4691_v22, %v4667_v29  ;;  %v4719_v46 = vsub.f32 %v6504_v6, %v9874_v7  ;;  %v4721_v37 = vmul.f32 %v4713_v11, %v4713_v11  ;;  %v6510_v61 = vld [vmem:[%s12207_s5 + $0x6e8] sm:$0xff] }
 0x299   :  { %v4701_v19 = vadd.f32 %v4693_v30, %v4669_v58  ;;  %v4703_v8 = vadd.f32 %v4695_v50, %v4671_v26  ;;  %v4723_v41 = vmul.f32 %v4715_v15, %v4715_v15  ;;  %v4725_v42 = vmul.f32 %v4717_v17, %v4717_v17 }
 0x29a   :  { %v4727_v29 = vmul.f32 %v4719_v46, %v4719_v46  ;;  %v4729_v10 = vadd.f32 %v4721_v37, %v4697_v24  ;;  %v4745_v14 = vsub.f32 %v6506_v0, %v9874_v7  ;;  %v4747_v55 = vsub.f32 %v6508_v18, %v9874_v7 }
 0x29b   :  { %v4731_v22 = vadd.f32 %v4723_v41, %v4699_v16  ;;  %v4733_v11 = vadd.f32 %v4725_v42, %v4701_v19  ;;  %v4749_v58 = vsub.f32 %v6510_v61, %v9874_v7  ;;  %v4751_v26 = vsub.f32 %v6512_v32, %v9874_v7 }
 0x29c   :  { %v4735_v30 = vadd.f32 %v4727_v29, %v4703_v8  ;;  %v4753_v50 = vmul.f32 %v4745_v14, %v4745_v14  ;;  %v4755_v6 = vmul.f32 %v4747_v55, %v4747_v55  ;;  %v4774_v17 = vrot.slane %v10082_v34, 2 }
 0x29d   :  { %v4757_v15 = vmul.f32 %v4749_v58, %v4749_v58  ;;  %v4759_v24 = vmul.f32 %v4751_v26, %v4751_v26 }
 0x29e   :  { %v4761_v46 = vadd.f32 %v4753_v50, %v4729_v10  ;;  %v4763_v37 = vadd.f32 %v4755_v6, %v4731_v22  ;;  %v4775_v19 = vadd.f32 %v4774_v17, %v10082_v34  ;;  %v7480_v34 = vmov 1966171168  }
 0x29f   :  { %v4765_v25 = vadd.f32 %v4757_v15, %v4733_v11  ;;  %v4767_v20 = vadd.f32 %v4759_v24, %v4735_v30  ;;  %v4804_v15 = vlaneseq }
 0x2a0   :  { %v4778_v0 = vsel %vm157_vm1, %v4761_v46, 0.0  ;;  %v4779_v16 = vsel %vm157_vm1, %v4763_v37, 0.0  ;;  %v4776_v29 = vrot.slane %v4775_v19, 1 }
 0x2a1   :  { %v4780_v18 = vadd.f32 %v4779_v16, %v4778_v0  ;;  %v4781_v41 = vsel %vm157_vm1, %v4765_v25, 0.0  ;;  %v4783_v42 = vsel %vm164_vm2, %v4767_v20, 0.0  ;;  %v4802_v25 = vunpack.c.l.s4 %v7480_v34 }
 0x2a2   :  { %v4777_v10 = vadd.f32 %v4776_v29, %v4775_v19  ;;  %v10401_v20 = vshrl.u32 %v4804_v15, 7 }
 0x2a3   :  { %v4782_v8 = vadd.f32 %v4781_v41, %v4780_v18  ;;  %v4803_v17 = vunpack.c.0.s8 %v4802_v25  ;;  %v4797_v18 = vld [vmem:[%s12208_s3] sm:$0x3] }
 0x2a4   :  { %v4791_v11 = vmul.f32 0.0012755102, %v4777_v10  ;;  %v4821_v41 = vsub.s32 0, %v10401_v20 }
 0x2a5   :  { %v4784_v61 = vadd.f32 %v4783_v42, %v4782_v8  ;;  %v4806_v46 = vsub.s32 %v4803_v17, %v10401_v20  ;;  %v4825_v8 = vsub.s32 1, %v10401_v20  ;;  %v4817_v20 = vld [vmem:[%s12209_s4] sm:$0x3] }
 0x2a6   :  { %v4793_v30 = vadd.f32 1e-05, %v4791_v11 }
 0x2a7   :  { %v4785_v32 = vrot.slane %v4784_v61, 4 }
 0x2a8   :  { %7395 = vrsqrt.f32 %v4793_v30  ;;  %v12393_v30 = vld [vmem:[#allocation2_spill] sm:$0xff] }
 0x2a9   :  { %v4786_v14 = vadd.f32 %v4785_v32, %v4784_v61 }
 0x2ab   :  { %v4787_v55 = vrot.slane %v4786_v14, 2 }
 0x2ad   :  { %v4788_v22 = vadd.f32 %v4787_v55, %v4786_v14 }
 0x2af   :  { %v4789_v58 = vrot.slane %v4788_v22, 1 }
 0x2b1   :  { %v4790_v26 = vadd.f32 %v4789_v58, %v4788_v22 }
 0x2b2   :  { %v7396_v24 = vpop.eup %7395 }
 0x2b3   :  { %v4792_v50 = vmul.f32 0.0012755102, %v4790_v26 }
 0x2b5   :  { %v4794_v6 = vadd.f32 1e-05, %v4792_v50 }
 0x2b7   :  { %7397 = vrsqrt.f32 %v4794_v6  ;;  %v12394_v6 = vld [vmem:[#allocation3_spill] sm:$0xff] }
 0x2c1   :  { %v7398_v37 = vpop.eup %7397 }
 0x2c2   :  { %v4800_v0 = vcombine.low %v7396_v24, %v7398_v37 }
 0x2c4   :  { %v4807_v16 = vrot.slane %v4800_v0, %v4806_v46  ;;  %v12396_v0 = vld [vmem:[#allocation5_spill] sm:$0xff] }
 0x2c6   :  { %v4814_v19 = vrot.slane %v4807_v16, %v4806_v46 }
 0x2c8   :  { %v4816_v42 = vmul.f32 %v4814_v19, %v4797_v18  ;;  %v6536_v18 = vld [vmem:[%s12207_s5 + $0xb8] sm:$0xf] }
 0x2ca   :  { %v10409_v61 = vrot.slane %v4816_v42, %v4821_v41  ;;  %v10411_v29 = vrot.slane %v4816_v42, %v4825_v8  ;;  %v12397_v42 = vld [vmem:[#allocation6_spill] sm:$0xff] }
 0x2cc   :  { %v4829_v32 = vmul.f32 %v10409_v61, %v9592_v57  ;;  %v4830_v14 = vmul.f32 %v10411_v29, %v9874_v7  ;;  %v4850_v10 = vmul.f32 %v10409_v61, %v8632_v47  ;;  %v4851_v55 = vmul.f32 %v10411_v29, %v9895_v35  ;;  %v7401_v47 = vld [vmem:[%s12207_s5 + $0x30] sm:$0xf] }
 0x2cd   :  { %v4852_v22 = vmul.f32 %v10409_v61, %v8670_v59  ;;  %v4853_v11 = vmul.f32 %v10411_v29, %v9900_v13  ;;  %v4854_v58 = vmul.f32 %v10409_v61, %v8708_v12  ;;  %v4855_v57 = vmul.f32 %v10411_v29, %v9905_v4  ;;  %v6519_v12 = vld [vmem:[%s12207_s5 + $0x70] sm:$0xf]  ;;  %v6520_v13 = vld [vmem:[%s12207_s5 + $0x78] sm:$0xf] }
 0x2ce   :  { %v4833_v26 = vcombine.low %v4829_v32, %v4830_v14  ;;  %v4856_v7 = vmul.f32 %v7401_v47, %v10409_v61  ;;  %v4857_v35 = vmul.f32 %v10411_v29, %v9910_v3  ;;  %v4893_v59 = vmul.f32 %v10409_v61, %v8634_v48 }
 0x2cf   :  { %v4894_v4 = vmul.f32 %v9927_v45, %v10411_v29  ;;  %v4895_v50 = vmul.f32 %v10409_v61, %v12393_v30  ;;  %v4896_v3 = vmul.f32 %v9932_v38, %v10411_v29  ;;  %v4897_v48 = vmul.f32 %v10409_v61, %v12394_v6  ;;  %v6535_v45 = vld [vmem:[%s12207_s5 + $0xb0] sm:$0xf] }
 0x2d0   :  { %v4840_v34 = vrot.slane %v4833_v26, %v4806_v46  ;;  %v4898_v25 = vmul.f32 %v9937_v43, %v10411_v29  ;;  %v4899_v15 = vmul.f32 %v6519_v12, %v10409_v61  ;;  %v4900_v17 = vmul.f32 %v6520_v13, %v10411_v29  ;;  %v12395_v38 = vld [vmem:[#allocation4_spill] sm:$0xff]  ;;  %v6552_v12 = vld [vmem:[%s12207_s5 + $0xf8] sm:$0xf] }
 0x2d1   :  { %v4925_v24 = vmul.f32 %v10409_v61, %v12395_v38  ;;  %v4926_v37 = vmul.f32 %v9945_v36, %v10411_v29  ;;  %v4927_v43 = vmul.f32 %v10409_v61, %v12396_v0  ;;  %v4928_v16 = vmul.f32 %v9950_v49, %v10411_v29 }
 0x2d2   :  { %v4847_v19 = vrot.slane %v4840_v34, %v4806_v46  ;;  %v10474_v32 = vmul.f32 %v10409_v61, %v12397_v42  ;;  %v10478_v14 = vmul.f32 %v9959_v62, %v10411_v29  ;;  %v10481_v36 = vmul.f32 %v6535_v45, %v10409_v61  ;;  %v6551_v62 = vld [vmem:[%s12207_s5 + $0xf0] sm:$0xf] }
 0x2d3   :  { %v10484_v26 = vmul.f32 %v6536_v18, %v10411_v29  ;;  %v10488_v49 = vmul.f32 %v10409_v61, %v8802_v53  ;;  %v10492_v46 = vmul.f32 %v9977_v54, %v10411_v29  ;;  %v10496_v47 = vmul.f32 %v10409_v61, %v8841_v2 }
 0x2d4   :  { %v4849_v13 = vsub.f32 %v4817_v20, %v4847_v19  ;;  %v10506_v53 = vmul.f32 %v9982_v28, %v10411_v29  ;;  %v10510_v54 = vmul.f32 %v10409_v61, %v8874_v27  ;;  %v10514_v2 = vmul.f32 %v9987_v21, %v10411_v29  ;;  %v6567_v27 = vld [vmem:[%s12207_s5 + $0x130] sm:$0xf]  ;;  %v6568_v21 = vld [vmem:[%s12207_s5 + $0x138] sm:$0xf] }
 0x2d5   :  { %v10517_v30 = vmul.f32 %v6551_v62, %v10409_v61  ;;  %v10520_v6 = vmul.f32 %v6552_v12, %v10411_v29  ;;  %v10524_v34 = vmul.f32 %v10409_v61, %v8910_v39  ;;  %v10528_v28 = vmul.f32 %v9997_v51, %v10411_v29 }
 0x2d6   :  { %v10536_v45 = vrot.slane %v4849_v13, %v4821_v41  ;;  %v10538_v20 = vrot.slane %v4849_v13, %v4825_v8  ;;  %v10542_v39 = vmul.f32 %v10409_v61, %v8923_v56  ;;  %v10546_v51 = vmul.f32 %v10006_v63, %v10411_v29 }
 0x2d7   :  { %v10550_v38 = vmul.f32 %v10409_v61, %v8941_v60  ;;  %v10554_v0 = vmul.f32 %v10011_v1, %v10411_v29  ;;  %v10557_v41 = vmul.f32 %v6567_v27, %v10409_v61  ;;  %v10560_v8 = vmul.f32 %v6568_v21, %v10411_v29 }
 0x2d8   :  { %v4869_v56 = vadd.f32 %v10536_v45, %v4850_v10  ;;  %v4870_v18 = vadd.f32 %v10538_v20, %v4851_v55  ;;  %v4871_v63 = vadd.f32 %v10536_v45, %v4852_v22  ;;  %v4872_v19 = vadd.f32 %v10538_v20, %v4853_v11 }
 0x2d9   :  { %v4873_v60 = vadd.f32 %v10536_v45, %v4854_v58  ;;  %v4874_v42 = vadd.f32 %v10538_v20, %v4855_v57  ;;  %v4875_v1 = vadd.f32 %v10536_v45, %v4856_v7  ;;  %v4876_v62 = vadd.f32 %v10538_v20, %v4857_v35 }
 0x2da   :  { %4877 = vst [vmem:[%s12207_s5] sm:$0xff] %v4869_v56  ;;  %4878 = vst.msk [vmem:[%s12207_s5 + $0x8] sm:$0xff] %vm157_vm1, %v4870_v18  ;;  %v4901_v10 = vadd.f32 %v4893_v59, %v10536_v45  ;;  %v4902_v55 = vadd.f32 %v4894_v4, %v10538_v20  ;;  %v4903_v22 = vadd.f32 %v4895_v50, %v10536_v45 }
 0x2db   :  { %4879 = vst [vmem:[%s12207_s5 + $0x10] sm:$0xff] %v4871_v63  ;;  %4880 = vst.msk [vmem:[%s12207_s5 + $0x18] sm:$0xff] %vm157_vm1, %v4872_v19  ;;  %v4904_v11 = vadd.f32 %v4896_v3, %v10538_v20  ;;  %v4905_v58 = vadd.f32 %v4897_v48, %v10536_v45  ;;  %v4906_v57 = vadd.f32 %v4898_v25, %v10538_v20 }
 0x2dc   :  { %4881 = vst [vmem:[%s12207_s5 + $0x20] sm:$0xff] %v4873_v60  ;;  %4882 = vst.msk [vmem:[%s12207_s5 + $0x28] sm:$0xff] %vm157_vm1, %v4874_v42  ;;  %v4907_v7 = vadd.f32 %v4899_v15, %v10536_v45  ;;  %v4908_v35 = vadd.f32 %v4900_v17, %v10538_v20  ;;  %v4933_v59 = vadd.f32 %v4925_v24, %v10536_v45 }
 0x2dd   :  { %4883 = vst [vmem:[%s12207_s5 + $0x30] sm:$0xf] %v4875_v1  ;;  %4884 = vst.msk [vmem:[%s12207_s5 + $0x38] sm:$0xf] %vm164_vm2, %v4876_v62  ;;  %v4934_v4 = vadd.f32 %v4926_v37, %v10538_v20  ;;  %v4935_v50 = vadd.f32 %v4927_v43, %v10536_v45  ;;  %v4936_v3 = vadd.f32 %v4928_v16, %v10538_v20  ;;  %v6599_v1 = vld [vmem:[%s12207_s5 + $0x1b0] sm:$0xf] }
 0x2de   :  { %6521 = vst [vmem:[%s12207_s5 + $0x40] sm:$0xff] %v4901_v10  ;;  %6522 = vst.msk [vmem:[%s12207_s5 + $0x48] sm:$0xff] %vm157_vm1, %v4902_v55  ;;  %v4937_v48 = vadd.f32 %v10474_v32, %v10536_v45  ;;  %v4938_v25 = vadd.f32 %v10478_v14, %v10538_v20  ;;  %v4939_v15 = vadd.f32 %v10481_v36, %v10536_v45  ;;  %v6600_v62 = vld [vmem:[%s12207_s5 + $0x1b8] sm:$0xf]  ;;  %v7405_v55 = vld [vmem:[%s12207_s5 + $0x188] sm:$0xff] }
 0x2df   :  { %6523 = vst [vmem:[%s12207_s5 + $0x50] sm:$0xff] %v4903_v22  ;;  %6524 = vst.msk [vmem:[%s12207_s5 + $0x58] sm:$0xff] %vm157_vm1, %v4904_v11  ;;  %v4940_v17 = vadd.f32 %v10484_v26, %v10538_v20  ;;  %v4965_v24 = vadd.f32 %v10488_v49, %v10536_v45  ;;  %v4966_v37 = vadd.f32 %v10492_v46, %v10538_v20 }
 0x2e0   :  { %6525 = vst [vmem:[%s12207_s5 + $0x60] sm:$0xff] %v4905_v58  ;;  %6526 = vst.msk [vmem:[%s12207_s5 + $0x68] sm:$0xff] %vm157_vm1, %v4906_v57  ;;  %v4967_v43 = vadd.f32 %v10496_v47, %v10536_v45  ;;  %v4968_v16 = vadd.f32 %v10506_v53, %v10538_v20  ;;  %v4969_v32 = vadd.f32 %v10510_v54, %v10536_v45  ;;  %v7406_v58 = vld [vmem:[%s12207_s5 + $0x198] sm:$0xff] }
 0x2e1   :  { %6527 = vst [vmem:[%s12207_s5 + $0x70] sm:$0xf] %v4907_v7  ;;  %6528 = vst.msk [vmem:[%s12207_s5 + $0x78] sm:$0xf] %vm164_vm2, %v4908_v35  ;;  %v4970_v14 = vadd.f32 %v10514_v2, %v10538_v20  ;;  %v4971_v36 = vadd.f32 %v10517_v30, %v10536_v45  ;;  %v4972_v26 = vadd.f32 %v10520_v6, %v10538_v20  ;;  %v6583_v30 = vld [vmem:[%s12207_s5 + $0x170] sm:$0xf] }
 0x2e2   :  { %6537 = vst [vmem:[%s12207_s5 + $0x80] sm:$0xff] %v4933_v59  ;;  %6538 = vst.msk [vmem:[%s12207_s5 + $0x88] sm:$0xff] %vm157_vm1, %v4934_v4  ;;  %v4997_v49 = vadd.f32 %v10524_v34, %v10536_v45  ;;  %v4998_v46 = vadd.f32 %v10528_v28, %v10538_v20  ;;  %v4999_v47 = vadd.f32 %v10542_v39, %v10536_v45  ;;  %v6584_v6 = vld [vmem:[%s12207_s5 + $0x178] sm:$0xf]  ;;  %v7402_v28 = vld [vmem:[%s12207_s5 + $0x148] sm:$0xff] }
 0x2e3   :  { %6539 = vst [vmem:[%s12207_s5 + $0x90] sm:$0xff] %v4935_v50  ;;  %6540 = vst.msk [vmem:[%s12207_s5 + $0x98] sm:$0xff] %vm157_vm1, %v4936_v3  ;;  %v5000_v12 = vadd.f32 %v10546_v51, %v10538_v20  ;;  %v5001_v13 = vadd.f32 %v10550_v38, %v10536_v45  ;;  %v5002_v53 = vadd.f32 %v10554_v0, %v10538_v20  ;;  %v7403_v39 = vld [vmem:[%s12207_s5 + $0x158] sm:$0xff] }
 0x2e4   :  { %6541 = vst [vmem:[%s12207_s5 + $0xa0] sm:$0xff] %v4937_v48  ;;  %6542 = vst.msk [vmem:[%s12207_s5 + $0xa8] sm:$0xff] %vm157_vm1, %v4938_v25  ;;  %v5003_v54 = vadd.f32 %v10557_v41, %v10536_v45  ;;  %v5004_v2 = vadd.f32 %v10560_v8, %v10538_v20  ;;  %v5021_v34 = vmul.f32 %v10409_v61, %v8920_v52 }
 0x2e5   :  { %6543 = vst [vmem:[%s12207_s5 + $0xb0] sm:$0xf] %v4939_v15  ;;  %6544 = vst.msk [vmem:[%s12207_s5 + $0xb8] sm:$0xf] %vm164_vm2, %v4940_v17  ;;  %v5022_v27 = vmul.f32 %v7402_v28, %v10411_v29  ;;  %v5023_v21 = vmul.f32 %v10409_v61, %v8930_v31  ;;  %v5024_v51 = vmul.f32 %v7403_v39, %v10411_v29  ;;  %v7404_v31 = vld [vmem:[%s12207_s5 + $0x168] sm:$0xff]  ;;  %v12399_v39 = vld [vmem:[#allocation8_spill] sm:$0xff] }
 0x2e6   :  { %6553 = vst [vmem:[%s12207_s5 + $0xc0] sm:$0xff] %v4965_v24  ;;  %6554 = vst.msk [vmem:[%s12207_s5 + $0xc8] sm:$0xff] %vm157_vm1, %v4966_v37  ;;  %v5025_v52 = vmul.f32 %v10409_v61, %v8948_v5  ;;  %v5026_v38 = vmul.f32 %v7404_v31, %v10411_v29  ;;  %v5027_v0 = vmul.f32 %v6583_v30, %v10409_v61  ;;  %v6615_v24 = vld [vmem:[%s12207_s5 + $0x1f0] sm:$0xf]  ;;  %v6616_v37 = vld [vmem:[%s12207_s5 + $0x1f8] sm:$0xf] }
 0x2e7   :  { %6555 = vst [vmem:[%s12207_s5 + $0xd0] sm:$0xff] %v4967_v43  ;;  %6556 = vst.msk [vmem:[%s12207_s5 + $0xd8] sm:$0xff] %vm157_vm1, %v4968_v16  ;;  %v5028_v41 = vmul.f32 %v6584_v6, %v10411_v29  ;;  %v5029_v8 = vadd.f32 %v5021_v34, %v10536_v45  ;;  %v5030_v56 = vadd.f32 %v5022_v27, %v10538_v20  ;;  %v7408_v16 = vld [vmem:[%s12207_s5 + $0x1c8] sm:$0xff]  ;;  %v6631_v27 = vld [vmem:[%s12207_s5 + $0x230] sm:$0xf] }
 0x2e8   :  { %6557 = vst [vmem:[%s12207_s5 + $0xe0] sm:$0xff] %v4969_v32  ;;  %6558 = vst.msk [vmem:[%s12207_s5 + $0xe8] sm:$0xff] %vm157_vm1, %v4970_v14  ;;  %v5031_v18 = vadd.f32 %v5023_v21, %v10536_v45  ;;  %v5032_v63 = vadd.f32 %v5024_v51, %v10538_v20  ;;  %v5033_v5 = vadd.f32 %v5025_v52, %v10536_v45  ;;  %v6632_v21 = vld [vmem:[%s12207_s5 + $0x238] sm:$0xf]  ;;  %v7411_v52 = vld [vmem:[%s12207_s5 + $0x208] sm:$0xff] }
 0x2e9   :  { %6559 = vst [vmem:[%s12207_s5 + $0xf0] sm:$0xf] %v4971_v36  ;;  %6560 = vst.msk [vmem:[%s12207_s5 + $0xf8] sm:$0xf] %vm164_vm2, %v4972_v26  ;;  %v5034_v19 = vadd.f32 %v5026_v38, %v10538_v20  ;;  %v5035_v60 = vadd.f32 %v5027_v0, %v10536_v45  ;;  %v5036_v42 = vadd.f32 %v5028_v41, %v10538_v20  ;;  %v7409_v36 = vld [vmem:[%s12207_s5 + $0x1d8] sm:$0xff]  ;;  %v12400_v38 = vld [vmem:[#allocation10_spill] sm:$0xff] }
 0x2ea   :  { %6569 = vst [vmem:[%s12207_s5 + $0x100] sm:$0xff] %v4997_v49  ;;  %6570 = vst.msk [vmem:[%s12207_s5 + $0x108] sm:$0xff] %vm157_vm1, %v4998_v46  ;;  %v5053_v10 = vmul.f32 %v10409_v61, %v8969_v23  ;;  %v5054_v22 = vmul.f32 %v7405_v55, %v10411_v29  ;;  %v5055_v11 = vmul.f32 %v10409_v61, %v8983_v9  ;;  %v7407_v9 = vld [vmem:[%s12207_s5 + $0x1a8] sm:$0xff]  ;;  %v7412_v41 = vld [vmem:[%s12207_s5 + $0x218] sm:$0xff] }
 0x2eb   :  { %6571 = vst [vmem:[%s12207_s5 + $0x110] sm:$0xff] %v4999_v47  ;;  %6572 = vst.msk [vmem:[%s12207_s5 + $0x118] sm:$0xff] %vm157_vm1, %v5000_v12  ;;  %v5056_v57 = vmul.f32 %v7406_v58, %v10411_v29  ;;  %v5057_v23 = vmul.f32 %v10409_v61, %v8997_v44  ;;  %v5058_v7 = vmul.f32 %v7407_v9, %v10411_v29  ;;  %v7410_v49 = vld [vmem:[%s12207_s5 + $0x1e8] sm:$0xff]  ;;  %v12402_v9 = vld [vmem:[#allocation9_spill] sm:$0xff] }
 0x2ec   :  { %6573 = vst [vmem:[%s12207_s5 + $0x120] sm:$0xff] %v5001_v13  ;;  %6574 = vst.msk [vmem:[%s12207_s5 + $0x128] sm:$0xff] %vm157_vm1, %v5002_v53  ;;  %v5059_v35 = vmul.f32 %v6599_v1, %v10409_v61  ;;  %v5060_v59 = vmul.f32 %v6600_v62, %v10411_v29  ;;  %v5061_v4 = vadd.f32 %v5053_v10, %v10536_v45 }
 0x2ed   :  { %6575 = vst [vmem:[%s12207_s5 + $0x130] sm:$0xf] %v5003_v54  ;;  %6576 = vst.msk [vmem:[%s12207_s5 + $0x138] sm:$0xf] %vm164_vm2, %v5004_v2  ;;  %v5062_v50 = vadd.f32 %v5054_v22, %v10538_v20  ;;  %v5063_v3 = vadd.f32 %v5055_v11, %v10536_v45  ;;  %v5064_v48 = vadd.f32 %v5056_v57, %v10538_v20  ;;  %v6647_v57 = vld [vmem:[%s12207_s5 + $0x270] sm:$0xf] }
 0x2ee   :  { %6585 = vst [vmem:[%s12207_s5 + $0x140] sm:$0xff] %v5029_v8  ;;  %6586 = vst.msk [vmem:[%s12207_s5 + $0x148] sm:$0xff] %vm157_vm1, %v5030_v56  ;;  %v5065_v44 = vadd.f32 %v5057_v23, %v10536_v45  ;;  %v5066_v25 = vadd.f32 %v5058_v7, %v10538_v20  ;;  %v5067_v15 = vadd.f32 %v5059_v35, %v10536_v45  ;;  %v12401_v56 = vld [vmem:[#allocation12_spill] sm:$0xff]  ;;  %v6648_v23 = vld [vmem:[%s12207_s5 + $0x278] sm:$0xf] }
 0x2ef   :  { %6587 = vst [vmem:[%s12207_s5 + $0x150] sm:$0xff] %v5031_v18  ;;  %6588 = vst.msk [vmem:[%s12207_s5 + $0x158] sm:$0xff] %vm157_vm1, %v5032_v63  ;;  %v5068_v17 = vadd.f32 %v5060_v59, %v10538_v20  ;;  %v5085_v43 = vmul.f32 %v10409_v61, %v8976_v33  ;;  %v5086_v32 = vmul.f32 %v7408_v16, %v10411_v29  ;;  %v12398_v33 = vld [vmem:[#allocation7_spill] sm:$0xff] }
 0x2f0   :  { %6589 = vst [vmem:[%s12207_s5 + $0x160] sm:$0xff] %v5033_v5  ;;  %6590 = vst.msk [vmem:[%s12207_s5 + $0x168] sm:$0xff] %vm157_vm1, %v5034_v19  ;;  %v5087_v14 = vmul.f32 %v10409_v61, %v8990_v40  ;;  %v5088_v26 = vmul.f32 %v7409_v36, %v10411_v29  ;;  %v5089_v40 = vmul.f32 %v10409_v61, %v12398_v33  ;;  %v7413_v63 = vld [vmem:[%s12207_s5 + $0x228] sm:$0xff] }
 0x2f1   :  { %6591 = vst [vmem:[%s12207_s5 + $0x170] sm:$0xf] %v5035_v60  ;;  %6592 = vst.msk [vmem:[%s12207_s5 + $0x178] sm:$0xf] %vm164_vm2, %v5036_v42  ;;  %v5090_v46 = vmul.f32 %v7410_v49, %v10411_v29  ;;  %v5091_v47 = vmul.f32 %v6615_v24, %v10409_v61  ;;  %v5092_v12 = vmul.f32 %v6616_v37, %v10411_v29  ;;  %v7414_v35 = vld [vmem:[%s12207_s5 + $0x248] sm:$0xff] }
 0x2f2   :  { %6601 = vst [vmem:[%s12207_s5 + $0x180] sm:$0xff] %v5061_v4  ;;  %6602 = vst.msk [vmem:[%s12207_s5 + $0x188] sm:$0xff] %vm157_vm1, %v5062_v50  ;;  %v5093_v13 = vadd.f32 %v5085_v43, %v10536_v45  ;;  %v5094_v53 = vadd.f32 %v5086_v32, %v10538_v20  ;;  %v5095_v54 = vadd.f32 %v5087_v14, %v10536_v45  ;;  %v12403_v4 = vld [vmem:[#allocation11_spill] sm:$0xff]  ;;  %v6663_v49 = vld [vmem:[%s12207_s5 + $0x2b0] sm:$0xf] }
 0x2f3   :  { %6603 = vst [vmem:[%s12207_s5 + $0x190] sm:$0xff] %v5063_v3  ;;  %6604 = vst.msk [vmem:[%s12207_s5 + $0x198] sm:$0xff] %vm157_vm1, %v5064_v48  ;;  %v5096_v2 = vadd.f32 %v5088_v26, %v10538_v20  ;;  %v5097_v30 = vadd.f32 %v5089_v40, %v10536_v45  ;;  %v5098_v6 = vadd.f32 %v5090_v46, %v10538_v20  ;;  %v7415_v3 = vld [vmem:[%s12207_s5 + $0x258] sm:$0xff] }
 0x2f4   :  { %6605 = vst [vmem:[%s12207_s5 + $0x1a0] sm:$0xff] %v5065_v44  ;;  %6606 = vst.msk [vmem:[%s12207_s5 + $0x1a8] sm:$0xff] %vm157_vm1, %v5066_v25  ;;  %v5099_v34 = vadd.f32 %v5091_v47, %v10536_v45  ;;  %v5100_v28 = vadd.f32 %v5092_v12, %v10538_v20  ;;  %v5117_v51 = vmul.f32 %v10409_v61, %v12399_v39  ;;  %v12404_v44 = vld [vmem:[#allocation13_spill] sm:$0xff]  ;;  %v12405_v47 = vld [vmem:[#allocation14_spill] sm:$0xff] }
 0x2f5   :  { %6607 = vst [vmem:[%s12207_s5 + $0x1b0] sm:$0xf] %v5067_v15  ;;  %6608 = vst.msk [vmem:[%s12207_s5 + $0x1b8] sm:$0xf] %vm164_vm2, %v5068_v17  ;;  %v5118_v31 = vmul.f32 %v7411_v52, %v10411_v29  ;;  %v5119_v0 = vmul.f32 %v10409_v61, %v12400_v38  ;;  %v5120_v8 = vmul.f32 %v7412_v41, %v10411_v29  ;;  %v7416_v15 = vld [vmem:[%s12207_s5 + $0x268] sm:$0xff] }
 0x2f6   :  { %6617 = vst [vmem:[%s12207_s5 + $0x1c0] sm:$0xff] %v5093_v13  ;;  %6618 = vst.msk [vmem:[%s12207_s5 + $0x1c8] sm:$0xff] %vm157_vm1, %v5094_v53  ;;  %v5121_v18 = vmul.f32 %v10409_v61, %v12401_v56  ;;  %v5122_v5 = vmul.f32 %v7413_v63, %v10411_v29  ;;  %v5123_v19 = vmul.f32 %v6631_v27, %v10409_v61  ;;  %v6664_v46 = vld [vmem:[%s12207_s5 + $0x2b8] sm:$0xf]  ;;  %v7417_v13 = vld [vmem:[%s12207_s5 + $0x288] sm:$0xff] }
 0x2f7   :  { %6619 = vst [vmem:[%s12207_s5 + $0x1d0] sm:$0xff] %v5095_v54  ;;  %6620 = vst.msk [vmem:[%s12207_s5 + $0x1d8] sm:$0xff] %vm157_vm1, %v5096_v2  ;;  %v5124_v60 = vmul.f32 %v6632_v21, %v10411_v29  ;;  %v5125_v42 = vadd.f32 %v5117_v51, %v10536_v45  ;;  %v5126_v1 = vadd.f32 %v5118_v31, %v10538_v20  ;;  %v12406_v54 = vld [vmem:[#allocation16_spill] sm:$0xff]  ;;  %v7419_v27 = vld [vmem:[%s12207_s5 + $0x2a8] sm:$0xff] }
 0x2f8   :  { %6621 = vst [vmem:[%s12207_s5 + $0x1e0] sm:$0xff] %v5097_v30  ;;  %6622 = vst.msk [vmem:[%s12207_s5 + $0x1e8] sm:$0xff] %vm157_vm1, %v5098_v6  ;;  %v5127_v62 = vadd.f32 %v5119_v0, %v10536_v45  ;;  %v5128_v10 = vadd.f32 %v5120_v8, %v10538_v20  ;;  %v5129_v55 = vadd.f32 %v5121_v18, %v10536_v45  ;;  %v7418_v30 = vld [vmem:[%s12207_s5 + $0x298] sm:$0xff]  ;;  %v6679_v63 = vld [vmem:[%s12207_s5 + $0x2f0] sm:$0xf] }
 0x2f9   :  { %6623 = vst [vmem:[%s12207_s5 + $0x1f0] sm:$0xf] %v5099_v34  ;;  %6624 = vst.msk [vmem:[%s12207_s5 + $0x1f8] sm:$0xf] %vm164_vm2, %v5100_v28  ;;  %v5130_v22 = vadd.f32 %v5122_v5, %v10538_v20  ;;  %v5131_v11 = vadd.f32 %v5123_v19, %v10536_v45  ;;  %v5132_v58 = vadd.f32 %v5124_v60, %v10538_v20  ;;  %v12407_v34 = vld [vmem:[#allocation18_spill] sm:$0xff]  ;;  %v12408_v19 = vld [vmem:[#allocation15_spill] sm:$0xff] }
 0x2fa   :  { %6633 = vst [vmem:[%s12207_s5 + $0x200] sm:$0xff] %v5125_v42  ;;  %6634 = vst.msk [vmem:[%s12207_s5 + $0x208] sm:$0xff] %vm157_vm1, %v5126_v1  ;;  %v5149_v7 = vmul.f32 %v10409_v61, %v12402_v9  ;;  %v5150_v59 = vmul.f32 %v7414_v35, %v10411_v29  ;;  %v5151_v50 = vmul.f32 %v10409_v61, %v12403_v4  ;;  %v6680_v5 = vld [vmem:[%s12207_s5 + $0x2f8] sm:$0xf]  ;;  %v7420_v42 = vld [vmem:[%s12207_s5 + $0x2c8] sm:$0xff] }
 0x2fb   :  { %6635 = vst [vmem:[%s12207_s5 + $0x210] sm:$0xff] %v5127_v62  ;;  %6636 = vst.msk [vmem:[%s12207_s5 + $0x218] sm:$0xff] %vm157_vm1, %v5128_v10  ;;  %v5152_v48 = vmul.f32 %v7415_v3, %v10411_v29  ;;  %v5153_v25 = vmul.f32 %v10409_v61, %v12404_v44  ;;  %v5154_v17 = vmul.f32 %v7416_v15, %v10411_v29  ;;  %v12409_v62 = vld [vmem:[#allocation17_spill] sm:$0xff]  ;;  %v6695_v15 = vld [vmem:[%s12207_s5 + $0x330] sm:$0xf] }
 0x2fc   :  { %6637 = vst [vmem:[%s12207_s5 + $0x220] sm:$0xff] %v5129_v55  ;;  %6638 = vst.msk [vmem:[%s12207_s5 + $0x228] sm:$0xff] %vm157_vm1, %v5130_v22  ;;  %v5155_v24 = vmul.f32 %v6647_v57, %v10409_v61  ;;  %v5156_v37 = vmul.f32 %v6648_v23, %v10411_v29  ;;  %v5157_v43 = vadd.f32 %v5149_v7, %v10536_v45  ;;  %v7421_v55 = vld [vmem:[%s12207_s5 + $0x2d8] sm:$0xff]  ;;  %v7422_v57 = vld [vmem:[%s12207_s5 + $0x2e8] sm:$0xff] }
 0x2fd   :  { %6639 = vst [vmem:[%s12207_s5 + $0x230] sm:$0xf] %v5131_v11  ;;  %6640 = vst.msk [vmem:[%s12207_s5 + $0x238] sm:$0xf] %vm164_vm2, %v5132_v58  ;;  %v5158_v16 = vadd.f32 %v5150_v59, %v10538_v20  ;;  %v5159_v32 = vadd.f32 %v5151_v50, %v10536_v45  ;;  %v5160_v14 = vadd.f32 %v5152_v48, %v10538_v20  ;;  %v12410_v11 = vld [vmem:[#allocation19_spill] sm:$0xff] }
 0x2fe   :  { %v5161_v36 = vadd.f32 %v5153_v25, %v10536_v45  ;;  %v5162_v26 = vadd.f32 %v5154_v17, %v10538_v20  ;;  %v5163_v33 = vadd.f32 %v5155_v24, %v10536_v45  ;;  %v5164_v40 = vadd.f32 %v5156_v37, %v10538_v20  ;;  %6649 = vst [vmem:[%s12207_s5 + $0x240] sm:$0xff] %v5157_v43  ;;  %v6696_v17 = vld [vmem:[%s12207_s5 + $0x338] sm:$0xf]  ;;  %v12411_v24 = vld [vmem:[#allocation20_spill] sm:$0xff]  ;;  %v7423_v43 = vld [vmem:[%s12207_s5 + $0x308] sm:$0xff] }
 0x2ff   :  { %6650 = vst.msk [vmem:[%s12207_s5 + $0x248] sm:$0xff] %vm157_vm1, %v5158_v16  ;;  %6651 = vst [vmem:[%s12207_s5 + $0x250] sm:$0xff] %v5159_v32  ;;  %v5181_v12 = vmul.f32 %v10409_v61, %v12405_v47  ;;  %v5182_v53 = vmul.f32 %v7417_v13, %v10411_v29  ;;  %v5183_v2 = vmul.f32 %v10409_v61, %v12406_v54  ;;  %v12412_v32 = vld [vmem:[#allocation22_spill] sm:$0xff] }
 0x300   :  { %6652 = vst.msk [vmem:[%s12207_s5 + $0x258] sm:$0xff] %vm157_vm1, %v5160_v14  ;;  %v5184_v6 = vmul.f32 %v7418_v30, %v10411_v29  ;;  %6653 = vst [vmem:[%s12207_s5 + $0x260] sm:$0xff] %v5161_v36  ;;  %v5185_v28 = vmul.f32 %v10409_v61, %v12407_v34  ;;  %v5186_v21 = vmul.f32 %v7419_v27, %v10411_v29  ;;  %v7424_v36 = vld [vmem:[%s12207_s5 + $0x318] sm:$0xff]  ;;  %v6711_v27 = vld [vmem:[%s12207_s5 + $0x370] sm:$0xf] }
 0x301   :  { %6654 = vst.msk [vmem:[%s12207_s5 + $0x268] sm:$0xff] %vm157_vm1, %v5162_v26  ;;  %6655 = vst [vmem:[%s12207_s5 + $0x270] sm:$0xf] %v5163_v33  ;;  %v5187_v39 = vmul.f32 %v6663_v49, %v10409_v61  ;;  %v5188_v51 = vmul.f32 %v6664_v46, %v10411_v29  ;;  %v5189_v52 = vadd.f32 %v5181_v12, %v10536_v45  ;;  %v12413_v33 = vld [vmem:[#allocation24_spill] sm:$0xff]  ;;  %v7425_v49 = vld [vmem:[%s12207_s5 + $0x328] sm:$0xff] }
 0x302   :  { %6656 = vst.msk [vmem:[%s12207_s5 + $0x278] sm:$0xf] %vm164_vm2, %v5164_v40  ;;  %v5190_v31 = vadd.f32 %v5182_v53, %v10538_v20  ;;  %v5191_v38 = vadd.f32 %v5183_v2, %v10536_v45  ;;  %v5192_v0 = vadd.f32 %v5184_v6, %v10538_v20  ;;  %v5193_v41 = vadd.f32 %v5185_v28, %v10536_v45 }
 0x303   :  { %v5194_v8 = vadd.f32 %v5186_v21, %v10538_v20  ;;  %v5195_v56 = vadd.f32 %v5187_v39, %v10536_v45  ;;  %v5196_v18 = vadd.f32 %v5188_v51, %v10538_v20  ;;  %6665 = vst [vmem:[%s12207_s5 + $0x280] sm:$0xff] %v5189_v52  ;;  %v5213_v60 = vmul.f32 %v10409_v61, %v12408_v19  ;;  %v6712_v21 = vld [vmem:[%s12207_s5 + $0x378] sm:$0xf]  ;;  %v7426_v52 = vld [vmem:[%s12207_s5 + $0x348] sm:$0xff] }
 0x304   :  { %6666 = vst.msk [vmem:[%s12207_s5 + $0x288] sm:$0xff] %vm157_vm1, %v5190_v31  ;;  %6667 = vst [vmem:[%s12207_s5 + $0x290] sm:$0xff] %v5191_v38  ;;  %v5214_v1 = vmul.f32 %v7420_v42, %v10411_v29  ;;  %v5215_v10 = vmul.f32 %v10409_v61, %v12409_v62  ;;  %v5216_v22 = vmul.f32 %v7421_v55, %v10411_v29  ;;  %v12414_v39 = vld [vmem:[#allocation21_spill] sm:$0xff]  ;;  %v12415_v38 = vld [vmem:[#allocation23_spill] sm:$0xff] }
 0x305   :  { %6668 = vst.msk [vmem:[%s12207_s5 + $0x298] sm:$0xff] %vm157_vm1, %v5192_v0  ;;  %6669 = vst [vmem:[%s12207_s5 + $0x2a0] sm:$0xff] %v5193_v41  ;;  %v5217_v58 = vmul.f32 %v10409_v61, %v12410_v11  ;;  %v5218_v23 = vmul.f32 %v7422_v57, %v10411_v29  ;;  %v5219_v9 = vmul.f32 %v6679_v63, %v10409_v61  ;;  %v7427_v41 = vld [vmem:[%s12207_s5 + $0x358] sm:$0xff]  ;;  %v7428_v63 = vld [vmem:[%s12207_s5 + $0x368] sm:$0xff] }
 0x306   :  { %6670 = vst.msk [vmem:[%s12207_s5 + $0x2a8] sm:$0xff] %vm157_vm1, %v5194_v8  ;;  %6671 = vst [vmem:[%s12207_s5 + $0x2b0] sm:$0xf] %v5195_v56  ;;  %v5220_v7 = vmul.f32 %v6680_v5, %v10411_v29  ;;  %v5221_v35 = vadd.f32 %v5213_v60, %v10536_v45  ;;  %v5222_v59 = vadd.f32 %v5214_v1, %v10538_v20  ;;  %v12416_v56 = vld [vmem:[#allocation25_spill] sm:$0xff]  ;;  %v6727_v57 = vld [vmem:[%s12207_s5 + $0x3b0] sm:$0xf] }
 0x307   :  { %6672 = vst.msk [vmem:[%s12207_s5 + $0x2b8] sm:$0xf] %vm164_vm2, %v5196_v18  ;;  %v5223_v4 = vadd.f32 %v5215_v10, %v10536_v45  ;;  %v5224_v50 = vadd.f32 %v5216_v22, %v10538_v20  ;;  %v5225_v3 = vadd.f32 %v5217_v58, %v10536_v45  ;;  %v5226_v48 = vadd.f32 %v5218_v23, %v10538_v20  ;;  %v6728_v23 = vld [vmem:[%s12207_s5 + $0x3b8] sm:$0xf] }
 0x308   :  { %v5227_v44 = vadd.f32 %v5219_v9, %v10536_v45  ;;  %v5228_v25 = vadd.f32 %v5220_v7, %v10538_v20  ;;  %6681 = vst [vmem:[%s12207_s5 + $0x2c0] sm:$0xff] %v5221_v35  ;;  %6682 = vst.msk [vmem:[%s12207_s5 + $0x2c8] sm:$0xff] %vm157_vm1, %v5222_v59  ;;  %v5245_v37 = vmul.f32 %v10409_v61, %v12411_v24  ;;  %v12417_v9 = vld [vmem:[#allocation26_spill] sm:$0xff]  ;;  %v7429_v35 = vld [vmem:[%s12207_s5 + $0x388] sm:$0xff] }
 0x309   :  { %6683 = vst [vmem:[%s12207_s5 + $0x2d0] sm:$0xff] %v5223_v4  ;;  %6684 = vst.msk [vmem:[%s12207_s5 + $0x2d8] sm:$0xff] %vm157_vm1, %v5224_v50  ;;  %v5246_v16 = vmul.f32 %v7423_v43, %v10411_v29  ;;  %v5247_v14 = vmul.f32 %v10409_v61, %v12412_v32  ;;  %v5248_v26 = vmul.f32 %v7424_v36, %v10411_v29  ;;  %v12418_v4 = vld [vmem:[#allocation28_spill] sm:$0xff] }
 0x30a   :  { %6685 = vst [vmem:[%s12207_s5 + $0x2e0] sm:$0xff] %v5225_v3  ;;  %6686 = vst.msk [vmem:[%s12207_s5 + $0x2e8] sm:$0xff] %vm157_vm1, %v5226_v48  ;;  %v5249_v40 = vmul.f32 %v10409_v61, %v12413_v33  ;;  %v5250_v46 = vmul.f32 %v7425_v49, %v10411_v29  ;;  %v5251_v47 = vmul.f32 %v6695_v15, %v10409_v61  ;;  %v7430_v3 = vld [vmem:[%s12207_s5 + $0x398] sm:$0xff]  ;;  %v7431_v15 = vld [vmem:[%s12207_s5 + $0x3a8] sm:$0xff] }
 0x30b   :  { %6687 = vst [vmem:[%s12207_s5 + $0x2f0] sm:$0xf] %v5227_v44  ;;  %6688 = vst.msk [vmem:[%s12207_s5 + $0x2f8] sm:$0xf] %vm164_vm2, %v5228_v25  ;;  %v5252_v12 = vmul.f32 %v6696_v17, %v10411_v29  ;;  %v5253_v13 = vadd.f32 %v5245_v37, %v10536_v45  ;;  %v5254_v53 = vadd.f32 %v5246_v16, %v10538_v20  ;;  %v12419_v44 = vld [vmem:[#allocation30_spill] sm:$0xff] }
 0x30c   :  { %v5255_v54 = vadd.f32 %v5247_v14, %v10536_v45  ;;  %v5256_v2 = vadd.f32 %v5248_v26, %v10538_v20  ;;  %v5257_v30 = vadd.f32 %v5249_v40, %v10536_v45  ;;  %v5258_v6 = vadd.f32 %v5250_v46, %v10538_v20  ;;  %v6743_v49 = vld [vmem:[%s12207_s5 + $0x3f0] sm:$0xf]  ;;  %v6744_v46 = vld [vmem:[%s12207_s5 + $0x3f8] sm:$0xf] }
 0x30d   :  { %v5259_v34 = vadd.f32 %v5251_v47, %v10536_v45  ;;  %v5260_v28 = vadd.f32 %v5252_v12, %v10538_v20  ;;  %6697 = vst [vmem:[%s12207_s5 + $0x300] sm:$0xff] %v5253_v13  ;;  %6698 = vst.msk [vmem:[%s12207_s5 + $0x308] sm:$0xff] %vm157_vm1, %v5254_v53  ;;  %v5277_v51 = vmul.f32 %v10409_v61, %v12414_v39  ;;  %v12420_v47 = vld [vmem:[#allocation27_spill] sm:$0xff] }
 0x30e   :  { %6699 = vst [vmem:[%s12207_s5 + $0x310] sm:$0xff] %v5255_v54  ;;  %6700 = vst.msk [vmem:[%s12207_s5 + $0x318] sm:$0xff] %vm157_vm1, %v5256_v2  ;;  %v5278_v31 = vmul.f32 %v7426_v52, %v10411_v29  ;;  %v5279_v0 = vmul.f32 %v10409_v61, %v12415_v38  ;;  %v5280_v8 = vmul.f32 %v7427_v41, %v10411_v29  ;;  %v7432_v13 = vld [vmem:[%s12207_s5 + $0x3c8] sm:$0xff]  ;;  %v12421_v54 = vld [vmem:[#allocation29_spill] sm:$0xff] }
 0x30f   :  { %6701 = vst [vmem:[%s12207_s5 + $0x320] sm:$0xff] %v5257_v30  ;;  %6702 = vst.msk [vmem:[%s12207_s5 + $0x328] sm:$0xff] %vm157_vm1, %v5258_v6  ;;  %v5281_v18 = vmul.f32 %v10409_v61, %v12416_v56  ;;  %v5282_v5 = vmul.f32 %v7428_v63, %v10411_v29  ;;  %v5283_v19 = vmul.f32 %v6711_v27, %v10409_v61  ;;  %v7433_v30 = vld [vmem:[%s12207_s5 + $0x3d8] sm:$0xff]  ;;  %v7434_v27 = vld [vmem:[%s12207_s5 + $0x3e8] sm:$0xff] }
 0x310   :  { %6703 = vst [vmem:[%s12207_s5 + $0x330] sm:$0xf] %v5259_v34  ;;  %6704 = vst.msk [vmem:[%s12207_s5 + $0x338] sm:$0xf] %vm164_vm2, %v5260_v28  ;;  %v5284_v60 = vmul.f32 %v6712_v21, %v10411_v29  ;;  %v5285_v42 = vadd.f32 %v5277_v51, %v10536_v45  ;;  %v5286_v1 = vadd.f32 %v5278_v31, %v10538_v20  ;;  %v12422_v34 = vld [vmem:[#allocation31_spill] sm:$0xff] }
 0x311   :  { %v5287_v62 = vadd.f32 %v5279_v0, %v10536_v45  ;;  %v5288_v10 = vadd.f32 %v5280_v8, %v10538_v20  ;;  %v5289_v55 = vadd.f32 %v5281_v18, %v10536_v45  ;;  %v5290_v22 = vadd.f32 %v5282_v5, %v10538_v20  ;;  %v6759_v63 = vld [vmem:[%s12207_s5 + $0x430] sm:$0xf]  ;;  %v6760_v5 = vld [vmem:[%s12207_s5 + $0x438] sm:$0xf] }
 0x312   :  { %v5291_v11 = vadd.f32 %v5283_v19, %v10536_v45  ;;  %v5292_v58 = vadd.f32 %v5284_v60, %v10538_v20  ;;  %6713 = vst [vmem:[%s12207_s5 + $0x340] sm:$0xff] %v5285_v42  ;;  %6714 = vst.msk [vmem:[%s12207_s5 + $0x348] sm:$0xff] %vm157_vm1, %v5286_v1  ;;  %v5309_v7 = vmul.f32 %v10409_v61, %v12417_v9  ;;  %v12423_v19 = vld [vmem:[#allocation32_spill] sm:$0xff]  ;;  %v7435_v42 = vld [vmem:[%s12207_s5 + $0x408] sm:$0xff] }
 0x313   :  { %6715 = vst [vmem:[%s12207_s5 + $0x350] sm:$0xff] %v5287_v62  ;;  %6716 = vst.msk [vmem:[%s12207_s5 + $0x358] sm:$0xff] %vm157_vm1, %v5288_v10  ;;  %v5310_v59 = vmul.f32 %v7429_v35, %v10411_v29  ;;  %v5311_v50 = vmul.f32 %v10409_v61, %v12418_v4  ;;  %v5312_v48 = vmul.f32 %v7430_v3, %v10411_v29  ;;  %v12424_v62 = vld [vmem:[#allocation34_spill] sm:$0xff] }
 0x314   :  { %6717 = vst [vmem:[%s12207_s5 + $0x360] sm:$0xff] %v5289_v55  ;;  %6718 = vst.msk [vmem:[%s12207_s5 + $0x368] sm:$0xff] %vm157_vm1, %v5290_v22  ;;  %v5313_v25 = vmul.f32 %v10409_v61, %v12419_v44  ;;  %v5314_v17 = vmul.f32 %v7431_v15, %v10411_v29  ;;  %v5315_v24 = vmul.f32 %v6727_v57, %v10409_v61  ;;  %v7436_v55 = vld [vmem:[%s12207_s5 + $0x418] sm:$0xff]  ;;  %v7437_v57 = vld [vmem:[%s12207_s5 + $0x428] sm:$0xff] }
 0x315   :  { %6719 = vst [vmem:[%s12207_s5 + $0x370] sm:$0xf] %v5291_v11  ;;  %6720 = vst.msk [vmem:[%s12207_s5 + $0x378] sm:$0xf] %vm164_vm2, %v5292_v58  ;;  %v5316_v37 = vmul.f32 %v6728_v23, %v10411_v29  ;;  %v5317_v43 = vadd.f32 %v5309_v7, %v10536_v45  ;;  %v5318_v16 = vadd.f32 %v5310_v59, %v10538_v20  ;;  %v12425_v11 = vld [vmem:[#allocation36_spill] sm:$0xff] }
 0x316   :  { %v5319_v32 = vadd.f32 %v5311_v50, %v10536_v45  ;;  %v5320_v14 = vadd.f32 %v5312_v48, %v10538_v20  ;;  %v5321_v36 = vadd.f32 %v5313_v25, %v10536_v45  ;;  %v5322_v26 = vadd.f32 %v5314_v17, %v10538_v20  ;;  %v6775_v15 = vld [vmem:[%s12207_s5 + $0x470] sm:$0xf]  ;;  %v6776_v17 = vld [vmem:[%s12207_s5 + $0x478] sm:$0xf] }
 0x317   :  { %v5323_v33 = vadd.f32 %v5315_v24, %v10536_v45  ;;  %v5324_v40 = vadd.f32 %v5316_v37, %v10538_v20  ;;  %6729 = vst [vmem:[%s12207_s5 + $0x380] sm:$0xff] %v5317_v43  ;;  %6730 = vst.msk [vmem:[%s12207_s5 + $0x388] sm:$0xff] %vm157_vm1, %v5318_v16  ;;  %v5341_v12 = vmul.f32 %v10409_v61, %v12420_v47  ;;  %v12426_v24 = vld [vmem:[#allocation33_spill] sm:$0xff]  ;;  %v7438_v43 = vld [vmem:[%s12207_s5 + $0x448] sm:$0xff] }
 0x318   :  { %6731 = vst [vmem:[%s12207_s5 + $0x390] sm:$0xff] %v5319_v32  ;;  %6732 = vst.msk [vmem:[%s12207_s5 + $0x398] sm:$0xff] %vm157_vm1, %v5320_v14  ;;  %v5342_v53 = vmul.f32 %v7432_v13, %v10411_v29  ;;  %v5343_v2 = vmul.f32 %v10409_v61, %v12421_v54  ;;  %v5344_v6 = vmul.f32 %v7433_v30, %v10411_v29  ;;  %v12427_v32 = vld [vmem:[#allocation35_spill] sm:$0xff] }
 0x319   :  { %6733 = vst [vmem:[%s12207_s5 + $0x3a0] sm:$0xff] %v5321_v36  ;;  %6734 = vst.msk [vmem:[%s12207_s5 + $0x3a8] sm:$0xff] %vm157_vm1, %v5322_v26  ;;  %v5345_v28 = vmul.f32 %v10409_v61, %v12422_v34  ;;  %v5346_v21 = vmul.f32 %v7434_v27, %v10411_v29  ;;  %v5347_v39 = vmul.f32 %v6743_v49, %v10409_v61  ;;  %v7439_v36 = vld [vmem:[%s12207_s5 + $0x458] sm:$0xff]  ;;  %v7440_v49 = vld [vmem:[%s12207_s5 + $0x468] sm:$0xff] }
 0x31a   :  { %6735 = vst [vmem:[%s12207_s5 + $0x3b0] sm:$0xf] %v5323_v33  ;;  %6736 = vst.msk [vmem:[%s12207_s5 + $0x3b8] sm:$0xf] %vm164_vm2, %v5324_v40  ;;  %v5348_v51 = vmul.f32 %v6744_v46, %v10411_v29  ;;  %v5349_v52 = vadd.f32 %v5341_v12, %v10536_v45  ;;  %v5350_v31 = vadd.f32 %v5342_v53, %v10538_v20  ;;  %v12428_v33 = vld [vmem:[#allocation37_spill] sm:$0xff] }
 0x31b   :  { %v5351_v38 = vadd.f32 %v5343_v2, %v10536_v45  ;;  %v5352_v0 = vadd.f32 %v5344_v6, %v10538_v20  ;;  %v5353_v41 = vadd.f32 %v5345_v28, %v10536_v45  ;;  %v5354_v8 = vadd.f32 %v5346_v21, %v10538_v20  ;;  %v6791_v27 = vld [vmem:[%s12207_s5 + $0x4b0] sm:$0xf]  ;;  %v6792_v21 = vld [vmem:[%s12207_s5 + $0x4b8] sm:$0xf] }
 0x31c   :  { %v5355_v56 = vadd.f32 %v5347_v39, %v10536_v45  ;;  %v5356_v18 = vadd.f32 %v5348_v51, %v10538_v20  ;;  %6745 = vst [vmem:[%s12207_s5 + $0x3c0] sm:$0xff] %v5349_v52  ;;  %6746 = vst.msk [vmem:[%s12207_s5 + $0x3c8] sm:$0xff] %vm157_vm1, %v5350_v31  ;;  %v5373_v60 = vmul.f32 %v10409_v61, %v12423_v19  ;;  %v12429_v39 = vld [vmem:[#allocation38_spill] sm:$0xff]  ;;  %v7441_v52 = vld [vmem:[%s12207_s5 + $0x488] sm:$0xff] }
 0x31d   :  { %6747 = vst [vmem:[%s12207_s5 + $0x3d0] sm:$0xff] %v5351_v38  ;;  %6748 = vst.msk [vmem:[%s12207_s5 + $0x3d8] sm:$0xff] %vm157_vm1, %v5352_v0  ;;  %v5374_v1 = vmul.f32 %v7435_v42, %v10411_v29  ;;  %v5375_v10 = vmul.f32 %v10409_v61, %v12424_v62  ;;  %v5376_v22 = vmul.f32 %v7436_v55, %v10411_v29  ;;  %v12430_v38 = vld [vmem:[#allocation39_spill] sm:$0xff] }
 0x31e   :  { %6749 = vst [vmem:[%s12207_s5 + $0x3e0] sm:$0xff] %v5353_v41  ;;  %6750 = vst.msk [vmem:[%s12207_s5 + $0x3e8] sm:$0xff] %vm157_vm1, %v5354_v8  ;;  %v5377_v58 = vmul.f32 %v10409_v61, %v12425_v11  ;;  %v5378_v23 = vmul.f32 %v7437_v57, %v10411_v29  ;;  %v5379_v9 = vmul.f32 %v6759_v63, %v10409_v61  ;;  %v7442_v41 = vld [vmem:[%s12207_s5 + $0x498] sm:$0xff]  ;;  %v7444_v63 = vld [vmem:[%s12207_s5 + $0x4a8] sm:$0xff] }
 0x31f   :  { %6751 = vst [vmem:[%s12207_s5 + $0x3f0] sm:$0xf] %v5355_v56  ;;  %6752 = vst.msk [vmem:[%s12207_s5 + $0x3f8] sm:$0xf] %vm164_vm2, %v5356_v18  ;;  %v5380_v7 = vmul.f32 %v6760_v5, %v10411_v29  ;;  %v5381_v35 = vadd.f32 %v5373_v60, %v10536_v45  ;;  %v5382_v59 = vadd.f32 %v5374_v1, %v10538_v20  ;;  %v7443_v56 = vld [vmem:[%s12207_s5 + $0x4a0] sm:$0xff] }
 0x320   :  { %v5383_v4 = vadd.f32 %v5375_v10, %v10536_v45  ;;  %v5384_v50 = vadd.f32 %v5376_v22, %v10538_v20  ;;  %v5385_v3 = vadd.f32 %v5377_v58, %v10536_v45  ;;  %v5386_v48 = vadd.f32 %v5378_v23, %v10538_v20  ;;  %v6807_v57 = vld [vmem:[%s12207_s5 + $0x4f0] sm:$0xf]  ;;  %v6808_v23 = vld [vmem:[%s12207_s5 + $0x4f8] sm:$0xf] }
 0x321   :  { %v5387_v44 = vadd.f32 %v5379_v9, %v10536_v45  ;;  %v5388_v25 = vadd.f32 %v5380_v7, %v10538_v20  ;;  %6761 = vst [vmem:[%s12207_s5 + $0x400] sm:$0xff] %v5381_v35  ;;  %6762 = vst.msk [vmem:[%s12207_s5 + $0x408] sm:$0xff] %vm157_vm1, %v5382_v59  ;;  %v5405_v37 = vmul.f32 %v10409_v61, %v12426_v24  ;;  %v7445_v9 = vld [vmem:[%s12207_s5 + $0x4c0] sm:$0xff]  ;;  %v7446_v35 = vld [vmem:[%s12207_s5 + $0x4c8] sm:$0xff] }
 0x322   :  { %6763 = vst [vmem:[%s12207_s5 + $0x410] sm:$0xff] %v5383_v4  ;;  %6764 = vst.msk [vmem:[%s12207_s5 + $0x418] sm:$0xff] %vm157_vm1, %v5384_v50  ;;  %v5406_v16 = vmul.f32 %v7438_v43, %v10411_v29  ;;  %v5407_v14 = vmul.f32 %v10409_v61, %v12427_v32  ;;  %v5408_v26 = vmul.f32 %v7439_v36, %v10411_v29  ;;  %v7447_v4 = vld [vmem:[%s12207_s5 + $0x4d0] sm:$0xff] }
 0x323   :  { %6765 = vst [vmem:[%s12207_s5 + $0x420] sm:$0xff] %v5385_v3  ;;  %6766 = vst.msk [vmem:[%s12207_s5 + $0x428] sm:$0xff] %vm157_vm1, %v5386_v48  ;;  %v5409_v40 = vmul.f32 %v10409_v61, %v12428_v33  ;;  %v5410_v46 = vmul.f32 %v7440_v49, %v10411_v29  ;;  %v5411_v47 = vmul.f32 %v6775_v15, %v10409_v61  ;;  %v7448_v3 = vld [vmem:[%s12207_s5 + $0x4d8] sm:$0xff]  ;;  %v7450_v15 = vld [vmem:[%s12207_s5 + $0x4e8] sm:$0xff] }
 0x324   :  { %6767 = vst [vmem:[%s12207_s5 + $0x430] sm:$0xf] %v5387_v44  ;;  %6768 = vst.msk [vmem:[%s12207_s5 + $0x438] sm:$0xf] %vm164_vm2, %v5388_v25  ;;  %v5412_v12 = vmul.f32 %v6776_v17, %v10411_v29  ;;  %v5413_v13 = vadd.f32 %v5405_v37, %v10536_v45  ;;  %v5414_v53 = vadd.f32 %v5406_v16, %v10538_v20  ;;  %v7449_v44 = vld [vmem:[%s12207_s5 + $0x4e0] sm:$0xff] }
 0x325   :  { %v5415_v54 = vadd.f32 %v5407_v14, %v10536_v45  ;;  %v5416_v2 = vadd.f32 %v5408_v26, %v10538_v20  ;;  %v5417_v30 = vadd.f32 %v5409_v40, %v10536_v45  ;;  %v5418_v6 = vadd.f32 %v5410_v46, %v10538_v20  ;;  %v6823_v49 = vld [vmem:[%s12207_s5 + $0x530] sm:$0xf]  ;;  %v6824_v46 = vld [vmem:[%s12207_s5 + $0x538] sm:$0xf] }
 0x326   :  { %v5419_v34 = vadd.f32 %v5411_v47, %v10536_v45  ;;  %v5420_v28 = vadd.f32 %v5412_v12, %v10538_v20  ;;  %6777 = vst [vmem:[%s12207_s5 + $0x440] sm:$0xff] %v5413_v13  ;;  %6778 = vst.msk [vmem:[%s12207_s5 + $0x448] sm:$0xff] %vm157_vm1, %v5414_v53  ;;  %v5437_v51 = vmul.f32 %v10409_v61, %v12429_v39  ;;  %v7451_v47 = vld [vmem:[%s12207_s5 + $0x500] sm:$0xff]  ;;  %v7452_v13 = vld [vmem:[%s12207_s5 + $0x508] sm:$0xff] }
 0x327   :  { %6779 = vst [vmem:[%s12207_s5 + $0x450] sm:$0xff] %v5415_v54  ;;  %6780 = vst.msk [vmem:[%s12207_s5 + $0x458] sm:$0xff] %vm157_vm1, %v5416_v2  ;;  %v5438_v31 = vmul.f32 %v7441_v52, %v10411_v29  ;;  %v5439_v0 = vmul.f32 %v10409_v61, %v12430_v38  ;;  %v5440_v8 = vmul.f32 %v7442_v41, %v10411_v29  ;;  %v7453_v54 = vld [vmem:[%s12207_s5 + $0x510] sm:$0xff] }
 0x328   :  { %6781 = vst [vmem:[%s12207_s5 + $0x460] sm:$0xff] %v5417_v30  ;;  %6782 = vst.msk [vmem:[%s12207_s5 + $0x468] sm:$0xff] %vm157_vm1, %v5418_v6  ;;  %v5441_v18 = vmul.f32 %v7443_v56, %v10409_v61  ;;  %v5442_v5 = vmul.f32 %v7444_v63, %v10411_v29  ;;  %v5443_v19 = vmul.f32 %v6791_v27, %v10409_v61  ;;  %v7454_v30 = vld [vmem:[%s12207_s5 + $0x518] sm:$0xff]  ;;  %v7455_v27 = vld [vmem:[%s12207_s5 + $0x528] sm:$0xff] }
 0x329   :  { %6783 = vst [vmem:[%s12207_s5 + $0x470] sm:$0xf] %v5419_v34  ;;  %6784 = vst.msk [vmem:[%s12207_s5 + $0x478] sm:$0xf] %vm164_vm2, %v5420_v28  ;;  %v5444_v60 = vmul.f32 %v6792_v21, %v10411_v29  ;;  %v5445_v42 = vadd.f32 %v5437_v51, %v10536_v45  ;;  %v5446_v1 = vadd.f32 %v5438_v31, %v10538_v20  ;;  %v12431_v34 = vld [vmem:[#allocation40_spill] sm:$0xff] }
 0x32a   :  { %v5447_v62 = vadd.f32 %v5439_v0, %v10536_v45  ;;  %v5448_v10 = vadd.f32 %v5440_v8, %v10538_v20  ;;  %v5449_v55 = vadd.f32 %v5441_v18, %v10536_v45  ;;  %v5450_v22 = vadd.f32 %v5442_v5, %v10538_v20  ;;  %v6839_v63 = vld [vmem:[%s12207_s5 + $0x570] sm:$0xf]  ;;  %v6840_v5 = vld [vmem:[%s12207_s5 + $0x578] sm:$0xf] }
 0x32b   :  { %v5451_v11 = vadd.f32 %v5443_v19, %v10536_v45  ;;  %v5452_v58 = vadd.f32 %v5444_v60, %v10538_v20  ;;  %6793 = vst [vmem:[%s12207_s5 + $0x480] sm:$0xff] %v5445_v42  ;;  %6794 = vst.msk [vmem:[%s12207_s5 + $0x488] sm:$0xff] %vm157_vm1, %v5446_v1  ;;  %v5469_v7 = vmul.f32 %v7445_v9, %v10409_v61  ;;  %v7456_v19 = vld [vmem:[%s12207_s5 + $0x540] sm:$0xff]  ;;  %v7457_v42 = vld [vmem:[%s12207_s5 + $0x548] sm:$0xff] }
 0x32c   :  { %6795 = vst [vmem:[%s12207_s5 + $0x490] sm:$0xff] %v5447_v62  ;;  %6796 = vst.msk [vmem:[%s12207_s5 + $0x498] sm:$0xff] %vm157_vm1, %v5448_v10  ;;  %v5470_v59 = vmul.f32 %v7446_v35, %v10411_v29  ;;  %v5471_v50 = vmul.f32 %v7447_v4, %v10409_v61  ;;  %v5472_v48 = vmul.f32 %v7448_v3, %v10411_v29  ;;  %v7458_v62 = vld [vmem:[%s12207_s5 + $0x550] sm:$0xff] }
 0x32d   :  { %6797 = vst [vmem:[%s12207_s5 + $0x4a0] sm:$0xff] %v5449_v55  ;;  %6798 = vst.msk [vmem:[%s12207_s5 + $0x4a8] sm:$0xff] %vm157_vm1, %v5450_v22  ;;  %v5473_v25 = vmul.f32 %v7449_v44, %v10409_v61  ;;  %v5474_v17 = vmul.f32 %v7450_v15, %v10411_v29  ;;  %v5475_v24 = vmul.f32 %v6807_v57, %v10409_v61  ;;  %v7459_v55 = vld [vmem:[%s12207_s5 + $0x558] sm:$0xff]  ;;  %v7460_v57 = vld [vmem:[%s12207_s5 + $0x568] sm:$0xff] }
 0x32e   :  { %6799 = vst [vmem:[%s12207_s5 + $0x4b0] sm:$0xf] %v5451_v11  ;;  %6800 = vst.msk [vmem:[%s12207_s5 + $0x4b8] sm:$0xf] %vm164_vm2, %v5452_v58  ;;  %v5476_v37 = vmul.f32 %v6808_v23, %v10411_v29  ;;  %v5477_v43 = vadd.f32 %v5469_v7, %v10536_v45  ;;  %v5478_v16 = vadd.f32 %v5470_v59, %v10538_v20  ;;  %v12432_v11 = vld [vmem:[#allocation41_spill] sm:$0xff] }
 0x32f   :  { %v5479_v32 = vadd.f32 %v5471_v50, %v10536_v45  ;;  %v5480_v14 = vadd.f32 %v5472_v48, %v10538_v20  ;;  %v5481_v36 = vadd.f32 %v5473_v25, %v10536_v45  ;;  %v5482_v26 = vadd.f32 %v5474_v17, %v10538_v20  ;;  %v6855_v15 = vld [vmem:[%s12207_s5 + $0x5b0] sm:$0xf]  ;;  %v6856_v17 = vld [vmem:[%s12207_s5 + $0x5b8] sm:$0xf] }
 0x330   :  { %v5483_v33 = vadd.f32 %v5475_v24, %v10536_v45  ;;  %v5484_v40 = vadd.f32 %v5476_v37, %v10538_v20  ;;  %6809 = vst [vmem:[%s12207_s5 + $0x4c0] sm:$0xff] %v5477_v43  ;;  %6810 = vst.msk [vmem:[%s12207_s5 + $0x4c8] sm:$0xff] %vm157_vm1, %v5478_v16  ;;  %v5501_v12 = vmul.f32 %v7451_v47, %v10409_v61  ;;  %v12433_v24 = vld [vmem:[#allocation42_spill] sm:$0xff]  ;;  %v7461_v43 = vld [vmem:[%s12207_s5 + $0x588] sm:$0xff] }
 0x331   :  { %6811 = vst [vmem:[%s12207_s5 + $0x4d0] sm:$0xff] %v5479_v32  ;;  %6812 = vst.msk [vmem:[%s12207_s5 + $0x4d8] sm:$0xff] %vm157_vm1, %v5480_v14  ;;  %v5502_v53 = vmul.f32 %v7452_v13, %v10411_v29  ;;  %v5503_v2 = vmul.f32 %v7453_v54, %v10409_v61  ;;  %v5504_v6 = vmul.f32 %v7454_v30, %v10411_v29  ;;  %v12434_v32 = vld [vmem:[#allocation44_spill] sm:$0xff] }
 0x332   :  { %6813 = vst [vmem:[%s12207_s5 + $0x4e0] sm:$0xff] %v5481_v36  ;;  %6814 = vst.msk [vmem:[%s12207_s5 + $0x4e8] sm:$0xff] %vm157_vm1, %v5482_v26  ;;  %v5505_v28 = vmul.f32 %v10409_v61, %v12431_v34  ;;  %v5506_v21 = vmul.f32 %v7455_v27, %v10411_v29  ;;  %v5507_v39 = vmul.f32 %v6823_v49, %v10409_v61  ;;  %v7462_v36 = vld [vmem:[%s12207_s5 + $0x598] sm:$0xff]  ;;  %v7463_v49 = vld [vmem:[%s12207_s5 + $0x5a8] sm:$0xff] }
 0x333   :  { %6815 = vst [vmem:[%s12207_s5 + $0x4f0] sm:$0xf] %v5483_v33  ;;  %6816 = vst.msk [vmem:[%s12207_s5 + $0x4f8] sm:$0xf] %vm164_vm2, %v5484_v40  ;;  %v5508_v51 = vmul.f32 %v6824_v46, %v10411_v29  ;;  %v5509_v52 = vadd.f32 %v5501_v12, %v10536_v45  ;;  %v5510_v31 = vadd.f32 %v5502_v53, %v10538_v20  ;;  %v12435_v33 = vld [vmem:[#allocation46_spill] sm:$0xff] }
 0x334   :  { %v5511_v38 = vadd.f32 %v5503_v2, %v10536_v45  ;;  %v5512_v0 = vadd.f32 %v5504_v6, %v10538_v20  ;;  %v5513_v41 = vadd.f32 %v5505_v28, %v10536_v45  ;;  %v5514_v8 = vadd.f32 %v5506_v21, %v10538_v20  ;;  %v6871_v27 = vld [vmem:[%s12207_s5 + $0x5f0] sm:$0xf]  ;;  %v6872_v21 = vld [vmem:[%s12207_s5 + $0x5f8] sm:$0xf] }
 0x335   :  { %v5515_v56 = vadd.f32 %v5507_v39, %v10536_v45  ;;  %v5516_v18 = vadd.f32 %v5508_v51, %v10538_v20  ;;  %6825 = vst [vmem:[%s12207_s5 + $0x500] sm:$0xff] %v5509_v52  ;;  %6826 = vst.msk [vmem:[%s12207_s5 + $0x508] sm:$0xff] %vm157_vm1, %v5510_v31  ;;  %v5533_v60 = vmul.f32 %v7456_v19, %v10409_v61  ;;  %v12436_v39 = vld [vmem:[#allocation43_spill] sm:$0xff] }
 0x336   :  { %6827 = vst [vmem:[%s12207_s5 + $0x510] sm:$0xff] %v5511_v38  ;;  %6828 = vst.msk [vmem:[%s12207_s5 + $0x518] sm:$0xff] %vm157_vm1, %v5512_v0  ;;  %v5534_v1 = vmul.f32 %v7457_v42, %v10411_v29  ;;  %v5535_v10 = vmul.f32 %v7458_v62, %v10409_v61  ;;  %v5536_v22 = vmul.f32 %v7459_v55, %v10411_v29  ;;  %v7464_v52 = vld [vmem:[%s12207_s5 + $0x5c8] sm:$0xff]  ;;  %v12437_v38 = vld [vmem:[#allocation45_spill] sm:$0xff] }
 0x337   :  { %6829 = vst [vmem:[%s12207_s5 + $0x520] sm:$0xff] %v5513_v41  ;;  %6830 = vst.msk [vmem:[%s12207_s5 + $0x528] sm:$0xff] %vm157_vm1, %v5514_v8  ;;  %v5537_v58 = vmul.f32 %v10409_v61, %v12432_v11  ;;  %v5538_v23 = vmul.f32 %v7460_v57, %v10411_v29  ;;  %v5539_v9 = vmul.f32 %v6839_v63, %v10409_v61  ;;  %v7465_v41 = vld [vmem:[%s12207_s5 + $0x5d8] sm:$0xff]  ;;  %v7466_v63 = vld [vmem:[%s12207_s5 + $0x5e8] sm:$0xff] }
 0x338   :  { %6831 = vst [vmem:[%s12207_s5 + $0x530] sm:$0xf] %v5515_v56  ;;  %6832 = vst.msk [vmem:[%s12207_s5 + $0x538] sm:$0xf] %vm164_vm2, %v5516_v18  ;;  %v5540_v7 = vmul.f32 %v6840_v5, %v10411_v29  ;;  %v5541_v35 = vadd.f32 %v5533_v60, %v10536_v45  ;;  %v5542_v59 = vadd.f32 %v5534_v1, %v10538_v20  ;;  %v12438_v56 = vld [vmem:[#allocation47_spill] sm:$0xff] }
 0x339   :  { %v5543_v4 = vadd.f32 %v5535_v10, %v10536_v45  ;;  %v5544_v50 = vadd.f32 %v5536_v22, %v10538_v20  ;;  %v5545_v3 = vadd.f32 %v5537_v58, %v10536_v45  ;;  %v5546_v48 = vadd.f32 %v5538_v23, %v10538_v20  ;;  %v6887_v57 = vld [vmem:[%s12207_s5 + $0x630] sm:$0xf]  ;;  %v6888_v23 = vld [vmem:[%s12207_s5 + $0x638] sm:$0xf] }
 0x33a   :  { %v5547_v44 = vadd.f32 %v5539_v9, %v10536_v45  ;;  %v5548_v25 = vadd.f32 %v5540_v7, %v10538_v20  ;;  %6841 = vst [vmem:[%s12207_s5 + $0x540] sm:$0xff] %v5541_v35  ;;  %6842 = vst.msk [vmem:[%s12207_s5 + $0x548] sm:$0xff] %vm157_vm1, %v5542_v59  ;;  %v5565_v37 = vmul.f32 %v10409_v61, %v12433_v24  ;;  %v12439_v9 = vld [vmem:[#allocation48_spill] sm:$0xff]  ;;  %v7467_v35 = vld [vmem:[%s12207_s5 + $0x608] sm:$0xff] }
 0x33b   :  { %6843 = vst [vmem:[%s12207_s5 + $0x550] sm:$0xff] %v5543_v4  ;;  %6844 = vst.msk [vmem:[%s12207_s5 + $0x558] sm:$0xff] %vm157_vm1, %v5544_v50  ;;  %v5566_v16 = vmul.f32 %v7461_v43, %v10411_v29  ;;  %v5567_v14 = vmul.f32 %v10409_v61, %v12434_v32  ;;  %v5568_v26 = vmul.f32 %v7462_v36, %v10411_v29  ;;  %v12440_v4 = vld [vmem:[#allocation50_spill] sm:$0xff] }
 0x33c   :  { %6845 = vst [vmem:[%s12207_s5 + $0x560] sm:$0xff] %v5545_v3  ;;  %6846 = vst.msk [vmem:[%s12207_s5 + $0x568] sm:$0xff] %vm157_vm1, %v5546_v48  ;;  %v5569_v40 = vmul.f32 %v10409_v61, %v12435_v33  ;;  %v5570_v46 = vmul.f32 %v7463_v49, %v10411_v29  ;;  %v5571_v47 = vmul.f32 %v6855_v15, %v10409_v61  ;;  %v7468_v3 = vld [vmem:[%s12207_s5 + $0x618] sm:$0xff]  ;;  %v7469_v15 = vld [vmem:[%s12207_s5 + $0x628] sm:$0xff] }
 0x33d   :  { %6847 = vst [vmem:[%s12207_s5 + $0x570] sm:$0xf] %v5547_v44  ;;  %6848 = vst.msk [vmem:[%s12207_s5 + $0x578] sm:$0xf] %vm164_vm2, %v5548_v25  ;;  %v5572_v12 = vmul.f32 %v6856_v17, %v10411_v29  ;;  %v5573_v13 = vadd.f32 %v5565_v37, %v10536_v45  ;;  %v5574_v53 = vadd.f32 %v5566_v16, %v10538_v20  ;;  %v12441_v44 = vld [vmem:[#allocation52_spill] sm:$0xff] }
 0x33e   :  { %v5575_v54 = vadd.f32 %v5567_v14, %v10536_v45  ;;  %v5576_v2 = vadd.f32 %v5568_v26, %v10538_v20  ;;  %v5577_v30 = vadd.f32 %v5569_v40, %v10536_v45  ;;  %v5578_v6 = vadd.f32 %v5570_v46, %v10538_v20  ;;  %v6903_v49 = vld [vmem:[%s12207_s5 + $0x670] sm:$0xf]  ;;  %v6904_v46 = vld [vmem:[%s12207_s5 + $0x678] sm:$0xf] }
 0x33f   :  { %v5579_v34 = vadd.f32 %v5571_v47, %v10536_v45  ;;  %v5580_v28 = vadd.f32 %v5572_v12, %v10538_v20  ;;  %6857 = vst [vmem:[%s12207_s5 + $0x580] sm:$0xff] %v5573_v13  ;;  %6858 = vst.msk [vmem:[%s12207_s5 + $0x588] sm:$0xff] %vm157_vm1, %v5574_v53  ;;  %v5597_v51 = vmul.f32 %v10409_v61, %v12436_v39  ;;  %v12442_v47 = vld [vmem:[#allocation49_spill] sm:$0xff]  ;;  %v7470_v13 = vld [vmem:[%s12207_s5 + $0x648] sm:$0xff] }
 0x340   :  { %6859 = vst [vmem:[%s12207_s5 + $0x590] sm:$0xff] %v5575_v54  ;;  %6860 = vst.msk [vmem:[%s12207_s5 + $0x598] sm:$0xff] %vm157_vm1, %v5576_v2  ;;  %v5598_v31 = vmul.f32 %v7464_v52, %v10411_v29  ;;  %v5599_v0 = vmul.f32 %v10409_v61, %v12437_v38  ;;  %v5600_v8 = vmul.f32 %v7465_v41, %v10411_v29  ;;  %v12443_v54 = vld [vmem:[#allocation51_spill] sm:$0xff] }
 0x341   :  { %6861 = vst [vmem:[%s12207_s5 + $0x5a0] sm:$0xff] %v5577_v30  ;;  %6862 = vst.msk [vmem:[%s12207_s5 + $0x5a8] sm:$0xff] %vm157_vm1, %v5578_v6  ;;  %v5601_v18 = vmul.f32 %v10409_v61, %v12438_v56  ;;  %v5602_v5 = vmul.f32 %v7466_v63, %v10411_v29  ;;  %v5603_v19 = vmul.f32 %v6871_v27, %v10409_v61  ;;  %v7471_v30 = vld [vmem:[%s12207_s5 + $0x658] sm:$0xff]  ;;  %v7472_v27 = vld [vmem:[%s12207_s5 + $0x668] sm:$0xff] }
 0x342   :  { %6863 = vst [vmem:[%s12207_s5 + $0x5b0] sm:$0xf] %v5579_v34  ;;  %6864 = vst.msk [vmem:[%s12207_s5 + $0x5b8] sm:$0xf] %vm164_vm2, %v5580_v28  ;;  %v5604_v60 = vmul.f32 %v6872_v21, %v10411_v29  ;;  %v5605_v42 = vadd.f32 %v5597_v51, %v10536_v45  ;;  %v5606_v1 = vadd.f32 %v5598_v31, %v10538_v20  ;;  %v12444_v34 = vld [vmem:[#allocation53_spill] sm:$0xff] }
 0x343   :  { %v5607_v62 = vadd.f32 %v5599_v0, %v10536_v45  ;;  %v5608_v10 = vadd.f32 %v5600_v8, %v10538_v20  ;;  %v5609_v55 = vadd.f32 %v5601_v18, %v10536_v45  ;;  %v5610_v22 = vadd.f32 %v5602_v5, %v10538_v20  ;;  %v6919_v63 = vld [vmem:[%s12207_s5 + $0x6b0] sm:$0xf]  ;;  %v6920_v5 = vld [vmem:[%s12207_s5 + $0x6b8] sm:$0xf] }
 0x344   :  { %v5611_v11 = vadd.f32 %v5603_v19, %v10536_v45  ;;  %v5612_v58 = vadd.f32 %v5604_v60, %v10538_v20  ;;  %6873 = vst [vmem:[%s12207_s5 + $0x5c0] sm:$0xff] %v5605_v42  ;;  %6874 = vst.msk [vmem:[%s12207_s5 + $0x5c8] sm:$0xff] %vm157_vm1, %v5606_v1  ;;  %v5629_v7 = vmul.f32 %v10409_v61, %v12439_v9  ;;  %v12445_v19 = vld [vmem:[#allocation54_spill] sm:$0xff]  ;;  %v7473_v42 = vld [vmem:[%s12207_s5 + $0x688] sm:$0xff] }
 0x345   :  { %6875 = vst [vmem:[%s12207_s5 + $0x5d0] sm:$0xff] %v5607_v62  ;;  %6876 = vst.msk [vmem:[%s12207_s5 + $0x5d8] sm:$0xff] %vm157_vm1, %v5608_v10  ;;  %v5630_v59 = vmul.f32 %v7467_v35, %v10411_v29  ;;  %v5631_v50 = vmul.f32 %v10409_v61, %v12440_v4  ;;  %v5632_v48 = vmul.f32 %v7468_v3, %v10411_v29  ;;  %v12446_v62 = vld [vmem:[#allocation56_spill] sm:$0xff] }
 0x346   :  { %6877 = vst [vmem:[%s12207_s5 + $0x5e0] sm:$0xff] %v5609_v55  ;;  %6878 = vst.msk [vmem:[%s12207_s5 + $0x5e8] sm:$0xff] %vm157_vm1, %v5610_v22  ;;  %v5633_v25 = vmul.f32 %v10409_v61, %v12441_v44  ;;  %v5634_v17 = vmul.f32 %v7469_v15, %v10411_v29  ;;  %v5635_v24 = vmul.f32 %v6887_v57, %v10409_v61  ;;  %v7474_v55 = vld [vmem:[%s12207_s5 + $0x698] sm:$0xff]  ;;  %v7475_v57 = vld [vmem:[%s12207_s5 + $0x6a8] sm:$0xff] }
 0x347   :  { %6879 = vst [vmem:[%s12207_s5 + $0x5f0] sm:$0xf] %v5611_v11  ;;  %6880 = vst.msk [vmem:[%s12207_s5 + $0x5f8] sm:$0xf] %vm164_vm2, %v5612_v58  ;;  %v5636_v37 = vmul.f32 %v6888_v23, %v10411_v29  ;;  %v5637_v43 = vadd.f32 %v5629_v7, %v10536_v45  ;;  %v5638_v16 = vadd.f32 %v5630_v59, %v10538_v20  ;;  %v12447_v11 = vld [vmem:[#allocation58_spill] sm:$0xff] }
 0x348   :  { %v5639_v32 = vadd.f32 %v5631_v50, %v10536_v45  ;;  %v5640_v14 = vadd.f32 %v5632_v48, %v10538_v20  ;;  %v5641_v36 = vadd.f32 %v5633_v25, %v10536_v45  ;;  %v5642_v26 = vadd.f32 %v5634_v17, %v10538_v20  ;;  %v6935_v15 = vld [vmem:[%s12207_s5 + $0x6f0] sm:$0xf]  ;;  %v6936_v17 = vld [vmem:[%s12207_s5 + $0x6f8] sm:$0xf] }
 0x349   :  { %v5643_v33 = vadd.f32 %v5635_v24, %v10536_v45  ;;  %v5644_v40 = vadd.f32 %v5636_v37, %v10538_v20  ;;  %6889 = vst [vmem:[%s12207_s5 + $0x600] sm:$0xff] %v5637_v43  ;;  %6890 = vst.msk [vmem:[%s12207_s5 + $0x608] sm:$0xff] %vm157_vm1, %v5638_v16  ;;  %v5661_v12 = vmul.f32 %v10409_v61, %v12442_v47  ;;  %v12448_v24 = vld [vmem:[#allocation55_spill] sm:$0xff] }
 0x34a   :  { %6891 = vst [vmem:[%s12207_s5 + $0x610] sm:$0xff] %v5639_v32  ;;  %6892 = vst.msk [vmem:[%s12207_s5 + $0x618] sm:$0xff] %vm157_vm1, %v5640_v14  ;;  %v5662_v53 = vmul.f32 %v7470_v13, %v10411_v29  ;;  %v5663_v2 = vmul.f32 %v10409_v61, %v12443_v54  ;;  %v5664_v6 = vmul.f32 %v7471_v30, %v10411_v29  ;;  %v7476_v43 = vld [vmem:[%s12207_s5 + $0x6c8] sm:$0xff]  ;;  %v12449_v32 = vld [vmem:[#allocation57_spill] sm:$0xff] }
 0x34b   :  { %6893 = vst [vmem:[%s12207_s5 + $0x620] sm:$0xff] %v5641_v36  ;;  %6894 = vst.msk [vmem:[%s12207_s5 + $0x628] sm:$0xff] %vm157_vm1, %v5642_v26  ;;  %v5665_v28 = vmul.f32 %v10409_v61, %v12444_v34  ;;  %v5666_v21 = vmul.f32 %v7472_v27, %v10411_v29  ;;  %v5667_v39 = vmul.f32 %v6903_v49, %v10409_v61  ;;  %v7477_v36 = vld [vmem:[%s12207_s5 + $0x6d8] sm:$0xff]  ;;  %v7478_v49 = vld [vmem:[%s12207_s5 + $0x6e8] sm:$0xff] }
 0x34c   :  { %6895 = vst [vmem:[%s12207_s5 + $0x630] sm:$0xf] %v5643_v33  ;;  %6896 = vst.msk [vmem:[%s12207_s5 + $0x638] sm:$0xf] %vm164_vm2, %v5644_v40  ;;  %v5668_v51 = vmul.f32 %v6904_v46, %v10411_v29  ;;  %v5669_v52 = vadd.f32 %v5661_v12, %v10536_v45  ;;  %v5670_v31 = vadd.f32 %v5662_v53, %v10538_v20  ;;  %v12450_v33 = vld [vmem:[#allocation59_spill] sm:$0xff] }
 0x34d   :  { %v5671_v38 = vadd.f32 %v5663_v2, %v10536_v45  ;;  %v5672_v0 = vadd.f32 %v5664_v6, %v10538_v20  ;;  %v5673_v41 = vadd.f32 %v5665_v28, %v10536_v45  ;;  %v5674_v8 = vadd.f32 %v5666_v21, %v10538_v20 }
 0x34e   :  { %v5675_v56 = vadd.f32 %v5667_v39, %v10536_v45  ;;  %v5676_v18 = vadd.f32 %v5668_v51, %v10538_v20  ;;  %6905 = vst [vmem:[%s12207_s5 + $0x640] sm:$0xff] %v5669_v52  ;;  %6906 = vst.msk [vmem:[%s12207_s5 + $0x648] sm:$0xff] %vm157_vm1, %v5670_v31  ;;  %v5693_v60 = vmul.f32 %v10409_v61, %v12445_v19 }
 0x34f   :  { %6907 = vst [vmem:[%s12207_s5 + $0x650] sm:$0xff] %v5671_v38  ;;  %6908 = vst.msk [vmem:[%s12207_s5 + $0x658] sm:$0xff] %vm157_vm1, %v5672_v0  ;;  %v5694_v1 = vmul.f32 %v7473_v42, %v10411_v29  ;;  %v5695_v10 = vmul.f32 %v10409_v61, %v12446_v62  ;;  %v5696_v22 = vmul.f32 %v7474_v55, %v10411_v29 }
 0x350   :  { %6909 = vst [vmem:[%s12207_s5 + $0x660] sm:$0xff] %v5673_v41  ;;  %6910 = vst.msk [vmem:[%s12207_s5 + $0x668] sm:$0xff] %vm157_vm1, %v5674_v8  ;;  %v5697_v58 = vmul.f32 %v10409_v61, %v12447_v11  ;;  %v5698_v23 = vmul.f32 %v7475_v57, %v10411_v29  ;;  %v5699_v9 = vmul.f32 %v6919_v63, %v10409_v61 }
 0x351   :  { %6911 = vst [vmem:[%s12207_s5 + $0x670] sm:$0xf] %v5675_v56  ;;  %6912 = vst.msk [vmem:[%s12207_s5 + $0x678] sm:$0xf] %vm164_vm2, %v5676_v18  ;;  %v5700_v7 = vmul.f32 %v6920_v5, %v10411_v29  ;;  %v5701_v35 = vadd.f32 %v5693_v60, %v10536_v45  ;;  %v5702_v59 = vadd.f32 %v5694_v1, %v10538_v20 }
 0x352   :  { %v5703_v4 = vadd.f32 %v5695_v10, %v10536_v45  ;;  %v5704_v50 = vadd.f32 %v5696_v22, %v10538_v20  ;;  %v5705_v3 = vadd.f32 %v5697_v58, %v10536_v45  ;;  %v5706_v48 = vadd.f32 %v5698_v23, %v10538_v20 }
 0x353   :  { %v5707_v44 = vadd.f32 %v5699_v9, %v10536_v45  ;;  %v5708_v25 = vadd.f32 %v5700_v7, %v10538_v20  ;;  %6921 = vst [vmem:[%s12207_s5 + $0x680] sm:$0xff] %v5701_v35  ;;  %6922 = vst.msk [vmem:[%s12207_s5 + $0x688] sm:$0xff] %vm157_vm1, %v5702_v59  ;;  %v5725_v37 = vmul.f32 %v10409_v61, %v12448_v24 }
 0x354   :  { %6923 = vst [vmem:[%s12207_s5 + $0x690] sm:$0xff] %v5703_v4  ;;  %6924 = vst.msk [vmem:[%s12207_s5 + $0x698] sm:$0xff] %vm157_vm1, %v5704_v50  ;;  %v5726_v16 = vmul.f32 %v7476_v43, %v10411_v29  ;;  %v5727_v14 = vmul.f32 %v10409_v61, %v12449_v32  ;;  %v5728_v26 = vmul.f32 %v7477_v36, %v10411_v29 }
 0x355   :  { %6925 = vst [vmem:[%s12207_s5 + $0x6a0] sm:$0xff] %v5705_v3  ;;  %6926 = vst.msk [vmem:[%s12207_s5 + $0x6a8] sm:$0xff] %vm157_vm1, %v5706_v48  ;;  %v5729_v40 = vmul.f32 %v10409_v61, %v12450_v33  ;;  %v5730_v46 = vmul.f32 %v7478_v49, %v10411_v29  ;;  %v5731_v47 = vmul.f32 %v6935_v15, %v10409_v61 }
 0x356   :  { %6927 = vst [vmem:[%s12207_s5 + $0x6b0] sm:$0xf] %v5707_v44  ;;  %6928 = vst.msk [vmem:[%s12207_s5 + $0x6b8] sm:$0xf] %vm164_vm2, %v5708_v25  ;;  %v5732_v12 = vmul.f32 %v6936_v17, %v10411_v29  ;;  %v5733_v13 = vadd.f32 %v5725_v37, %v10536_v45  ;;  %v5734_v53 = vadd.f32 %v5726_v16, %v10538_v20 }
 0x357   :  { %v5735_v54 = vadd.f32 %v5727_v14, %v10536_v45  ;;  %v5736_v2 = vadd.f32 %v5728_v26, %v10538_v20  ;;  %v5737_v30 = vadd.f32 %v5729_v40, %v10536_v45  ;;  %v5738_v6 = vadd.f32 %v5730_v46, %v10538_v20 }
 0x358   :  { %v5739_v34 = vadd.f32 %v5731_v47, %v10536_v45  ;;  %v5740_v28 = vadd.f32 %v5732_v12, %v10538_v20  ;;  %6937 = vst [vmem:[%s12207_s5 + $0x6c0] sm:$0xff] %v5733_v13  ;;  %6938 = vst.msk [vmem:[%s12207_s5 + $0x6c8] sm:$0xff] %vm157_vm1, %v5734_v53 }
 0x359   :  { %6939 = vst [vmem:[%s12207_s5 + $0x6d0] sm:$0xff] %v5735_v54  ;;  %6940 = vst.msk [vmem:[%s12207_s5 + $0x6d8] sm:$0xff] %vm157_vm1, %v5736_v2 }
 0x35a   :  { %6941 = vst [vmem:[%s12207_s5 + $0x6e0] sm:$0xff] %v5737_v30  ;;  %6942 = vst.msk [vmem:[%s12207_s5 + $0x6e8] sm:$0xff] %vm157_vm1, %v5738_v6 }
 0x35b   :  { %6943 = vst [vmem:[%s12207_s5 + $0x6f0] sm:$0xf] %v5739_v34  ;;  %6944 = vst.msk [vmem:[%s12207_s5 + $0x6f8] sm:$0xf] %vm164_vm2, %v5740_v28 }

</bundles_post_ra>
